<compile_context>
chip_gen: v7x
topology: tpu7x:2x2x1
jax: 0.10.0
libtpu: 0.0.40
codegen_flags: <defaults>
</compile_context>

<pallas_src>
import functools
import math

import jax
import jax.numpy as jnp
import numpy as np
from jax.experimental import pallas as pl


# ------------------------- configuration -------------------------
CFG = dict(
    image_size=16,
    tactile_size=16,
    patch_size=8,
    num_stack=2,        # num_frames
    frameskip=1,
    num_classes=10,
    dim=32,
    depth=2,
    heads=4,
    mlp_ratio=4,
    channels=3,
    ablation="vf_vg_t",
)

LN_EPS = 1e-5                       # PyTorch LayerNorm default
MATMUL_DTYPE = jnp.bfloat16         # MXU operand dtype (accumulation stays f32)
NEG_INF = -1e30


# ------------------------- in-kernel helpers -------------------------
def _layernorm(x, g, b):
    mu = jnp.mean(x, axis=-1, keepdims=True)
    xc = x - mu
    var = jnp.mean(xc * xc, axis=-1, keepdims=True)
    return xc * jax.lax.rsqrt(var + LN_EPS) * g + b


def _erf(x):
    # Abramowitz & Stegun 7.1.26 rational approximation (|abs err| < 1.5e-7),
    # keeps PyTorch's exact-erf GELU semantics to f32 noise level with only an
    # exp (EUP) and one exact f32 divide.
    p = 0.3275911
    a1, a2, a3, a4, a5 = (0.254829592, -0.284496736, 1.421413741,
                          -1.453152027, 1.061405429)
    sgn = jnp.where(x >= 0.0, 1.0, -1.0)
    ax = jnp.abs(x)
    t = 1.0 / (1.0 + p * ax)
    poly = ((((a5 * t + a4) * t + a3) * t + a2) * t + a1) * t
    return sgn * (1.0 - poly * jnp.exp(-ax * ax))


def _gelu(x):
    return 0.5 * x * (1.0 + _erf(x * 0.7071067811865476))


# ------------------------- fused patch-embedding kernel -------------------------
def _patch_embed_kernel(xv_ref, wv_ref, bv_ref, xt_ref, wt_ref, bt_ref,
                        yv_ref, yt_ref):
    yv_ref[...] = jnp.dot(xv_ref[...].astype(MATMUL_DTYPE), wv_ref[...],
                          preferred_element_type=jnp.float32) + bv_ref[...]
    yt_ref[...] = jnp.dot(xt_ref[...].astype(MATMUL_DTYPE), wt_ref[...],
                          preferred_element_type=jnp.float32) + bt_ref[...]


def patch_embed_pair(xv, wv, bv, xt, wt, bt):
    """One gridless pallas_call for both patch-embedding linears."""
    Mv, _ = xv.shape
    Mt = xt.shape[0]
    N = wv.shape[1]
    return pl.pallas_call(
        _patch_embed_kernel,
        out_shape=(jax.ShapeDtypeStruct((Mv, N), jnp.float32),
                   jax.ShapeDtypeStruct((Mt, N), jnp.float32)),
    )(xv, wv, bv, xt, wt, bt)


# ------------------------- fused whole-transformer kernel -------------------------
_BLOCK_KEYS = ("tn1_g", "tn1_b", "t_wq", "t_wk", "t_wv", "t_pw", "t_pb",
               "tfc_w", "tfc_b",
               "n1_g", "n1_b", "s_wq", "s_wk", "s_wv", "s_pw", "s_pb",
               "n2_g", "n2_b", "fc1_w", "fc1_b", "fc2_w", "fc2_b")
_HEAD_KEYS = ("head_w1", "head_c1", "head_w2", "head_c2")


def _transformer_kernel(*refs, depth, B, T, P, num_heads):
    nb = len(_BLOCK_KEYS)
    cls_ref, pat_ref, mask_t_ref, mask_s_ref, hmask_t_ref, hmask_s_ref = refs[:6]
    blk = dict(zip(_BLOCK_KEYS, refs[6:6 + nb]))
    hw1_ref, hc1_ref, hw2_ref, hc2_ref = refs[6 + nb:6 + nb + 4]
    out_ref = refs[-1]

    D = cls_ref.shape[-1]
    Dh = D // num_heads
    scale = Dh ** -0.5
    TP = T * P
    Nt = B * TP                     # temporal / patch token count
    BT = B * T

    mask_t = mask_t_ref[...]        # [H*Nt, Nt] additive (0 / -1e30)
    mask_s = mask_s_ref[...]        # [H*Ns, Ns]
    hmask_t = hmask_t_ref[...]      # [H*Nt, D]  per-head lane selector (0/1)
    hmask_s = hmask_s_ref[...]      # [H*Ns, D]

    def attention(x, gamma, beta, wq, wk, wv, pw, pb, mask_add, hmask):
        """LN -> multi-head attention (all heads via ONE row-stacked
        block-diagonal score/PV matmul pair) -> output projection.
        x: [N, D] f32, groups encoded in mask_add."""
        N = x.shape[0]
        xn = _layernorm(x, gamma, beta).astype(MATMUL_DTYPE)      # cast once
        qf = jnp.dot(xn, wq, preferred_element_type=jnp.float32)
        k = jnp.dot(xn, wk, preferred_element_type=jnp.float32).astype(MATMUL_DTYPE)
        v = jnp.dot(xn, wv, preferred_element_type=jnp.float32).astype(MATMUL_DTYPE)
        # Heads stacked along rows: block h of q_bd keeps only head h's lanes,
        # so a single K=32 contraction yields every head's scores.
        q_bd = (jnp.concatenate([qf] * num_heads, axis=0) * hmask
                ).astype(MATMUL_DTYPE)                            # [H*N, D]
        s = jax.lax.dot_general(q_bd, k, (((1,), (1,)), ((), ())),
                                preferred_element_type=jnp.float32)  # [H*N, N]
        s = s * scale + mask_add
        s = s - jnp.max(s, axis=-1, keepdims=True)
        p = jnp.exp(s)                                            # masked -> 0
        p = p / jnp.sum(p, axis=-1, keepdims=True)                # exact softmax
        o = jnp.dot(p.astype(MATMUL_DTYPE), v,
                    preferred_element_type=jnp.float32)           # [H*N, D]
        o = o * hmask                                             # keep head-h lanes
        o = sum(o[h * N:(h + 1) * N] for h in range(num_heads))   # [N, D] concat-heads
        return jnp.dot(o.astype(MATMUL_DTYPE), pw,
                       preferred_element_type=jnp.float32) + pb

    x_cls = cls_ref[...]            # [B, D]
    x_pat = pat_ref[...]            # [B*T*P, D], rows ordered (b, t, p)

    for d in range(depth):          # static unroll over depth
        # ---- temporal attention + temporal_fc, residual on patch tokens ----
        res_t = attention(x_pat, blk["tn1_g"][d], blk["tn1_b"][d],
                          blk["t_wq"][d], blk["t_wk"][d], blk["t_wv"][d],
                          blk["t_pw"][d], blk["t_pb"][d], mask_t, hmask_t)
        res_t = jnp.dot(res_t.astype(MATMUL_DTYPE), blk["tfc_w"][d],
                        preferred_element_type=jnp.float32) + blk["tfc_b"][d]
        x_pat = x_pat + res_t

        # ---- spatial attention over [cls replicated per (t,b) ; patches] ----
        cls_rep = jnp.concatenate([x_cls] * T, axis=0)            # rows (t, b)
        xs = jnp.concatenate([cls_rep, x_pat], axis=0)            # [BT + Nt, D]
        res_s = attention(xs, blk["n1_g"][d], blk["n1_b"][d],
                          blk["s_wq"][d], blk["s_wk"][d], blk["s_wv"][d],
                          blk["s_pw"][d], blk["s_pb"][d], mask_s, hmask_s)
        res_cls = res_s[:BT]
        res_pat = res_s[BT:]
        cls_mean = sum(res_cls[t * B:(t + 1) * B] for t in range(T)) * (1.0 / T)
        x_cls = x_cls + cls_mean                                  # init_cls + mean_t
        x_pat = x_pat + res_pat

        # ---- MLP: LN + fc1 + GELU + fc2 + residual on all tokens ----
        xm = jnp.concatenate([x_cls, x_pat], axis=0)              # [B + Nt, D]
        h = _layernorm(xm, blk["n2_g"][d], blk["n2_b"][d]).astype(MATMUL_DTYPE)
        h = jnp.dot(h, blk["fc1_w"][d],
                    preferred_element_type=jnp.float32) + blk["fc1_b"][d]
        h = _gelu(h)
        h = jnp.dot(h.astype(MATMUL_DTYPE), blk["fc2_w"][d],
                    preferred_element_type=jnp.float32) + blk["fc2_b"][d]
        xm = xm + h
        x_cls = xm[:B]
        x_pat = xm[B:]

    # ---- classification heads on the cls token (LN affine folded into w1) ----
    mu = jnp.mean(x_cls, axis=-1, keepdims=True)
    xc = x_cls - mu
    var = jnp.mean(xc * xc, axis=-1, keepdims=True)
    xhat = xc * jax.lax.rsqrt(var + LN_EPS)
    hh = jnp.dot(xhat.astype(MATMUL_DTYPE), hw1_ref[...],
                 preferred_element_type=jnp.float32) + hc1_ref[...]
    out_ref[...] = jnp.dot(hh.astype(MATMUL_DTYPE), hw2_ref[...],
                           preferred_element_type=jnp.float32) + hc2_ref[...]


def fused_transformer(cls0, patches, consts, blocks, head, *,
                      B, T, P, num_heads, depth):
    mask_t, mask_s, hmask_t, hmask_s = consts
    args = [cls0, patches, mask_t, mask_s, hmask_t, hmask_s]
    args += [blocks[k] for k in _BLOCK_KEYS]
    args += [head[k] for k in _HEAD_KEYS]
    n_out = head["head_w2"].shape[1]
    kern = functools.partial(_transformer_kernel, depth=depth, B=B, T=T, P=P,
                             num_heads=num_heads)
    # Gridless call: one invocation, every operand VMEM-resident (<1 MiB total);
    # the model is launch/latency-bound, so a single launch is the right shape.
    return pl.pallas_call(
        kern,
        out_shape=jax.ShapeDtypeStruct((B, n_out), jnp.float32),
    )(*args)


# ------------------------- host-side constants -------------------------
def _build_attn_constants(B, T, P, D, H):
    """Block-diagonal attention masks for the batch-flattened token layouts
    (no physical transposes anywhere):
      temporal rows: (b, t, p);  same group iff same (b, p)
      spatial  rows: [cls in (t, b) order ; patches in (b, t, p) order];
                     same group iff same (b, t)
    Plus the per-head lane-selector masks used by the row-stacked head trick."""
    TP = T * P
    Nt = B * TP
    Ns = B * T + Nt
    Dh = D // H

    r = np.arange(Nt)
    same = (((r[:, None] // TP) == (r[None, :] // TP))
            & ((r[:, None] % P) == (r[None, :] % P)))
    mask_t = np.where(same, 0.0, NEG_INF).astype(np.float32)
    mask_t = np.tile(mask_t, (H, 1))                       # [H*Nt, Nt]

    grp = np.empty(Ns, np.int64)
    i_cls = np.arange(B * T)
    grp[:B * T] = (i_cls % B) * T + (i_cls // B)           # cls rows: (t, b) order
    j = np.arange(Nt)
    grp[B * T:] = (j // TP) * T + ((j % TP) // P)          # patch rows: (b, t, p)
    mask_s = np.where(grp[:, None] == grp[None, :], 0.0, NEG_INF).astype(np.float32)
    mask_s = np.tile(mask_s, (H, 1))                       # [H*Ns, Ns]

    def head_mask(N):
        hm = np.zeros((H * N, D), np.float32)
        for h in range(H):
            hm[h * N:(h + 1) * N, h * Dh:(h + 1) * Dh] = 1.0
        return hm

    return (jnp.asarray(mask_t), jnp.asarray(mask_s),
            jnp.asarray(head_mask(Nt)), jnp.asarray(head_mask(Ns)))


# ------------------------- model glue (plain JAX) -------------------------
def extract_patches(x, p):
    # Rearrange 'q l c (h p1) (w p2) -> q l (h w) (p1 p2 c)'
    Q, L, C, H, W = x.shape
    h, w = H // p, W // p
    x = x.reshape(Q, L, C, h, p, w, p)
    x = x.transpose(0, 1, 3, 5, 4, 6, 2)           # q l h w p1 p2 c
    return x.reshape(Q, L, h * w, p * p * C)


def model_forward(params, inputs, start):
    vf_inp, vg_inp, t_inp, audio_g, audio_h = inputs
    del audio_g, audio_h
    # TODO(synk): audio branches ('ah'/'ag': torchaudio MelSpectrogram / Conv1d
    # Audio_Encoder) are not implemented; ablation='vf_vg_t' never exercises them.
    dim = CFG["dim"]
    heads = CFG["heads"]
    p_sz = CFG["patch_size"]
    B, L = vg_inp.shape[0], vg_inp.shape[1]
    C, H, W = vf_inp.shape[2:]

    # ---- patch embedding: vf+vg share patch_v_w, tactile rides in same call ----
    vboth = jnp.stack([vf_inp, vg_inp], axis=0).reshape(2 * B, L, C, H, W)
    vtok = extract_patches(vboth, p_sz)                     # [2B, L, Pv, pd]
    ttok = extract_patches(t_inp, p_sz)                     # [B, L, Pt, pd]
    Pv, pd = vtok.shape[2], vtok.shape[3]
    Pt = ttok.shape[2]
    v_emb, t_emb = patch_embed_pair(
        vtok.reshape(-1, pd), params["patch_v_w"], params["patch_v_b"],
        ttok.reshape(-1, pd), params["patch_t_w"], params["patch_t_b"])
    v_emb = v_emb.reshape(2, B, L, Pv, dim)
    t_emb = t_emb.reshape(B, L, Pt, dim)

    vf = v_emb[0] + params["pos_embed_v"] + params["modal_enc_vf"]
    vg = v_emb[1] + params["pos_embed_v"] + params["modal_enc_vg"]
    tt = t_emb + params["pos_embed_t"] + params["modal_enc_t"]
    embeds = jnp.concatenate([vf, vg, tt], axis=2)          # [B, L, P, dim]

    # TimeEncoding (learn_time_embedding=False): sinusoidal pe sliced per sample.
    offset = CFG["num_stack"] * CFG["frameskip"]
    pe = params["pe"]

    def add_pe(xi, si):
        pe_sl = jax.lax.dynamic_slice_in_dim(pe, si + offset, L, axis=0)
        return xi + pe_sl[:, None, :]

    embeds = jax.vmap(add_pe)(embeds, start)

    P = embeds.shape[2]
    patches = embeds.reshape(B * L * P, dim)                # rows ordered (b, t, p)
    cls0 = jnp.broadcast_to(params["cls_token"].reshape(1, dim), (B, dim))

    consts = _build_attn_constants(B, L, P, dim, heads)
    out = fused_transformer(cls0, patches, consts, params["blocks"],
                            params["head"], B=B, T=L, P=P, num_heads=heads,
                            depth=CFG["depth"])             # [B, num_classes + 6]
    nc = CFG["num_classes"]
    return out[:, :nc], out[:, nc:], None


# ------------------------- deterministic parameter init -------------------------
def init_params(key):
    dim = CFG["dim"]
    mlp_hidden = CFG["mlp_ratio"] * dim
    patch_dim = CFG["channels"] * CFG["patch_size"] ** 2
    num_patches_v = (CFG["image_size"] // CFG["patch_size"]) ** 2
    num_patches_t = (CFG["tactile_size"] // CFG["patch_size"]) ** 2

    keys = iter(jax.random.split(key, 256))

    def nrm(shape, scale=0.02):
        return jax.random.normal(next(keys), shape, jnp.float32) * scale

    zeros = lambda n: jnp.zeros((n,), jnp.float32)
    ones = lambda n: jnp.ones((n,), jnp.float32)

    p = {
        "patch_v_w": nrm((patch_dim, dim)), "patch_v_b": zeros(dim),
        "patch_t_w": nrm((patch_dim, dim)), "patch_t_b": zeros(dim),
        "pos_embed_v": nrm((1, 1, num_patches_v, dim), 1.0),
        "pos_embed_t": nrm((1, 1, num_patches_t, dim), 1.0),
        "modal_enc_vf": nrm((1, 1, 1, dim), 1.0),
        "modal_enc_vg": nrm((1, 1, 1, dim), 1.0),
        "modal_enc_t": nrm((1, 1, 1, dim), 1.0),
        "cls_token": nrm((1, 1, dim), 1.0),
    }

    def attn_params():   # qkv_bias=False -> no qkv bias parameter at all
        return dict(qkv_w=nrm((dim, 3 * dim)),
                    proj_w=nrm((dim, dim)), proj_b=zeros(dim))

    blocks = []
    for _ in range(CFG["depth"]):
        blocks.append(dict(
            n1_g=ones(dim), n1_b=zeros(dim),
            tn1_g=ones(dim), tn1_b=zeros(dim),
            n2_g=ones(dim), n2_b=zeros(dim),
            attn=attn_params(), tattn=attn_params(),
            tfc_w=nrm((dim, dim)), tfc_b=zeros(dim),
            fc1_w=nrm((dim, mlp_hidden)), fc1_b=zeros(mlp_hidden),
            fc2_w=nrm((mlp_hidden, dim)), fc2_b=zeros(dim),
        ))
    p["blocks"] = blocks

    def head_params(out_dim):
        return dict(ln_g=ones(dim), ln_b=zeros(dim),
                    fc1_w=nrm((dim, mlp_hidden)), fc1_b=zeros(mlp_hidden),
                    fc2_w=nrm((mlp_hidden, out_dim)), fc2_b=zeros(out_dim))

    p["action_head"] = head_params(CFG["num_classes"])
    p["xyz_head"] = head_params(6)

    # Sinusoidal PE table from TimeEncoding (max_len=1000).
    max_len = 1000
    position = jnp.arange(max_len, dtype=jnp.float32)[:, None]
    div_term = jnp.exp(jnp.arange(0, dim, 2, dtype=jnp.float32)
                       * (-math.log(10000.0) / dim))
    pe = jnp.zeros((max_len, dim), jnp.float32)
    pe = pe.at[:, 0::2].set(jnp.sin(position * div_term))
    pe = pe.at[:, 1::2].set(jnp.cos(position * div_term))
    p["pe"] = pe
    return p


def pack_params(p):
    """Repack raw (PyTorch-layout) params for the fused kernels:
       - matmul weights cast to bf16 (MXU operands; accumulation stays f32),
       - qkv split into wq/wk/wv (avoids in-kernel lane slicing),
       - per-block params stacked along a leading depth axis (one ref each),
       - biases / LN affine kept f32 as [1, N] (or [depth, 1, N]) rows,
       - both classification heads folded (LN affine absorbed into fc1, fc2s
         block-diagonally concatenated) so they run as a kernel epilogue."""
    dim = CFG["dim"]
    bf = lambda w: w.astype(MATMUL_DTYPE)
    row = lambda v: v.reshape(1, -1)

    q = {
        "patch_v_w": bf(p["patch_v_w"]), "patch_v_b": row(p["patch_v_b"]),
        "patch_t_w": bf(p["patch_t_w"]), "patch_t_b": row(p["patch_t_b"]),
        "pos_embed_v": p["pos_embed_v"], "pos_embed_t": p["pos_embed_t"],
        "modal_enc_vf": p["modal_enc_vf"], "modal_enc_vg": p["modal_enc_vg"],
        "modal_enc_t": p["modal_enc_t"],
        "cls_token": p["cls_token"], "pe": p["pe"],
    }

    def stack(fn):
        return jnp.stack([fn(bp) for bp in p["blocks"]], axis=0)

    q["blocks"] = {
        "tn1_g": stack(lambda bp: row(bp["tn1_g"])),
        "tn1_b": stack(lambda bp: row(bp["tn1_b"])),
        "t_wq": stack(lambda bp: bf(bp["tattn"]["qkv_w"][:, :dim])),
        "t_wk": stack(lambda bp: bf(bp["tattn"]["qkv_w"][:, dim:2 * dim])),
        "t_wv": stack(lambda bp: bf(bp["tattn"]["qkv_w"][:, 2 * dim:])),
        "t_pw": stack(lambda bp: bf(bp["tattn"]["proj_w"])),
        "t_pb": stack(lambda bp: row(bp["tattn"]["proj_b"])),
        "tfc_w": stack(lambda bp: bf(bp["tfc_w"])),
        "tfc_b": stack(lambda bp: row(bp["tfc_b"])),
        "n1_g": stack(lambda bp: row(bp["n1_g"])),
        "n1_b": stack(lambda bp: row(bp["n1_b"])),
        "s_wq": stack(lambda bp: bf(bp["attn"]["qkv_w"][:, :dim])),
        "s_wk": stack(lambda bp: bf(bp["attn"]["qkv_w"][:, dim:2 * dim])),
        "s_wv": stack(lambda bp: bf(bp["attn"]["qkv_w"][:, 2 * dim:])),
        "s_pw": stack(lambda bp: bf(bp["attn"]["proj_w"])),
        "s_pb": stack(lambda bp: row(bp["attn"]["proj_b"])),
        "n2_g": stack(lambda bp: row(bp["n2_g"])),
        "n2_b": stack(lambda bp: row(bp["n2_b"])),
        "fc1_w": stack(lambda bp: bf(bp["fc1_w"])),
        "fc1_b": stack(lambda bp: row(bp["fc1_b"])),
        "fc2_w": stack(lambda bp: bf(bp["fc2_w"])),
        "fc2_b": stack(lambda bp: row(bp["fc2_b"])),
    }

    def fold(hp):
        w1 = hp["ln_g"][:, None] * hp["fc1_w"]          # LN scale folded into fc1
        c1 = hp["ln_b"] @ hp["fc1_w"] + hp["fc1_b"]     # LN shift folded into bias
        return w1, c1, hp["fc2_w"], hp["fc2_b"]

    w1a, c1a, w2a, b2a = fold(p["action_head"])
    w1x, c1x, w2x, b2x = fold(p["xyz_head"])
    h1 = w1a.shape[1]
    na, nx = w2a.shape[1], w2x.shape[1]
    w2cat = jnp.zeros((2 * h1, na + nx), jnp.float32)
    w2cat = w2cat.at[:h1, :na].set(w2a)
    w2cat = w2cat.at[h1:, na:].set(w2x)
    q["head"] = {
        "head_w1": bf(jnp.concatenate([w1a, w1x], axis=1)),     # [dim, 2*hidden]
        "head_c1": row(jnp.concatenate([c1a, c1x])),            # [1, 2*hidden]
        "head_w2": bf(w2cat),                                   # [2*hidden, nc+6]
        "head_c2": row(jnp.concatenate([b2a, b2x])),            # [1, nc+6]
    }
    return q


# ------------------------- main -------------------------
if __name__ == "__main__":
    key = jax.random.PRNGKey(0)
    pkey, k1, k2, k3, k4, k5 = jax.random.split(key, 6)
    params = pack_params(init_params(pkey))

    B, L = 2, CFG["num_stack"]
    C, H = CFG["channels"], CFG["image_size"]
    Ht = CFG["tactile_size"]

    vf_inp = jax.random.normal(k1, (B, L, C, H, H), jnp.float32)
    vg_inp = jax.random.normal(k2, (B, L, C, H, H), jnp.float32)
    t_inp = jax.random.normal(k3, (B, L, C, Ht, Ht), jnp.float32)
    audio_g = jax.random.normal(k4, (B, 1, 160), jnp.float32)   # unused (ablation)
    audio_h = jax.random.normal(k5, (B, 1, 160), jnp.float32)   # unused (ablation)
    start = jnp.array([0, 3], dtype=jnp.int32)

    fwd = jax.jit(model_forward)
    action, xyz, _ = fwd(params, (vf_inp, vg_inp, t_inp, audio_g, audio_h), start)
    jax.block_until_ready((action, xyz))

    assert action.shape == (B, CFG["num_classes"]), action.shape
    assert xyz.shape == (B, 6), xyz.shape
    assert jnp.all(jnp.isfinite(action)) and jnp.all(jnp.isfinite(xyz))
    print("KERNEL_OK")
</pallas_src>

<mosaic_0001>
module attributes {stable_mosaic.version = 11 : i64} {
  func.func @_patch_embed_kernel(%arg0: memref<32x192xf32, #tpu.memory_space<vmem>>, %arg1: memref<192x32xbf16, #tpu.memory_space<vmem>>, %arg2: memref<1x32xf32, #tpu.memory_space<vmem>>, %arg3: memref<16x192xf32, #tpu.memory_space<vmem>>, %arg4: memref<192x32xbf16, #tpu.memory_space<vmem>>, %arg5: memref<1x32xf32, #tpu.memory_space<vmem>>, %arg6: memref<32x32xf32, #tpu.memory_space<vmem>>, %arg7: memref<16x32xf32, #tpu.memory_space<vmem>>) attributes {dimension_semantics = [], scalar_prefetch = 0 : i64, scratch_operands = 0 : i64, tpu.core_type = #tpu.core_type<tc>} {
    %c0 = arith.constant 0 : index
    %c0_0 = arith.constant 0 : index
    %0 = vector.load %arg0[%c0, %c0_0] : memref<32x192xf32, #tpu.memory_space<vmem>>, vector<32x192xf32>
    %1 = arith.truncf %0 : vector<32x192xf32> to vector<32x192xbf16>
    %c0_1 = arith.constant 0 : index
    %c0_2 = arith.constant 0 : index
    %2 = vector.load %arg1[%c0_1, %c0_2] : memref<192x32xbf16, #tpu.memory_space<vmem>>, vector<192x32xbf16>
    %cst = arith.constant dense<0.000000e+00> : vector<32x32xf32>
    %3 = tpu.matmul %1, %2, %cst {dimension_numbers = #tpu.dot_dimension_numbers<[1], [0], [0], [1], [0, 0, 1, 1], [], []>} : vector<32x192xbf16>, vector<192x32xbf16>, vector<32x32xf32> -> vector<32x32xf32>
    %c0_3 = arith.constant 0 : index
    %c0_4 = arith.constant 0 : index
    %4 = vector.load %arg2[%c0_3, %c0_4] : memref<1x32xf32, #tpu.memory_space<vmem>>, vector<1x32xf32>
    %5 = vector.broadcast %4 : vector<1x32xf32> to vector<32x32xf32>
    %6 = arith.addf %3, %5 : vector<32x32xf32>
    %c0_5 = arith.constant 0 : index
    %c0_6 = arith.constant 0 : index
    %7 = vector.load %arg6[%c0_5, %c0_6] : memref<32x32xf32, #tpu.memory_space<vmem>>, vector<32x32xf32>
    tpu.vector_store %arg6[%c0_5, %c0_6], %6 {strides = array<i32>} : memref<32x32xf32, #tpu.memory_space<vmem>>, vector<32x32xf32>,
    %c0_7 = arith.constant 0 : index
    %c0_8 = arith.constant 0 : index
    %8 = vector.load %arg3[%c0_7, %c0_8] : memref<16x192xf32, #tpu.memory_space<vmem>>, vector<16x192xf32>
    %9 = arith.truncf %8 : vector<16x192xf32> to vector<16x192xbf16>
    %c0_9 = arith.constant 0 : index
    %c0_10 = arith.constant 0 : index
    %10 = vector.load %arg4[%c0_9, %c0_10] : memref<192x32xbf16, #tpu.memory_space<vmem>>, vector<192x32xbf16>
    %cst_11 = arith.constant dense<0.000000e+00> : vector<16x32xf32>
    %11 = tpu.matmul %9, %10, %cst_11 {dimension_numbers = #tpu.dot_dimension_numbers<[1], [0], [0], [1], [0, 0, 1, 1], [], []>} : vector<16x192xbf16>, vector<192x32xbf16>, vector<16x32xf32> -> vector<16x32xf32>
    %c0_12 = arith.constant 0 : index
    %c0_13 = arith.constant 0 : index
    %12 = vector.load %arg5[%c0_12, %c0_13] : memref<1x32xf32, #tpu.memory_space<vmem>>, vector<1x32xf32>
    %13 = vector.broadcast %12 : vector<1x32xf32> to vector<16x32xf32>
    %14 = arith.addf %11, %13 : vector<16x32xf32>
    %c0_14 = arith.constant 0 : index
    %c0_15 = arith.constant 0 : index
    %15 = vector.load %arg7[%c0_14, %c0_15] : memref<16x32xf32, #tpu.memory_space<vmem>>, vector<16x32xf32>
    tpu.vector_store %arg7[%c0_14, %c0_15], %14 {strides = array<i32>} : memref<16x32xf32, #tpu.memory_space<vmem>>, vector<16x32xf32>,
    return
  }
}

module attributes {stable_mosaic.version = 11 : i64} {
  func.func @_transformer_kernel(%arg0: memref<2x32xf32, #tpu.memory_space<vmem>>, %arg1: memref<48x32xf32, #tpu.memory_space<vmem>>, %arg2: memref<192x48xf32, #tpu.memory_space<vmem>>, %arg3: memref<208x52xf32, #tpu.memory_space<vmem>>, %arg4: memref<192x32xf32, #tpu.memory_space<vmem>>, %arg5: memref<208x32xf32, #tpu.memory_space<vmem>>, %arg6: memref<2x1x32xf32, #tpu.memory_space<vmem>>, %arg7: memref<2x1x32xf32, #tpu.memory_space<vmem>>, %arg8: memref<2x32x32xbf16, #tpu.memory_space<vmem>>, %arg9: memref<2x32x32xbf16, #tpu.memory_space<vmem>>, %arg10: memref<2x32x32xbf16, #tpu.memory_space<vmem>>, %arg11: memref<2x32x32xbf16, #tpu.memory_space<vmem>>, %arg12: memref<2x1x32xf32, #tpu.memory_space<vmem>>, %arg13: memref<2x32x32xbf16, #tpu.memory_space<vmem>>, %arg14: memref<2x1x32xf32, #tpu.memory_space<vmem>>, %arg15: memref<2x1x32xf32, #tpu.memory_space<vmem>>, %arg16: memref<2x1x32xf32, #tpu.memory_space<vmem>>, %arg17: memref<2x32x32xbf16, #tpu.memory_space<vmem>>, %arg18: memref<2x32x32xbf16, #tpu.memory_space<vmem>>, %arg19: memref<2x32x32xbf16, #tpu.memory_space<vmem>>, %arg20: memref<2x32x32xbf16, #tpu.memory_space<vmem>>, %arg21: memref<2x1x32xf32, #tpu.memory_space<vmem>>, %arg22: memref<2x1x32xf32, #tpu.memory_space<vmem>>, %arg23: memref<2x1x32xf32, #tpu.memory_space<vmem>>, %arg24: memref<2x32x128xbf16, #tpu.memory_space<vmem>>, %arg25: memref<2x1x128xf32, #tpu.memory_space<vmem>>, %arg26: memref<2x128x32xbf16, #tpu.memory_space<vmem>>, %arg27: memref<2x1x32xf32, #tpu.memory_space<vmem>>, %arg28: memref<32x256xbf16, #tpu.memory_space<vmem>>, %arg29: memref<1x256xf32, #tpu.memory_space<vmem>>, %arg30: memref<256x16xbf16, #tpu.memory_space<vmem>>, %arg31: memref<1x16xf32, #tpu.memory_space<vmem>>, %arg32: memref<2x16xf32, #tpu.memory_space<vmem>>) attributes {dimension_semantics = [], scalar_prefetch = 0 : i64, scratch_operands = 0 : i64, tpu.core_type = #tpu.core_type<tc>} {
    %c0 = arith.constant 0 : index
    %c0_0 = arith.constant 0 : index
    %0 = vector.load %arg2[%c0, %c0_0] : memref<192x48xf32, #tpu.memory_space<vmem>>, vector<192x48xf32>
    %c0_1 = arith.constant 0 : index
    %c0_2 = arith.constant 0 : index
    %1 = vector.load %arg3[%c0_1, %c0_2] : memref<208x52xf32, #tpu.memory_space<vmem>>, vector<208x52xf32>
    %c0_3 = arith.constant 0 : index
    %c0_4 = arith.constant 0 : index
    %2 = vector.load %arg4[%c0_3, %c0_4] : memref<192x32xf32, #tpu.memory_space<vmem>>, vector<192x32xf32>
    %c0_5 = arith.constant 0 : index
    %c0_6 = arith.constant 0 : index
    %3 = vector.load %arg5[%c0_5, %c0_6] : memref<208x32xf32, #tpu.memory_space<vmem>>, vector<208x32xf32>
    %c0_7 = arith.constant 0 : index
    %c0_8 = arith.constant 0 : index
    %4 = vector.load %arg0[%c0_7, %c0_8] : memref<2x32xf32, #tpu.memory_space<vmem>>, vector<2x32xf32>
    %c0_9 = arith.constant 0 : index
    %c0_10 = arith.constant 0 : index
    %5 = vector.load %arg1[%c0_9, %c0_10] : memref<48x32xf32, #tpu.memory_space<vmem>>, vector<48x32xf32>
    %c0_11 = arith.constant 0 : index
    %c0_12 = arith.constant 0 : index
    %c0_13 = arith.constant 0 : index
    %6 = vector.load %arg6[%c0_11, %c0_12, %c0_13] : memref<2x1x32xf32, #tpu.memory_space<vmem>>, vector<1x1x32xf32>
    %7 = vector.shape_cast %6 : vector<1x1x32xf32> to vector<1x32xf32>
    %c0_14 = arith.constant 0 : index
    %c0_15 = arith.constant 0 : index
    %c0_16 = arith.constant 0 : index
    %8 = vector.load %arg7[%c0_14, %c0_15, %c0_16] : memref<2x1x32xf32, #tpu.memory_space<vmem>>, vector<1x1x32xf32>
    %9 = vector.shape_cast %8 : vector<1x1x32xf32> to vector<1x32xf32>
    %c0_17 = arith.constant 0 : index
    %c0_18 = arith.constant 0 : index
    %c0_19 = arith.constant 0 : index
    %10 = vector.load %arg8[%c0_17, %c0_18, %c0_19] : memref<2x32x32xbf16, #tpu.memory_space<vmem>>, vector<1x32x32xbf16>
    %11 = vector.shape_cast %10 : vector<1x32x32xbf16> to vector<32x32xbf16>
    %c0_20 = arith.constant 0 : index
    %c0_21 = arith.constant 0 : index
    %c0_22 = arith.constant 0 : index
    %12 = vector.load %arg9[%c0_20, %c0_21, %c0_22] : memref<2x32x32xbf16, #tpu.memory_space<vmem>>, vector<1x32x32xbf16>
    %13 = vector.shape_cast %12 : vector<1x32x32xbf16> to vector<32x32xbf16>
    %c0_23 = arith.constant 0 : index
    %c0_24 = arith.constant 0 : index
    %c0_25 = arith.constant 0 : index
    %14 = vector.load %arg10[%c0_23, %c0_24, %c0_25] : memref<2x32x32xbf16, #tpu.memory_space<vmem>>, vector<1x32x32xbf16>
    %15 = vector.shape_cast %14 : vector<1x32x32xbf16> to vector<32x32xbf16>
    %c0_26 = arith.constant 0 : index
    %c0_27 = arith.constant 0 : index
    %c0_28 = arith.constant 0 : index
    %16 = vector.load %arg11[%c0_26, %c0_27, %c0_28] : memref<2x32x32xbf16, #tpu.memory_space<vmem>>, vector<1x32x32xbf16>
    %17 = vector.shape_cast %16 : vector<1x32x32xbf16> to vector<32x32xbf16>
    %c0_29 = arith.constant 0 : index
    %c0_30 = arith.constant 0 : index
    %c0_31 = arith.constant 0 : index
    %18 = vector.load %arg12[%c0_29, %c0_30, %c0_31] : memref<2x1x32xf32, #tpu.memory_space<vmem>>, vector<1x1x32xf32>
    %19 = vector.shape_cast %18 : vector<1x1x32xf32> to vector<1x32xf32>
    %cst = arith.constant dense<0.000000e+00> : vector<48xf32>
    %20 = vector.multi_reduction <add>, %5, %cst [1] : vector<48x32xf32> to vector<48xf32>
    %21 = vector.shape_cast %20 : vector<48xf32> to vector<48x1xf32>
    %cst_32 = arith.constant 3.200000e+01 : f32
    %22 = vector.broadcast %cst_32 : f32 to vector<48x1xf32>
    %23 = arith.divf %21, %22 : vector<48x1xf32>
    %24 = vector.broadcast %23 : vector<48x1xf32> to vector<48x32xf32>
    %25 = arith.subf %5, %24 : vector<48x32xf32>
    %26 = arith.mulf %25, %25 : vector<48x32xf32>
    %cst_33 = arith.constant dense<0.000000e+00> : vector<48xf32>
    %27 = vector.multi_reduction <add>, %26, %cst_33 [1] : vector<48x32xf32> to vector<48xf32>
    %28 = vector.shape_cast %27 : vector<48xf32> to vector<48x1xf32>
    %cst_34 = arith.constant 3.200000e+01 : f32
    %29 = vector.broadcast %cst_34 : f32 to vector<48x1xf32>
    %30 = arith.divf %28, %29 : vector<48x1xf32>
    %cst_35 = arith.constant 9.99999974E-6 : f32
    %31 = vector.broadcast %cst_35 : f32 to vector<48x1xf32>
    %32 = arith.addf %30, %31 : vector<48x1xf32>
    %33 = math.rsqrt %32 : vector<48x1xf32>
    %34 = vector.broadcast %33 : vector<48x1xf32> to vector<48x32xf32>
    %35 = arith.mulf %25, %34 : vector<48x32xf32>
    %36 = vector.broadcast %7 : vector<1x32xf32> to vector<48x32xf32>
    %37 = arith.mulf %35, %36 : vector<48x32xf32>
    %38 = vector.broadcast %9 : vector<1x32xf32> to vector<48x32xf32>
    %39 = arith.addf %37, %38 : vector<48x32xf32>
    %40 = arith.truncf %39 : vector<48x32xf32> to vector<48x32xbf16>
    %cst_36 = arith.constant dense<0.000000e+00> : vector<48x32xf32>
    %41 = tpu.matmul %40, %11, %cst_36 {dimension_numbers = #tpu.dot_dimension_numbers<[1], [0], [0], [1], [0, 0, 1, 1], [], []>} : vector<48x32xbf16>, vector<32x32xbf16>, vector<48x32xf32> -> vector<48x32xf32>
    %cst_37 = arith.constant dense<0.000000e+00> : vector<48x32xf32>
    %42 = tpu.matmul %40, %13, %cst_37 {dimension_numbers = #tpu.dot_dimension_numbers<[1], [0], [0], [1], [0, 0, 1, 1], [], []>} : vector<48x32xbf16>, vector<32x32xbf16>, vector<48x32xf32> -> vector<48x32xf32>
    %43 = arith.truncf %42 : vector<48x32xf32> to vector<48x32xbf16>
    %cst_38 = arith.constant dense<0.000000e+00> : vector<48x32xf32>
    %44 = tpu.matmul %40, %15, %cst_38 {dimension_numbers = #tpu.dot_dimension_numbers<[1], [0], [0], [1], [0, 0, 1, 1], [], []>} : vector<48x32xbf16>, vector<32x32xbf16>, vector<48x32xf32> -> vector<48x32xf32>
    %45 = arith.truncf %44 : vector<48x32xf32> to vector<48x32xbf16>
    %46 = tpu.concatenate %41, %41, %41, %41 in 0 : vector<48x32xf32>, vector<48x32xf32>, vector<48x32xf32>, vector<48x32xf32> -> vector<192x32xf32>
    %47 = arith.mulf %46, %2 : vector<192x32xf32>
    %48 = arith.truncf %47 : vector<192x32xf32> to vector<192x32xbf16>
    %cst_39 = arith.constant dense<0.000000e+00> : vector<192x48xf32>
    %49 = tpu.matmul %48, %43, %cst_39 {dimension_numbers = #tpu.dot_dimension_numbers<[1], [1], [0], [0], [0, 0, 1, 0], [], []>} : vector<192x32xbf16>, vector<48x32xbf16>, vector<192x48xf32> -> vector<192x48xf32>
    %cst_40 = arith.constant 0.353553385 : f32
    %50 = vector.broadcast %cst_40 : f32 to vector<192x48xf32>
    %51 = arith.mulf %49, %50 : vector<192x48xf32>
    %52 = arith.addf %51, %0 : vector<192x48xf32>
    %cst_41 = arith.constant dense<0xFF800000> : vector<192xf32>
    %53 = vector.multi_reduction <maximumf>, %52, %cst_41 [1] : vector<192x48xf32> to vector<192xf32>
    %54 = vector.shape_cast %53 : vector<192xf32> to vector<192x1xf32>
    %55 = vector.broadcast %54 : vector<192x1xf32> to vector<192x48xf32>
    %56 = arith.subf %52, %55 : vector<192x48xf32>
    %57 = math.exp %56 : vector<192x48xf32>
    %cst_42 = arith.constant dense<0.000000e+00> : vector<192xf32>
    %58 = vector.multi_reduction <add>, %57, %cst_42 [1] : vector<192x48xf32> to vector<192xf32>
    %59 = vector.shape_cast %58 : vector<192xf32> to vector<192x1xf32>
    %60 = vector.broadcast %59 : vector<192x1xf32> to vector<192x48xf32>
    %61 = arith.divf %57, %60 : vector<192x48xf32>
    %62 = arith.truncf %61 : vector<192x48xf32> to vector<192x48xbf16>
    %cst_43 = arith.constant dense<0.000000e+00> : vector<192x32xf32>
    %63 = tpu.matmul %62, %45, %cst_43 {dimension_numbers = #tpu.dot_dimension_numbers<[1], [0], [0], [1], [0, 0, 1, 1], [], []>} : vector<192x48xbf16>, vector<48x32xbf16>, vector<192x32xf32> -> vector<192x32xf32>
    %64 = arith.mulf %63, %2 : vector<192x32xf32>
    %65 = vector.extract_strided_slice %64 {offsets = [0, 0], sizes = [48, 32], strides = [1, 1]} : vector<192x32xf32> to vector<48x32xf32>
    %cst_44 = arith.constant 0.000000e+00 : f32
    %66 = vector.broadcast %cst_44 : f32 to vector<48x32xf32>
    %67 = arith.addf %66, %65 : vector<48x32xf32>
    %68 = vector.extract_strided_slice %64 {offsets = [48, 0], sizes = [48, 32], strides = [1, 1]} : vector<192x32xf32> to vector<48x32xf32>
    %69 = arith.addf %67, %68 : vector<48x32xf32>
    %70 = vector.extract_strided_slice %64 {offsets = [96, 0], sizes = [48, 32], strides = [1, 1]} : vector<192x32xf32> to vector<48x32xf32>
    %71 = arith.addf %69, %70 : vector<48x32xf32>
    %72 = vector.extract_strided_slice %64 {offsets = [144, 0], sizes = [48, 32], strides = [1, 1]} : vector<192x32xf32> to vector<48x32xf32>
    %73 = arith.addf %71, %72 : vector<48x32xf32>
    %74 = arith.truncf %73 : vector<48x32xf32> to vector<48x32xbf16>
    %cst_45 = arith.constant dense<0.000000e+00> : vector<48x32xf32>
    %75 = tpu.matmul %74, %17, %cst_45 {dimension_numbers = #tpu.dot_dimension_numbers<[1], [0], [0], [1], [0, 0, 1, 1], [], []>} : vector<48x32xbf16>, vector<32x32xbf16>, vector<48x32xf32> -> vector<48x32xf32>
    %76 = vector.broadcast %19 : vector<1x32xf32> to vector<48x32xf32>
    %77 = arith.addf %75, %76 : vector<48x32xf32>
    %78 = arith.truncf %77 : vector<48x32xf32> to vector<48x32xbf16>
    %c0_46 = arith.constant 0 : index
    %c0_47 = arith.constant 0 : index
    %c0_48 = arith.constant 0 : index
    %79 = vector.load %arg13[%c0_46, %c0_47, %c0_48] : memref<2x32x32xbf16, #tpu.memory_space<vmem>>, vector<1x32x32xbf16>
    %80 = vector.shape_cast %79 : vector<1x32x32xbf16> to vector<32x32xbf16>
    %cst_49 = arith.constant dense<0.000000e+00> : vector<48x32xf32>
    %81 = tpu.matmul %78, %80, %cst_49 {dimension_numbers = #tpu.dot_dimension_numbers<[1], [0], [0], [1], [0, 0, 1, 1], [], []>} : vector<48x32xbf16>, vector<32x32xbf16>, vector<48x32xf32> -> vector<48x32xf32>
    %c0_50 = arith.constant 0 : index
    %c0_51 = arith.constant 0 : index
    %c0_52 = arith.constant 0 : index
    %82 = vector.load %arg14[%c0_50, %c0_51, %c0_52] : memref<2x1x32xf32, #tpu.memory_space<vmem>>, vector<1x1x32xf32>
    %83 = vector.shape_cast %82 : vector<1x1x32xf32> to vector<1x32xf32>
    %84 = vector.broadcast %83 : vector<1x32xf32> to vector<48x32xf32>
    %85 = arith.addf %81, %84 : vector<48x32xf32>
    %86 = arith.addf %5, %85 : vector<48x32xf32>
    %87 = tpu.concatenate %4, %4 in 0 : vector<2x32xf32>, vector<2x32xf32> -> vector<4x32xf32>
    %88 = tpu.concatenate %87, %86 in 0 : vector<4x32xf32>, vector<48x32xf32> -> vector<52x32xf32>
    %c0_53 = arith.constant 0 : index
    %c0_54 = arith.constant 0 : index
    %c0_55 = arith.constant 0 : index
    %89 = vector.load %arg15[%c0_53, %c0_54, %c0_55] : memref<2x1x32xf32, #tpu.memory_space<vmem>>, vector<1x1x32xf32>
    %90 = vector.shape_cast %89 : vector<1x1x32xf32> to vector<1x32xf32>
    %c0_56 = arith.constant 0 : index
    %c0_57 = arith.constant 0 : index
    %c0_58 = arith.constant 0 : index
    %91 = vector.load %arg16[%c0_56, %c0_57, %c0_58] : memref<2x1x32xf32, #tpu.memory_space<vmem>>, vector<1x1x32xf32>
    %92 = vector.shape_cast %91 : vector<1x1x32xf32> to vector<1x32xf32>
    %c0_59 = arith.constant 0 : index
    %c0_60 = arith.constant 0 : index
    %c0_61 = arith.constant 0 : index
    %93 = vector.load %arg17[%c0_59, %c0_60, %c0_61] : memref<2x32x32xbf16, #tpu.memory_space<vmem>>, vector<1x32x32xbf16>
    %94 = vector.shape_cast %93 : vector<1x32x32xbf16> to vector<32x32xbf16>
    %c0_62 = arith.constant 0 : index
    %c0_63 = arith.constant 0 : index
    %c0_64 = arith.constant 0 : index
    %95 = vector.load %arg18[%c0_62, %c0_63, %c0_64] : memref<2x32x32xbf16, #tpu.memory_space<vmem>>, vector<1x32x32xbf16>
    %96 = vector.shape_cast %95 : vector<1x32x32xbf16> to vector<32x32xbf16>
    %c0_65 = arith.constant 0 : index
    %c0_66 = arith.constant 0 : index
    %c0_67 = arith.constant 0 : index
    %97 = vector.load %arg19[%c0_65, %c0_66, %c0_67] : memref<2x32x32xbf16, #tpu.memory_space<vmem>>, vector<1x32x32xbf16>
    %98 = vector.shape_cast %97 : vector<1x32x32xbf16> to vector<32x32xbf16>
    %c0_68 = arith.constant 0 : index
    %c0_69 = arith.constant 0 : index
    %c0_70 = arith.constant 0 : index
    %99 = vector.load %arg20[%c0_68, %c0_69, %c0_70] : memref<2x32x32xbf16, #tpu.memory_space<vmem>>, vector<1x32x32xbf16>
    %100 = vector.shape_cast %99 : vector<1x32x32xbf16> to vector<32x32xbf16>
    %c0_71 = arith.constant 0 : index
    %c0_72 = arith.constant 0 : index
    %c0_73 = arith.constant 0 : index
    %101 = vector.load %arg21[%c0_71, %c0_72, %c0_73] : memref<2x1x32xf32, #tpu.memory_space<vmem>>, vector<1x1x32xf32>
    %102 = vector.shape_cast %101 : vector<1x1x32xf32> to vector<1x32xf32>
    %cst_74 = arith.constant dense<0.000000e+00> : vector<52xf32>
    %103 = vector.multi_reduction <add>, %88, %cst_74 [1] : vector<52x32xf32> to vector<52xf32>
    %104 = vector.shape_cast %103 : vector<52xf32> to vector<52x1xf32>
    %cst_75 = arith.constant 3.200000e+01 : f32
    %105 = vector.broadcast %cst_75 : f32 to vector<52x1xf32>
    %106 = arith.divf %104, %105 : vector<52x1xf32>
    %107 = vector.broadcast %106 : vector<52x1xf32> to vector<52x32xf32>
    %108 = arith.subf %88, %107 : vector<52x32xf32>
    %109 = arith.mulf %108, %108 : vector<52x32xf32>
    %cst_76 = arith.constant dense<0.000000e+00> : vector<52xf32>
    %110 = vector.multi_reduction <add>, %109, %cst_76 [1] : vector<52x32xf32> to vector<52xf32>
    %111 = vector.shape_cast %110 : vector<52xf32> to vector<52x1xf32>
    %cst_77 = arith.constant 3.200000e+01 : f32
    %112 = vector.broadcast %cst_77 : f32 to vector<52x1xf32>
    %113 = arith.divf %111, %112 : vector<52x1xf32>
    %cst_78 = arith.constant 9.99999974E-6 : f32
    %114 = vector.broadcast %cst_78 : f32 to vector<52x1xf32>
    %115 = arith.addf %113, %114 : vector<52x1xf32>
    %116 = math.rsqrt %115 : vector<52x1xf32>
    %117 = vector.broadcast %116 : vector<52x1xf32> to vector<52x32xf32>
    %118 = arith.mulf %108, %117 : vector<52x32xf32>
    %119 = vector.broadcast %90 : vector<1x32xf32> to vector<52x32xf32>
    %120 = arith.mulf %118, %119 : vector<52x32xf32>
    %121 = vector.broadcast %92 : vector<1x32xf32> to vector<52x32xf32>
    %122 = arith.addf %120, %121 : vector<52x32xf32>
    %123 = arith.truncf %122 : vector<52x32xf32> to vector<52x32xbf16>
    %cst_79 = arith.constant dense<0.000000e+00> : vector<52x32xf32>
    %124 = tpu.matmul %123, %94, %cst_79 {dimension_numbers = #tpu.dot_dimension_numbers<[1], [0], [0], [1], [0, 0, 1, 1], [], []>} : vector<52x32xbf16>, vector<32x32xbf16>, vector<52x32xf32> -> vector<52x32xf32>
    %cst_80 = arith.constant dense<0.000000e+00> : vector<52x32xf32>
    %125 = tpu.matmul %123, %96, %cst_80 {dimension_numbers = #tpu.dot_dimension_numbers<[1], [0], [0], [1], [0, 0, 1, 1], [], []>} : vector<52x32xbf16>, vector<32x32xbf16>, vector<52x32xf32> -> vector<52x32xf32>
    %126 = arith.truncf %125 : vector<52x32xf32> to vector<52x32xbf16>
    %cst_81 = arith.constant dense<0.000000e+00> : vector<52x32xf32>
    %127 = tpu.matmul %123, %98, %cst_81 {dimension_numbers = #tpu.dot_dimension_numbers<[1], [0], [0], [1], [0, 0, 1, 1], [], []>} : vector<52x32xbf16>, vector<32x32xbf16>, vector<52x32xf32> -> vector<52x32xf32>
    %128 = arith.truncf %127 : vector<52x32xf32> to vector<52x32xbf16>
    %129 = tpu.concatenate %124, %124, %124, %124 in 0 : vector<52x32xf32>, vector<52x32xf32>, vector<52x32xf32>, vector<52x32xf32> -> vector<208x32xf32>
    %130 = arith.mulf %129, %3 : vector<208x32xf32>
    %131 = arith.truncf %130 : vector<208x32xf32> to vector<208x32xbf16>
    %cst_82 = arith.constant dense<0.000000e+00> : vector<208x52xf32>
    %132 = tpu.matmul %131, %126, %cst_82 {dimension_numbers = #tpu.dot_dimension_numbers<[1], [1], [0], [0], [0, 0, 1, 0], [], []>} : vector<208x32xbf16>, vector<52x32xbf16>, vector<208x52xf32> -> vector<208x52xf32>
    %cst_83 = arith.constant 0.353553385 : f32
    %133 = vector.broadcast %cst_83 : f32 to vector<208x52xf32>
    %134 = arith.mulf %132, %133 : vector<208x52xf32>
    %135 = arith.addf %134, %1 : vector<208x52xf32>
    %cst_84 = arith.constant dense<0xFF800000> : vector<208xf32>
    %136 = vector.multi_reduction <maximumf>, %135, %cst_84 [1] : vector<208x52xf32> to vector<208xf32>
    %137 = vector.shape_cast %136 : vector<208xf32> to vector<208x1xf32>
    %138 = vector.broadcast %137 : vector<208x1xf32> to vector<208x52xf32>
    %139 = arith.subf %135, %138 : vector<208x52xf32>
    %140 = math.exp %139 : vector<208x52xf32>
    %cst_85 = arith.constant dense<0.000000e+00> : vector<208xf32>
    %141 = vector.multi_reduction <add>, %140, %cst_85 [1] : vector<208x52xf32> to vector<208xf32>
    %142 = vector.shape_cast %141 : vector<208xf32> to vector<208x1xf32>
    %143 = vector.broadcast %142 : vector<208x1xf32> to vector<208x52xf32>
    %144 = arith.divf %140, %143 : vector<208x52xf32>
    %145 = arith.truncf %144 : vector<208x52xf32> to vector<208x52xbf16>
    %cst_86 = arith.constant dense<0.000000e+00> : vector<208x32xf32>
    %146 = tpu.matmul %145, %128, %cst_86 {dimension_numbers = #tpu.dot_dimension_numbers<[1], [0], [0], [1], [0, 0, 1, 1], [], []>} : vector<208x52xbf16>, vector<52x32xbf16>, vector<208x32xf32> -> vector<208x32xf32>
    %147 = arith.mulf %146, %3 : vector<208x32xf32>
    %148 = vector.extract_strided_slice %147 {offsets = [0, 0], sizes = [52, 32], strides = [1, 1]} : vector<208x32xf32> to vector<52x32xf32>
    %cst_87 = arith.constant 0.000000e+00 : f32
    %149 = vector.broadcast %cst_87 : f32 to vector<52x32xf32>
    %150 = arith.addf %149, %148 : vector<52x32xf32>
    %151 = vector.extract_strided_slice %147 {offsets = [52, 0], sizes = [52, 32], strides = [1, 1]} : vector<208x32xf32> to vector<52x32xf32>
    %152 = arith.addf %150, %151 : vector<52x32xf32>
    %153 = vector.extract_strided_slice %147 {offsets = [104, 0], sizes = [52, 32], strides = [1, 1]} : vector<208x32xf32> to vector<52x32xf32>
    %154 = arith.addf %152, %153 : vector<52x32xf32>
    %155 = vector.extract_strided_slice %147 {offsets = [156, 0], sizes = [52, 32], strides = [1, 1]} : vector<208x32xf32> to vector<52x32xf32>
    %156 = arith.addf %154, %155 : vector<52x32xf32>
    %157 = arith.truncf %156 : vector<52x32xf32> to vector<52x32xbf16>
    %cst_88 = arith.constant dense<0.000000e+00> : vector<52x32xf32>
    %158 = tpu.matmul %157, %100, %cst_88 {dimension_numbers = #tpu.dot_dimension_numbers<[1], [0], [0], [1], [0, 0, 1, 1], [], []>} : vector<52x32xbf16>, vector<32x32xbf16>, vector<52x32xf32> -> vector<52x32xf32>
    %159 = vector.broadcast %102 : vector<1x32xf32> to vector<52x32xf32>
    %160 = arith.addf %158, %159 : vector<52x32xf32>
    %161 = vector.extract_strided_slice %160 {offsets = [0, 0], sizes = [4, 32], strides = [1, 1]} : vector<52x32xf32> to vector<4x32xf32>
    %162 = vector.extract_strided_slice %160 {offsets = [4, 0], sizes = [48, 32], strides = [1, 1]} : vector<52x32xf32> to vector<48x32xf32>
    %163 = vector.extract_strided_slice %161 {offsets = [0, 0], sizes = [2, 32], strides = [1, 1]} : vector<4x32xf32> to vector<2x32xf32>
    %cst_89 = arith.constant 0.000000e+00 : f32
    %164 = vector.broadcast %cst_89 : f32 to vector<2x32xf32>
    %165 = arith.addf %164, %163 : vector<2x32xf32>
    %166 = vector.extract_strided_slice %161 {offsets = [2, 0], sizes = [2, 32], strides = [1, 1]} : vector<4x32xf32> to vector<2x32xf32>
    %167 = arith.addf %165, %166 : vector<2x32xf32>
    %cst_90 = arith.constant 5.000000e-01 : f32
    %168 = vector.broadcast %cst_90 : f32 to vector<2x32xf32>
    %169 = arith.mulf %167, %168 : vector<2x32xf32>
    %170 = arith.addf %4, %169 : vector<2x32xf32>
    %171 = arith.addf %86, %162 : vector<48x32xf32>
    %172 = tpu.concatenate %170, %171 in 0 : vector<2x32xf32>, vector<48x32xf32> -> vector<50x32xf32>
    %c0_91 = arith.constant 0 : index
    %c0_92 = arith.constant 0 : index
    %c0_93 = arith.constant 0 : index
    %173 = vector.load %arg22[%c0_91, %c0_92, %c0_93] : memref<2x1x32xf32, #tpu.memory_space<vmem>>, vector<1x1x32xf32>
    %174 = vector.shape_cast %173 : vector<1x1x32xf32> to vector<1x32xf32>
    %c0_94 = arith.constant 0 : index
    %c0_95 = arith.constant 0 : index
    %c0_96 = arith.constant 0 : index
    %175 = vector.load %arg23[%c0_94, %c0_95, %c0_96] : memref<2x1x32xf32, #tpu.memory_space<vmem>>, vector<1x1x32xf32>
    %176 = vector.shape_cast %175 : vector<1x1x32xf32> to vector<1x32xf32>
    %cst_97 = arith.constant dense<0.000000e+00> : vector<50xf32>
    %177 = vector.multi_reduction <add>, %172, %cst_97 [1] : vector<50x32xf32> to vector<50xf32>
    %178 = vector.shape_cast %177 : vector<50xf32> to vector<50x1xf32>
    %cst_98 = arith.constant 3.200000e+01 : f32
    %179 = vector.broadcast %cst_98 : f32 to vector<50x1xf32>
    %180 = arith.divf %178, %179 : vector<50x1xf32>
    %181 = vector.broadcast %180 : vector<50x1xf32> to vector<50x32xf32>
    %182 = arith.subf %172, %181 : vector<50x32xf32>
    %183 = arith.mulf %182, %182 : vector<50x32xf32>
    %cst_99 = arith.constant dense<0.000000e+00> : vector<50xf32>
    %184 = vector.multi_reduction <add>, %183, %cst_99 [1] : vector<50x32xf32> to vector<50xf32>
    %185 = vector.shape_cast %184 : vector<50xf32> to vector<50x1xf32>
    %cst_100 = arith.constant 3.200000e+01 : f32
    %186 = vector.broadcast %cst_100 : f32 to vector<50x1xf32>
    %187 = arith.divf %185, %186 : vector<50x1xf32>
    %cst_101 = arith.constant 9.99999974E-6 : f32
    %188 = vector.broadcast %cst_101 : f32 to vector<50x1xf32>
    %189 = arith.addf %187, %188 : vector<50x1xf32>
    %190 = math.rsqrt %189 : vector<50x1xf32>
    %191 = vector.broadcast %190 : vector<50x1xf32> to vector<50x32xf32>
    %192 = arith.mulf %182, %191 : vector<50x32xf32>
    %193 = vector.broadcast %174 : vector<1x32xf32> to vector<50x32xf32>
    %194 = arith.mulf %192, %193 : vector<50x32xf32>
    %195 = vector.broadcast %176 : vector<1x32xf32> to vector<50x32xf32>
    %196 = arith.addf %194, %195 : vector<50x32xf32>
    %197 = arith.truncf %196 : vector<50x32xf32> to vector<50x32xbf16>
    %c0_102 = arith.constant 0 : index
    %c0_103 = arith.constant 0 : index
    %c0_104 = arith.constant 0 : index
    %198 = vector.load %arg24[%c0_102, %c0_103, %c0_104] : memref<2x32x128xbf16, #tpu.memory_space<vmem>>, vector<1x32x128xbf16>
    %199 = vector.shape_cast %198 : vector<1x32x128xbf16> to vector<32x128xbf16>
    %cst_105 = arith.constant dense<0.000000e+00> : vector<50x128xf32>
    %200 = tpu.matmul %197, %199, %cst_105 {dimension_numbers = #tpu.dot_dimension_numbers<[1], [0], [0], [1], [0, 0, 1, 1], [], []>} : vector<50x32xbf16>, vector<32x128xbf16>, vector<50x128xf32> -> vector<50x128xf32>
    %c0_106 = arith.constant 0 : index
    %c0_107 = arith.constant 0 : index
    %c0_108 = arith.constant 0 : index
    %201 = vector.load %arg25[%c0_106, %c0_107, %c0_108] : memref<2x1x128xf32, #tpu.memory_space<vmem>>, vector<1x1x128xf32>
    %202 = vector.shape_cast %201 : vector<1x1x128xf32> to vector<1x128xf32>
    %203 = vector.broadcast %202 : vector<1x128xf32> to vector<50x128xf32>
    %204 = arith.addf %200, %203 : vector<50x128xf32>
    %cst_109 = arith.constant 5.000000e-01 : f32
    %205 = vector.broadcast %cst_109 : f32 to vector<50x128xf32>
    %206 = arith.mulf %205, %204 : vector<50x128xf32>
    %cst_110 = arith.constant 0.707106769 : f32
    %207 = vector.broadcast %cst_110 : f32 to vector<50x128xf32>
    %208 = arith.mulf %204, %207 : vector<50x128xf32>
    %cst_111 = arith.constant 0.000000e+00 : f32
    %209 = vector.broadcast %cst_111 : f32 to vector<50x128xf32>
    %210 = arith.cmpf oge, %208, %209 : vector<50x128xf32>
    %cst_112 = arith.constant 1.000000e+00 : f32
    %cst_113 = arith.constant -1.000000e+00 : f32
    %211 = vector.broadcast %cst_112 : f32 to vector<50x128xf32>
    %212 = vector.broadcast %cst_113 : f32 to vector<50x128xf32>
    %213 = arith.select %210, %211, %212 : vector<50x128xi1>, vector<50x128xf32>
    %214 = math.absf %208 : vector<50x128xf32>
    %cst_114 = arith.constant 0.327591091 : f32
    %215 = vector.broadcast %cst_114 : f32 to vector<50x128xf32>
    %216 = arith.mulf %215, %214 : vector<50x128xf32>
    %cst_115 = arith.constant 1.000000e+00 : f32
    %217 = vector.broadcast %cst_115 : f32 to vector<50x128xf32>
    %218 = arith.addf %217, %216 : vector<50x128xf32>
    %cst_116 = arith.constant 1.000000e+00 : f32
    %219 = vector.broadcast %cst_116 : f32 to vector<50x128xf32>
    %220 = arith.divf %219, %218 : vector<50x128xf32>
    %cst_117 = arith.constant 1.06140542 : f32
    %221 = vector.broadcast %cst_117 : f32 to vector<50x128xf32>
    %222 = arith.mulf %221, %220 : vector<50x128xf32>
    %cst_118 = arith.constant -1.45315206 : f32
    %223 = vector.broadcast %cst_118 : f32 to vector<50x128xf32>
    %224 = arith.addf %222, %223 : vector<50x128xf32>
    %225 = arith.mulf %224, %220 : vector<50x128xf32>
    %cst_119 = arith.constant 1.42141378 : f32
    %226 = vector.broadcast %cst_119 : f32 to vector<50x128xf32>
    %227 = arith.addf %225, %226 : vector<50x128xf32>
    %228 = arith.mulf %227, %220 : vector<50x128xf32>
    %cst_120 = arith.constant -0.284496725 : f32
    %229 = vector.broadcast %cst_120 : f32 to vector<50x128xf32>
    %230 = arith.addf %228, %229 : vector<50x128xf32>
    %231 = arith.mulf %230, %220 : vector<50x128xf32>
    %cst_121 = arith.constant 0.254829586 : f32
    %232 = vector.broadcast %cst_121 : f32 to vector<50x128xf32>
    %233 = arith.addf %231, %232 : vector<50x128xf32>
    %234 = arith.mulf %233, %220 : vector<50x128xf32>
    %cst_122 = arith.constant 0.000000e+00 : f32
    %235 = vector.broadcast %cst_122 : f32 to vector<50x128xf32>
    %236 = arith.subf %235, %214 : vector<50x128xf32>
    %237 = arith.mulf %236, %214 : vector<50x128xf32>
    %238 = math.exp %237 : vector<50x128xf32>
    %239 = arith.mulf %234, %238 : vector<50x128xf32>
    %cst_123 = arith.constant 1.000000e+00 : f32
    %240 = vector.broadcast %cst_123 : f32 to vector<50x128xf32>
    %241 = arith.subf %240, %239 : vector<50x128xf32>
    %242 = arith.mulf %213, %241 : vector<50x128xf32>
    %cst_124 = arith.constant 1.000000e+00 : f32
    %243 = vector.broadcast %cst_124 : f32 to vector<50x128xf32>
    %244 = arith.addf %243, %242 : vector<50x128xf32>
    %245 = arith.mulf %206, %244 : vector<50x128xf32>
    %246 = arith.truncf %245 : vector<50x128xf32> to vector<50x128xbf16>
    %c0_125 = arith.constant 0 : index
    %c0_126 = arith.constant 0 : index
    %c0_127 = arith.constant 0 : index
    %247 = vector.load %arg26[%c0_125, %c0_126, %c0_127] : memref<2x128x32xbf16, #tpu.memory_space<vmem>>, vector<1x128x32xbf16>
    %248 = vector.shape_cast %247 : vector<1x128x32xbf16> to vector<128x32xbf16>
    %cst_128 = arith.constant dense<0.000000e+00> : vector<50x32xf32>
    %249 = tpu.matmul %246, %248, %cst_128 {dimension_numbers = #tpu.dot_dimension_numbers<[1], [0], [0], [1], [0, 0, 1, 1], [], []>} : vector<50x128xbf16>, vector<128x32xbf16>, vector<50x32xf32> -> vector<50x32xf32>
    %c0_129 = arith.constant 0 : index
    %c0_130 = arith.constant 0 : index
    %c0_131 = arith.constant 0 : index
    %250 = vector.load %arg27[%c0_129, %c0_130, %c0_131] : memref<2x1x32xf32, #tpu.memory_space<vmem>>, vector<1x1x32xf32>
    %251 = vector.shape_cast %250 : vector<1x1x32xf32> to vector<1x32xf32>
    %252 = vector.broadcast %251 : vector<1x32xf32> to vector<50x32xf32>
    %253 = arith.addf %249, %252 : vector<50x32xf32>
    %254 = arith.addf %172, %253 : vector<50x32xf32>
    %255 = vector.extract_strided_slice %254 {offsets = [0, 0], sizes = [2, 32], strides = [1, 1]} : vector<50x32xf32> to vector<2x32xf32>
    %256 = vector.extract_strided_slice %254 {offsets = [2, 0], sizes = [48, 32], strides = [1, 1]} : vector<50x32xf32> to vector<48x32xf32>
    %c1 = arith.constant 1 : index
    %c0_132 = arith.constant 0 : index
    %c0_133 = arith.constant 0 : index
    %257 = vector.load %arg6[%c1, %c0_132, %c0_133] : memref<2x1x32xf32, #tpu.memory_space<vmem>>, vector<1x1x32xf32>
    %258 = vector.shape_cast %257 : vector<1x1x32xf32> to vector<1x32xf32>
    %c1_134 = arith.constant 1 : index
    %c0_135 = arith.constant 0 : index
    %c0_136 = arith.constant 0 : index
    %259 = vector.load %arg7[%c1_134, %c0_135, %c0_136] : memref<2x1x32xf32, #tpu.memory_space<vmem>>, vector<1x1x32xf32>
    %260 = vector.shape_cast %259 : vector<1x1x32xf32> to vector<1x32xf32>
    %c1_137 = arith.constant 1 : index
    %c0_138 = arith.constant 0 : index
    %c0_139 = arith.constant 0 : index
    %261 = vector.load %arg8[%c1_137, %c0_138, %c0_139] : memref<2x32x32xbf16, #tpu.memory_space<vmem>>, vector<1x32x32xbf16>
    %262 = vector.shape_cast %261 : vector<1x32x32xbf16> to vector<32x32xbf16>
    %c1_140 = arith.constant 1 : index
    %c0_141 = arith.constant 0 : index
    %c0_142 = arith.constant 0 : index
    %263 = vector.load %arg9[%c1_140, %c0_141, %c0_142] : memref<2x32x32xbf16, #tpu.memory_space<vmem>>, vector<1x32x32xbf16>
    %264 = vector.shape_cast %263 : vector<1x32x32xbf16> to vector<32x32xbf16>
    %c1_143 = arith.constant 1 : index
    %c0_144 = arith.constant 0 : index
    %c0_145 = arith.constant 0 : index
    %265 = vector.load %arg10[%c1_143, %c0_144, %c0_145] : memref<2x32x32xbf16, #tpu.memory_space<vmem>>, vector<1x32x32xbf16>
    %266 = vector.shape_cast %265 : vector<1x32x32xbf16> to vector<32x32xbf16>
    %c1_146 = arith.constant 1 : index
    %c0_147 = arith.constant 0 : index
    %c0_148 = arith.constant 0 : index
    %267 = vector.load %arg11[%c1_146, %c0_147, %c0_148] : memref<2x32x32xbf16, #tpu.memory_space<vmem>>, vector<1x32x32xbf16>
    %268 = vector.shape_cast %267 : vector<1x32x32xbf16> to vector<32x32xbf16>
    %c1_149 = arith.constant 1 : index
    %c0_150 = arith.constant 0 : index
    %c0_151 = arith.constant 0 : index
    %269 = vector.load %arg12[%c1_149, %c0_150, %c0_151] : memref<2x1x32xf32, #tpu.memory_space<vmem>>, vector<1x1x32xf32>
    %270 = vector.shape_cast %269 : vector<1x1x32xf32> to vector<1x32xf32>
    %cst_152 = arith.constant dense<0.000000e+00> : vector<48xf32>
    %271 = vector.multi_reduction <add>, %256, %cst_152 [1] : vector<48x32xf32> to vector<48xf32>
    %272 = vector.shape_cast %271 : vector<48xf32> to vector<48x1xf32>
    %cst_153 = arith.constant 3.200000e+01 : f32
    %273 = vector.broadcast %cst_153 : f32 to vector<48x1xf32>
    %274 = arith.divf %272, %273 : vector<48x1xf32>
    %275 = vector.broadcast %274 : vector<48x1xf32> to vector<48x32xf32>
    %276 = arith.subf %256, %275 : vector<48x32xf32>
    %277 = arith.mulf %276, %276 : vector<48x32xf32>
    %cst_154 = arith.constant dense<0.000000e+00> : vector<48xf32>
    %278 = vector.multi_reduction <add>, %277, %cst_154 [1] : vector<48x32xf32> to vector<48xf32>
    %279 = vector.shape_cast %278 : vector<48xf32> to vector<48x1xf32>
    %cst_155 = arith.constant 3.200000e+01 : f32
    %280 = vector.broadcast %cst_155 : f32 to vector<48x1xf32>
    %281 = arith.divf %279, %280 : vector<48x1xf32>
    %cst_156 = arith.constant 9.99999974E-6 : f32
    %282 = vector.broadcast %cst_156 : f32 to vector<48x1xf32>
    %283 = arith.addf %281, %282 : vector<48x1xf32>
    %284 = math.rsqrt %283 : vector<48x1xf32>
    %285 = vector.broadcast %284 : vector<48x1xf32> to vector<48x32xf32>
    %286 = arith.mulf %276, %285 : vector<48x32xf32>
    %287 = vector.broadcast %258 : vector<1x32xf32> to vector<48x32xf32>
    %288 = arith.mulf %286, %287 : vector<48x32xf32>
    %289 = vector.broadcast %260 : vector<1x32xf32> to vector<48x32xf32>
    %290 = arith.addf %288, %289 : vector<48x32xf32>
    %291 = arith.truncf %290 : vector<48x32xf32> to vector<48x32xbf16>
    %cst_157 = arith.constant dense<0.000000e+00> : vector<48x32xf32>
    %292 = tpu.matmul %291, %262, %cst_157 {dimension_numbers = #tpu.dot_dimension_numbers<[1], [0], [0], [1], [0, 0, 1, 1], [], []>} : vector<48x32xbf16>, vector<32x32xbf16>, vector<48x32xf32> -> vector<48x32xf32>
    %cst_158 = arith.constant dense<0.000000e+00> : vector<48x32xf32>
    %293 = tpu.matmul %291, %264, %cst_158 {dimension_numbers = #tpu.dot_dimension_numbers<[1], [0], [0], [1], [0, 0, 1, 1], [], []>} : vector<48x32xbf16>, vector<32x32xbf16>, vector<48x32xf32> -> vector<48x32xf32>
    %294 = arith.truncf %293 : vector<48x32xf32> to vector<48x32xbf16>
    %cst_159 = arith.constant dense<0.000000e+00> : vector<48x32xf32>
    %295 = tpu.matmul %291, %266, %cst_159 {dimension_numbers = #tpu.dot_dimension_numbers<[1], [0], [0], [1], [0, 0, 1, 1], [], []>} : vector<48x32xbf16>, vector<32x32xbf16>, vector<48x32xf32> -> vector<48x32xf32>
    %296 = arith.truncf %295 : vector<48x32xf32> to vector<48x32xbf16>
    %297 = tpu.concatenate %292, %292, %292, %292 in 0 : vector<48x32xf32>, vector<48x32xf32>, vector<48x32xf32>, vector<48x32xf32> -> vector<192x32xf32>
    %298 = arith.mulf %297, %2 : vector<192x32xf32>
    %299 = arith.truncf %298 : vector<192x32xf32> to vector<192x32xbf16>
    %cst_160 = arith.constant dense<0.000000e+00> : vector<192x48xf32>
    %300 = tpu.matmul %299, %294, %cst_160 {dimension_numbers = #tpu.dot_dimension_numbers<[1], [1], [0], [0], [0, 0, 1, 0], [], []>} : vector<192x32xbf16>, vector<48x32xbf16>, vector<192x48xf32> -> vector<192x48xf32>
    %cst_161 = arith.constant 0.353553385 : f32
    %301 = vector.broadcast %cst_161 : f32 to vector<192x48xf32>
    %302 = arith.mulf %300, %301 : vector<192x48xf32>
    %303 = arith.addf %302, %0 : vector<192x48xf32>
    %cst_162 = arith.constant dense<0xFF800000> : vector<192xf32>
    %304 = vector.multi_reduction <maximumf>, %303, %cst_162 [1] : vector<192x48xf32> to vector<192xf32>
    %305 = vector.shape_cast %304 : vector<192xf32> to vector<192x1xf32>
    %306 = vector.broadcast %305 : vector<192x1xf32> to vector<192x48xf32>
    %307 = arith.subf %303, %306 : vector<192x48xf32>
    %308 = math.exp %307 : vector<192x48xf32>
    %cst_163 = arith.constant dense<0.000000e+00> : vector<192xf32>
    %309 = vector.multi_reduction <add>, %308, %cst_163 [1] : vector<192x48xf32> to vector<192xf32>
    %310 = vector.shape_cast %309 : vector<192xf32> to vector<192x1xf32>
    %311 = vector.broadcast %310 : vector<192x1xf32> to vector<192x48xf32>
    %312 = arith.divf %308, %311 : vector<192x48xf32>
    %313 = arith.truncf %312 : vector<192x48xf32> to vector<192x48xbf16>
    %cst_164 = arith.constant dense<0.000000e+00> : vector<192x32xf32>
    %314 = tpu.matmul %313, %296, %cst_164 {dimension_numbers = #tpu.dot_dimension_numbers<[1], [0], [0], [1], [0, 0, 1, 1], [], []>} : vector<192x48xbf16>, vector<48x32xbf16>, vector<192x32xf32> -> vector<192x32xf32>
    %315 = arith.mulf %314, %2 : vector<192x32xf32>
    %316 = vector.extract_strided_slice %315 {offsets = [0, 0], sizes = [48, 32], strides = [1, 1]} : vector<192x32xf32> to vector<48x32xf32>
    %cst_165 = arith.constant 0.000000e+00 : f32
    %317 = vector.broadcast %cst_165 : f32 to vector<48x32xf32>
    %318 = arith.addf %317, %316 : vector<48x32xf32>
    %319 = vector.extract_strided_slice %315 {offsets = [48, 0], sizes = [48, 32], strides = [1, 1]} : vector<192x32xf32> to vector<48x32xf32>
    %320 = arith.addf %318, %319 : vector<48x32xf32>
    %321 = vector.extract_strided_slice %315 {offsets = [96, 0], sizes = [48, 32], strides = [1, 1]} : vector<192x32xf32> to vector<48x32xf32>
    %322 = arith.addf %320, %321 : vector<48x32xf32>
    %323 = vector.extract_strided_slice %315 {offsets = [144, 0], sizes = [48, 32], strides = [1, 1]} : vector<192x32xf32> to vector<48x32xf32>
    %324 = arith.addf %322, %323 : vector<48x32xf32>
    %325 = arith.truncf %324 : vector<48x32xf32> to vector<48x32xbf16>
    %cst_166 = arith.constant dense<0.000000e+00> : vector<48x32xf32>
    %326 = tpu.matmul %325, %268, %cst_166 {dimension_numbers = #tpu.dot_dimension_numbers<[1], [0], [0], [1], [0, 0, 1, 1], [], []>} : vector<48x32xbf16>, vector<32x32xbf16>, vector<48x32xf32> -> vector<48x32xf32>
    %327 = vector.broadcast %270 : vector<1x32xf32> to vector<48x32xf32>
    %328 = arith.addf %326, %327 : vector<48x32xf32>
    %329 = arith.truncf %328 : vector<48x32xf32> to vector<48x32xbf16>
    %c1_167 = arith.constant 1 : index
    %c0_168 = arith.constant 0 : index
    %c0_169 = arith.constant 0 : index
    %330 = vector.load %arg13[%c1_167, %c0_168, %c0_169] : memref<2x32x32xbf16, #tpu.memory_space<vmem>>, vector<1x32x32xbf16>
    %331 = vector.shape_cast %330 : vector<1x32x32xbf16> to vector<32x32xbf16>
    %cst_170 = arith.constant dense<0.000000e+00> : vector<48x32xf32>
    %332 = tpu.matmul %329, %331, %cst_170 {dimension_numbers = #tpu.dot_dimension_numbers<[1], [0], [0], [1], [0, 0, 1, 1], [], []>} : vector<48x32xbf16>, vector<32x32xbf16>, vector<48x32xf32> -> vector<48x32xf32>
    %c1_171 = arith.constant 1 : index
    %c0_172 = arith.constant 0 : index
    %c0_173 = arith.constant 0 : index
    %333 = vector.load %arg14[%c1_171, %c0_172, %c0_173] : memref<2x1x32xf32, #tpu.memory_space<vmem>>, vector<1x1x32xf32>
    %334 = vector.shape_cast %333 : vector<1x1x32xf32> to vector<1x32xf32>
    %335 = vector.broadcast %334 : vector<1x32xf32> to vector<48x32xf32>
    %336 = arith.addf %332, %335 : vector<48x32xf32>
    %337 = arith.addf %256, %336 : vector<48x32xf32>
    %338 = tpu.concatenate %255, %255 in 0 : vector<2x32xf32>, vector<2x32xf32> -> vector<4x32xf32>
    %339 = tpu.concatenate %338, %337 in 0 : vector<4x32xf32>, vector<48x32xf32> -> vector<52x32xf32>
    %c1_174 = arith.constant 1 : index
    %c0_175 = arith.constant 0 : index
    %c0_176 = arith.constant 0 : index
    %340 = vector.load %arg15[%c1_174, %c0_175, %c0_176] : memref<2x1x32xf32, #tpu.memory_space<vmem>>, vector<1x1x32xf32>
    %341 = vector.shape_cast %340 : vector<1x1x32xf32> to vector<1x32xf32>
    %c1_177 = arith.constant 1 : index
    %c0_178 = arith.constant 0 : index
    %c0_179 = arith.constant 0 : index
    %342 = vector.load %arg16[%c1_177, %c0_178, %c0_179] : memref<2x1x32xf32, #tpu.memory_space<vmem>>, vector<1x1x32xf32>
    %343 = vector.shape_cast %342 : vector<1x1x32xf32> to vector<1x32xf32>
    %c1_180 = arith.constant 1 : index
    %c0_181 = arith.constant 0 : index
    %c0_182 = arith.constant 0 : index
    %344 = vector.load %arg17[%c1_180, %c0_181, %c0_182] : memref<2x32x32xbf16, #tpu.memory_space<vmem>>, vector<1x32x32xbf16>
    %345 = vector.shape_cast %344 : vector<1x32x32xbf16> to vector<32x32xbf16>
    %c1_183 = arith.constant 1 : index
    %c0_184 = arith.constant 0 : index
    %c0_185 = arith.constant 0 : index
    %346 = vector.load %arg18[%c1_183, %c0_184, %c0_185] : memref<2x32x32xbf16, #tpu.memory_space<vmem>>, vector<1x32x32xbf16>
    %347 = vector.shape_cast %346 : vector<1x32x32xbf16> to vector<32x32xbf16>
    %c1_186 = arith.constant 1 : index
    %c0_187 = arith.constant 0 : index
    %c0_188 = arith.constant 0 : index
    %348 = vector.load %arg19[%c1_186, %c0_187, %c0_188] : memref<2x32x32xbf16, #tpu.memory_space<vmem>>, vector<1x32x32xbf16>
    %349 = vector.shape_cast %348 : vector<1x32x32xbf16> to vector<32x32xbf16>
    %c1_189 = arith.constant 1 : index
    %c0_190 = arith.constant 0 : index
    %c0_191 = arith.constant 0 : index
    %350 = vector.load %arg20[%c1_189, %c0_190, %c0_191] : memref<2x32x32xbf16, #tpu.memory_space<vmem>>, vector<1x32x32xbf16>
    %351 = vector.shape_cast %350 : vector<1x32x32xbf16> to vector<32x32xbf16>
    %c1_192 = arith.constant 1 : index
    %c0_193 = arith.constant 0 : index
    %c0_194 = arith.constant 0 : index
    %352 = vector.load %arg21[%c1_192, %c0_193, %c0_194] : memref<2x1x32xf32, #tpu.memory_space<vmem>>, vector<1x1x32xf32>
    %353 = vector.shape_cast %352 : vector<1x1x32xf32> to vector<1x32xf32>
    %cst_195 = arith.constant dense<0.000000e+00> : vector<52xf32>
    %354 = vector.multi_reduction <add>, %339, %cst_195 [1] : vector<52x32xf32> to vector<52xf32>
    %355 = vector.shape_cast %354 : vector<52xf32> to vector<52x1xf32>
    %cst_196 = arith.constant 3.200000e+01 : f32
    %356 = vector.broadcast %cst_196 : f32 to vector<52x1xf32>
    %357 = arith.divf %355, %356 : vector<52x1xf32>
    %358 = vector.broadcast %357 : vector<52x1xf32> to vector<52x32xf32>
    %359 = arith.subf %339, %358 : vector<52x32xf32>
    %360 = arith.mulf %359, %359 : vector<52x32xf32>
    %cst_197 = arith.constant dense<0.000000e+00> : vector<52xf32>
    %361 = vector.multi_reduction <add>, %360, %cst_197 [1] : vector<52x32xf32> to vector<52xf32>
    %362 = vector.shape_cast %361 : vector<52xf32> to vector<52x1xf32>
    %cst_198 = arith.constant 3.200000e+01 : f32
    %363 = vector.broadcast %cst_198 : f32 to vector<52x1xf32>
    %364 = arith.divf %362, %363 : vector<52x1xf32>
    %cst_199 = arith.constant 9.99999974E-6 : f32
    %365 = vector.broadcast %cst_199 : f32 to vector<52x1xf32>
    %366 = arith.addf %364, %365 : vector<52x1xf32>
    %367 = math.rsqrt %366 : vector<52x1xf32>
    %368 = vector.broadcast %367 : vector<52x1xf32> to vector<52x32xf32>
    %369 = arith.mulf %359, %368 : vector<52x32xf32>
    %370 = vector.broadcast %341 : vector<1x32xf32> to vector<52x32xf32>
    %371 = arith.mulf %369, %370 : vector<52x32xf32>
    %372 = vector.broadcast %343 : vector<1x32xf32> to vector<52x32xf32>
    %373 = arith.addf %371, %372 : vector<52x32xf32>
    %374 = arith.truncf %373 : vector<52x32xf32> to vector<52x32xbf16>
    %cst_200 = arith.constant dense<0.000000e+00> : vector<52x32xf32>
    %375 = tpu.matmul %374, %345, %cst_200 {dimension_numbers = #tpu.dot_dimension_numbers<[1], [0], [0], [1], [0, 0, 1, 1], [], []>} : vector<52x32xbf16>, vector<32x32xbf16>, vector<52x32xf32> -> vector<52x32xf32>
    %cst_201 = arith.constant dense<0.000000e+00> : vector<52x32xf32>
    %376 = tpu.matmul %374, %347, %cst_201 {dimension_numbers = #tpu.dot_dimension_numbers<[1], [0], [0], [1], [0, 0, 1, 1], [], []>} : vector<52x32xbf16>, vector<32x32xbf16>, vector<52x32xf32> -> vector<52x32xf32>
    %377 = arith.truncf %376 : vector<52x32xf32> to vector<52x32xbf16>
    %cst_202 = arith.constant dense<0.000000e+00> : vector<52x32xf32>
    %378 = tpu.matmul %374, %349, %cst_202 {dimension_numbers = #tpu.dot_dimension_numbers<[1], [0], [0], [1], [0, 0, 1, 1], [], []>} : vector<52x32xbf16>, vector<32x32xbf16>, vector<52x32xf32> -> vector<52x32xf32>
    %379 = arith.truncf %378 : vector<52x32xf32> to vector<52x32xbf16>
    %380 = tpu.concatenate %375, %375, %375, %375 in 0 : vector<52x32xf32>, vector<52x32xf32>, vector<52x32xf32>, vector<52x32xf32> -> vector<208x32xf32>
    %381 = arith.mulf %380, %3 : vector<208x32xf32>
    %382 = arith.truncf %381 : vector<208x32xf32> to vector<208x32xbf16>
    %cst_203 = arith.constant dense<0.000000e+00> : vector<208x52xf32>
    %383 = tpu.matmul %382, %377, %cst_203 {dimension_numbers = #tpu.dot_dimension_numbers<[1], [1], [0], [0], [0, 0, 1, 0], [], []>} : vector<208x32xbf16>, vector<52x32xbf16>, vector<208x52xf32> -> vector<208x52xf32>
    %cst_204 = arith.constant 0.353553385 : f32
    %384 = vector.broadcast %cst_204 : f32 to vector<208x52xf32>
    %385 = arith.mulf %383, %384 : vector<208x52xf32>
    %386 = arith.addf %385, %1 : vector<208x52xf32>
    %cst_205 = arith.constant dense<0xFF800000> : vector<208xf32>
    %387 = vector.multi_reduction <maximumf>, %386, %cst_205 [1] : vector<208x52xf32> to vector<208xf32>
    %388 = vector.shape_cast %387 : vector<208xf32> to vector<208x1xf32>
    %389 = vector.broadcast %388 : vector<208x1xf32> to vector<208x52xf32>
    %390 = arith.subf %386, %389 : vector<208x52xf32>
    %391 = math.exp %390 : vector<208x52xf32>
    %cst_206 = arith.constant dense<0.000000e+00> : vector<208xf32>
    %392 = vector.multi_reduction <add>, %391, %cst_206 [1] : vector<208x52xf32> to vector<208xf32>
    %393 = vector.shape_cast %392 : vector<208xf32> to vector<208x1xf32>
    %394 = vector.broadcast %393 : vector<208x1xf32> to vector<208x52xf32>
    %395 = arith.divf %391, %394 : vector<208x52xf32>
    %396 = arith.truncf %395 : vector<208x52xf32> to vector<208x52xbf16>
    %cst_207 = arith.constant dense<0.000000e+00> : vector<208x32xf32>
    %397 = tpu.matmul %396, %379, %cst_207 {dimension_numbers = #tpu.dot_dimension_numbers<[1], [0], [0], [1], [0, 0, 1, 1], [], []>} : vector<208x52xbf16>, vector<52x32xbf16>, vector<208x32xf32> -> vector<208x32xf32>
    %398 = arith.mulf %397, %3 : vector<208x32xf32>
    %399 = vector.extract_strided_slice %398 {offsets = [0, 0], sizes = [52, 32], strides = [1, 1]} : vector<208x32xf32> to vector<52x32xf32>
    %cst_208 = arith.constant 0.000000e+00 : f32
    %400 = vector.broadcast %cst_208 : f32 to vector<52x32xf32>
    %401 = arith.addf %400, %399 : vector<52x32xf32>
    %402 = vector.extract_strided_slice %398 {offsets = [52, 0], sizes = [52, 32], strides = [1, 1]} : vector<208x32xf32> to vector<52x32xf32>
    %403 = arith.addf %401, %402 : vector<52x32xf32>
    %404 = vector.extract_strided_slice %398 {offsets = [104, 0], sizes = [52, 32], strides = [1, 1]} : vector<208x32xf32> to vector<52x32xf32>
    %405 = arith.addf %403, %404 : vector<52x32xf32>
    %406 = vector.extract_strided_slice %398 {offsets = [156, 0], sizes = [52, 32], strides = [1, 1]} : vector<208x32xf32> to vector<52x32xf32>
    %407 = arith.addf %405, %406 : vector<52x32xf32>
    %408 = arith.truncf %407 : vector<52x32xf32> to vector<52x32xbf16>
    %cst_209 = arith.constant dense<0.000000e+00> : vector<52x32xf32>
    %409 = tpu.matmul %408, %351, %cst_209 {dimension_numbers = #tpu.dot_dimension_numbers<[1], [0], [0], [1], [0, 0, 1, 1], [], []>} : vector<52x32xbf16>, vector<32x32xbf16>, vector<52x32xf32> -> vector<52x32xf32>
    %410 = vector.broadcast %353 : vector<1x32xf32> to vector<52x32xf32>
    %411 = arith.addf %409, %410 : vector<52x32xf32>
    %412 = vector.extract_strided_slice %411 {offsets = [0, 0], sizes = [4, 32], strides = [1, 1]} : vector<52x32xf32> to vector<4x32xf32>
    %413 = vector.extract_strided_slice %411 {offsets = [4, 0], sizes = [48, 32], strides = [1, 1]} : vector<52x32xf32> to vector<48x32xf32>
    %414 = vector.extract_strided_slice %412 {offsets = [0, 0], sizes = [2, 32], strides = [1, 1]} : vector<4x32xf32> to vector<2x32xf32>
    %cst_210 = arith.constant 0.000000e+00 : f32
    %415 = vector.broadcast %cst_210 : f32 to vector<2x32xf32>
    %416 = arith.addf %415, %414 : vector<2x32xf32>
    %417 = vector.extract_strided_slice %412 {offsets = [2, 0], sizes = [2, 32], strides = [1, 1]} : vector<4x32xf32> to vector<2x32xf32>
    %418 = arith.addf %416, %417 : vector<2x32xf32>
    %cst_211 = arith.constant 5.000000e-01 : f32
    %419 = vector.broadcast %cst_211 : f32 to vector<2x32xf32>
    %420 = arith.mulf %418, %419 : vector<2x32xf32>
    %421 = arith.addf %255, %420 : vector<2x32xf32>
    %422 = arith.addf %337, %413 : vector<48x32xf32>
    %423 = tpu.concatenate %421, %422 in 0 : vector<2x32xf32>, vector<48x32xf32> -> vector<50x32xf32>
    %c1_212 = arith.constant 1 : index
    %c0_213 = arith.constant 0 : index
    %c0_214 = arith.constant 0 : index
    %424 = vector.load %arg22[%c1_212, %c0_213, %c0_214] : memref<2x1x32xf32, #tpu.memory_space<vmem>>, vector<1x1x32xf32>
    %425 = vector.shape_cast %424 : vector<1x1x32xf32> to vector<1x32xf32>
    %c1_215 = arith.constant 1 : index
    %c0_216 = arith.constant 0 : index
    %c0_217 = arith.constant 0 : index
    %426 = vector.load %arg23[%c1_215, %c0_216, %c0_217] : memref<2x1x32xf32, #tpu.memory_space<vmem>>, vector<1x1x32xf32>
    %427 = vector.shape_cast %426 : vector<1x1x32xf32> to vector<1x32xf32>
    %cst_218 = arith.constant dense<0.000000e+00> : vector<50xf32>
    %428 = vector.multi_reduction <add>, %423, %cst_218 [1] : vector<50x32xf32> to vector<50xf32>
    %429 = vector.shape_cast %428 : vector<50xf32> to vector<50x1xf32>
    %cst_219 = arith.constant 3.200000e+01 : f32
    %430 = vector.broadcast %cst_219 : f32 to vector<50x1xf32>
    %431 = arith.divf %429, %430 : vector<50x1xf32>
    %432 = vector.broadcast %431 : vector<50x1xf32> to vector<50x32xf32>
    %433 = arith.subf %423, %432 : vector<50x32xf32>
    %434 = arith.mulf %433, %433 : vector<50x32xf32>
    %cst_220 = arith.constant dense<0.000000e+00> : vector<50xf32>
    %435 = vector.multi_reduction <add>, %434, %cst_220 [1] : vector<50x32xf32> to vector<50xf32>
    %436 = vector.shape_cast %435 : vector<50xf32> to vector<50x1xf32>
    %cst_221 = arith.constant 3.200000e+01 : f32
    %437 = vector.broadcast %cst_221 : f32 to vector<50x1xf32>
    %438 = arith.divf %436, %437 : vector<50x1xf32>
    %cst_222 = arith.constant 9.99999974E-6 : f32
    %439 = vector.broadcast %cst_222 : f32 to vector<50x1xf32>
    %440 = arith.addf %438, %439 : vector<50x1xf32>
    %441 = math.rsqrt %440 : vector<50x1xf32>
    %442 = vector.broadcast %441 : vector<50x1xf32> to vector<50x32xf32>
    %443 = arith.mulf %433, %442 : vector<50x32xf32>
    %444 = vector.broadcast %425 : vector<1x32xf32> to vector<50x32xf32>
    %445 = arith.mulf %443, %444 : vector<50x32xf32>
    %446 = vector.broadcast %427 : vector<1x32xf32> to vector<50x32xf32>
    %447 = arith.addf %445, %446 : vector<50x32xf32>
    %448 = arith.truncf %447 : vector<50x32xf32> to vector<50x32xbf16>
    %c1_223 = arith.constant 1 : index
    %c0_224 = arith.constant 0 : index
    %c0_225 = arith.constant 0 : index
    %449 = vector.load %arg24[%c1_223, %c0_224, %c0_225] : memref<2x32x128xbf16, #tpu.memory_space<vmem>>, vector<1x32x128xbf16>
    %450 = vector.shape_cast %449 : vector<1x32x128xbf16> to vector<32x128xbf16>
    %cst_226 = arith.constant dense<0.000000e+00> : vector<50x128xf32>
    %451 = tpu.matmul %448, %450, %cst_226 {dimension_numbers = #tpu.dot_dimension_numbers<[1], [0], [0], [1], [0, 0, 1, 1], [], []>} : vector<50x32xbf16>, vector<32x128xbf16>, vector<50x128xf32> -> vector<50x128xf32>
    %c1_227 = arith.constant 1 : index
    %c0_228 = arith.constant 0 : index
    %c0_229 = arith.constant 0 : index
    %452 = vector.load %arg25[%c1_227, %c0_228, %c0_229] : memref<2x1x128xf32, #tpu.memory_space<vmem>>, vector<1x1x128xf32>
    %453 = vector.shape_cast %452 : vector<1x1x128xf32> to vector<1x128xf32>
    %454 = vector.broadcast %453 : vector<1x128xf32> to vector<50x128xf32>
    %455 = arith.addf %451, %454 : vector<50x128xf32>
    %cst_230 = arith.constant 5.000000e-01 : f32
    %456 = vector.broadcast %cst_230 : f32 to vector<50x128xf32>
    %457 = arith.mulf %456, %455 : vector<50x128xf32>
    %cst_231 = arith.constant 0.707106769 : f32
    %458 = vector.broadcast %cst_231 : f32 to vector<50x128xf32>
    %459 = arith.mulf %455, %458 : vector<50x128xf32>
    %cst_232 = arith.constant 0.000000e+00 : f32
    %460 = vector.broadcast %cst_232 : f32 to vector<50x128xf32>
    %461 = arith.cmpf oge, %459, %460 : vector<50x128xf32>
    %cst_233 = arith.constant 1.000000e+00 : f32
    %cst_234 = arith.constant -1.000000e+00 : f32
    %462 = vector.broadcast %cst_233 : f32 to vector<50x128xf32>
    %463 = vector.broadcast %cst_234 : f32 to vector<50x128xf32>
    %464 = arith.select %461, %462, %463 : vector<50x128xi1>, vector<50x128xf32>
    %465 = math.absf %459 : vector<50x128xf32>
    %cst_235 = arith.constant 0.327591091 : f32
    %466 = vector.broadcast %cst_235 : f32 to vector<50x128xf32>
    %467 = arith.mulf %466, %465 : vector<50x128xf32>
    %cst_236 = arith.constant 1.000000e+00 : f32
    %468 = vector.broadcast %cst_236 : f32 to vector<50x128xf32>
    %469 = arith.addf %468, %467 : vector<50x128xf32>
    %cst_237 = arith.constant 1.000000e+00 : f32
    %470 = vector.broadcast %cst_237 : f32 to vector<50x128xf32>
    %471 = arith.divf %470, %469 : vector<50x128xf32>
    %cst_238 = arith.constant 1.06140542 : f32
    %472 = vector.broadcast %cst_238 : f32 to vector<50x128xf32>
    %473 = arith.mulf %472, %471 : vector<50x128xf32>
    %cst_239 = arith.constant -1.45315206 : f32
    %474 = vector.broadcast %cst_239 : f32 to vector<50x128xf32>
    %475 = arith.addf %473, %474 : vector<50x128xf32>
    %476 = arith.mulf %475, %471 : vector<50x128xf32>
    %cst_240 = arith.constant 1.42141378 : f32
    %477 = vector.broadcast %cst_240 : f32 to vector<50x128xf32>
    %478 = arith.addf %476, %477 : vector<50x128xf32>
    %479 = arith.mulf %478, %471 : vector<50x128xf32>
    %cst_241 = arith.constant -0.284496725 : f32
    %480 = vector.broadcast %cst_241 : f32 to vector<50x128xf32>
    %481 = arith.addf %479, %480 : vector<50x128xf32>
    %482 = arith.mulf %481, %471 : vector<50x128xf32>
    %cst_242 = arith.constant 0.254829586 : f32
    %483 = vector.broadcast %cst_242 : f32 to vector<50x128xf32>
    %484 = arith.addf %482, %483 : vector<50x128xf32>
    %485 = arith.mulf %484, %471 : vector<50x128xf32>
    %cst_243 = arith.constant 0.000000e+00 : f32
    %486 = vector.broadcast %cst_243 : f32 to vector<50x128xf32>
    %487 = arith.subf %486, %465 : vector<50x128xf32>
    %488 = arith.mulf %487, %465 : vector<50x128xf32>
    %489 = math.exp %488 : vector<50x128xf32>
    %490 = arith.mulf %485, %489 : vector<50x128xf32>
    %cst_244 = arith.constant 1.000000e+00 : f32
    %491 = vector.broadcast %cst_244 : f32 to vector<50x128xf32>
    %492 = arith.subf %491, %490 : vector<50x128xf32>
    %493 = arith.mulf %464, %492 : vector<50x128xf32>
    %cst_245 = arith.constant 1.000000e+00 : f32
    %494 = vector.broadcast %cst_245 : f32 to vector<50x128xf32>
    %495 = arith.addf %494, %493 : vector<50x128xf32>
    %496 = arith.mulf %457, %495 : vector<50x128xf32>
    %497 = arith.truncf %496 : vector<50x128xf32> to vector<50x128xbf16>
    %c1_246 = arith.constant 1 : index
    %c0_247 = arith.constant 0 : index
    %c0_248 = arith.constant 0 : index
    %498 = vector.load %arg26[%c1_246, %c0_247, %c0_248] : memref<2x128x32xbf16, #tpu.memory_space<vmem>>, vector<1x128x32xbf16>
    %499 = vector.shape_cast %498 : vector<1x128x32xbf16> to vector<128x32xbf16>
    %cst_249 = arith.constant dense<0.000000e+00> : vector<50x32xf32>
    %500 = tpu.matmul %497, %499, %cst_249 {dimension_numbers = #tpu.dot_dimension_numbers<[1], [0], [0], [1], [0, 0, 1, 1], [], []>} : vector<50x128xbf16>, vector<128x32xbf16>, vector<50x32xf32> -> vector<50x32xf32>
    %c1_250 = arith.constant 1 : index
    %c0_251 = arith.constant 0 : index
    %c0_252 = arith.constant 0 : index
    %501 = vector.load %arg27[%c1_250, %c0_251, %c0_252] : memref<2x1x32xf32, #tpu.memory_space<vmem>>, vector<1x1x32xf32>
    %502 = vector.shape_cast %501 : vector<1x1x32xf32> to vector<1x32xf32>
    %503 = vector.broadcast %502 : vector<1x32xf32> to vector<50x32xf32>
    %504 = arith.addf %500, %503 : vector<50x32xf32>
    %505 = arith.addf %423, %504 : vector<50x32xf32>
    %506 = vector.extract_strided_slice %505 {offsets = [0, 0], sizes = [2, 32], strides = [1, 1]} : vector<50x32xf32> to vector<2x32xf32>
    %cst_253 = arith.constant dense<0.000000e+00> : vector<2xf32>
    %507 = vector.multi_reduction <add>, %506, %cst_253 [1] : vector<2x32xf32> to vector<2xf32>
    %508 = vector.shape_cast %507 : vector<2xf32> to vector<2x1xf32>
    %cst_254 = arith.constant 3.200000e+01 : f32
    %509 = vector.broadcast %cst_254 : f32 to vector<2x1xf32>
    %510 = arith.divf %508, %509 : vector<2x1xf32>
    %511 = vector.broadcast %510 : vector<2x1xf32> to vector<2x32xf32>
    %512 = arith.subf %506, %511 : vector<2x32xf32>
    %513 = arith.mulf %512, %512 : vector<2x32xf32>
    %cst_255 = arith.constant dense<0.000000e+00> : vector<2xf32>
    %514 = vector.multi_reduction <add>, %513, %cst_255 [1] : vector<2x32xf32> to vector<2xf32>
    %515 = vector.shape_cast %514 : vector<2xf32> to vector<2x1xf32>
    %cst_256 = arith.constant 3.200000e+01 : f32
    %516 = vector.broadcast %cst_256 : f32 to vector<2x1xf32>
    %517 = arith.divf %515, %516 : vector<2x1xf32>
    %cst_257 = arith.constant 9.99999974E-6 : f32
    %518 = vector.broadcast %cst_257 : f32 to vector<2x1xf32>
    %519 = arith.addf %517, %518 : vector<2x1xf32>
    %520 = math.rsqrt %519 : vector<2x1xf32>
    %521 = vector.broadcast %520 : vector<2x1xf32> to vector<2x32xf32>
    %522 = arith.mulf %512, %521 : vector<2x32xf32>
    %523 = arith.truncf %522 : vector<2x32xf32> to vector<2x32xbf16>
    %c0_258 = arith.constant 0 : index
    %c0_259 = arith.constant 0 : index
    %524 = vector.load %arg28[%c0_258, %c0_259] : memref<32x256xbf16, #tpu.memory_space<vmem>>, vector<32x256xbf16>
    %cst_260 = arith.constant dense<0.000000e+00> : vector<2x256xf32>
    %525 = tpu.matmul %523, %524, %cst_260 {dimension_numbers = #tpu.dot_dimension_numbers<[1], [0], [0], [1], [0, 0, 1, 1], [], []>} : vector<2x32xbf16>, vector<32x256xbf16>, vector<2x256xf32> -> vector<2x256xf32>
    %c0_261 = arith.constant 0 : index
    %c0_262 = arith.constant 0 : index
    %526 = vector.load %arg29[%c0_261, %c0_262] : memref<1x256xf32, #tpu.memory_space<vmem>>, vector<1x256xf32>
    %527 = vector.broadcast %526 : vector<1x256xf32> to vector<2x256xf32>
    %528 = arith.addf %525, %527 : vector<2x256xf32>
    %529 = arith.truncf %528 : vector<2x256xf32> to vector<2x256xbf16>
    %c0_263 = arith.constant 0 : index
    %c0_264 = arith.constant 0 : index
    %530 = vector.load %arg30[%c0_263, %c0_264] : memref<256x16xbf16, #tpu.memory_space<vmem>>, vector<256x16xbf16>
    %cst_265 = arith.constant dense<0.000000e+00> : vector<2x16xf32>
    %531 = tpu.matmul %529, %530, %cst_265 {dimension_numbers = #tpu.dot_dimension_numbers<[1], [0], [0], [1], [0, 0, 1, 1], [], []>} : vector<2x256xbf16>, vector<256x16xbf16>, vector<2x16xf32> -> vector<2x16xf32>
    %c0_266 = arith.constant 0 : index
    %c0_267 = arith.constant 0 : index
    %532 = vector.load %arg31[%c0_266, %c0_267] : memref<1x16xf32, #tpu.memory_space<vmem>>, vector<1x16xf32>
    %533 = vector.broadcast %532 : vector<1x16xf32> to vector<2x16xf32>
    %534 = arith.addf %531, %533 : vector<2x16xf32>
    %c0_268 = arith.constant 0 : index
    %c0_269 = arith.constant 0 : index
    %535 = vector.load %arg32[%c0_268, %c0_269] : memref<2x16xf32, #tpu.memory_space<vmem>>, vector<2x16xf32>
    tpu.vector_store %arg32[%c0_268, %c0_269], %534 {strides = array<i32>} : memref<2x16xf32, #tpu.memory_space<vmem>>, vector<2x16xf32>,
    return
  }
}

</mosaic_0001>

<bundles_post_ra>
// kernel: model_forward.2
= control target key start
LH: loop header
LB: loop body
LE: loop exit
PB: predicated region body
PF: predicated region fallthrough
CT: control target
= control target key end

     0   :  { %v419_v0 = vmov 0   ;;  %vm141_vm0 = vcmask 523264   ;;  %vm197_vm1 = vcmask 261120   ;;  %s625_s1 = inlined_call_operand.vmem [shape: bf16[192,32], index: 1, kind: input, shape index: {}]   ;;  %s626_s4 = inlined_call_operand.vmem [shape: bf16[192,32], index: 4, kind: input, shape index: {}]   ;;  %s627_s0 = inlined_call_operand.vmem [shape: f32[32,192], index: 0, kind: input, shape index: {}]   ;;  %s628_s3 = inlined_call_operand.vmem [shape: f32[16,192], index: 3, kind: input, shape index: {}]   ;;  %s629_s2 = inlined_call_operand.vmem [shape: f32[1,32], index: 2, kind: input, shape index: {}]   ;;  %s630_s5 = inlined_call_operand.vmem [shape: f32[1,32], index: 5, kind: input, shape index: {}]   ;;  %s631_s6 = inlined_call_operand.vmem [shape: f32[32,32], index: 6, kind: output, shape index: {0}]   ;;  %s632_s7 = inlined_call_operand.vmem [shape: f32[16,32], index: 7, kind: output, shape index: {1}]  }
   0x1   :  { %148 = vmatprep.subr.bf16.mxu0 %v419_v0  ;;  %v395_v1 = vld [vmem:[%s625_s1] sm:$0xff]   ;;  %314 = vmatprep.subr.bf16.mxu1 %v419_v0  ;;  %v396_v2 = vld [vmem:[%s625_s1 + $0x8] sm:$0xff]   ;;  %v398_v5 = vld [vmem:[%s625_s1 + $0x10] sm:$0xff]  }
   0x2   :  { %149 = vmatpush1.bf16.msra.mxu0 %v395_v1  ;;  %v397_v3 = vld [vmem:[%s626_s4] sm:$0xff]   ;;  %v399_v4 = vld [vmem:[%s626_s4 + $0x8] sm:$0xff]   ;;  %v401_v6 = vld [vmem:[%s626_s4 + $0x10] sm:$0xff]  }
   0x3   :  { %150 = vmatprep.subr.bf16.mxu0 %v419_v0  ;;  %315 = vmatpush1.bf16.msra.mxu1 %v397_v3  ;;  %v400_v7 = vld [vmem:[%s625_s1 + $0x18] sm:$0xff]   ;;  %v402_v9 = vld [vmem:[%s625_s1 + $0x20] sm:$0xff]   ;;  %v404_v11 = vld [vmem:[%s625_s1 + $0x28] sm:$0xff]  }
   0x4   :  { %316 = vmatprep.subr.bf16.mxu1 %v419_v0  ;;  %v403_v8 = vld [vmem:[%s626_s4 + $0x18] sm:$0xff]   ;;  %v405_v10 = vld [vmem:[%s626_s4 + $0x20] sm:$0xff]   ;;  %v407_v12 = vld [vmem:[%s626_s4 + $0x28] sm:$0xff]  }
   0x5   :  { %v406_v13 = vld [vmem:[%s625_s1 + $0x30] sm:$0xff]   ;;  %v27_v14 = vld [vmem:[%s627_s0 + $0x8] sm:$0xff]  ;;  %v29_v15 = vld [vmem:[%s627_s0 + $0x18] sm:$0xff] }
   0x6   :  { %151 = vmatpush1.bf16.msra.mxu0 %v396_v2  ;;  %v409_v16 = vld [vmem:[%s626_s4 + $0x30] sm:$0xff]   ;;  %v35_v17 = vpack.c.bf16 %v29_v15, %v27_v14  ;;  %v203_v18 = vld [vmem:[%s628_s3 + $0x8] sm:$0xff]  ;;  %v205_v19 = vld [vmem:[%s628_s3 + $0x18] sm:$0xff] }
   0x7   :  { %152 = vmatprep.subr.bf16.mxu0 %v419_v0  ;;  %317 = vmatpush1.bf16.msra.mxu1 %v399_v4  ;;  %v408_v20 = vld [vmem:[%s625_s1 + $0x38] sm:$0xff]   ;;  %v207_v21 = vpack.c.bf16 %v205_v19, %v203_v18  ;;  %v410_v23 = vld [vmem:[%s625_s1 + $0x40] sm:$0xff]   ;;  %v412_v25 = vld [vmem:[%s625_s1 + $0x48] sm:$0xff]  }
   0x8   :  { %318 = vmatprep.subr.bf16.mxu1 %v419_v0  ;;  %378 = vmatprep.mubr.msk.bf16.mxu0 %vm141_vm0, %v35_v17  ;;  %v411_v22 = vld [vmem:[%s626_s4 + $0x38] sm:$0xff]   ;;  %v413_v24 = vld [vmem:[%s626_s4 + $0x40] sm:$0xff]   ;;  %v415_v26 = vld [vmem:[%s626_s4 + $0x48] sm:$0xff]  }
   0x9   :  { %393 = vmatprep.mubr.msk.bf16.mxu1 %vm141_vm0, %v207_v21  ;;  %v414_v27 = vld [vmem:[%s625_s1 + $0x50] sm:$0xff]   ;;  %v416_v29 = vld [vmem:[%s625_s1 + $0x58] sm:$0xff]   ;;  %v26_v30 = vld [vmem:[%s627_s0] sm:$0xff] }
   0xa   :  { %153 = vmatpush1.bf16.msra.mxu0 %v398_v5  ;;  %v417_v28 = vld [vmem:[%s626_s4 + $0x50] sm:$0xff]   ;;  %v31_v32 = vld [vmem:[%s627_s0 + $0x28] sm:$0xff]  ;;  %v33_v33 = vld [vmem:[%s627_s0 + $0x38] sm:$0xff] }
   0xb   :  { %154 = vmatprep.subr.bf16.mxu0 %v419_v0  ;;  %319 = vmatpush1.bf16.msra.mxu1 %v401_v6  ;;  %v28_v31 = vld [vmem:[%s627_s0 + $0x10] sm:$0xff]  ;;  %v418_v34 = vld [vmem:[%s626_s4 + $0x58] sm:$0xff]   ;;  %v202_v35 = vld [vmem:[%s628_s3] sm:$0xff]  ;;  %v37_v38 = vpack.c.bf16 %v33_v33, %v31_v32 }
   0xc   :  { %320 = vmatprep.subr.bf16.mxu1 %v419_v0  ;;  %v204_v36 = vld [vmem:[%s628_s3 + $0x10] sm:$0xff]  ;;  %v34_v37 = vpack.c.bf16 %v28_v31, %v26_v30  ;;  %v30_v40 = vld [vmem:[%s627_s0 + $0x20] sm:$0xff] }
   0xd   :  { %v206_v39 = vpack.c.bf16 %v204_v36, %v202_v35  ;;  %v32_v41 = vld [vmem:[%s627_s0 + $0x30] sm:$0xff]  ;;  %v365_v43 = vld [vmem:[%s629_s2] ss:$0 sm:$0xff] }
   0xe   :  { %155 = vmatpush1.bf16.msra.mxu0 %v400_v7  ;;  %v36_v42 = vpack.c.bf16 %v32_v41, %v30_v40  ;;  %v380_v45 = vld [vmem:[%s630_s5] ss:$0 sm:$0xff] }
   0xf   :  { %156 = vmatprep.subr.bf16.mxu0 %v419_v0  ;;  %321 = vmatpush1.bf16.msra.mxu1 %v403_v8 }
  0x10   :  { %322 = vmatprep.subr.bf16.mxu1 %v419_v0 }
  0x12   :  { %157 = vmatpush1.bf16.msra.mxu0 %v402_v9 }
  0x13   :  { %158 = vmatprep.subr.bf16.mxu0 %v419_v0  ;;  %323 = vmatpush1.bf16.msra.mxu1 %v405_v10 }
  0x14   :  { %324 = vmatprep.subr.bf16.mxu1 %v419_v0 }
  0x16   :  { %159 = vmatpush1.bf16.msra.mxu0 %v404_v11 }
  0x17   :  { %160 = vmatprep.subr.bf16.mxu0 %v419_v0  ;;  %325 = vmatpush1.bf16.msra.mxu1 %v407_v12 }
  0x18   :  { %326 = vmatprep.subr.bf16.mxu1 %v419_v0 }
  0x1a   :  { %161 = vmatpush1.bf16.msra.mxu0 %v406_v13 }
  0x1b   :  { %162 = vmatprep.subr.bf16.mxu0 %v419_v0  ;;  %327 = vmatpush1.bf16.msra.mxu1 %v409_v16 }
  0x1c   :  { %328 = vmatprep.subr.bf16.mxu1 %v419_v0 }
  0x1e   :  { %163 = vmatpush1.bf16.msra.mxu0 %v408_v20 }
  0x1f   :  { %164 = vmatprep.subr.bf16.mxu0 %v419_v0  ;;  %329 = vmatpush1.bf16.msra.mxu1 %v411_v22 }
  0x20   :  { %330 = vmatprep.subr.bf16.mxu1 %v419_v0 }
  0x22   :  { %165 = vmatpush1.bf16.msra.mxu0 %v410_v23 }
  0x23   :  { %166 = vmatprep.subr.bf16.mxu0 %v419_v0  ;;  %331 = vmatpush1.bf16.msra.mxu1 %v413_v24 }
  0x24   :  { %332 = vmatprep.subr.bf16.mxu1 %v419_v0 }
  0x26   :  { %167 = vmatpush1.bf16.msra.mxu0 %v412_v25 }
  0x27   :  { %168 = vmatprep.subr.bf16.mxu0 %v419_v0  ;;  %333 = vmatpush1.bf16.msra.mxu1 %v415_v26 }
  0x28   :  { %334 = vmatprep.subr.bf16.mxu1 %v419_v0 }
  0x2a   :  { %169 = vmatpush1.bf16.msra.mxu0 %v414_v27 }
  0x2b   :  { %170 = vmatprep.subr.bf16.mxu0 %v419_v0  ;;  %335 = vmatpush1.bf16.msra.mxu1 %v417_v28 }
  0x2c   :  { %336 = vmatprep.subr.bf16.mxu1 %v419_v0 }
  0x2e   :  { %171 = vmatpush1.bf16.msra.mxu0 %v416_v29 }
  0x2f   :  { %337 = vmatpush1.bf16.msra.mxu1 %v418_v34 }
  0x31   :  { %181 = vmatmul.mubr.bf16.vlgmr.msra.gmra.mrb[0].mxu0 %v34_v37 }
  0x32   :  { %379 = vmatprep.mubr.msk.bf16.mxu0 %vm141_vm0, %v37_v38  ;;  %347 = vmatmul.mubr.bf16.vlgmr.msra.gmra.mrb[0].mxu1 %v206_v39 }
  0x39   :  { %189 = vmatmul.mubr.bf16.gmra.mrb[4].mxu0 %v36_v42 }
 0x104   :  { %v182_v44 = vpop.f32.mrb[0].mxu0 }
 0x105   :  { %v183_v46 = vadd.f32 %v365_v43, %v182_v44  ;;  %v184_v47 = vpop.f32.mrb[1].mxu0  ;;  %v348_v49 = vpop.f32.mrb[0].mxu1 }
 0x106   :  { %v185_v48 = vpop.f32.mrb[2].mxu0  ;;  %v349_v52 = vadd.f32 %v380_v45, %v348_v49  ;;  %v350_v53 = vpop.f32.mrb[1].mxu1 }
 0x107   :  { %198 = vst.msk [vmem:[%s631_s6] sm:$0xff] %vm197_vm1, %v183_v46  ;;  %v186_v50 = vadd.f32 %v365_v43, %v185_v48  ;;  %v187_v51 = vpop.f32.mrb[3].mxu0  ;;  %v351_v54 = vpop.f32.mrb[2].mxu1 }
 0x108   :  { %355 = vst.msk [vmem:[%s632_s7] sm:$0xff] %vm197_vm1, %v349_v52  ;;  %v352_v55 = vadd.f32 %v380_v45, %v351_v54  ;;  %v353_v56 = vpop.f32.mrb[3].mxu1 }
 0x109   :  { %199 = vst.msk [vmem:[%s631_s6 + $0x8] sm:$0xff] %vm197_vm1, %v186_v50 }
 0x10a   :  { %356 = vst.msk [vmem:[%s632_s7 + $0x8] sm:$0xff] %vm197_vm1, %v352_v55 }
 0x10c   :  { %v190_v57 = vpop.f32.mrb[4].mxu0 }
 0x10d   :  { %v191_v58 = vadd.f32 %v365_v43, %v190_v57  ;;  %v192_v59 = vpop.f32.mrb[5].mxu0 }
 0x10e   :  { %v193_v60 = vpop.f32.mrb[6].mxu0 }
 0x10f   :  { %200 = vst.msk [vmem:[%s631_s6 + $0x10] sm:$0xff] %vm197_vm1, %v191_v58  ;;  %v194_v61 = vadd.f32 %v365_v43, %v193_v60  ;;  %v195_v62 = vpop.f32.mrb[7].mxu0 }
 0x111   :  { %201 = vst.msk [vmem:[%s631_s6 + $0x18] sm:$0xff] %vm197_vm1, %v194_v61 }

// kernel: custom-call
= control target key start
LH: loop header
LB: loop body
LE: loop exit
PB: predicated region body
PF: predicated region fallthrough
CT: control target
= control target key end

     0   :  { %s6_s0 = inlined_call_operand.vmem [shape: f32[2,2,32], index: 0, kind: output, shape index: {}]  }

// kernel: model_forward.3
= control target key start
LH: loop header
LB: loop body
LE: loop exit
PB: predicated region body
PF: predicated region fallthrough
CT: control target
= control target key end

     0   :  { %s9388_s3 = smov 1   ;;  %vm261_vm0 = vcmask 261120   ;;  %s9389_s7 = smov 8   ;;  %v9391_v42 = vmov 0.0   ;;  %vm9392_vm1 = vmmov 0   ;;  %vm848_vm2 = vcmask 392192   ;;  %s12364_s0 = inlined_call_operand.smem [shape: u32[33], index: -1, kind: input, shape index: {}] }
   0x1   :  { %s9432_s6 = sld [smem:[%s12364_s0 + %s9388_s3]]   ;;  %s9390_s11 = smov 9   ;;  %7837 = vmatprep.subr.bf16.mxu0 %v9391_v42  ;;  %7853 = vmatprep.subr.bf16.mxu1 %v9391_v42  ;;  %vm1526_vm3 = vcmask 1041408   ;;  %vm1534_vm4 = vcmask 1043456   ;;  %vm1591_vm5 = vcmask 257024   ;;  %vm2250_vm6 = vcmask 424960  }
   0x2   :  { %s9479_s10 = sld [smem:[%s12364_s0 + %s9389_s7]]   ;;  %7841 = vmatprep.mubr.msk.bf16.mxu0 %vm9392_vm1, %v9391_v42  ;;  %7857 = vmatprep.mubr.msk.bf16.mxu1 %vm9392_vm1, %v9391_v42  ;;  %s9393_s15 = smov 10   ;;  %vm3018_vm7 = vcmask 254976   ;;  %vm3582_vm15 = vcmask 261122  }
   0x3   :  { %s9484_s14 = sld [smem:[%s12364_s0 + %s9390_s11]]   ;;  %s9394_s19 = smov 6  }
   0x4   :  { %s9502_s18 = sld [smem:[%s12364_s0 + %s9393_s15]]   ;;  %s9395_s23 = smov 7  }
   0x5   :  { %s9507_s22 = sld [smem:[%s12364_s0 + %s9394_s19]]   ;;  %s9396_s27 = smov 4  }
   0x6   :  { %s9512_s26 = sld [smem:[%s12364_s0 + %s9395_s23]]   ;;  %s9397_s1 = smov 2  }
   0x7   :  { %v236_v0 = vld [vmem:[%s9432_s6] sm:$0xff]  ;;  %v238_v1 = vld [vmem:[%s9432_s6 + $0x10] sm:$0xff]  ;;  %v237_v2 = vld [vmem:[%s9432_s6 + $0x8] sm:$0xff]  ;;  %s9551_s30 = sld [smem:[%s12364_s0 + %s9396_s27]]   ;;  %s9398_s5 = smov 11  }
   0x8   :  { %v262_v3 = vsel %vm261_vm0, %v236_v0, 0.0  ;;  %v268_v4 = vsel %vm261_vm0, %v238_v1, 0.0  ;;  %v239_v5 = vld [vmem:[%s9432_s6 + $0x18] sm:$0xff]  ;;  %v265_v6 = vsel %vm261_vm0, %v237_v2, 0.0  ;;  %v240_v8 = vld [vmem:[%s9432_s6 + $0x20] sm:$0xff]  ;;  %v241_v9 = vld [vmem:[%s9432_s6 + $0x28] sm:$0xff]  ;;  %s9650_s4 = sld [smem:[%s12364_s0 + %s9397_s1]]  }
   0x9   :  { %263 = vadd.xlane.f32.xlu0 %v262_v3  ;;  %269 = vadd.xlane.f32.xlu1 %v268_v4  ;;  %v271_v7 = vsel %vm261_vm0, %v239_v5, 0.0  ;;  %v274_v10 = vsel %vm261_vm0, %v240_v8, 0.0  ;;  %v277_v11 = vsel %vm261_vm0, %v241_v9, 0.0  ;;  %v8567_v43 = vld [vmem:[%s9479_s10] sm:$0xff]   ;;  %v8569_v45 = vld [vmem:[%s9479_s10 + $0x8] sm:$0xff]   ;;  %s9895_s9 = sld [smem:[%s12364_s0 + %s9398_s5]]   ;;  %s9399_s11 = smov 13  }
   0xa   :  { %v8568_v44 = vld [vmem:[%s9484_s14] sm:$0xff]   ;;  %7838 = vmatpush3.bf16.msra.mxu0 %v8567_v43  ;;  %v8570_v46 = vld [vmem:[%s9484_s14 + $0x8] sm:$0xff]   ;;  %s9941_s15 = sld [smem:[%s12364_s0 + %s9399_s11]]   ;;  %s9400_s16 = smov 12  }
   0xb   :  { %7854 = vmatpush3.bf16.msra.mxu1 %v8568_v44  ;;  %7839 = vmatprep.subr.bf16.mxu0 %v9391_v42  ;;  %v7216_v3 = vld [vmem:[%s9507_s22] ss:$0 sm:$0xff]  ;;  %s9980_s20 = sld [smem:[%s12364_s0 + %s9400_s16]]   ;;  %s9401_s25 = smov 14  }
   0xc   :  { %7855 = vmatprep.subr.bf16.mxu1 %v9391_v42  ;;  %s9993_s24 = sld [smem:[%s12364_s0]]   ;;  %s9403_s5 = smov 19  }
   0xd   :  { %266 = vadd.xlane.f32.xlu0 %v265_v6  ;;  %272 = vadd.xlane.f32.xlu1 %v271_v7  ;;  %v203_v43 = vld [vmem:[%s9551_s30 + $0x90] sm:$0xff]  ;;  %v204_v44 = vld [vmem:[%s9551_s30 + $0x98] sm:$0xff]  ;;  %s9998_s29 = sld [smem:[%s12364_s0 + %s9401_s25]]   ;;  %s9404_s12 = smov 18  }
   0xe   :  { %7840 = vmatpush3.bf16.msra.mxu0 %v8569_v45  ;;  %s10083_s11 = sld [smem:[%s12364_s0 + %s9403_s5]]   ;;  %s9405_s19 = smov 15  }
   0xf   :  { %7856 = vmatpush3.bf16.msra.mxu1 %v8570_v46  ;;  %7869 = vmatprep.subr.bf16.mxu0 %v9391_v42  ;;  %s10092_s17 = sld [smem:[%s12364_s0 + %s9404_s12]]   ;;  %s9406_s27 = smov 16  }
  0x10   :  { %s10102_s25 = sld [smem:[%s12364_s0 + %s9405_s19]]   ;;  %s9407_s2 = smov 5  }
  0x11   :  { %275 = vadd.xlane.f32.xlu0 %v274_v10  ;;  %278 = vadd.xlane.f32.xlu1 %v277_v11  ;;  %s10107_s1 = sld [smem:[%s12364_s0 + %s9406_s27]]   ;;  %s9408_s12 = smov 3  }
  0x12   :  { %s10140_s8 = sld [smem:[%s12364_s0 + %s9407_s2]]   ;;  %s9409_s21 = smov 20  }
  0x13   :  { %s10304_s19 = sld [smem:[%s12364_s0 + %s9408_s12]]   ;;  %s9413_s2 = smov 23  }
  0x14   :  { %s10629_s28 = sld [smem:[%s12364_s0 + %s9409_s21]]   ;;  %s9412_s21 = smov 22  }
  0x15   :  { %s10782_s12 = sld [smem:[%s12364_s0 + %s9413_s2]]   ;;  %s9414_s13 = smov 26  }
  0x16   :  { %s10800_s27 = sld [smem:[%s12364_s0 + %s9414_s13]]   ;;  %s9415_s2 = smov 25  }
  0x17   :  { %s10814_s13 = sld [smem:[%s12364_s0 + %s9415_s2]]  }
  0x96   :  { %v264_v12 = vpop.xlane.xlu0 %263  ;;  %v270_v13 = vpop.xlane.xlu1 %269 }
  0x97   :  { %v281_v14 = vmul.f32 0.03125, %v264_v12  ;;  %v283_v15 = vmul.f32 0.03125, %v270_v13 }
  0x99   :  { %v9446_v16 = vsub.f32 %v236_v0, %v281_v14  ;;  %v9448_v17 = vsub.f32 %v238_v1, %v283_v15 }
  0x9a   :  { %v267_v18 = vpop.xlane.xlu0 %266  ;;  %v273_v19 = vpop.xlane.xlu1 %272 }
  0x9b   :  { %v282_v20 = vmul.f32 0.03125, %v267_v18  ;;  %v284_v21 = vmul.f32 0.03125, %v273_v19  ;;  %v293_v22 = vmul.f32 %v9446_v16, %v9446_v16  ;;  %v295_v23 = vmul.f32 %v9448_v17, %v9448_v17  ;;  %v8571_v18 = vld [vmem:[%s9502_s18] sm:$0xff]  }
  0x9d   :  { %v9454_v24 = vsub.f32 %v237_v2, %v282_v20  ;;  %v9456_v25 = vsub.f32 %v239_v5, %v284_v21  ;;  %v299_v26 = vsel %vm261_vm0, %v293_v22, 0.0  ;;  %v305_v29 = vsel %vm261_vm0, %v295_v23, 0.0  ;;  %v8572_v23 = vld [vmem:[%s9502_s18 + $0x8] sm:$0xff]  }
  0x9e   :  { %300 = vadd.xlane.f32.xlu0 %v299_v26  ;;  %v276_v27 = vpop.xlane.xlu0 %275  ;;  %v279_v28 = vpop.xlane.xlu1 %278 }
  0x9f   :  { %v285_v30 = vmul.f32 0.03125, %v276_v27  ;;  %v286_v31 = vmul.f32 0.03125, %v279_v28  ;;  %v294_v32 = vmul.f32 %v9454_v24, %v9454_v24  ;;  %v296_v33 = vmul.f32 %v9456_v25, %v9456_v25 }
  0xa1   :  { %v9464_v34 = vsub.f32 %v240_v8, %v285_v30  ;;  %v9466_v35 = vsub.f32 %v241_v9, %v286_v31  ;;  %v302_v36 = vsel %vm261_vm0, %v294_v32, 0.0  ;;  %v308_v37 = vsel %vm261_vm0, %v296_v33, 0.0  ;;  %v7217_v8 = vld [vmem:[%s9512_s26] ss:$0 sm:$0xff]  ;;  %v191_v33 = vld [vmem:[%s9551_s30 + $0x30] sm:$0xff] }
  0xa2   :  { %306 = vadd.xlane.f32.xlu0 %v305_v29  ;;  %303 = vadd.xlane.f32.xlu1 %v302_v36  ;;  %v185_v32 = vld [vmem:[%s9551_s30] sm:$0xff] }
  0xa3   :  { %v297_v38 = vmul.f32 %v9464_v34, %v9464_v34  ;;  %v298_v39 = vmul.f32 %v9466_v35, %v9466_v35 }
  0xa5   :  { %v311_v40 = vsel %vm261_vm0, %v297_v38, 0.0  ;;  %v314_v41 = vsel %vm261_vm0, %v298_v39, 0.0  ;;  %v192_v38 = vld [vmem:[%s9551_s30 + $0x38] sm:$0xff]  ;;  %v198_v39 = vld [vmem:[%s9551_s30 + $0x68] sm:$0xff] }
  0xa6   :  { %309 = vadd.xlane.f32.xlu1 %v308_v37  ;;  %312 = vadd.xlane.f32.xlu0 %v311_v40  ;;  %v186_v37 = vld [vmem:[%s9551_s30 + $0x8] sm:$0xff] }
  0xaa   :  { %315 = vadd.xlane.f32.xlu1 %v314_v41 }
 0x12b   :  { %v301_v47 = vpop.xlane.xlu0 %300 }
 0x12c   :  { %v317_v48 = vmul.f32 0.03125, %v301_v47 }
 0x12e   :  { %v323_v49 = vadd.f32 1e-05, %v317_v48 }
 0x12f   :  { %v304_v50 = vpop.xlane.xlu1 %303  ;;  %v307_v51 = vpop.xlane.xlu0 %306 }
 0x130   :  { %8645 = vrsqrt.f32 %v323_v49  ;;  %v318_v52 = vmul.f32 0.03125, %v304_v50  ;;  %v319_v53 = vmul.f32 0.03125, %v307_v51 }
 0x132   :  { %v324_v54 = vadd.f32 1e-05, %v318_v52  ;;  %v325_v55 = vadd.f32 1e-05, %v319_v53 }
 0x133   :  { %v310_v56 = vpop.xlane.xlu1 %309  ;;  %v313_v57 = vpop.xlane.xlu0 %312 }
 0x134   :  { %8647 = vrsqrt.f32 %v324_v54  ;;  %v320_v58 = vmul.f32 0.03125, %v310_v56  ;;  %v321_v60 = vmul.f32 0.03125, %v313_v57 }
 0x135   :  { %8649 = vrsqrt.f32 %v325_v55 }
 0x136   :  { %v326_v59 = vadd.f32 1e-05, %v320_v58  ;;  %v327_v0 = vadd.f32 1e-05, %v321_v60 }
 0x137   :  { %v316_v61 = vpop.xlane.xlu1 %315 }
 0x138   :  { %8651 = vrsqrt.f32 %v326_v59  ;;  %v322_v62 = vmul.f32 0.03125, %v316_v61 }
 0x13a   :  { %v8646_v63 = vpop.eup %8645  ;;  %v328_v1 = vadd.f32 1e-05, %v322_v62 }
 0x13b   :  { %v335_v2 = vmul.f32 %v8646_v63, %v9446_v16  ;;  %v187_v63 = vld [vmem:[%s9551_s30 + $0x10] sm:$0xff] }
 0x13c   :  { %8653 = vrsqrt.f32 %v328_v1  ;;  %v199_v1 = vld [vmem:[%s9551_s30 + $0x70] sm:$0xff] }
 0x13d   :  { %8655 = vrsqrt.f32 %v327_v0  ;;  %v347_v6 = vmul.f32 %v7216_v3, %v335_v2  ;;  %v193_v0 = vld [vmem:[%s9551_s30 + $0x40] sm:$0xff] }
 0x13e   :  { %v8648_v4 = vpop.eup %8647 }
 0x13f   :  { %v336_v5 = vmul.f32 %v8648_v4, %v9454_v24  ;;  %v8650_v7 = vpop.eup %8649  ;;  %v359_v11 = vadd.f32 %v7217_v8, %v347_v6  ;;  %v188_v4 = vld [vmem:[%s9551_s30 + $0x18] sm:$0xff] }
 0x140   :  { %v337_v13 = vmul.f32 %v8650_v7, %v9448_v17  ;;  %v200_v6 = vld [vmem:[%s9551_s30 + $0x78] sm:$0xff] }
 0x141   :  { %v348_v9 = vmul.f32 %v7216_v3, %v336_v5  ;;  %v194_v5 = vld [vmem:[%s9551_s30 + $0x48] sm:$0xff] }
 0x142   :  { %v8652_v10 = vpop.eup %8651  ;;  %v349_v20 = vmul.f32 %v7216_v3, %v337_v13 }
 0x143   :  { %v360_v12 = vadd.f32 %v7217_v8, %v348_v9  ;;  %v338_v14 = vmul.f32 %v8652_v10, %v9456_v25  ;;  %v205_v9 = vld [vmem:[%s9551_s30 + $0xa0] sm:$0xff]  ;;  %v206_v10 = vld [vmem:[%s9551_s30 + $0xa8] sm:$0xff] }
 0x144   :  { %v361_v24 = vadd.f32 %v7217_v8, %v349_v20 }
 0x145   :  { %v365_v15 = vpack.c.bf16 %v360_v12, %v359_v11  ;;  %v350_v16 = vmul.f32 %v7216_v3, %v338_v14 }
 0x146   :  { %v8654_v19 = vpop.eup %8653 }
 0x147   :  { %7842 = vmatmul.mubr.msk.bf16.vlgmr.msra.gmra.mrb[0].mxu0 %vm261_vm0, %v365_v15  ;;  %7858 = vmatmul.mubr.msk.bf16.vlgmr.msra.gmra.mrb[0].mxu1 %vm261_vm0, %v365_v15  ;;  %v8656_v21 = vpop.eup %8655  ;;  %v362_v22 = vadd.f32 %v7217_v8, %v350_v16  ;;  %v340_v17 = vmul.f32 %v8654_v19, %v9466_v35 }
 0x148   :  { %7845 = vmatprep.mubr.msk.bf16.mxu0 %vm9392_vm1, %v9391_v42  ;;  %7861 = vmatprep.mubr.msk.bf16.mxu1 %vm9392_vm1, %v9391_v42  ;;  %v339_v25 = vmul.f32 %v8656_v21, %v9464_v34  ;;  %v197_v34 = vld [vmem:[%s9551_s30 + $0x60] sm:$0xff] }
 0x149   :  { %7870 = vmatpush3.bf16.msra.mxu0 %v8571_v18  ;;  %v366_v26 = vpack.c.bf16 %v362_v22, %v361_v24  ;;  %v352_v27 = vmul.f32 %v7216_v3, %v340_v17 }
 0x14a   :  { %7871 = vmatprep.subr.bf16.mxu0 %v9391_v42  ;;  %v351_v28 = vmul.f32 %v7216_v3, %v339_v25 }
 0x14b   :  { %v364_v29 = vadd.f32 %v7217_v8, %v352_v27 }
 0x14c   :  { %v363_v30 = vadd.f32 %v7217_v8, %v351_v28 }
 0x14d   :  { %7872 = vmatpush3.bf16.msra.mxu0 %v8572_v23 }
 0x14e   :  { %v367_v31 = vpack.c.bf16 %v364_v29, %v363_v30  ;;  %v189_v29 = vld [vmem:[%s9551_s30 + $0x20] sm:$0xff]  ;;  %v195_v30 = vld [vmem:[%s9551_s30 + $0x50] sm:$0xff] }
 0x14f   :  { %7846 = vmatmul.mubr.msk.bf16.gmra.mrb[4].mxu0 %vm261_vm0, %v366_v26  ;;  %7862 = vmatmul.mubr.msk.bf16.gmra.mrb[4].mxu1 %vm261_vm0, %v366_v26 }
 0x150   :  { %7849 = vmatprep.mubr.msk.bf16.mxu0 %vm9392_vm1, %v9391_v42  ;;  %7865 = vmatprep.mubr.msk.bf16.mxu1 %vm9392_vm1, %v9391_v42 }
 0x157   :  { %7850 = vmatmul.mubr.msk.bf16.gmra.mrb[8].mxu0 %vm261_vm0, %v367_v31  ;;  %7866 = vmatmul.mubr.msk.bf16.gmra.mrb[8].mxu1 %vm261_vm0, %v367_v31 }
 0x158   :  { %7873 = vmatprep.mubr.msk.bf16.mxu0 %vm9392_vm1, %v9391_v42 }
 0x15f   :  { %7874 = vmatmul.mubr.msk.bf16.vlgmr.msra.gmra.mrb[12].mxu0 %vm261_vm0, %v365_v15 }
 0x160   :  { %7877 = vmatprep.mubr.msk.bf16.mxu0 %vm9392_vm1, %v9391_v42 }
 0x167   :  { %7878 = vmatmul.mubr.msk.bf16.gmra.mrb[16].mxu0 %vm261_vm0, %v366_v26 }
 0x168   :  { %7881 = vmatprep.mubr.msk.bf16.mxu0 %vm9392_vm1, %v9391_v42 }
 0x16f   :  { %7882 = vmatmul.mubr.msk.bf16.gmra.mrb[20].mxu0 %vm261_vm0, %v367_v31  ;;  %v201_v31 = vld [vmem:[%s9551_s30 + $0x80] sm:$0xff] }
 0x21a   :  { %v423_v35 = vpop.f32.mrb[0].mxu0  ;;  %v492_v36 = vpop.f32.mrb[0].mxu1 }
 0x21b   :  { %v7843_v40 = vpop.f32.mrb[1].mxu0  ;;  %v7859_v41 = vpop.f32.mrb[1].mxu1  ;;  %v590_v47 = vmul.f32 %v423_v35, %v185_v32  ;;  %v9561_v48 = vmul.f32 %v423_v35, %v191_v33  ;;  %v9563_v49 = vmul.f32 %v423_v35, %v197_v34  ;;  %v9569_v56 = vmul.f32 %v423_v35, %v203_v43  ;;  %v190_v34 = vld [vmem:[%s9551_s30 + $0x28] sm:$0xff]  ;;  %v196_v35 = vld [vmem:[%s9551_s30 + $0x58] sm:$0xff] }
 0x21c   :  { %v426_v45 = vpop.f32.mrb[2].mxu0  ;;  %v495_v46 = vpop.f32.mrb[2].mxu1  ;;  %v208_v40 = vld [vmem:[%s9551_s30 + $0xb8] sm:$0xff] }
 0x21d   :  { %v515_v50 = vpack.c.bf16 %v495_v46, %v492_v36  ;;  %v7844_v51 = vpop.f32.mrb[3].mxu0  ;;  %v7860_v52 = vpop.f32.mrb[3].mxu1  ;;  %v591_v53 = vmul.f32 %v426_v45, %v186_v37  ;;  %v9565_v54 = vmul.f32 %v426_v45, %v192_v38  ;;  %v9567_v55 = vmul.f32 %v426_v45, %v198_v39  ;;  %v202_v36 = vld [vmem:[%s9551_s30 + $0x88] sm:$0xff]  ;;  %v207_v39 = vld [vmem:[%s9551_s30 + $0xb0] sm:$0xff] }
 0x21e   :  { %v9571_v57 = vmul.f32 %v426_v45, %v204_v44 }
 0x21f   :  { %8525 = vmatprep.subr.msk.bf16.mxu1 %vm261_vm0, %v515_v50  ;;  %v663_v58 = vsel %vm261_vm0, %v515_v50, 0  ;;  %v614_v59 = vpack.c.bf16 %v591_v53, %v590_v47  ;;  %v617_v60 = vpack.c.bf16 %v9565_v54, %v9561_v48  ;;  %v620_v61 = vpack.c.bf16 %v9567_v55, %v9563_v49  ;;  %v135_v54 = vld [vmem:[%s9650_s4] sm:$0xff] }
 0x220   :  { %7886 = vmatpush3.bf16.xpose.msra.mxu1 %v663_v58  ;;  %v623_v62 = vpack.c.bf16 %v9571_v57, %v9569_v56 }
 0x221   :  { %7891 = vmatprep.mubr.msk.bf16.mxu1 %vm261_vm0, %v614_v59 }
 0x222   :  { %v431_v2 = vpop.f32.mrb[4].mxu0  ;;  %v500_v3 = vpop.f32.mrb[4].mxu1 }
 0x223   :  { %v7847_v7 = vpop.f32.mrb[5].mxu0  ;;  %v7863_v8 = vpop.f32.mrb[5].mxu1  ;;  %v592_v11 = vmul.f32 %v431_v2, %v187_v63  ;;  %v9590_v14 = vmul.f32 %v431_v2, %v193_v0  ;;  %v9592_v15 = vmul.f32 %v431_v2, %v199_v1  ;;  %v9596_v17 = vmul.f32 %v431_v2, %v205_v9 }
 0x224   :  { %v434_v12 = vpop.f32.mrb[6].mxu0  ;;  %v503_v13 = vpop.f32.mrb[6].mxu1 }
 0x225   :  { %v593_v16 = vmul.f32 %v434_v12, %v188_v4  ;;  %v516_v18 = vpack.c.bf16 %v503_v13, %v500_v3  ;;  %v7848_v19 = vpop.f32.mrb[7].mxu0  ;;  %v7864_v20 = vpop.f32.mrb[7].mxu1  ;;  %v599_v21 = vmul.f32 %v434_v12, %v194_v5  ;;  %v9594_v22 = vmul.f32 %v434_v12, %v200_v6 }
 0x226   :  { %v9598_v23 = vmul.f32 %v434_v12, %v206_v10 }
 0x227   :  { %v615_v24 = vpack.c.bf16 %v593_v16, %v592_v11  ;;  %v666_v25 = vsel %vm261_vm0, %v516_v18, 0  ;;  %8526 = vmatprep.subr.msk.bf16.mxu1 %vm261_vm0, %v516_v18  ;;  %v618_v26 = vpack.c.bf16 %v599_v21, %v9590_v14  ;;  %v621_v27 = vpack.c.bf16 %v9594_v22, %v9592_v15 }
 0x228   :  { %7888 = vmatpush3.bf16.xpose.msra.mxu1 %v666_v25  ;;  %v624_v28 = vpack.c.bf16 %v9598_v23, %v9596_v17  ;;  %v138_v23 = vld [vmem:[%s9650_s4 + $0x18] sm:$0xff] }
 0x22a   :  { %v439_v32 = vpop.f32.mrb[8].mxu0  ;;  %v508_v33 = vpop.f32.mrb[8].mxu1 }
 0x22b   :  { %v7851_v37 = vpop.f32.mrb[9].mxu0  ;;  %v7867_v38 = vpop.f32.mrb[9].mxu1  ;;  %v594_v44 = vmul.f32 %v439_v32, %v189_v29  ;;  %v600_v45 = vmul.f32 %v439_v32, %v195_v30  ;;  %v606_v46 = vmul.f32 %v439_v32, %v201_v31  ;;  %v612_v59 = vmul.f32 %v439_v32, %v207_v39  ;;  %v139_v31 = vld [vmem:[%s9650_s4 + $0x20] sm:$0xff] }
 0x22c   :  { %v442_v41 = vpop.f32.mrb[10].mxu0  ;;  %v511_v43 = vpop.f32.mrb[10].mxu1  ;;  %v140_v37 = vld [vmem:[%s9650_s4 + $0x28] sm:$0xff]  ;;  %v141_v38 = vld [vmem:[%s9650_s4 + $0x30] sm:$0xff] }
 0x22d   :  { %v517_v47 = vpack.c.bf16 %v511_v43, %v508_v33  ;;  %v7852_v50 = vpop.f32.mrb[11].mxu0  ;;  %v7868_v51 = vpop.f32.mrb[11].mxu1  ;;  %v595_v52 = vmul.f32 %v442_v41, %v190_v34  ;;  %v601_v53 = vmul.f32 %v442_v41, %v196_v35  ;;  %v607_v58 = vmul.f32 %v442_v41, %v202_v36 }
 0x22e   :  { %v613_v63 = vmul.f32 %v442_v41, %v208_v40 }
 0x22f   :  { %v669_v0 = vsel %vm261_vm0, %v517_v47, 0  ;;  %8527 = vmatprep.subr.msk.bf16.mxu1 %vm261_vm0, %v517_v47  ;;  %v616_v1 = vpack.c.bf16 %v595_v52, %v594_v44  ;;  %v619_v2 = vpack.c.bf16 %v601_v53, %v600_v45  ;;  %v622_v3 = vpack.c.bf16 %v607_v58, %v606_v46  ;;  %v142_v44 = vld [vmem:[%s9650_s4 + $0x38] sm:$0xff]  ;;  %v143_v58 = vld [vmem:[%s9650_s4 + $0x40] sm:$0xff] }
 0x230   :  { %7890 = vmatpush3.bf16.xpose.msra.mxu1 %v669_v0  ;;  %v625_v4 = vpack.c.bf16 %v613_v63, %v612_v59 }
 0x231   :  { %7945 = vmatprep.subr.bf16.mxu1 %v9391_v42 }
 0x232   :  { %v564_v5 = vpop.f32.mrb[12].mxu0 }
 0x233   :  { %v7875_v6 = vpop.f32.mrb[13].mxu0 }
 0x234   :  { %v567_v7 = vpop.f32.mrb[14].mxu0 }
 0x235   :  { %v587_v8 = vpack.c.bf16 %v567_v7, %v564_v5  ;;  %v7876_v9 = vpop.f32.mrb[15].mxu0 }
 0x236   :  { %v146_v9 = vld [vmem:[%s9650_s4 + $0x58] sm:$0xff] }
 0x237   :  { %7892 = vmatmul.mubr.msk.bf16.vlgmr.msra.gmra.mrb[12].mxu1 %vm261_vm0, %v615_v24  ;;  %7915 = vmatprep.subr.bf16.mxu0 %v587_v8 }
 0x238   :  { %7895 = vmatprep.mubr.msk.bf16.mxu1 %vm261_vm0, %v616_v1  ;;  %7916 = vmatpush3.bf16.msra.mxu0 %v587_v8 }
 0x23a   :  { %v572_v10 = vpop.f32.mrb[16].mxu0 }
 0x23b   :  { %v7879_v11 = vpop.f32.mrb[17].mxu0 }
 0x23c   :  { %v575_v12 = vpop.f32.mrb[18].mxu0 }
 0x23d   :  { %v588_v13 = vpack.c.bf16 %v575_v12, %v572_v10  ;;  %v7880_v14 = vpop.f32.mrb[19].mxu0 }
 0x23f   :  { %7896 = vmatmul.mubr.msk.bf16.gmra.mrb[16].mxu1 %vm261_vm0, %v617_v60  ;;  %7917 = vmatprep.subr.bf16.mxu0 %v588_v13 }
 0x240   :  { %7899 = vmatprep.mubr.msk.bf16.mxu1 %vm261_vm0, %v618_v26  ;;  %7918 = vmatpush3.bf16.msra.mxu0 %v588_v13 }
 0x242   :  { %v580_v16 = vpop.f32.mrb[20].mxu0 }
 0x243   :  { %v7883_v18 = vpop.f32.mrb[21].mxu0 }
 0x244   :  { %v583_v19 = vpop.f32.mrb[22].mxu0 }
 0x245   :  { %v589_v20 = vpack.c.bf16 %v583_v19, %v580_v16  ;;  %v7884_v21 = vpop.f32.mrb[23].mxu0  ;;  %v147_v19 = vld [vmem:[%s9650_s4 + $0x60] sm:$0xff] }
 0x247   :  { %7900 = vmatmul.mubr.msk.bf16.gmra.mrb[20].mxu1 %vm261_vm0, %v619_v2  ;;  %7919 = vmatprep.subr.bf16.mxu0 %v589_v20 }
 0x248   :  { %7903 = vmatprep.mubr.msk.bf16.mxu1 %vm261_vm0, %v620_v61  ;;  %7920 = vmatpush3.bf16.msra.mxu0 %v589_v20  ;;  %v136_v61 = vld [vmem:[%s9650_s4 + $0x8] sm:$0xff] }
 0x249   :  { %7961 = vmatprep.subr.bf16.mxu0 %v9391_v42 }
 0x24f   :  { %7904 = vmatmul.mubr.msk.bf16.gmra.mrb[24].mxu1 %vm261_vm0, %v621_v27 }
 0x250   :  { %7907 = vmatprep.mubr.msk.bf16.mxu1 %vm261_vm0, %v622_v3  ;;  %v144_v3 = vld [vmem:[%s9650_s4 + $0x48] sm:$0xff] }
 0x257   :  { %7908 = vmatmul.mubr.msk.bf16.gmra.mrb[28].mxu1 %vm261_vm0, %v623_v62  ;;  %v137_v62 = vld [vmem:[%s9650_s4 + $0x10] sm:$0xff] }
 0x258   :  { %7911 = vmatprep.mubr.msk.bf16.mxu1 %vm261_vm0, %v624_v28 }
 0x25f   :  { %7912 = vmatmul.mubr.msk.bf16.gmra.mrb[32].mxu1 %vm261_vm0, %v625_v4  ;;  %v145_v4 = vld [vmem:[%s9650_s4 + $0x50] sm:$0xff] }
 0x260   :  { %7949 = vmatprep.mubr.msk.bf16.mxu1 %vm9392_vm1, %v9391_v42 }
 0x30a   :  { %v7893_v48 = vpop.f32.mrb[12].mxu1 }
 0x30b   :  { %v705_v49 = vpop.f32.mrb[13].mxu1  ;;  %v802_v55 = vmul.f32 0.35355338, %v7893_v48 }
 0x30c   :  { %v800_v56 = vmul.f32 0.35355338, %v705_v49  ;;  %v7894_v57 = vpop.f32.mrb[14].mxu1 }
 0x30d   :  { %v708_v60 = vpop.f32.mrb[15].mxu1  ;;  %v803_v15 = vmul.f32 0.35355338, %v7894_v57  ;;  %v9662_v26 = vadd.f32 %v802_v55, %v137_v62  ;;  %v148_v55 = vld [vmem:[%s9650_s4 + $0x68] sm:$0xff] }
 0x30e   :  { %v801_v22 = vmul.f32 0.35355338, %v708_v60  ;;  %v9655_v17 = vadd.f32 %v800_v56, %v135_v54  ;;  %v149_v56 = vld [vmem:[%s9650_s4 + $0x70] sm:$0xff] }
 0x30f   :  { %v9666_v29 = vadd.f32 %v803_v15, %v138_v23  ;;  %v855_v35 = vsel %vm848_vm2, %v9662_v26, -inf  ;;  %v150_v15 = vld [vmem:[%s9650_s4 + $0x78] sm:$0xff] }
 0x310   :  { %v849_v24 = vsel %vm848_vm2, %v9655_v17, -inf  ;;  %v9660_v25 = vadd.f32 %v801_v22, %v136_v61 }
 0x311   :  { %850 = vmax.xlane.f32.xlu0 %v849_v24  ;;  %v858_v41 = vsel %vm848_vm2, %v9666_v29, -inf }
 0x312   :  { %v7897_v27 = vpop.f32.mrb[16].mxu1  ;;  %v852_v28 = vsel %vm848_vm2, %v9660_v25, -inf }
 0x313   :  { %853 = vmax.xlane.f32.xlu1 %v852_v28  ;;  %v721_v30 = vpop.f32.mrb[17].mxu1  ;;  %v806_v32 = vmul.f32 0.35355338, %v7897_v27 }
 0x314   :  { %v804_v33 = vmul.f32 0.35355338, %v721_v30  ;;  %v7898_v34 = vpop.f32.mrb[18].mxu1 }
 0x315   :  { %856 = vmax.xlane.f32.xlu0 %v855_v35  ;;  %v724_v36 = vpop.f32.mrb[19].mxu1  ;;  %v807_v39 = vmul.f32 0.35355338, %v7898_v34  ;;  %v9682_v47 = vadd.f32 %v806_v32, %v141_v38  ;;  %v151_v32 = vld [vmem:[%s9650_s4 + $0x80] sm:$0xff]  ;;  %v152_v38 = vld [vmem:[%s9650_s4 + $0x88] sm:$0xff] }
 0x316   :  { %v805_v40 = vmul.f32 0.35355338, %v724_v36  ;;  %v9675_v43 = vadd.f32 %v804_v33, %v139_v31 }
 0x317   :  { %859 = vmax.xlane.f32.xlu1 %v858_v41  ;;  %v9686_v52 = vadd.f32 %v807_v39, %v142_v44  ;;  %v867_v1 = vsel %vm848_vm2, %v9682_v47, -inf  ;;  %v153_v39 = vld [vmem:[%s9650_s4 + $0x90] sm:$0xff] }
 0x318   :  { %v861_v45 = vsel %vm848_vm2, %v9675_v43, -inf  ;;  %v9680_v46 = vadd.f32 %v805_v40, %v140_v37 }
 0x319   :  { %862 = vmax.xlane.f32.xlu0 %v861_v45  ;;  %v870_v7 = vsel %vm848_vm2, %v9686_v52, -inf }
 0x31a   :  { %v7901_v50 = vpop.f32.mrb[20].mxu1  ;;  %v864_v51 = vsel %vm848_vm2, %v9680_v46, -inf }
 0x31b   :  { %865 = vmax.xlane.f32.xlu1 %v864_v51  ;;  %v737_v53 = vpop.f32.mrb[21].mxu1  ;;  %v810_v59 = vmul.f32 0.35355338, %v7901_v50  ;;  %v154_v50 = vld [vmem:[%s9650_s4 + $0x98] sm:$0xff] }
 0x31c   :  { %v808_v63 = vmul.f32 0.35355338, %v737_v53  ;;  %v7902_v0 = vpop.f32.mrb[22].mxu1 }
 0x31d   :  { %868 = vmax.xlane.f32.xlu0 %v867_v1  ;;  %v740_v2 = vpop.f32.mrb[23].mxu1  ;;  %v811_v5 = vmul.f32 0.35355338, %v7902_v0  ;;  %v9702_v12 = vadd.f32 %v810_v59, %v145_v4 }
 0x31e   :  { %v809_v6 = vmul.f32 0.35355338, %v740_v2  ;;  %v9695_v8 = vadd.f32 %v808_v63, %v143_v58  ;;  %v155_v2 = vld [vmem:[%s9650_s4 + $0xa0] sm:$0xff] }
 0x31f   :  { %871 = vmax.xlane.f32.xlu1 %v870_v7  ;;  %v9706_v16 = vadd.f32 %v811_v5, %v146_v9  ;;  %v879_v49 = vsel %vm848_vm2, %v9702_v12, -inf  ;;  %v156_v9 = vld [vmem:[%s9650_s4 + $0xa8] sm:$0xff] }
 0x320   :  { %v873_v10 = vsel %vm848_vm2, %v9695_v8, -inf  ;;  %v9700_v11 = vadd.f32 %v809_v6, %v144_v3 }
 0x321   :  { %874 = vmax.xlane.f32.xlu0 %v873_v10  ;;  %v882_v61 = vsel %vm848_vm2, %v9706_v16, -inf  ;;  %v157_v10 = vld [vmem:[%s9650_s4 + $0xb0] sm:$0xff] }
 0x322   :  { %v7905_v13 = vpop.f32.mrb[24].mxu1  ;;  %v876_v14 = vsel %vm848_vm2, %v9700_v11, -inf }
 0x323   :  { %877 = vmax.xlane.f32.xlu1 %v876_v14  ;;  %v753_v18 = vpop.f32.mrb[25].mxu1  ;;  %v814_v20 = vmul.f32 0.35355338, %v7905_v13 }
 0x324   :  { %v812_v21 = vmul.f32 0.35355338, %v753_v18  ;;  %v7906_v48 = vpop.f32.mrb[26].mxu1 }
 0x325   :  { %880 = vmax.xlane.f32.xlu0 %v879_v49  ;;  %v756_v54 = vpop.f32.mrb[27].mxu1  ;;  %v815_v57 = vmul.f32 0.35355338, %v7906_v48  ;;  %v9722_v24 = vadd.f32 %v814_v20, %v149_v56  ;;  %v158_v20 = vld [vmem:[%s9650_s4 + $0xb8] sm:$0xff] }
 0x326   :  { %v813_v60 = vmul.f32 0.35355338, %v756_v54  ;;  %v9715_v62 = vadd.f32 %v812_v21, %v147_v19 }
 0x327   :  { %883 = vmax.xlane.f32.xlu1 %v882_v61  ;;  %v9726_v30 = vadd.f32 %v815_v57, %v150_v15  ;;  %v891_v36 = vsel %vm848_vm2, %v9722_v24, -inf }
 0x328   :  { %v885_v22 = vsel %vm848_vm2, %v9715_v62, -inf  ;;  %v9720_v23 = vadd.f32 %v813_v60, %v148_v55 }
 0x329   :  { %886 = vmax.xlane.f32.xlu0 %v885_v22  ;;  %v894_v44 = vsel %vm848_vm2, %v9726_v30, -inf }
 0x32a   :  { %v7909_v27 = vpop.f32.mrb[28].mxu1  ;;  %v888_v28 = vsel %vm848_vm2, %v9720_v23, -inf }
 0x32b   :  { %889 = vmax.xlane.f32.xlu1 %v888_v28  ;;  %v769_v31 = vpop.f32.mrb[29].mxu1  ;;  %v818_v33 = vmul.f32 0.35355338, %v7909_v27 }
 0x32c   :  { %v816_v34 = vmul.f32 0.35355338, %v769_v31  ;;  %v7910_v35 = vpop.f32.mrb[30].mxu1 }
 0x32d   :  { %892 = vmax.xlane.f32.xlu0 %v891_v36  ;;  %v772_v37 = vpop.f32.mrb[31].mxu1  ;;  %v819_v40 = vmul.f32 0.35355338, %v7910_v35  ;;  %v9742_v58 = vadd.f32 %v818_v33, %v153_v39 }
 0x32e   :  { %v817_v41 = vmul.f32 0.35355338, %v772_v37  ;;  %v9735_v45 = vadd.f32 %v816_v34, %v151_v32 }
 0x32f   :  { %895 = vmax.xlane.f32.xlu1 %v894_v44  ;;  %v9746_v0 = vadd.f32 %v819_v40, %v154_v50  ;;  %v903_v6 = vsel %vm848_vm2, %v9742_v58, -inf }
 0x330   :  { %v897_v51 = vsel %vm848_vm2, %v9735_v45, -inf  ;;  %v9740_v53 = vadd.f32 %v817_v41, %v152_v38 }
 0x331   :  { %898 = vmax.xlane.f32.xlu0 %v897_v51  ;;  %v906_v18 = vsel %vm848_vm2, %v9746_v0, -inf }
 0x332   :  { %v7913_v59 = vpop.f32.mrb[32].mxu1  ;;  %v900_v63 = vsel %vm848_vm2, %v9740_v53, -inf }
 0x333   :  { %901 = vmax.xlane.f32.xlu1 %v900_v63  ;;  %v785_v1 = vpop.f32.mrb[33].mxu1  ;;  %v822_v3 = vmul.f32 0.35355338, %v7913_v59 }
 0x334   :  { %v820_v4 = vmul.f32 0.35355338, %v785_v1  ;;  %v7914_v5 = vpop.f32.mrb[34].mxu1 }
 0x335   :  { %904 = vmax.xlane.f32.xlu0 %v903_v6  ;;  %v788_v7 = vpop.f32.mrb[35].mxu1  ;;  %v823_v13 = vmul.f32 0.35355338, %v7914_v5  ;;  %v9762_v49 = vadd.f32 %v822_v3, %v157_v10 }
 0x336   :  { %v821_v14 = vmul.f32 0.35355338, %v788_v7  ;;  %v9755_v19 = vadd.f32 %v820_v4, %v155_v2 }
 0x337   :  { %907 = vmax.xlane.f32.xlu1 %v906_v18  ;;  %v9766_v55 = vadd.f32 %v823_v13, %v158_v20  ;;  %v915_v56 = vsel %vm848_vm2, %v9762_v49, -inf }
 0x338   :  { %v909_v21 = vsel %vm848_vm2, %v9755_v19, -inf  ;;  %v9760_v48 = vadd.f32 %v821_v14, %v156_v9 }
 0x339   :  { %910 = vmax.xlane.f32.xlu0 %v909_v21  ;;  %v918_v57 = vsel %vm848_vm2, %v9766_v55, -inf }
 0x33a   :  { %v912_v54 = vsel %vm848_vm2, %v9760_v48, -inf }
 0x33b   :  { %913 = vmax.xlane.f32.xlu1 %v912_v54 }
 0x33d   :  { %916 = vmax.xlane.f32.xlu0 %v915_v56 }
 0x33f   :  { %919 = vmax.xlane.f32.xlu1 %v918_v57 }
 0x39e   :  { %v851_v60 = vpop.xlane.xlu0 %850 }
 0x39f   :  { %v921_v61 = vsub.f32 %v9655_v17, %v851_v60 }
 0x3a0   :  { %v854_v15 = vpop.xlane.xlu1 %853 }
 0x3a1   :  { %v945_v22 = vmul.f32 1.442695, %v921_v61  ;;  %v922_v27 = vsub.f32 %v9660_v25, %v854_v15 }
 0x3a2   :  { %v857_v28 = vpop.xlane.xlu0 %856 }
 0x3a3   :  { %8657 = vpow2.f32 %v945_v22  ;;  %v947_v31 = vmul.f32 1.442695, %v922_v27  ;;  %v923_v32 = vsub.f32 %v9662_v26, %v857_v28 }
 0x3a4   :  { %v860_v33 = vpop.xlane.xlu1 %859 }
 0x3a5   :  { %8659 = vpow2.f32 %v947_v31  ;;  %v949_v34 = vmul.f32 1.442695, %v923_v32  ;;  %v924_v35 = vsub.f32 %v9666_v29, %v860_v33 }
 0x3a6   :  { %v863_v36 = vpop.xlane.xlu0 %862 }
 0x3a7   :  { %8661 = vpow2.f32 %v949_v34  ;;  %v951_v37 = vmul.f32 1.442695, %v924_v35  ;;  %v925_v38 = vsub.f32 %v9675_v43, %v863_v36 }
 0x3a8   :  { %v866_v17 = vpop.xlane.xlu1 %865 }
 0x3a9   :  { %8663 = vpow2.f32 %v951_v37  ;;  %v953_v39 = vmul.f32 1.442695, %v925_v38  ;;  %v926_v25 = vsub.f32 %v9680_v46, %v866_v17 }
 0x3aa   :  { %v869_v40 = vpop.xlane.xlu0 %868 }
 0x3ab   :  { %8665 = vpow2.f32 %v953_v39  ;;  %v955_v41 = vmul.f32 1.442695, %v926_v25  ;;  %v927_v26 = vsub.f32 %v9682_v47, %v869_v40 }
 0x3ac   :  { %v872_v44 = vpop.xlane.xlu1 %871 }
 0x3ad   :  { %v9779_v50 = vpop.eup %8657  ;;  %8667 = vpow2.f32 %v955_v41  ;;  %v957_v29 = vmul.f32 1.442695, %v927_v26  ;;  %v928_v51 = vsub.f32 %v9686_v52, %v872_v44 }
 0x3ae   :  { %v875_v59 = vpop.xlane.xlu0 %874  ;;  %v993_v43 = vsel %vm848_vm2, %v9779_v50, 0.0 }
 0x3af   :  { %v9784_v63 = vpop.eup %8659  ;;  %8669 = vpow2.f32 %v957_v29  ;;  %v959_v46 = vmul.f32 1.442695, %v928_v51  ;;  %v929_v1 = vsub.f32 %v9695_v8, %v875_v59  ;;  %994 = vadd.xlane.f32.xlu0 %v993_v43 }
 0x3b0   :  { %v878_v2 = vpop.xlane.xlu1 %877  ;;  %v996_v47 = vsel %vm848_vm2, %v9784_v63, 0.0 }
 0x3b1   :  { %v9789_v3 = vpop.eup %8661  ;;  %8671 = vpow2.f32 %v959_v46  ;;  %v961_v4 = vmul.f32 1.442695, %v929_v1  ;;  %v930_v52 = vsub.f32 %v9700_v11, %v878_v2  ;;  %997 = vadd.xlane.f32.xlu1 %v996_v47 }
 0x3b2   :  { %v881_v5 = vpop.xlane.xlu0 %880  ;;  %v999_v6 = vsel %vm848_vm2, %v9789_v3, 0.0 }
 0x3b3   :  { %v9794_v7 = vpop.eup %8663  ;;  %8673 = vpow2.f32 %v961_v4  ;;  %v963_v8 = vmul.f32 1.442695, %v930_v52  ;;  %v931_v9 = vsub.f32 %v9702_v12, %v881_v5  ;;  %1000 = vadd.xlane.f32.xlu0 %v999_v6 }
 0x3b4   :  { %v884_v10 = vpop.xlane.xlu1 %883  ;;  %v1002_v13 = vsel %vm848_vm2, %v9794_v7, 0.0 }
 0x3b5   :  { %v9799_v14 = vpop.eup %8665  ;;  %8675 = vpow2.f32 %v963_v8  ;;  %v965_v11 = vmul.f32 1.442695, %v931_v9  ;;  %v932_v18 = vsub.f32 %v9706_v16, %v884_v10  ;;  %1003 = vadd.xlane.f32.xlu1 %v1002_v13 }
 0x3b6   :  { %v887_v20 = vpop.xlane.xlu0 %886  ;;  %v1005_v21 = vsel %vm848_vm2, %v9799_v14, 0.0 }
 0x3b7   :  { %v9804_v54 = vpop.eup %8667  ;;  %8677 = vpow2.f32 %v965_v11  ;;  %v967_v12 = vmul.f32 1.442695, %v932_v18  ;;  %v933_v56 = vsub.f32 %v9715_v62, %v887_v20  ;;  %1006 = vadd.xlane.f32.xlu0 %v1005_v21 }
 0x3b8   :  { %v890_v57 = vpop.xlane.xlu1 %889  ;;  %v1008_v60 = vsel %vm848_vm2, %v9804_v54, 0.0 }
 0x3b9   :  { %v9809_v61 = vpop.eup %8669  ;;  %8679 = vpow2.f32 %v967_v12  ;;  %v969_v16 = vmul.f32 1.442695, %v933_v56  ;;  %v934_v15 = vsub.f32 %v9720_v23, %v890_v57  ;;  %1009 = vadd.xlane.f32.xlu1 %v1008_v60 }
 0x3ba   :  { %v893_v22 = vpop.xlane.xlu0 %892  ;;  %v1011_v27 = vsel %vm848_vm2, %v9809_v61, 0.0 }
 0x3bb   :  { %v9814_v28 = vpop.eup %8671  ;;  %8681 = vpow2.f32 %v969_v16  ;;  %v971_v62 = vmul.f32 1.442695, %v934_v15  ;;  %v935_v31 = vsub.f32 %v9722_v24, %v893_v22  ;;  %1012 = vadd.xlane.f32.xlu0 %v1011_v27 }
 0x3bc   :  { %v896_v32 = vpop.xlane.xlu1 %895  ;;  %v1014_v33 = vsel %vm848_vm2, %v9814_v28, 0.0 }
 0x3bd   :  { %v9819_v34 = vpop.eup %8673  ;;  %8683 = vpow2.f32 %v971_v62  ;;  %v973_v23 = vmul.f32 1.442695, %v935_v31  ;;  %v936_v35 = vsub.f32 %v9726_v30, %v896_v32  ;;  %1015 = vadd.xlane.f32.xlu1 %v1014_v33 }
 0x3be   :  { %v899_v36 = vpop.xlane.xlu0 %898  ;;  %v1017_v37 = vsel %vm848_vm2, %v9819_v34, 0.0 }
 0x3bf   :  { %v9824_v38 = vpop.eup %8675  ;;  %8685 = vpow2.f32 %v973_v23  ;;  %v975_v24 = vmul.f32 1.442695, %v936_v35  ;;  %v937_v17 = vsub.f32 %v9735_v45, %v899_v36  ;;  %1018 = vadd.xlane.f32.xlu0 %v1017_v37 }
 0x3c0   :  { %v902_v39 = vpop.xlane.xlu1 %901  ;;  %v1020_v25 = vsel %vm848_vm2, %v9824_v38, 0.0 }
 0x3c1   :  { %v9829_v40 = vpop.eup %8677  ;;  %8687 = vpow2.f32 %v975_v24  ;;  %v977_v30 = vmul.f32 1.442695, %v937_v17  ;;  %v938_v41 = vsub.f32 %v9740_v53, %v902_v39  ;;  %1021 = vadd.xlane.f32.xlu1 %v1020_v25  ;;  %v8573_v24 = vld [vmem:[%s9895_s9] sm:$0xff]  }
 0x3c2   :  { %v905_v26 = vpop.xlane.xlu0 %904  ;;  %v1023_v44 = vsel %vm848_vm2, %v9829_v40, 0.0  ;;  %7946 = vmatpush3.bf16.msra.mxu1 %v8573_v24 }
 0x3c3   :  { %v9834_v29 = vpop.eup %8679  ;;  %8689 = vpow2.f32 %v977_v30  ;;  %v979_v45 = vmul.f32 1.442695, %v938_v41  ;;  %v939_v51 = vsub.f32 %v9742_v58, %v905_v26  ;;  %1024 = vadd.xlane.f32.xlu0 %v1023_v44  ;;  %7947 = vmatprep.subr.bf16.mxu1 %v9391_v42 }
 0x3c4   :  { %v908_v59 = vpop.xlane.xlu1 %907  ;;  %v1026_v43 = vsel %vm848_vm2, %v9834_v29, 0.0 }
 0x3c5   :  { %v9839_v46 = vpop.eup %8681  ;;  %8691 = vpow2.f32 %v979_v45  ;;  %v981_v53 = vmul.f32 1.442695, %v939_v51  ;;  %v940_v1 = vsub.f32 %v9746_v0, %v908_v59  ;;  %1027 = vadd.xlane.f32.xlu1 %v1026_v43 }
 0x3c6   :  { %v911_v2 = vpop.xlane.xlu0 %910  ;;  %v1029_v47 = vsel %vm848_vm2, %v9839_v46, 0.0 }
 0x3c7   :  { %v9844_v4 = vpop.eup %8683  ;;  %8693 = vpow2.f32 %v981_v53  ;;  %v983_v58 = vmul.f32 1.442695, %v940_v1  ;;  %v941_v52 = vsub.f32 %v9755_v19, %v911_v2  ;;  %1030 = vadd.xlane.f32.xlu0 %v1029_v47 }
 0x3c8   :  { %v914_v5 = vpop.xlane.xlu1 %913  ;;  %v1032_v6 = vsel %vm848_vm2, %v9844_v4, 0.0 }
 0x3c9   :  { %v9849_v8 = vpop.eup %8685  ;;  %8695 = vpow2.f32 %v983_v58  ;;  %v985_v0 = vmul.f32 1.442695, %v941_v52  ;;  %v942_v9 = vsub.f32 %v9760_v48, %v914_v5  ;;  %1033 = vadd.xlane.f32.xlu1 %v1032_v6 }
 0x3ca   :  { %v917_v10 = vpop.xlane.xlu0 %916  ;;  %v1035_v13 = vsel %vm848_vm2, %v9849_v8, 0.0 }
 0x3cb   :  { %v9854_v11 = vpop.eup %8687  ;;  %8697 = vpow2.f32 %v985_v0  ;;  %v987_v19 = vmul.f32 1.442695, %v942_v9  ;;  %v943_v18 = vsub.f32 %v9762_v49, %v917_v10  ;;  %1036 = vadd.xlane.f32.xlu0 %v1035_v13 }
 0x3cc   :  { %v920_v20 = vpop.xlane.xlu1 %919  ;;  %v1038_v21 = vsel %vm848_vm2, %v9854_v11, 0.0 }
 0x3cd   :  { %v9859_v12 = vpop.eup %8689  ;;  %8699 = vpow2.f32 %v987_v19  ;;  %v989_v48 = vmul.f32 1.442695, %v943_v18  ;;  %v944_v56 = vsub.f32 %v9766_v55, %v920_v20  ;;  %1039 = vadd.xlane.f32.xlu1 %v1038_v21 }
 0x3ce   :  { %v1041_v57 = vsel %vm848_vm2, %v9859_v12, 0.0 }
 0x3cf   :  { %v9864_v60 = vpop.eup %8691  ;;  %8701 = vpow2.f32 %v989_v48  ;;  %v991_v16 = vmul.f32 1.442695, %v944_v56  ;;  %1042 = vadd.xlane.f32.xlu0 %v1041_v57 }
 0x3d0   :  { %v1044_v49 = vsel %vm848_vm2, %v9864_v60, 0.0 }
 0x3d1   :  { %v9868_v15 = vpop.eup %8693  ;;  %8703 = vpow2.f32 %v991_v16  ;;  %1045 = vadd.xlane.f32.xlu1 %v1044_v49 }
 0x3d2   :  { %v1047_v22 = vsel %vm848_vm2, %v9868_v15, 0.0 }
 0x3d3   :  { %v9872_v55 = vpop.eup %8695  ;;  %1048 = vadd.xlane.f32.xlu0 %v1047_v22 }
 0x3d4   :  { %v1050_v27 = vsel %vm848_vm2, %v9872_v55, 0.0 }
 0x3d5   :  { %v9876_v62 = vpop.eup %8697  ;;  %1051 = vadd.xlane.f32.xlu1 %v1050_v27 }
 0x3d6   :  { %v1053_v31 = vsel %vm848_vm2, %v9876_v62, 0.0 }
 0x3d7   :  { %v9880_v32 = vpop.eup %8699  ;;  %1054 = vadd.xlane.f32.xlu0 %v1053_v31 }
 0x3d8   :  { %v1056_v33 = vsel %vm848_vm2, %v9880_v32, 0.0 }
 0x3d9   :  { %v9884_v23 = vpop.eup %8701  ;;  %1057 = vadd.xlane.f32.xlu1 %v1056_v33 }
 0x3da   :  { %v1059_v35 = vsel %vm848_vm2, %v9884_v23, 0.0 }
 0x3db   :  { %v9888_v36 = vpop.eup %8703  ;;  %1060 = vadd.xlane.f32.xlu0 %v1059_v35 }
 0x3dc   :  { %v1062_v37 = vsel %vm848_vm2, %v9888_v36, 0.0 }
 0x3dd   :  { %1063 = vadd.xlane.f32.xlu1 %v1062_v37 }
 0x43c   :  { %v995_v17 = vpop.xlane.xlu0 %994 }
 0x43d   :  { %8705 = vrcp.f32 %v995_v17 }
 0x43e   :  { %v998_v39 = vpop.xlane.xlu1 %997 }
 0x43f   :  { %8707 = vrcp.f32 %v998_v39 }
 0x440   :  { %v1001_v25 = vpop.xlane.xlu0 %1000 }
 0x441   :  { %8709 = vrcp.f32 %v1001_v25 }
 0x442   :  { %v1004_v30 = vpop.xlane.xlu1 %1003 }
 0x443   :  { %8711 = vrcp.f32 %v1004_v30 }
 0x444   :  { %v1007_v41 = vpop.xlane.xlu0 %1006 }
 0x445   :  { %8713 = vrcp.f32 %v1007_v41 }
 0x446   :  { %v1010_v26 = vpop.xlane.xlu1 %1009 }
 0x447   :  { %v8706_v44 = vpop.eup %8705  ;;  %8715 = vrcp.f32 %v1010_v26 }
 0x448   :  { %v1013_v45 = vpop.xlane.xlu0 %1012  ;;  %v1066_v43 = vmul.f32 %v8706_v44, %v9779_v50 }
 0x449   :  { %v8708_v51 = vpop.eup %8707  ;;  %8717 = vrcp.f32 %v1013_v45 }
 0x44a   :  { %v1016_v59 = vpop.xlane.xlu1 %1015  ;;  %v1068_v53 = vmul.f32 %v8708_v51, %v9784_v63 }
 0x44b   :  { %v8710_v1 = vpop.eup %8709  ;;  %8719 = vrcp.f32 %v1016_v59 }
 0x44c   :  { %v1019_v2 = vpop.xlane.xlu0 %1018  ;;  %v1113_v47 = vpack.c.bf16 %v1068_v53, %v1066_v43  ;;  %v1070_v52 = vmul.f32 %v8710_v1, %v9789_v3 }
 0x44d   :  { %v8712_v58 = vpop.eup %8711  ;;  %8721 = vrcp.f32 %v1019_v2 }
 0x44e   :  { %v1072_v5 = vmul.f32 %v8712_v58, %v9794_v7  ;;  %7921 = vmatprep.mubr.msk.bf16.mxu0 %vm848_vm2, %v1113_v47  ;;  %v1022_v6 = vpop.xlane.xlu1 %1021 }
 0x44f   :  { %v8714_v0 = vpop.eup %8713  ;;  %8723 = vrcp.f32 %v1022_v6 }
 0x450   :  { %v1114_v9 = vpack.c.bf16 %v1072_v5, %v1070_v52  ;;  %v1025_v10 = vpop.xlane.xlu0 %1024  ;;  %v1074_v13 = vmul.f32 %v8714_v0, %v9799_v14 }
 0x451   :  { %v8716_v50 = vpop.eup %8715  ;;  %8725 = vrcp.f32 %v1025_v10 }
 0x452   :  { %v1028_v63 = vpop.xlane.xlu1 %1027  ;;  %7922 = vmatmul.mubr.msk.bf16.vlgmr.msra.gmra.mrb[24].mxu0 %vm848_vm2, %v1114_v9  ;;  %v1076_v19 = vmul.f32 %v8716_v50, %v9804_v54 }
 0x453   :  { %v8718_v18 = vpop.eup %8717  ;;  %8727 = vrcp.f32 %v1028_v63 }
 0x454   :  { %v1031_v3 = vpop.xlane.xlu0 %1030  ;;  %v1115_v7 = vpack.c.bf16 %v1076_v19, %v1074_v13  ;;  %v1078_v48 = vmul.f32 %v8718_v18, %v9809_v61  ;;  %v8574_v19 = vld [vmem:[%s9895_s9 + $0x8] sm:$0xff]  }
 0x455   :  { %v8720_v20 = vpop.eup %8719  ;;  %8729 = vrcp.f32 %v1031_v3  ;;  %7948 = vmatpush3.bf16.msra.mxu1 %v8574_v19 }
 0x456   :  { %v1034_v21 = vpop.xlane.xlu1 %1033  ;;  %7925 = vmatprep.mubr.msk.bf16.mxu0 %vm848_vm2, %v1115_v7  ;;  %v1080_v56 = vmul.f32 %v8720_v20, %v9814_v28  ;;  %v9185_v20 = vld [vmem:[%s9551_s30] sm:$0xff] }
 0x457   :  { %v8722_v57 = vpop.eup %8721  ;;  %8731 = vrcp.f32 %v1034_v21 }
 0x458   :  { %v1037_v16 = vpop.xlane.xlu0 %1036  ;;  %v1116_v49 = vpack.c.bf16 %v1080_v56, %v1078_v48  ;;  %v1082_v22 = vmul.f32 %v8722_v57, %v9819_v34  ;;  %v9186_v48 = vld [vmem:[%s9551_s30 + $0x30] sm:$0xff] }
 0x459   :  { %v8724_v14 = vpop.eup %8723  ;;  %8733 = vrcp.f32 %v1037_v16 }
 0x45a   :  { %v1040_v54 = vpop.xlane.xlu1 %1039  ;;  %7926 = vmatmul.mubr.msk.bf16.gmra.mrb[28].mxu0 %vm848_vm2, %v1116_v49  ;;  %v1084_v27 = vmul.f32 %v8724_v14, %v9824_v38  ;;  %v9187_v49 = vld [vmem:[%s9551_s30 + $0x8] sm:$0xff] }
 0x45b   :  { %v8726_v31 = vpop.eup %8725  ;;  %8735 = vrcp.f32 %v1040_v54 }
 0x45c   :  { %v1043_v33 = vpop.xlane.xlu0 %1042  ;;  %v1117_v35 = vpack.c.bf16 %v1084_v27, %v1082_v22  ;;  %v1086_v37 = vmul.f32 %v8726_v31, %v9829_v40  ;;  %v9188_v22 = vld [vmem:[%s9551_s30 + $0x38] sm:$0xff] }
 0x45d   :  { %v8728_v61 = vpop.eup %8727  ;;  %8737 = vrcp.f32 %v1043_v33 }
 0x45e   :  { %v1046_v28 = vpop.xlane.xlu1 %1045  ;;  %7929 = vmatprep.mubr.msk.bf16.mxu0 %vm848_vm2, %v1117_v35  ;;  %v1088_v24 = vmul.f32 %v8728_v61, %v9834_v29  ;;  %v9189_v61 = vld [vmem:[%s9551_s30 + $0x20] sm:$0xff] }
 0x45f   :  { %v8730_v17 = vpop.eup %8729  ;;  %8739 = vrcp.f32 %v1046_v28 }
 0x460   :  { %v1049_v39 = vpop.xlane.xlu0 %1048  ;;  %v1118_v25 = vpack.c.bf16 %v1088_v24, %v1086_v37  ;;  %v1090_v30 = vmul.f32 %v8730_v17, %v9839_v46  ;;  %v9190_v37 = vld [vmem:[%s9551_s30 + $0x50] sm:$0xff] }
 0x461   :  { %v8732_v34 = vpop.eup %8731  ;;  %8741 = vrcp.f32 %v1049_v39  ;;  %v9191_v39 = vld [vmem:[%s9551_s30 + $0x10] sm:$0xff] }
 0x462   :  { %v1052_v38 = vpop.xlane.xlu1 %1051  ;;  %7930 = vmatmul.mubr.msk.bf16.gmra.mrb[32].mxu0 %vm848_vm2, %v1118_v25  ;;  %v1092_v41 = vmul.f32 %v8732_v34, %v9844_v4  ;;  %v9192_v34 = vld [vmem:[%s9551_s30 + $0x40] sm:$0xff] }
 0x463   :  { %v8734_v26 = vpop.eup %8733  ;;  %8743 = vrcp.f32 %v1052_v38 }
 0x464   :  { %v1055_v44 = vpop.xlane.xlu0 %1054  ;;  %v1119_v45 = vpack.c.bf16 %v1092_v41, %v1090_v30  ;;  %v1094_v51 = vmul.f32 %v8734_v26, %v9849_v8  ;;  %v9193_v41 = vld [vmem:[%s9551_s30 + $0x28] sm:$0xff] }
 0x465   :  { %v8736_v40 = vpop.eup %8735  ;;  %8745 = vrcp.f32 %v1055_v44 }
 0x466   :  { %v1058_v29 = vpop.xlane.xlu1 %1057  ;;  %7933 = vmatprep.mubr.msk.bf16.mxu0 %vm848_vm2, %v1119_v45  ;;  %v1096_v59 = vmul.f32 %v8736_v40, %v9854_v11  ;;  %v9194_v45 = vld [vmem:[%s9551_s30 + $0x58] sm:$0xff] }
 0x467   :  { %v8738_v43 = vpop.eup %8737  ;;  %8747 = vrcp.f32 %v1058_v29 }
 0x468   :  { %v1061_v53 = vpop.xlane.xlu0 %1060  ;;  %v1120_v1 = vpack.c.bf16 %v1096_v59, %v1094_v51  ;;  %v1098_v2 = vmul.f32 %v8738_v43, %v9859_v12  ;;  %v9195_v51 = vld [vmem:[%s9551_s30 + $0x18] sm:$0xff] }
 0x469   :  { %v8740_v46 = vpop.eup %8739  ;;  %8749 = vrcp.f32 %v1061_v53  ;;  %v9196_v53 = vld [vmem:[%s9551_s30 + $0x48] sm:$0xff] }
 0x46a   :  { %v1064_v4 = vpop.xlane.xlu1 %1063  ;;  %7934 = vmatmul.mubr.msk.bf16.gmra.mrb[36].mxu0 %vm848_vm2, %v1120_v1  ;;  %v1100_v47 = vmul.f32 %v8740_v46, %v9864_v60 }
 0x46b   :  { %v8742_v58 = vpop.eup %8741  ;;  %8751 = vrcp.f32 %v1064_v4 }
 0x46c   :  { %v1121_v52 = vpack.c.bf16 %v1100_v47, %v1098_v2  ;;  %v1102_v8 = vmul.f32 %v8742_v58, %v9868_v15  ;;  %v9197_v47 = vld [vmem:[%s9551_s30 + $0x70] sm:$0xff] }
 0x46d   :  { %v8744_v5 = vpop.eup %8743 }
 0x46e   :  { %7937 = vmatprep.mubr.msk.bf16.mxu0 %vm848_vm2, %v1121_v52  ;;  %v1104_v11 = vmul.f32 %v8744_v5, %v9872_v55  ;;  %v9198_v5 = vld [vmem:[%s9551_s30 + $0x60] sm:$0xff] }
 0x46f   :  { %v8746_v6 = vpop.eup %8745 }
 0x470   :  { %v1122_v0 = vpack.c.bf16 %v1104_v11, %v1102_v8  ;;  %v1106_v12 = vmul.f32 %v8746_v6, %v9876_v62  ;;  %v8575_v62 = vld [vmem:[%s9941_s15] sm:$0xff]  }
 0x471   :  { %v8748_v9 = vpop.eup %8747  ;;  %7962 = vmatpush3.bf16.msra.mxu0 %v8575_v62 }
 0x472   :  { %7938 = vmatmul.mubr.msk.bf16.gmra.mrb[40].mxu0 %vm848_vm2, %v1122_v0  ;;  %v1108_v60 = vmul.f32 %v8748_v9, %v9880_v32  ;;  %v8576_v32 = vld [vmem:[%s9941_s15 + $0x8] sm:$0xff]   ;;  %7963 = vmatprep.subr.bf16.mxu0 %v9391_v42  ;;  %v9199_v0 = vld [vmem:[%s9551_s30 + $0x78] sm:$0xff] }
 0x473   :  { %v8750_v10 = vpop.eup %8749 }
 0x474   :  { %v1123_v50 = vpack.c.bf16 %v1108_v60, %v1106_v12  ;;  %v1110_v13 = vmul.f32 %v8750_v10, %v9884_v23  ;;  %v9200_v10 = vld [vmem:[%s9551_s30 + $0x68] sm:$0xff] }
 0x475   :  { %v8752_v63 = vpop.eup %8751  ;;  %7964 = vmatpush3.bf16.msra.mxu0 %v8576_v32  ;;  %v9202_v32 = vld [vmem:[%s9551_s30 + $0x80] sm:$0xff] }
 0x476   :  { %7941 = vmatprep.mubr.msk.bf16.mxu0 %vm848_vm2, %v1123_v50  ;;  %v1112_v15 = vmul.f32 %v8752_v63, %v9888_v36 }
 0x478   :  { %v1124_v55 = vpack.c.bf16 %v1112_v15, %v1110_v13 }
 0x47a   :  { %7942 = vmatmul.mubr.msk.bf16.gmra.mrb[44].mxu0 %vm848_vm2, %v1124_v55  ;;  %v9201_v55 = vld [vmem:[%s9551_s30 + $0x90] sm:$0xff] }
 0x47b   :  { %7965 = vmatprep.mubr.msk.bf16.mxu0 %vm9392_vm1, %v9391_v42 }
 0x525   :  { %v7923_v23 = vpop.f32.mrb[24].mxu0 }
 0x526   :  { %v1195_v36 = vpop.f32.mrb[25].mxu0  ;;  %v1292_v25 = vmul.f32 %v9191_v39, %v7923_v23  ;;  %v9208_v39 = vld [vmem:[%s9551_s30 + $0xa8] sm:$0xff] }
 0x527   :  { %v7924_v18 = vpop.f32.mrb[26].mxu0  ;;  %v1290_v21 = vmul.f32 %v9185_v20, %v1195_v36 }
 0x528   :  { %v1198_v3 = vpop.f32.mrb[27].mxu0  ;;  %v1293_v59 = vmul.f32 %v9195_v51, %v7924_v18 }
 0x529   :  { %v1291_v14 = vmul.f32 %v9187_v49, %v1198_v3  ;;  %v9203_v3 = vld [vmem:[%s9551_s30 + $0x98] sm:$0xff] }
 0x52d   :  { %v7927_v7 = vpop.f32.mrb[28].mxu0 }
 0x52e   :  { %v1296_v56 = vmul.f32 %v9186_v48, %v7927_v7  ;;  %v1211_v57 = vpop.f32.mrb[29].mxu0  ;;  %v9204_v48 = vld [vmem:[%s9551_s30 + $0x88] sm:$0xff] }
 0x52f   :  { %v7928_v16 = vpop.f32.mrb[30].mxu0  ;;  %v1294_v28 = vmul.f32 %v9189_v61, %v1211_v57 }
 0x530   :  { %v1320_v54 = vadd.f32 %v1296_v56, %v1290_v21  ;;  %v1297_v27 = vmul.f32 %v9188_v22, %v7928_v16  ;;  %v1214_v31 = vpop.f32.mrb[31].mxu0 }
 0x531   :  { %v1295_v26 = vmul.f32 %v9193_v41, %v1214_v31  ;;  %v9206_v31 = vld [vmem:[%s9551_s30 + $0xa0] sm:$0xff] }
 0x532   :  { %v1321_v33 = vadd.f32 %v1297_v27, %v1291_v14 }
 0x535   :  { %v7931_v35 = vpop.f32.mrb[32].mxu0 }
 0x536   :  { %v1300_v24 = vmul.f32 %v9190_v37, %v7931_v35  ;;  %v1227_v17 = vpop.f32.mrb[33].mxu0 }
 0x537   :  { %v1298_v38 = vmul.f32 %v9192_v34, %v1227_v17  ;;  %v7932_v30 = vpop.f32.mrb[34].mxu0 }
 0x538   :  { %v1324_v44 = vadd.f32 %v1300_v24, %v1294_v28  ;;  %v1301_v40 = vmul.f32 %v9194_v45, %v7932_v30  ;;  %v1230_v29 = vpop.f32.mrb[35].mxu0  ;;  %v9207_v28 = vld [vmem:[%s9551_s30 + $0xb8] sm:$0xff] }
 0x539   :  { %v1322_v43 = vadd.f32 %v1298_v38, %v1292_v25  ;;  %v1299_v1 = vmul.f32 %v9196_v53, %v1230_v29 }
 0x53a   :  { %v1325_v46 = vadd.f32 %v1301_v40, %v1295_v26  ;;  %v7257_v26 = vld [vmem:[%s9980_s20] ss:$0 sm:$0xff] }
 0x53b   :  { %v1323_v4 = vadd.f32 %v1299_v1, %v1293_v59 }
 0x53d   :  { %v7935_v2 = vpop.f32.mrb[36].mxu0 }
 0x53e   :  { %v1304_v58 = vmul.f32 %v9197_v47, %v7935_v2  ;;  %v1243_v52 = vpop.f32.mrb[37].mxu0 }
 0x53f   :  { %v1302_v8 = vmul.f32 %v9198_v5, %v1243_v52  ;;  %v7936_v11 = vpop.f32.mrb[38].mxu0 }
 0x540   :  { %v1328_v6 = vadd.f32 %v1322_v43, %v1304_v58  ;;  %v1305_v9 = vmul.f32 %v9199_v0, %v7936_v11  ;;  %v1246_v12 = vpop.f32.mrb[39].mxu0 }
 0x541   :  { %v1326_v60 = vadd.f32 %v1320_v54, %v1302_v8  ;;  %v1303_v50 = vmul.f32 %v9200_v10, %v1246_v12  ;;  %v9205_v54 = vld [vmem:[%s9551_s30 + $0xb0] sm:$0xff]  ;;  %v235_v12 = vld [vmem:[%s9993_s24] sm:$0x3] }
 0x542   :  { %v1329_v63 = vadd.f32 %v1323_v4, %v1305_v9 }
 0x543   :  { %v1327_v13 = vadd.f32 %v1321_v33, %v1303_v50  ;;  %v1524_v50 = vrot.slane %v235_v12, 6 }
 0x545   :  { %v7939_v15 = vpop.f32.mrb[40].mxu0 }
 0x546   :  { %v1308_v19 = vmul.f32 %v9201_v55, %v7939_v15  ;;  %v1259_v62 = vpop.f32.mrb[41].mxu0  ;;  %v9209_v55 = vld [vmem:[%s9432_s6] sm:$0xff] }
 0x547   :  { %v1306_v23 = vmul.f32 %v9202_v32, %v1259_v62  ;;  %v7940_v36 = vpop.f32.mrb[42].mxu0 }
 0x548   :  { %v1332_v18 = vadd.f32 %v1326_v60, %v1308_v19  ;;  %v1309_v7 = vmul.f32 %v9203_v3, %v7940_v36  ;;  %v1262_v20 = vpop.f32.mrb[43].mxu0  ;;  %v7263_v60 = vld [vmem:[%s9998_s29] ss:$0 sm:$0xff] }
 0x549   :  { %v1330_v21 = vadd.f32 %v1324_v44, %v1306_v23  ;;  %v1307_v56 = vmul.f32 %v9204_v48, %v1262_v20  ;;  %v1527_v23 = vsel %vm1526_vm3, %v235_v12, %v1524_v50 }
 0x54a   :  { %v1333_v57 = vadd.f32 %v1327_v13, %v1309_v7 }
 0x54b   :  { %v1331_v16 = vadd.f32 %v1325_v46, %v1307_v56 }
 0x54c   :  { %v1338_v49 = vpack.c.bf16 %v1333_v57, %v1332_v18  ;;  %v9210_v18 = vld [vmem:[%s9432_s6 + $0x8] sm:$0xff] }
 0x54d   :  { %v7943_v14 = vpop.f32.mrb[44].mxu0 }
 0x54e   :  { %v1312_v22 = vmul.f32 %v9205_v54, %v7943_v14  ;;  %v1275_v27 = vpop.f32.mrb[45].mxu0  ;;  %7950 = vmatmul.mubr.msk.bf16.vlgmr.msra.gmra.mrb[36].mxu1 %vm261_vm0, %v1338_v49  ;;  %v9211_v54 = vld [vmem:[%s9432_s6 + $0x10] sm:$0xff] }
 0x54f   :  { %v1310_v33 = vmul.f32 %v9206_v31, %v1275_v27  ;;  %v7944_v35 = vpop.f32.mrb[46].mxu0  ;;  %7953 = vmatprep.mubr.msk.bf16.mxu1 %vm9392_vm1, %v9391_v42 }
 0x550   :  { %v1336_v61 = vadd.f32 %v1330_v21, %v1312_v22  ;;  %v1313_v37 = vmul.f32 %v9207_v28, %v7944_v35  ;;  %v1278_v24 = vpop.f32.mrb[47].mxu0  ;;  %v9212_v35 = vld [vmem:[%s9432_s6 + $0x18] sm:$0xff] }
 0x551   :  { %v1334_v17 = vadd.f32 %v1328_v6, %v1310_v33  ;;  %v1311_v25 = vmul.f32 %v9208_v39, %v1278_v24 }
 0x552   :  { %v1337_v34 = vadd.f32 %v1331_v16, %v1313_v37 }
 0x553   :  { %v1335_v38 = vadd.f32 %v1329_v63, %v1311_v25 }
 0x554   :  { %v1340_v30 = vpack.c.bf16 %v1337_v34, %v1336_v61 }
 0x555   :  { %v1339_v41 = vpack.c.bf16 %v1335_v38, %v1334_v17 }
 0x557   :  { %7954 = vmatmul.mubr.msk.bf16.gmra.mrb[40].mxu1 %vm261_vm0, %v1339_v41  ;;  %v9213_v41 = vld [vmem:[%s9432_s6 + $0x20] sm:$0xff] }
 0x558   :  { %7957 = vmatprep.mubr.msk.bf16.mxu1 %vm9392_vm1, %v9391_v42 }
 0x55f   :  { %7958 = vmatmul.mubr.msk.bf16.gmra.mrb[44].mxu1 %vm261_vm0, %v1340_v30 }
 0x621   :  { %v1402_v44 = vpop.f32.mrb[36].mxu1 }
 0x622   :  { %v7951_v45 = vpop.f32.mrb[37].mxu1  ;;  %v1403_v29 = vadd.f32 %v7257_v26, %v1402_v44 }
 0x623   :  { %v1405_v40 = vpop.f32.mrb[38].mxu1 }
 0x624   :  { %v1406_v51 = vadd.f32 %v7257_v26, %v1405_v40  ;;  %v7952_v59 = vpop.f32.mrb[39].mxu1 }
 0x626   :  { %v1425_v43 = vpack.c.bf16 %v1406_v51, %v1403_v29  ;;  %v9214_v29 = vld [vmem:[%s9432_s6 + $0x28] sm:$0xff]  ;;  %s9402_s6 = smov 17  }
 0x627   :  { %s10078_s3 = sld [smem:[%s12364_s0 + %s9402_s6]]   ;;  %s9410_s6 = smov 21  }
 0x628   :  { %7966 = vmatmul.mubr.msk.bf16.vlgmr.msra.gmra.mrb[48].mxu0 %vm261_vm0, %v1425_v43  ;;  %s10681_s7 = sld [smem:[%s12364_s0 + %s9410_s6]]  }
 0x629   :  { %7969 = vmatprep.mubr.msk.bf16.mxu0 %vm9392_vm1, %v9391_v42  ;;  %s10777_s6 = sld [smem:[%s12364_s0 + %s9412_s21]]   ;;  %s9417_s21 = smov 27  }
 0x62a   :  { %v1410_v53 = vpop.f32.mrb[40].mxu1  ;;  %s10945_s5 = sld [smem:[%s12364_s0 + %s9417_s21]]  }
 0x62b   :  { %v7955_v1 = vpop.f32.mrb[41].mxu1  ;;  %v1411_v4 = vadd.f32 %v7257_v26, %v1410_v53 }
 0x62c   :  { %v1413_v46 = vpop.f32.mrb[42].mxu1 }
 0x62d   :  { %v1414_v2 = vadd.f32 %v7257_v26, %v1413_v46  ;;  %v7956_v47 = vpop.f32.mrb[43].mxu1 }
 0x62f   :  { %v1426_v58 = vpack.c.bf16 %v1414_v2, %v1411_v4 }
 0x631   :  { %7970 = vmatmul.mubr.msk.bf16.gmra.mrb[52].mxu0 %vm261_vm0, %v1426_v58 }
 0x632   :  { %v1418_v52 = vpop.f32.mrb[44].mxu1  ;;  %7973 = vmatprep.mubr.msk.bf16.mxu0 %vm9392_vm1, %v9391_v42 }
 0x633   :  { %v7959_v5 = vpop.f32.mrb[45].mxu1  ;;  %v1419_v11 = vadd.f32 %v7257_v26, %v1418_v52 }
 0x634   :  { %v1421_v8 = vpop.f32.mrb[46].mxu1 }
 0x635   :  { %v1422_v6 = vadd.f32 %v7257_v26, %v1421_v8  ;;  %v7960_v0 = vpop.f32.mrb[47].mxu1 }
 0x637   :  { %v1427_v9 = vpack.c.bf16 %v1422_v6, %v1419_v11 }
 0x639   :  { %7974 = vmatmul.mubr.msk.bf16.gmra.mrb[56].mxu0 %vm261_vm0, %v1427_v9 }
 0x6fb   :  { %v1494_v10 = vpop.f32.mrb[48].mxu0 }
 0x6fc   :  { %v1495_v63 = vadd.f32 %v7263_v60, %v1494_v10  ;;  %v7967_v13 = vpop.f32.mrb[49].mxu0 }
 0x6fd   :  { %v1497_v15 = vpop.f32.mrb[50].mxu0 }
 0x6fe   :  { %v10003_v19 = vadd.f32 %v9209_v55, %v1495_v63  ;;  %v1498_v62 = vadd.f32 %v7263_v60, %v1497_v15  ;;  %v7968_v32 = vpop.f32.mrb[51].mxu0 }
 0x700   :  { %v1535_v36 = vrot.slane %v10003_v19, 4  ;;  %v10008_v3 = vadd.f32 %v9210_v18, %v1498_v62 }
 0x702   :  { %v1536_v7 = vrot.slane %v10008_v3, 4  ;;  %v1553_v20 = vsel %vm1534_vm4, %v1527_v23, %v1535_v36 }
 0x703   :  { %v1573_v21 = vsel %vm261_vm0, %v1553_v20, 0.0 }
 0x704   :  { %v1502_v48 = vpop.f32.mrb[52].mxu0  ;;  %1574 = vadd.xlane.f32.xlu0 %v1573_v21  ;;  %v1537_v56 = vsel %vm1534_vm4, %v1535_v36, %v1536_v7 }
 0x705   :  { %v1503_v57 = vadd.f32 %v7263_v60, %v1502_v48  ;;  %v7971_v16 = vpop.f32.mrb[53].mxu0  ;;  %v1576_v49 = vsel %vm261_vm0, %v1537_v56, 0.0 }
 0x706   :  { %1577 = vadd.xlane.f32.xlu1 %v1576_v49  ;;  %v1505_v14 = vpop.f32.mrb[54].mxu0 }
 0x707   :  { %v10016_v22 = vadd.f32 %v9211_v54, %v1503_v57  ;;  %v1506_v27 = vadd.f32 %v7263_v60, %v1505_v14  ;;  %v7972_v31 = vpop.f32.mrb[55].mxu0 }
 0x709   :  { %v1538_v33 = vrot.slane %v10016_v22, 4  ;;  %v10020_v61 = vadd.f32 %v9212_v35, %v1506_v27  ;;  %v8579_v35 = vld [vmem:[%s10083_s11] sm:$0xff]  }
 0x70a   :  { %8001 = vmatprep.subr.bf16.mxu0 %v8579_v35 }
 0x70b   :  { %v1540_v28 = vrot.slane %v10020_v61, 4  ;;  %v1539_v37 = vsel %vm1534_vm4, %v1536_v7, %v1538_v33  ;;  %8002 = vmatpush3.bf16.msra.mxu0 %v8579_v35 }
 0x70c   :  { %v1510_v24 = vpop.f32.mrb[56].mxu0  ;;  %v1579_v17 = vsel %vm261_vm0, %v1539_v37, 0.0 }
 0x70d   :  { %v1511_v39 = vadd.f32 %v7263_v60, %v1510_v24  ;;  %v7975_v25 = vpop.f32.mrb[57].mxu0  ;;  %1580 = vadd.xlane.f32.xlu0 %v1579_v17  ;;  %v1541_v34 = vsel %vm1534_vm4, %v1538_v33, %v1540_v28  ;;  %v8577_v33 = vld [vmem:[%s10078_s3] sm:$0xff]  }
 0x70e   :  { %v1513_v38 = vpop.f32.mrb[58].mxu0  ;;  %v1582_v30 = vsel %vm261_vm0, %v1541_v34, 0.0  ;;  %7977 = vmatprep.subr.bf16.mxu1 %v8577_v33  ;;  %v10096_v24 = vld [vmem:[%s10092_s17] sm:$0xff]  }
 0x70f   :  { %v10028_v26 = vadd.f32 %v9213_v41, %v1511_v39  ;;  %v1514_v44 = vadd.f32 %v7263_v60, %v1513_v38  ;;  %1583 = vadd.xlane.f32.xlu1 %v1582_v30  ;;  %v7976_v45 = vpop.f32.mrb[59].mxu0  ;;  %7978 = vmatpush3.bf16.msra.mxu1 %v8577_v33 }
 0x711   :  { %v1542_v40 = vrot.slane %v10028_v26, 4  ;;  %v10032_v51 = vadd.f32 %v9214_v29, %v1514_v44 }
 0x713   :  { %v1544_v59 = vrot.slane %v10032_v51, 4  ;;  %v1543_v43 = vsel %vm1534_vm4, %v1540_v28, %v1542_v40  ;;  %v8578_v28 = vld [vmem:[%s10078_s3 + $0x8] sm:$0xff]  }
 0x714   :  { %v1585_v53 = vsel %vm261_vm0, %v1543_v43, 0.0  ;;  %7979 = vmatprep.subr.bf16.mxu1 %v8578_v28 }
 0x715   :  { %1586 = vadd.xlane.f32.xlu0 %v1585_v53  ;;  %v1545_v1 = vsel %vm1534_vm4, %v1542_v40, %v1544_v59  ;;  %v1592_v4 = vsel %vm1591_vm5, %v1544_v59, 0.0  ;;  %7980 = vmatpush3.bf16.msra.mxu1 %v8578_v28  ;;  %v7269_v53 = vld [vmem:[%s10102_s25] ss:$0 sm:$0xff] }
 0x716   :  { %v1588_v46 = vsel %vm261_vm0, %v1545_v1, 0.0  ;;  %7989 = vmatprep.subr.bf16.mxu1 %v10096_v24 }
 0x717   :  { %1589 = vadd.xlane.f32.xlu1 %v1588_v46 }
 0x719   :  { %1593 = vadd.xlane.f32.xlu0 %v1592_v4 }
 0x791   :  { %v1575_v2 = vpop.xlane.xlu0 %1574 }
 0x792   :  { %v1595_v47 = vmul.f32 0.03125, %v1575_v2  ;;  %v7270_v2 = vld [vmem:[%s10107_s1] ss:$0 sm:$0xff] }
 0x793   :  { %v1578_v58 = vpop.xlane.xlu1 %1577 }
 0x794   :  { %v10040_v52 = vsub.f32 %v1553_v20, %v1595_v47  ;;  %v1596_v5 = vmul.f32 0.03125, %v1578_v58 }
 0x796   :  { %v10042_v8 = vsub.f32 %v1537_v56, %v1596_v5  ;;  %v1609_v11 = vmul.f32 %v10040_v52, %v10040_v52 }
 0x798   :  { %v1616_v6 = vsel %vm261_vm0, %v1609_v11, 0.0  ;;  %v1610_v0 = vmul.f32 %v10042_v8, %v10042_v8 }
 0x799   :  { %1617 = vadd.xlane.f32.xlu1 %v1616_v6 }
 0x79a   :  { %v1581_v9 = vpop.xlane.xlu0 %1580  ;;  %v1619_v12 = vsel %vm261_vm0, %v1610_v0, 0.0 }
 0x79b   :  { %v1597_v60 = vmul.f32 0.03125, %v1581_v9  ;;  %1620 = vadd.xlane.f32.xlu0 %v1619_v12 }
 0x79c   :  { %v1584_v10 = vpop.xlane.xlu1 %1583 }
 0x79d   :  { %v10050_v50 = vsub.f32 %v1539_v37, %v1597_v60  ;;  %v1598_v63 = vmul.f32 0.03125, %v1584_v10  ;;  %v8580_v37 = vld [vmem:[%s10083_s11 + $0x8] sm:$0xff]  }
 0x79e   :  { %8003 = vmatprep.subr.bf16.mxu0 %v8580_v37 }
 0x79f   :  { %v10052_v13 = vsub.f32 %v1541_v34, %v1598_v63  ;;  %v1611_v15 = vmul.f32 %v10050_v50, %v10050_v50  ;;  %8004 = vmatpush3.bf16.msra.mxu0 %v8580_v37 }
 0x7a0   :  { %8073 = vmatprep.subr.bf16.mxu0 %v9391_v42 }
 0x7a1   :  { %v1622_v55 = vsel %vm261_vm0, %v1611_v15, 0.0  ;;  %v1612_v62 = vmul.f32 %v10052_v13, %v10052_v13 }
 0x7a2   :  { %1623 = vadd.xlane.f32.xlu1 %v1622_v55  ;;  %v1587_v32 = vpop.xlane.xlu0 %1586 }
 0x7a3   :  { %v1599_v23 = vmul.f32 0.03125, %v1587_v32  ;;  %v1625_v36 = vsel %vm261_vm0, %v1612_v62, 0.0 }
 0x7a4   :  { %v1590_v18 = vpop.xlane.xlu1 %1589  ;;  %1626 = vadd.xlane.f32.xlu0 %v1625_v36 }
 0x7a5   :  { %v10060_v7 = vsub.f32 %v1543_v43, %v1599_v23  ;;  %v1600_v20 = vmul.f32 0.03125, %v1590_v18 }
 0x7a6   :  { %v1594_v21 = vpop.xlane.xlu0 %1593 }
 0x7a7   :  { %v10062_v48 = vsub.f32 %v1545_v1, %v1600_v20  ;;  %v1601_v56 = vmul.f32 0.03125, %v1594_v21  ;;  %v1613_v57 = vmul.f32 %v10060_v7, %v10060_v7 }
 0x7a9   :  { %v10066_v16 = vsub.f32 %v1544_v59, %v1601_v56  ;;  %v1628_v49 = vsel %vm261_vm0, %v1613_v57, 0.0  ;;  %v1614_v14 = vmul.f32 %v10062_v48, %v10062_v48 }
 0x7aa   :  { %1629 = vadd.xlane.f32.xlu1 %v1628_v49 }
 0x7ab   :  { %v1631_v54 = vsel %vm261_vm0, %v1614_v14, 0.0  ;;  %v1615_v27 = vmul.f32 %v10066_v16, %v10066_v16  ;;  %v8582_v14 = vld [vmem:[%s10092_s17 + $0x8] sm:$0xff]  }
 0x7ac   :  { %1632 = vadd.xlane.f32.xlu0 %v1631_v54 }
 0x7ad   :  { %v1634_v31 = vsel %vm1591_vm5, %v1615_v27, 0.0 }
 0x7ae   :  { %1635 = vadd.xlane.f32.xlu1 %v1634_v31 }
 0x826   :  { %v1618_v17 = vpop.xlane.xlu1 %1617 }
 0x827   :  { %v1637_v39 = vmul.f32 0.03125, %v1618_v17 }
 0x828   :  { %v1621_v25 = vpop.xlane.xlu0 %1620 }
 0x829   :  { %v1644_v34 = vadd.f32 1e-05, %v1637_v39  ;;  %v1638_v38 = vmul.f32 0.03125, %v1621_v25  ;;  %v209_v25 = vld [vmem:[%s10140_s8] sm:$0xff] }
 0x82b   :  { %8753 = vrsqrt.f32 %v1644_v34  ;;  %v1645_v30 = vadd.f32 1e-05, %v1638_v38  ;;  %v212_v34 = vld [vmem:[%s10140_s8 + $0x18] sm:$0xff] }
 0x82d   :  { %8755 = vrsqrt.f32 %v1645_v30 }
 0x82f   :  { %v1624_v41 = vpop.xlane.xlu1 %1623 }
 0x830   :  { %v1639_v44 = vmul.f32 0.03125, %v1624_v41  ;;  %v210_v41 = vld [vmem:[%s10140_s8 + $0x8] sm:$0xff] }
 0x831   :  { %v1627_v45 = vpop.xlane.xlu0 %1626 }
 0x832   :  { %v1646_v40 = vadd.f32 1e-05, %v1639_v44  ;;  %v1640_v29 = vmul.f32 0.03125, %v1627_v45  ;;  %v223_v44 = vld [vmem:[%s10140_s8 + $0x70] sm:$0xff]  ;;  %v224_v45 = vld [vmem:[%s10140_s8 + $0x78] sm:$0xff] }
 0x834   :  { %8757 = vrsqrt.f32 %v1646_v40  ;;  %v1647_v59 = vadd.f32 1e-05, %v1640_v29 }
 0x835   :  { %v8754_v43 = vpop.eup %8753 }
 0x836   :  { %8759 = vrsqrt.f32 %v1647_v59  ;;  %v1658_v1 = vmul.f32 %v8754_v43, %v10040_v52 }
 0x837   :  { %v8756_v46 = vpop.eup %8755  ;;  %v1630_v4 = vpop.xlane.xlu1 %1629 }
 0x838   :  { %v1641_v47 = vmul.f32 0.03125, %v1630_v4  ;;  %v1659_v58 = vmul.f32 %v8756_v46, %v10042_v8  ;;  %v1671_v5 = vmul.f32 %v7269_v53, %v1658_v1  ;;  %v218_v1 = vld [vmem:[%s10140_s8 + $0x48] sm:$0xff] }
 0x839   :  { %v1633_v11 = vpop.xlane.xlu0 %1632 }
 0x83a   :  { %v1648_v6 = vadd.f32 1e-05, %v1641_v47  ;;  %v1642_v0 = vmul.f32 0.03125, %v1633_v11  ;;  %v1672_v9 = vmul.f32 %v7269_v53, %v1659_v58  ;;  %v1684_v60 = vadd.f32 %v7270_v2, %v1671_v5  ;;  %v217_v5 = vld [vmem:[%s10140_s8 + $0x40] sm:$0xff]  ;;  %v230_v11 = vld [vmem:[%s10140_s8 + $0xa8] sm:$0xff] }
 0x83b   :  { %v1636_v12 = vpop.xlane.xlu1 %1635 }
 0x83c   :  { %8761 = vrsqrt.f32 %v1648_v6  ;;  %v1649_v10 = vadd.f32 1e-05, %v1642_v0  ;;  %v1643_v63 = vmul.f32 0.03125, %v1636_v12  ;;  %v1685_v15 = vadd.f32 %v7270_v2, %v1672_v9 }
 0x83e   :  { %v8758_v55 = vpop.eup %8757  ;;  %8763 = vrsqrt.f32 %v1649_v10  ;;  %v1650_v52 = vadd.f32 1e-05, %v1643_v63  ;;  %v1691_v62 = vpack.c.bf16 %v1685_v15, %v1684_v60 }
 0x83f   :  { %v1660_v32 = vmul.f32 %v8758_v55, %v10050_v50  ;;  %v229_v55 = vld [vmem:[%s10140_s8 + $0xa0] sm:$0xff] }
 0x840   :  { %v8760_v23 = vpop.eup %8759  ;;  %8765 = vrsqrt.f32 %v1650_v52  ;;  %7981 = vmatprep.mubr.msk.bf16.mxu1 %vm261_vm0, %v1691_v62  ;;  %8005 = vmatprep.mubr.msk.bf16.mxu0 %vm261_vm0, %v1691_v62 }
 0x841   :  { %v1673_v8 = vmul.f32 %v7269_v53, %v1660_v32  ;;  %v1661_v36 = vmul.f32 %v8760_v23, %v10052_v13 }
 0x843   :  { %v1674_v18 = vmul.f32 %v7269_v53, %v1661_v36  ;;  %v1686_v20 = vadd.f32 %v7270_v2, %v1673_v8 }
 0x845   :  { %v1687_v21 = vadd.f32 %v7270_v2, %v1674_v18 }
 0x846   :  { %v8762_v56 = vpop.eup %8761 }
 0x847   :  { %v1692_v57 = vpack.c.bf16 %v1687_v21, %v1686_v20  ;;  %v1662_v49 = vmul.f32 %v8762_v56, %v10060_v7  ;;  %v222_v20 = vld [vmem:[%s10140_s8 + $0x68] sm:$0xff]  ;;  %v225_v21 = vld [vmem:[%s10140_s8 + $0x80] sm:$0xff]  ;;  %v231_v56 = vld [vmem:[%s10140_s8 + $0xb0] sm:$0xff] }
 0x848   :  { %v8764_v54 = vpop.eup %8763 }
 0x849   :  { %7982 = vmatmul.mubr.msk.bf16.vlgmr.msra.gmra.mrb[48].mxu1 %vm261_vm0, %v1692_v57  ;;  %8006 = vmatmul.mubr.msk.bf16.vlgmr.msra.gmra.mrb[60].mxu0 %vm261_vm0, %v1692_v57  ;;  %v1663_v50 = vmul.f32 %v8764_v54, %v10062_v48  ;;  %v1675_v27 = vmul.f32 %v7269_v53, %v1662_v49  ;;  %v215_v49 = vld [vmem:[%s10140_s8 + $0x30] sm:$0xff] }
 0x84a   :  { %v8766_v31 = vpop.eup %8765  ;;  %7990 = vmatpush3.bf16.msra.mxu1 %v10096_v24 }
 0x84b   :  { %v1676_v13 = vmul.f32 %v7269_v53, %v1663_v50  ;;  %v1664_v33 = vmul.f32 %v8766_v31, %v10066_v16  ;;  %7991 = vmatprep.subr.bf16.mxu1 %v8582_v14  ;;  %v1688_v35 = vadd.f32 %v7270_v2, %v1675_v27  ;;  %v211_v16 = vld [vmem:[%s10140_s8 + $0x10] sm:$0xff]  ;;  %v228_v50 = vld [vmem:[%s10140_s8 + $0x98] sm:$0xff] }
 0x84d   :  { %v1689_v28 = vadd.f32 %v7270_v2, %v1676_v13  ;;  %v1677_v37 = vmul.f32 %v7269_v53, %v1664_v33  ;;  %v213_v13 = vld [vmem:[%s10140_s8 + $0x20] sm:$0xff]  ;;  %v226_v33 = vld [vmem:[%s10140_s8 + $0x88] sm:$0xff] }
 0x84e   :  { %7992 = vmatpush3.bf16.msra.mxu1 %v8582_v14  ;;  %v216_v14 = vld [vmem:[%s10140_s8 + $0x38] sm:$0xff] }
 0x84f   :  { %v1693_v7 = vpack.c.bf16 %v1689_v28, %v1688_v35  ;;  %v1690_v17 = vadd.f32 %v7270_v2, %v1677_v37  ;;  %8013 = vmatprep.subr.bf16.mxu1 %v9391_v42 }
 0x851   :  { %7985 = vmatprep.mubr.msk.bf16.mxu1 %vm261_vm0, %v1693_v7  ;;  %8009 = vmatprep.mubr.msk.bf16.mxu0 %vm261_vm0, %v1693_v7  ;;  %v1694_v48 = vpack.c.bf16 %v1690_v17, %v1690_v17 }
 0x853   :  { %7986 = vmatmul.mubr.msk.bf16.gmra.mrb[52].mxu1 %vm261_vm0, %v1694_v48  ;;  %8010 = vmatmul.mubr.msk.bf16.gmra.mrb[64].mxu0 %vm261_vm0, %v1694_v48 }
 0x854   :  { %7993 = vmatprep.mubr.msk.bf16.mxu1 %vm261_vm0, %v1691_v62  ;;  %8081 = vmatprep.mubr.msk.bf16.mxu0 %vm9392_vm1, %v9391_v42 }
 0x85b   :  { %7994 = vmatmul.mubr.msk.bf16.vlgmr.msra.gmra.mrb[56].mxu1 %vm261_vm0, %v1692_v57 }
 0x85c   :  { %7997 = vmatprep.mubr.msk.bf16.mxu1 %vm261_vm0, %v1693_v7 }
 0x863   :  { %7998 = vmatmul.mubr.msk.bf16.gmra.mrb[60].mxu1 %vm261_vm0, %v1694_v48  ;;  %v219_v48 = vld [vmem:[%s10140_s8 + $0x50] sm:$0xff] }
 0x864   :  { %8021 = vmatprep.mubr.msk.bf16.mxu1 %vm9392_vm1, %v9391_v42 }
 0x91c   :  { %v7983_v24 = vpop.f32.mrb[48].mxu1  ;;  %v8007_v39 = vpop.f32.mrb[60].mxu0 }
 0x91d   :  { %v1753_v38 = vpop.f32.mrb[49].mxu1  ;;  %v1909_v30 = vpop.f32.mrb[61].mxu0  ;;  %v1953_v40 = vrot.slane %v7983_v24, 4  ;;  %v10148_v29 = vmul.f32 %v7983_v24, %v211_v16  ;;  %v10165_v60 = vmul.f32 %v7983_v24, %v224_v45 }
 0x91e   :  { %v10150_v59 = vpop.f32.mrb[50].mxu1  ;;  %v8008_v43 = vpop.f32.mrb[62].mxu0  ;;  %v10152_v53 = vmul.f32 %v1753_v38, %v209_v25  ;;  %v1950_v10 = vrot.slane %v1753_v38, 4  ;;  %v10200_v28 = vmul.f32 %v1753_v38, %v222_v20 }
 0x91f   :  { %v1955_v46 = vrot.slane %v10150_v59, 4  ;;  %v10157_v4 = vmul.f32 %v10150_v59, %v212_v34  ;;  %v1940_v2 = vpack.c.bf16 %v8008_v43, %v8007_v39  ;;  %v1756_v47 = vpop.f32.mrb[51].mxu1  ;;  %v1912_v58 = vpop.f32.mrb[63].mxu0  ;;  %v10203_v37 = vmul.f32 %v10150_v59, %v225_v21  ;;  %v214_v39 = vld [vmem:[%s10140_s8 + $0x28] sm:$0xff] }
 0x920   :  { %v1951_v6 = vrot.slane %v1756_v47, 4  ;;  %v10161_v0 = vmul.f32 %v1756_v47, %v210_v41  ;;  %v10163_v9 = vmul.f32 %v1756_v47, %v223_v44  ;;  %v1939_v12 = vpack.c.bf16 %v1912_v58, %v1909_v30  ;;  %v232_v30 = vld [vmem:[%s10140_s8 + $0xb8] sm:$0xff] }
 0x921   :  { %v1956_v63 = vsel %vm1534_vm4, %v1953_v40, %v1955_v46  ;;  %v1998_v15 = vpack.c.bf16 %v10157_v4, %v10148_v29  ;;  %v220_v58 = vld [vmem:[%s10140_s8 + $0x58] sm:$0xff] }
 0x922   :  { %v10173_v52 = vmul.f32 %v1956_v63, %v218_v1  ;;  %v1954_v62 = vsel %vm1534_vm4, %v1951_v6, %v1953_v40  ;;  %v1997_v32 = vpack.c.bf16 %v10161_v0, %v10152_v53  ;;  %8074 = vmatpush3.bf16.msra.mxu0 %v1939_v12  ;;  %v2004_v36 = vpack.c.bf16 %v10165_v60, %v10163_v9  ;;  %v227_v40 = vld [vmem:[%s10140_s8 + $0x90] sm:$0xff]  ;;  %v159_v53 = vld [vmem:[%s10304_s19] sm:$0xff]  ;;  %v160_v60 = vld [vmem:[%s10304_s19 + $0x8] sm:$0xff] }
 0x923   :  { %v10178_v23 = vmul.f32 %v1954_v62, %v217_v5  ;;  %v10180_v8 = vmul.f32 %v1954_v62, %v230_v11  ;;  %8075 = vmatprep.subr.bf16.mxu0 %v9391_v42  ;;  %v1952_v18 = vsel %vm1534_vm4, %v1950_v10, %v1951_v6  ;;  %v10205_v7 = vmul.f32 %v1956_v63, %v231_v56  ;;  %v233_v63 = vld [vmem:[%s10140_s8 + $0xc0] sm:$0xff] }
 0x924   :  { %v10189_v57 = vmul.f32 %v1952_v18, %v229_v55  ;;  %v10213_v38 = vmul.f32 %v1952_v18, %v216_v14  ;;  %v234_v55 = vld [vmem:[%s10140_s8 + $0xc8] sm:$0xff] }
 0x925   :  { %v2001_v54 = vpack.c.bf16 %v10173_v52, %v10178_v23 }
 0x926   :  { %v7987_v27 = vpop.f32.mrb[52].mxu1  ;;  %v8011_v31 = vpop.f32.mrb[64].mxu0  ;;  %8076 = vmatpush3.bf16.msra.mxu0 %v1940_v2  ;;  %v2007_v35 = vpack.c.bf16 %v10180_v8, %v10189_v57 }
 0x927   :  { %v1970_v17 = vsel %vm1534_vm4, %v7987_v27, %v1950_v10  ;;  %v1769_v16 = vpop.f32.mrb[53].mxu1  ;;  %v1925_v24 = vpop.f32.mrb[65].mxu0  ;;  %8077 = vmatprep.subr.bf16.mxu0 %v9391_v42  ;;  %v1961_v25 = vrot.slane %v7987_v27, 4  ;;  %v1942_v1 = vpack.c.bf16 %v8011_v31, %v8011_v31  ;;  %v221_v10 = vld [vmem:[%s10140_s8 + $0x60] sm:$0xff] }
 0x928   :  { %v10211_v34 = vmul.f32 %v1970_v17, %v215_v49  ;;  %v1957_v41 = vrot.slane %v1769_v16, 4  ;;  %v7988_v44 = vpop.f32.mrb[54].mxu1  ;;  %v8012_v45 = vpop.f32.mrb[66].mxu0  ;;  %v10217_v43 = vmul.f32 %v1970_v17, %v228_v50  ;;  %v1975_v2 = vmul.f32 %v1769_v16, %v213_v13 }
 0x929   :  { %v10219_v47 = vmul.f32 %v1769_v16, %v226_v33  ;;  %v1772_v5 = vpop.f32.mrb[55].mxu1  ;;  %v1928_v11 = vpop.f32.mrb[67].mxu0 }
 0x92a   :  { %v2000_v6 = vpack.c.bf16 %v10213_v38, %v10211_v34  ;;  %v1958_v12 = vsel %vm1534_vm4, %v1955_v46, %v1957_v41  ;;  %v1959_v62 = vrot.slane %v1772_v5, 4  ;;  %v1976_v18 = vmul.f32 %v1772_v5, %v214_v39 }
 0x92b   :  { %v1981_v20 = vmul.f32 %v1958_v12, %v219_v48  ;;  %v10230_v21 = vmul.f32 %v1958_v12, %v232_v30  ;;  %v2005_v56 = vpack.c.bf16 %v10219_v47, %v10203_v37  ;;  %v1989_v49 = vmul.f32 %v1772_v5, %v227_v40  ;;  %v162_v12 = vld [vmem:[%s10304_s19 + $0x18] sm:$0xff] }
 0x92c   :  { %v1960_v14 = vsel %vm1534_vm4, %v1957_v41, %v1959_v62  ;;  %v1962_v50 = vsel %vm1534_vm4, %v1959_v62, %v1961_v25  ;;  %v1999_v27 = vpack.c.bf16 %v1976_v18, %v1975_v2  ;;  %v1941_v59 = vpack.c.bf16 %v1928_v11, %v1925_v24 }
 0x92d   :  { %v1982_v31 = vmul.f32 %v1960_v14, %v220_v58  ;;  %v1983_v46 = vmul.f32 %v1962_v50, %v221_v10  ;;  %v1995_v13 = vmul.f32 %v1960_v14, %v233_v63  ;;  %v1996_v33 = vmul.f32 %v1962_v50, %v234_v55 }
 0x92e   :  { %v2006_v17 = vpack.c.bf16 %v10217_v43, %v1989_v49  ;;  %8078 = vmatpush3.bf16.msra.mxu0 %v1941_v59  ;;  %v7995_v48 = vpop.f32.mrb[56].mxu1  ;;  %v2008_v16 = vpack.c.bf16 %v10230_v21, %v10205_v7  ;;  %v2590_v24 = vsel %vm1526_vm3, %v1942_v1, 0 }
 0x92f   :  { %v1829_v39 = vpop.f32.mrb[57].mxu1  ;;  %8079 = vmatprep.subr.bf16.mxu0 %v9391_v42  ;;  %v2002_v37 = vpack.c.bf16 %v1982_v31, %v1981_v20  ;;  %v2003_v34 = vpack.c.bf16 %v10200_v28, %v1983_v46  ;;  %v2009_v25 = vpack.c.bf16 %v1996_v33, %v1995_v13 }
 0x930   :  { %v7996_v38 = vpop.f32.mrb[58].mxu1 }
 0x931   :  { %v1860_v30 = vpack.c.bf16 %v7996_v38, %v7995_v48  ;;  %v1832_v41 = vpop.f32.mrb[59].mxu1 }
 0x932   :  { %8080 = vmatpush3.bf16.msra.mxu0 %v2590_v24  ;;  %v1859_v44 = vpack.c.bf16 %v1832_v41, %v1829_v39 }
 0x933   :  { %v2053_v28 = vsel %vm261_vm0, %v1860_v30, 0 }
 0x934   :  { %v2050_v45 = vsel %vm261_vm0, %v1859_v44, 0 }
 0x935   :  { %8014 = vmatpush3.bf16.xpose.msra.mxu1 %v2050_v45 }
 0x936   :  { %v7999_v40 = vpop.f32.mrb[60].mxu1  ;;  %8015 = vmatprep.subr.bf16.mxu1 %v9391_v42 }
 0x937   :  { %v1845_v7 = vpop.f32.mrb[61].mxu1  ;;  %v1862_v58 = vpack.c.bf16 %v7999_v40, %v7999_v40 }
 0x938   :  { %v8000_v43 = vpop.f32.mrb[62].mxu1 }
 0x939   :  { %v1848_v2 = vpop.f32.mrb[63].mxu1  ;;  %v2059_v5 = vsel %vm261_vm0, %v1862_v58, 0 }
 0x93a   :  { %v1861_v47 = vpack.c.bf16 %v1848_v2, %v1845_v7  ;;  %v167_v7 = vld [vmem:[%s10304_s19 + $0x40] sm:$0xff] }
 0x93c   :  { %v2056_v1 = vsel %vm261_vm0, %v1861_v47, 0 }
 0x93d   :  { %8016 = vmatpush3.bf16.xpose.msra.mxu1 %v2053_v28  ;;  %v168_v28 = vld [vmem:[%s10304_s19 + $0x48] sm:$0xff] }
 0x93e   :  { %8017 = vmatprep.subr.bf16.mxu1 %v9391_v42 }
 0x945   :  { %8018 = vmatpush3.bf16.xpose.msra.mxu1 %v2056_v1 }
 0x946   :  { %8019 = vmatprep.subr.bf16.mxu1 %v9391_v42 }
 0x94d   :  { %8020 = vmatpush3.bf16.xpose.msra.mxu1 %v2059_v5 }
 0x954   :  { %8022 = vmatmul.mubr.msk.bf16.vlgmr.msra.gmra.mrb[64].mxu1 %vm261_vm0, %v1997_v32 }
 0x955   :  { %8025 = vmatprep.mubr.msk.bf16.mxu1 %vm9392_vm1, %v9391_v42 }
 0x95c   :  { %8026 = vmatmul.mubr.msk.bf16.gmra.mrb[68].mxu1 %vm261_vm0, %v1998_v15 }
 0x95d   :  { %8029 = vmatprep.mubr.msk.bf16.mxu1 %vm9392_vm1, %v9391_v42 }
 0x964   :  { %8030 = vmatmul.mubr.msk.bf16.gmra.mrb[72].mxu1 %vm261_vm0, %v1999_v27  ;;  %v164_v27 = vld [vmem:[%s10304_s19 + $0x28] sm:$0xff] }
 0x965   :  { %8033 = vmatprep.mubr.msk.bf16.mxu1 %vm9392_vm1, %v9391_v42 }
 0x96c   :  { %8034 = vmatmul.mubr.msk.bf16.gmra.mrb[76].mxu1 %vm261_vm0, %v2000_v6 }
 0x96d   :  { %8037 = vmatprep.mubr.msk.bf16.mxu1 %vm9392_vm1, %v9391_v42 }
 0x974   :  { %8038 = vmatmul.mubr.msk.bf16.gmra.mrb[80].mxu1 %vm261_vm0, %v2001_v54  ;;  %v161_v54 = vld [vmem:[%s10304_s19 + $0x10] sm:$0xff] }
 0x975   :  { %8041 = vmatprep.mubr.msk.bf16.mxu1 %vm9392_vm1, %v9391_v42 }
 0x97c   :  { %8042 = vmatmul.mubr.msk.bf16.gmra.mrb[84].mxu1 %vm261_vm0, %v2002_v37 }
 0x97d   :  { %8045 = vmatprep.mubr.msk.bf16.mxu1 %vm9392_vm1, %v9391_v42 }
 0x984   :  { %8046 = vmatmul.mubr.msk.bf16.gmra.mrb[88].mxu1 %vm261_vm0, %v2003_v34 }
 0x985   :  { %8049 = vmatprep.mubr.msk.bf16.mxu1 %vm9392_vm1, %v9391_v42 }
 0x98c   :  { %8050 = vmatmul.mubr.msk.bf16.gmra.mrb[92].mxu1 %vm261_vm0, %v2004_v36 }
 0x98d   :  { %8053 = vmatprep.mubr.msk.bf16.mxu1 %vm9392_vm1, %v9391_v42 }
 0x994   :  { %8054 = vmatmul.mubr.msk.bf16.gmra.mrb[96].mxu1 %vm261_vm0, %v2005_v56  ;;  %v163_v56 = vld [vmem:[%s10304_s19 + $0x20] sm:$0xff] }
 0x995   :  { %8057 = vmatprep.mubr.msk.bf16.mxu1 %vm9392_vm1, %v9391_v42 }
 0x99c   :  { %8058 = vmatmul.mubr.msk.bf16.gmra.mrb[100].mxu1 %vm261_vm0, %v2006_v17 }
 0x99d   :  { %8061 = vmatprep.mubr.msk.bf16.mxu1 %vm9392_vm1, %v9391_v42 }
 0x9a4   :  { %8062 = vmatmul.mubr.msk.bf16.gmra.mrb[104].mxu1 %vm261_vm0, %v2007_v35 }
 0x9a5   :  { %8065 = vmatprep.mubr.msk.bf16.mxu1 %vm9392_vm1, %v9391_v42 }
 0x9ac   :  { %8066 = vmatmul.mubr.msk.bf16.gmra.mrb[108].mxu1 %vm261_vm0, %v2008_v16  ;;  %v165_v16 = vld [vmem:[%s10304_s19 + $0x30] sm:$0xff] }
 0x9ad   :  { %8069 = vmatprep.mubr.msk.bf16.mxu1 %vm9392_vm1, %v9391_v42 }
 0x9b4   :  { %8070 = vmatmul.mubr.msk.bf16.gmra.mrb[112].mxu1 %vm261_vm0, %v2009_v25  ;;  %v166_v25 = vld [vmem:[%s10304_s19 + $0x38] sm:$0xff] }
 0xa27   :  { %v2095_v29 = vpop.f32.mrb[64].mxu1 }
 0xa28   :  { %v2198_v4 = vmul.f32 0.35355338, %v2095_v29  ;;  %v8023_v0 = vpop.f32.mrb[65].mxu1 }
 0xa29   :  { %v2098_v9 = vpop.f32.mrb[66].mxu1 }
 0xa2a   :  { %v2199_v15 = vmul.f32 0.35355338, %v2098_v9  ;;  %v8024_v52 = vpop.f32.mrb[67].mxu1  ;;  %v10308_v32 = vadd.f32 %v2198_v4, %v159_v53  ;;  %v169_v9 = vld [vmem:[%s10304_s19 + $0x50] sm:$0xff] }
 0xa2c   :  { %v2251_v23 = vsel %vm2250_vm6, %v10308_v32, -inf  ;;  %v10312_v8 = vadd.f32 %v2199_v15, %v160_v60 }
 0xa2d   :  { %2252 = vmax.xlane.f32.xlu0 %v2251_v23  ;;  %v170_v23 = vld [vmem:[%s10304_s19 + $0x58] sm:$0xff] }
 0xa2e   :  { %v2254_v36 = vsel %vm2250_vm6, %v10312_v8, -inf }
 0xa2f   :  { %2255 = vmax.xlane.f32.xlu1 %v2254_v36  ;;  %v2103_v57 = vpop.f32.mrb[68].mxu1 }
 0xa30   :  { %v2200_v35 = vmul.f32 0.35355338, %v2103_v57  ;;  %v8027_v11 = vpop.f32.mrb[69].mxu1 }
 0xa31   :  { %v2106_v6 = vpop.f32.mrb[70].mxu1 }
 0xa32   :  { %v2201_v10 = vmul.f32 0.35355338, %v2106_v6  ;;  %v8028_v63 = vpop.f32.mrb[71].mxu1  ;;  %v10318_v55 = vadd.f32 %v2200_v35, %v161_v54 }
 0xa34   :  { %v2257_v62 = vsel %vm2250_vm6, %v10318_v55, -inf  ;;  %v10322_v18 = vadd.f32 %v2201_v10, %v162_v12  ;;  %v171_v10 = vld [vmem:[%s10304_s19 + $0x60] sm:$0xff] }
 0xa35   :  { %2258 = vmax.xlane.f32.xlu0 %v2257_v62 }
 0xa36   :  { %v2260_v20 = vsel %vm2250_vm6, %v10322_v18, -inf }
 0xa37   :  { %2261 = vmax.xlane.f32.xlu1 %v2260_v20  ;;  %v2111_v21 = vpop.f32.mrb[72].mxu1 }
 0xa38   :  { %v2202_v49 = vmul.f32 0.35355338, %v2111_v21  ;;  %v8031_v14 = vpop.f32.mrb[73].mxu1  ;;  %v172_v21 = vld [vmem:[%s10304_s19 + $0x68] sm:$0xff] }
 0xa39   :  { %v2114_v50 = vpop.f32.mrb[74].mxu1 }
 0xa3a   :  { %v2203_v59 = vmul.f32 0.35355338, %v2114_v50  ;;  %v8032_v31 = vpop.f32.mrb[75].mxu1  ;;  %v10328_v46 = vadd.f32 %v2202_v49, %v163_v56 }
 0xa3c   :  { %v2263_v13 = vsel %vm2250_vm6, %v10328_v46, -inf  ;;  %v10332_v33 = vadd.f32 %v2203_v59, %v164_v27 }
 0xa3d   :  { %2264 = vmax.xlane.f32.xlu0 %v2263_v13  ;;  %v173_v13 = vld [vmem:[%s10304_s19 + $0x70] sm:$0xff] }
 0xa3e   :  { %v2266_v17 = vsel %vm2250_vm6, %v10332_v33, -inf }
 0xa3f   :  { %2267 = vmax.xlane.f32.xlu1 %v2266_v17  ;;  %v2119_v48 = vpop.f32.mrb[76].mxu1 }
 0xa40   :  { %v2204_v39 = vmul.f32 0.35355338, %v2119_v48  ;;  %v8035_v37 = vpop.f32.mrb[77].mxu1 }
 0xa41   :  { %v2122_v34 = vpop.f32.mrb[78].mxu1 }
 0xa42   :  { %v2205_v38 = vmul.f32 0.35355338, %v2122_v34  ;;  %v8036_v24 = vpop.f32.mrb[79].mxu1  ;;  %v10338_v30 = vadd.f32 %v2204_v39, %v165_v16  ;;  %v174_v39 = vld [vmem:[%s10304_s19 + $0x78] sm:$0xff] }
 0xa44   :  { %v2269_v41 = vsel %vm2250_vm6, %v10338_v30, -inf  ;;  %v10342_v44 = vadd.f32 %v2205_v38, %v166_v25 }
 0xa45   :  { %2270 = vmax.xlane.f32.xlu0 %v2269_v41 }
 0xa46   :  { %v2272_v45 = vsel %vm2250_vm6, %v10342_v44, -inf }
 0xa47   :  { %2273 = vmax.xlane.f32.xlu1 %v2272_v45  ;;  %v2127_v40 = vpop.f32.mrb[80].mxu1 }
 0xa48   :  { %v2206_v43 = vmul.f32 0.35355338, %v2127_v40  ;;  %v8039_v2 = vpop.f32.mrb[81].mxu1  ;;  %v175_v40 = vld [vmem:[%s10304_s19 + $0x80] sm:$0xff] }
 0xa49   :  { %v2130_v47 = vpop.f32.mrb[82].mxu1 }
 0xa4a   :  { %v2207_v1 = vmul.f32 0.35355338, %v2130_v47  ;;  %v8040_v58 = vpop.f32.mrb[83].mxu1  ;;  %v10348_v5 = vadd.f32 %v2206_v43, %v167_v7  ;;  %v176_v47 = vld [vmem:[%s10304_s19 + $0x88] sm:$0xff] }
 0xa4c   :  { %v2275_v29 = vsel %vm2250_vm6, %v10348_v5, -inf  ;;  %v10352_v53 = vadd.f32 %v2207_v1, %v168_v28 }
 0xa4d   :  { %2276 = vmax.xlane.f32.xlu0 %v2275_v29 }
 0xa4e   :  { %v2278_v4 = vsel %vm2250_vm6, %v10352_v53, -inf }
 0xa4f   :  { %2279 = vmax.xlane.f32.xlu1 %v2278_v4  ;;  %v2135_v0 = vpop.f32.mrb[84].mxu1 }
 0xa50   :  { %v2208_v60 = vmul.f32 0.35355338, %v2135_v0  ;;  %v8043_v15 = vpop.f32.mrb[85].mxu1 }
 0xa51   :  { %v2138_v52 = vpop.f32.mrb[86].mxu1 }
 0xa52   :  { %v2209_v36 = vmul.f32 0.35355338, %v2138_v52  ;;  %v8044_v57 = vpop.f32.mrb[87].mxu1  ;;  %v10358_v54 = vadd.f32 %v2208_v60, %v169_v9  ;;  %v177_v60 = vld [vmem:[%s10304_s19 + $0x90] sm:$0xff] }
 0xa54   :  { %v2281_v35 = vsel %vm2250_vm6, %v10358_v54, -inf  ;;  %v10362_v11 = vadd.f32 %v2209_v36, %v170_v23  ;;  %v178_v36 = vld [vmem:[%s10304_s19 + $0x98] sm:$0xff] }
 0xa55   :  { %2282 = vmax.xlane.f32.xlu0 %v2281_v35 }
 0xa56   :  { %v2284_v6 = vsel %vm2250_vm6, %v10362_v11, -inf }
 0xa57   :  { %2285 = vmax.xlane.f32.xlu1 %v2284_v6  ;;  %v2143_v12 = vpop.f32.mrb[88].mxu1 }
 0xa58   :  { %v2210_v63 = vmul.f32 0.35355338, %v2143_v12  ;;  %v8047_v62 = vpop.f32.mrb[89].mxu1 }
 0xa59   :  { %v2146_v20 = vpop.f32.mrb[90].mxu1 }
 0xa5a   :  { %v2211_v56 = vmul.f32 0.35355338, %v2146_v20  ;;  %v8048_v49 = vpop.f32.mrb[91].mxu1  ;;  %v10368_v14 = vadd.f32 %v2210_v63, %v171_v10  ;;  %v179_v20 = vld [vmem:[%s10304_s19 + $0xa0] sm:$0xff] }
 0xa5c   :  { %v2287_v50 = vsel %vm2250_vm6, %v10368_v14, -inf  ;;  %v10372_v27 = vadd.f32 %v2211_v56, %v172_v21 }
 0xa5d   :  { %2288 = vmax.xlane.f32.xlu0 %v2287_v50  ;;  %v180_v50 = vld [vmem:[%s10304_s19 + $0xa8] sm:$0xff] }
 0xa5e   :  { %v2290_v59 = vsel %vm2250_vm6, %v10372_v27, -inf }
 0xa5f   :  { %2291 = vmax.xlane.f32.xlu1 %v2290_v59  ;;  %v2151_v31 = vpop.f32.mrb[92].mxu1 }
 0xa60   :  { %v2212_v17 = vmul.f32 0.35355338, %v2151_v31  ;;  %v8051_v48 = vpop.f32.mrb[93].mxu1 }
 0xa61   :  { %v2154_v16 = vpop.f32.mrb[94].mxu1 }
 0xa62   :  { %v2213_v37 = vmul.f32 0.35355338, %v2154_v16  ;;  %v8052_v34 = vpop.f32.mrb[95].mxu1  ;;  %v10378_v25 = vadd.f32 %v2212_v17, %v173_v13 }
 0xa64   :  { %v2293_v38 = vsel %vm2250_vm6, %v10378_v25, -inf  ;;  %v10382_v24 = vadd.f32 %v2213_v37, %v174_v39  ;;  %v181_v37 = vld [vmem:[%s10304_s19 + $0xb0] sm:$0xff] }
 0xa65   :  { %2294 = vmax.xlane.f32.xlu0 %v2293_v38 }
 0xa66   :  { %v2296_v41 = vsel %vm2250_vm6, %v10382_v24, -inf }
 0xa67   :  { %2297 = vmax.xlane.f32.xlu1 %v2296_v41  ;;  %v2159_v45 = vpop.f32.mrb[96].mxu1 }
 0xa68   :  { %v2214_v7 = vmul.f32 0.35355338, %v2159_v45  ;;  %v8055_v43 = vpop.f32.mrb[97].mxu1  ;;  %v182_v45 = vld [vmem:[%s10304_s19 + $0xb8] sm:$0xff] }
 0xa69   :  { %v2162_v2 = vpop.f32.mrb[98].mxu1 }
 0xa6a   :  { %v2215_v28 = vmul.f32 0.35355338, %v2162_v2  ;;  %v8056_v1 = vpop.f32.mrb[99].mxu1  ;;  %v10388_v58 = vadd.f32 %v2214_v7, %v175_v40 }
 0xa6c   :  { %v2299_v29 = vsel %vm2250_vm6, %v10388_v58, -inf  ;;  %v10392_v4 = vadd.f32 %v2215_v28, %v176_v47 }
 0xa6d   :  { %2300 = vmax.xlane.f32.xlu0 %v2299_v29 }
 0xa6e   :  { %v2302_v0 = vsel %vm2250_vm6, %v10392_v4, -inf }
 0xa6f   :  { %2303 = vmax.xlane.f32.xlu1 %v2302_v0  ;;  %v2167_v9 = vpop.f32.mrb[100].mxu1 }
 0xa70   :  { %v2216_v15 = vmul.f32 0.35355338, %v2167_v9  ;;  %v8059_v52 = vpop.f32.mrb[101].mxu1 }
 0xa71   :  { %v2170_v23 = vpop.f32.mrb[102].mxu1 }
 0xa72   :  { %v2217_v57 = vmul.f32 0.35355338, %v2170_v23  ;;  %v8060_v35 = vpop.f32.mrb[103].mxu1  ;;  %v10398_v6 = vadd.f32 %v2216_v15, %v177_v60 }
 0xa74   :  { %v2305_v12 = vsel %vm2250_vm6, %v10398_v6, -inf  ;;  %v10402_v10 = vadd.f32 %v2217_v57, %v178_v36 }
 0xa75   :  { %2306 = vmax.xlane.f32.xlu0 %v2305_v12 }
 0xa76   :  { %v2308_v63 = vsel %vm2250_vm6, %v10402_v10, -inf }
 0xa77   :  { %2309 = vmax.xlane.f32.xlu1 %v2308_v63  ;;  %v2175_v62 = vpop.f32.mrb[104].mxu1 }
 0xa78   :  { %v2218_v21 = vmul.f32 0.35355338, %v2175_v62  ;;  %v8063_v56 = vpop.f32.mrb[105].mxu1 }
 0xa79   :  { %v2178_v49 = vpop.f32.mrb[106].mxu1  ;;  %v183_v56 = vld [vmem:[%s10304_s19 + $0xc0] sm:$0xff] }
 0xa7a   :  { %v2219_v59 = vmul.f32 0.35355338, %v2178_v49  ;;  %v8064_v31 = vpop.f32.mrb[107].mxu1  ;;  %v10408_v13 = vadd.f32 %v2218_v21, %v179_v20 }
 0xa7c   :  { %v2311_v17 = vsel %vm2250_vm6, %v10408_v13, -inf  ;;  %v10412_v48 = vadd.f32 %v2219_v59, %v180_v50  ;;  %v184_v59 = vld [vmem:[%s10304_s19 + $0xc8] sm:$0xff] }
 0xa7d   :  { %2312 = vmax.xlane.f32.xlu0 %v2311_v17 }
 0xa7e   :  { %v2314_v16 = vsel %vm2250_vm6, %v10412_v48, -inf }
 0xa7f   :  { %2315 = vmax.xlane.f32.xlu1 %v2314_v16  ;;  %v2183_v39 = vpop.f32.mrb[108].mxu1 }
 0xa80   :  { %v2220_v34 = vmul.f32 0.35355338, %v2183_v39  ;;  %v8067_v38 = vpop.f32.mrb[109].mxu1 }
 0xa81   :  { %v2186_v41 = vpop.f32.mrb[110].mxu1 }
 0xa82   :  { %v2221_v40 = vmul.f32 0.35355338, %v2186_v41  ;;  %v8068_v7 = vpop.f32.mrb[111].mxu1  ;;  %v10418_v43 = vadd.f32 %v2220_v34, %v181_v37 }
 0xa84   :  { %v2317_v2 = vsel %vm2250_vm6, %v10418_v43, -inf  ;;  %v10422_v47 = vadd.f32 %v2221_v40, %v182_v45 }
 0xa85   :  { %2318 = vmax.xlane.f32.xlu0 %v2317_v2 }
 0xa86   :  { %v2320_v28 = vsel %vm2250_vm6, %v10422_v47, -inf }
 0xa87   :  { %2321 = vmax.xlane.f32.xlu1 %v2320_v28  ;;  %v2191_v1 = vpop.f32.mrb[112].mxu1 }
 0xa88   :  { %v8071_v29 = vpop.f32.mrb[113].mxu1  ;;  %v2222_v21 = vmul.f32 0.35355338, %v2191_v1 }
 0xa89   :  { %v2194_v0 = vpop.f32.mrb[114].mxu1 }
 0xa8a   :  { %v8072_v9 = vpop.f32.mrb[115].mxu1 }
 0xaba   :  { %v2253_v60 = vpop.xlane.xlu0 %2252 }
 0xabb   :  { %v2329_v15 = vsub.f32 %v10308_v32, %v2253_v60  ;;  %v2223_v32 = vmul.f32 0.35355338, %v2194_v0 }
 0xabc   :  { %v2256_v52 = vpop.xlane.xlu1 %2255 }
 0xabd   :  { %v2355_v23 = vmul.f32 1.442695, %v2329_v15  ;;  %v2330_v36 = vsub.f32 %v10312_v8, %v2256_v52  ;;  %v10434_v8 = vadd.f32 %v2222_v21, %v183_v56 }
 0xabf   :  { %8767 = vpow2.f32 %v2355_v23  ;;  %v2357_v57 = vmul.f32 1.442695, %v2330_v36  ;;  %v2323_v41 = vsel %vm2250_vm6, %v10434_v8, -inf }
 0xac1   :  { %8769 = vpow2.f32 %v2357_v57 }
 0xac2   :  { %v2259_v35 = vpop.xlane.xlu0 %2258 }
 0xac3   :  { %v2331_v12 = vsub.f32 %v10318_v55, %v2259_v35 }
 0xac4   :  { %v2262_v63 = vpop.xlane.xlu1 %2261 }
 0xac5   :  { %v2359_v62 = vmul.f32 1.442695, %v2331_v12  ;;  %v2332_v20 = vsub.f32 %v10322_v18, %v2262_v63  ;;  %v10441_v18 = vadd.f32 %v2223_v32, %v184_v59 }
 0xac7   :  { %8771 = vpow2.f32 %v2359_v62  ;;  %v2361_v49 = vmul.f32 1.442695, %v2332_v20 }
 0xac9   :  { %v10431_v50 = vpop.eup %8767  ;;  %8773 = vpow2.f32 %v2361_v49 }
 0xaca   :  { %v2265_v31 = vpop.xlane.xlu0 %2264  ;;  %v2407_v17 = vsel %vm2250_vm6, %v10431_v50, 0.0 }
 0xacb   :  { %v10438_v55 = vpop.eup %8769  ;;  %v2333_v16 = vsub.f32 %v10328_v46, %v2265_v31  ;;  %2408 = vadd.xlane.f32.xlu0 %v2407_v17  ;;  %v2326_v46 = vsel %vm2250_vm6, %v10441_v18, -inf }
 0xacc   :  { %v2268_v39 = vpop.xlane.xlu1 %2267  ;;  %v2410_v37 = vsel %vm2250_vm6, %v10438_v55, 0.0 }
 0xacd   :  { %v2363_v34 = vmul.f32 1.442695, %v2333_v16  ;;  %v2334_v38 = vsub.f32 %v10332_v33, %v2268_v39  ;;  %2411 = vadd.xlane.f32.xlu1 %v2410_v37 }
 0xacf   :  { %8775 = vpow2.f32 %v2363_v34  ;;  %v2365_v45 = vmul.f32 1.442695, %v2334_v38  ;;  %2324 = vmax.xlane.f32.xlu0 %v2323_v41 }
 0xad1   :  { %v10450_v40 = vpop.eup %8771  ;;  %8777 = vpow2.f32 %v2365_v45  ;;  %2327 = vmax.xlane.f32.xlu1 %v2326_v46 }
 0xad2   :  { %v2271_v7 = vpop.xlane.xlu0 %2270  ;;  %v2413_v2 = vsel %vm2250_vm6, %v10450_v40, 0.0 }
 0xad3   :  { %v10454_v28 = vpop.eup %8773  ;;  %v2335_v33 = vsub.f32 %v10338_v30, %v2271_v7  ;;  %2414 = vadd.xlane.f32.xlu0 %v2413_v2 }
 0xad4   :  { %v2274_v1 = vpop.xlane.xlu1 %2273  ;;  %v2416_v29 = vsel %vm2250_vm6, %v10454_v28, 0.0 }
 0xad5   :  { %v2367_v0 = vmul.f32 1.442695, %v2335_v33  ;;  %v2336_v9 = vsub.f32 %v10342_v44, %v2274_v1  ;;  %2417 = vadd.xlane.f32.xlu1 %v2416_v29 }
 0xad7   :  { %8779 = vpow2.f32 %v2367_v0  ;;  %v2369_v60 = vmul.f32 1.442695, %v2336_v9 }
 0xad9   :  { %v10460_v15 = vpop.eup %8775  ;;  %8781 = vpow2.f32 %v2369_v60 }
 0xada   :  { %v2277_v52 = vpop.xlane.xlu0 %2276  ;;  %v2419_v23 = vsel %vm2250_vm6, %v10460_v15, 0.0 }
 0xadb   :  { %v10464_v36 = vpop.eup %8777  ;;  %v2337_v30 = vsub.f32 %v10348_v5, %v2277_v52  ;;  %2420 = vadd.xlane.f32.xlu0 %v2419_v23 }
 0xadc   :  { %v2280_v57 = vpop.xlane.xlu1 %2279  ;;  %v2422_v35 = vsel %vm2250_vm6, %v10464_v36, 0.0 }
 0xadd   :  { %v2371_v44 = vmul.f32 1.442695, %v2337_v30  ;;  %v2338_v12 = vsub.f32 %v10352_v53, %v2280_v57  ;;  %2423 = vadd.xlane.f32.xlu1 %v2422_v35 }
 0xadf   :  { %8783 = vpow2.f32 %v2371_v44  ;;  %v2373_v63 = vmul.f32 1.442695, %v2338_v12 }
 0xae1   :  { %v10470_v62 = vpop.eup %8779  ;;  %8785 = vpow2.f32 %v2373_v63 }
 0xae2   :  { %v2283_v20 = vpop.xlane.xlu0 %2282  ;;  %v2425_v21 = vsel %vm2250_vm6, %v10470_v62, 0.0 }
 0xae3   :  { %v10474_v56 = vpop.eup %8781  ;;  %v2339_v5 = vsub.f32 %v10358_v54, %v2283_v20  ;;  %2426 = vadd.xlane.f32.xlu0 %v2425_v21 }
 0xae4   :  { %v2286_v49 = vpop.xlane.xlu1 %2285  ;;  %v2428_v32 = vsel %vm2250_vm6, %v10474_v56, 0.0 }
 0xae5   :  { %v2375_v53 = vmul.f32 1.442695, %v2339_v5  ;;  %v2340_v59 = vsub.f32 %v10362_v11, %v2286_v49  ;;  %2429 = vadd.xlane.f32.xlu1 %v2428_v32 }
 0xae7   :  { %8787 = vpow2.f32 %v2375_v53  ;;  %v2377_v31 = vmul.f32 1.442695, %v2340_v59 }
 0xae9   :  { %v10480_v17 = vpop.eup %8783  ;;  %8789 = vpow2.f32 %v2377_v31 }
 0xaea   :  { %v2289_v16 = vpop.xlane.xlu0 %2288  ;;  %v2431_v39 = vsel %vm2250_vm6, %v10480_v17, 0.0 }
 0xaeb   :  { %v10484_v37 = vpop.eup %8785  ;;  %v2341_v54 = vsub.f32 %v10368_v14, %v2289_v16  ;;  %2432 = vadd.xlane.f32.xlu0 %v2431_v39 }
 0xaec   :  { %v2292_v34 = vpop.xlane.xlu1 %2291  ;;  %v2434_v38 = vsel %vm2250_vm6, %v10484_v37, 0.0 }
 0xaed   :  { %v2379_v11 = vmul.f32 1.442695, %v2341_v54  ;;  %v2342_v41 = vsub.f32 %v10372_v27, %v2292_v34  ;;  %2435 = vadd.xlane.f32.xlu1 %v2434_v38 }
 0xaef   :  { %8791 = vpow2.f32 %v2379_v11  ;;  %v2381_v45 = vmul.f32 1.442695, %v2342_v41 }
 0xaf1   :  { %v10490_v46 = vpop.eup %8787  ;;  %8793 = vpow2.f32 %v2381_v45 }
 0xaf2   :  { %v2295_v7 = vpop.xlane.xlu0 %2294  ;;  %v2437_v2 = vsel %vm2250_vm6, %v10490_v46, 0.0 }
 0xaf3   :  { %v10494_v33 = vpop.eup %8789  ;;  %v2343_v14 = vsub.f32 %v10378_v25, %v2295_v7  ;;  %2438 = vadd.xlane.f32.xlu0 %v2437_v2 }
 0xaf4   :  { %v2298_v1 = vpop.xlane.xlu1 %2297  ;;  %v2440_v29 = vsel %vm2250_vm6, %v10494_v33, 0.0 }
 0xaf5   :  { %v2383_v27 = vmul.f32 1.442695, %v2343_v14  ;;  %v2344_v0 = vsub.f32 %v10382_v24, %v2298_v1  ;;  %2441 = vadd.xlane.f32.xlu1 %v2440_v29 }
 0xaf7   :  { %8795 = vpow2.f32 %v2383_v27  ;;  %v2385_v9 = vmul.f32 1.442695, %v2344_v0 }
 0xaf9   :  { %v10500_v60 = vpop.eup %8791  ;;  %8797 = vpow2.f32 %v2385_v9 }
 0xafa   :  { %v2301_v52 = vpop.xlane.xlu0 %2300  ;;  %v2443_v23 = vsel %vm2250_vm6, %v10500_v60, 0.0 }
 0xafb   :  { %v10504_v30 = vpop.eup %8793  ;;  %v2345_v25 = vsub.f32 %v10388_v58, %v2301_v52  ;;  %2444 = vadd.xlane.f32.xlu0 %v2443_v23 }
 0xafc   :  { %v2304_v57 = vpop.xlane.xlu1 %2303  ;;  %v2446_v35 = vsel %vm2250_vm6, %v10504_v30, 0.0 }
 0xafd   :  { %v2387_v24 = vmul.f32 1.442695, %v2345_v25  ;;  %v2346_v44 = vsub.f32 %v10392_v4, %v2304_v57  ;;  %2447 = vadd.xlane.f32.xlu1 %v2446_v35 }
 0xaff   :  { %8799 = vpow2.f32 %v2387_v24  ;;  %v2389_v12 = vmul.f32 1.442695, %v2346_v44 }
 0xb01   :  { %v10510_v63 = vpop.eup %8795  ;;  %8801 = vpow2.f32 %v2389_v12 }
 0xb02   :  { %v2307_v20 = vpop.xlane.xlu0 %2306  ;;  %v2449_v21 = vsel %vm2250_vm6, %v10510_v63, 0.0 }
 0xb03   :  { %v10514_v5 = vpop.eup %8797  ;;  %v2347_v58 = vsub.f32 %v10398_v6, %v2307_v20  ;;  %2450 = vadd.xlane.f32.xlu0 %v2449_v21 }
 0xb04   :  { %v2310_v49 = vpop.xlane.xlu1 %2309  ;;  %v2452_v32 = vsel %vm2250_vm6, %v10514_v5, 0.0 }
 0xb05   :  { %v2391_v4 = vmul.f32 1.442695, %v2347_v58  ;;  %v2348_v53 = vsub.f32 %v10402_v10, %v2310_v49  ;;  %2453 = vadd.xlane.f32.xlu1 %v2452_v32 }
 0xb07   :  { %8803 = vpow2.f32 %v2391_v4  ;;  %v2393_v59 = vmul.f32 1.442695, %v2348_v53 }
 0xb09   :  { %v10520_v31 = vpop.eup %8799  ;;  %8805 = vpow2.f32 %v2393_v59 }
 0xb0a   :  { %v2313_v16 = vpop.xlane.xlu0 %2312  ;;  %v2455_v39 = vsel %vm2250_vm6, %v10520_v31, 0.0 }
 0xb0b   :  { %v10524_v54 = vpop.eup %8801  ;;  %v2349_v6 = vsub.f32 %v10408_v13, %v2313_v16  ;;  %2456 = vadd.xlane.f32.xlu0 %v2455_v39 }
 0xb0c   :  { %v2316_v34 = vpop.xlane.xlu1 %2315  ;;  %v2458_v38 = vsel %vm2250_vm6, %v10524_v54, 0.0 }
 0xb0d   :  { %v2395_v10 = vmul.f32 1.442695, %v2349_v6  ;;  %v2350_v11 = vsub.f32 %v10412_v48, %v2316_v34  ;;  %2459 = vadd.xlane.f32.xlu1 %v2458_v38 }
 0xb0f   :  { %8807 = vpow2.f32 %v2395_v10  ;;  %v2397_v41 = vmul.f32 1.442695, %v2350_v11 }
 0xb11   :  { %v10530_v45 = vpop.eup %8803  ;;  %8809 = vpow2.f32 %v2397_v41 }
 0xb12   :  { %v2319_v7 = vpop.xlane.xlu0 %2318  ;;  %v2461_v2 = vsel %vm2250_vm6, %v10530_v45, 0.0 }
 0xb13   :  { %v10534_v14 = vpop.eup %8805  ;;  %v2351_v13 = vsub.f32 %v10418_v43, %v2319_v7  ;;  %2462 = vadd.xlane.f32.xlu0 %v2461_v2 }
 0xb14   :  { %v2322_v1 = vpop.xlane.xlu1 %2321  ;;  %v2464_v29 = vsel %vm2250_vm6, %v10534_v14, 0.0 }
 0xb15   :  { %v2399_v48 = vmul.f32 1.442695, %v2351_v13  ;;  %v2352_v27 = vsub.f32 %v10422_v47, %v2322_v1  ;;  %2465 = vadd.xlane.f32.xlu1 %v2464_v29 }
 0xb17   :  { %8811 = vpow2.f32 %v2399_v48  ;;  %v2401_v0 = vmul.f32 1.442695, %v2352_v27 }
 0xb19   :  { %v10540_v9 = vpop.eup %8807  ;;  %8813 = vpow2.f32 %v2401_v0 }
 0xb1a   :  { %v2467_v52 = vsel %vm2250_vm6, %v10540_v9, 0.0 }
 0xb1b   :  { %v10544_v23 = vpop.eup %8809  ;;  %2468 = vadd.xlane.f32.xlu0 %v2467_v52 }
 0xb1c   :  { %v2470_v43 = vsel %vm2250_vm6, %v10544_v23, 0.0 }
 0xb1d   :  { %2471 = vadd.xlane.f32.xlu1 %v2470_v43 }
 0xb21   :  { %v10548_v25 = vpop.eup %8811 }
 0xb22   :  { %v2473_v47 = vsel %vm2250_vm6, %v10548_v25, 0.0 }
 0xb23   :  { %v10552_v57 = vpop.eup %8813  ;;  %2474 = vadd.xlane.f32.xlu0 %v2473_v47 }
 0xb24   :  { %v2476_v35 = vsel %vm2250_vm6, %v10552_v57, 0.0 }
 0xb25   :  { %2477 = vadd.xlane.f32.xlu1 %v2476_v35 }
 0xb58   :  { %v2409_v24 = vpop.xlane.xlu0 %2408 }
 0xb59   :  { %8815 = vrcp.f32 %v2409_v24 }
 0xb5a   :  { %v2412_v44 = vpop.xlane.xlu1 %2411 }
 0xb5b   :  { %8817 = vrcp.f32 %v2412_v44 }
 0xb5c   :  { %v2325_v12 = vpop.xlane.xlu0 %2324 }
 0xb5d   :  { %v2353_v20 = vsub.f32 %v10434_v8, %v2325_v12 }
 0xb5e   :  { %v2328_v21 = vpop.xlane.xlu1 %2327 }
 0xb5f   :  { %v2403_v58 = vmul.f32 1.442695, %v2353_v20  ;;  %v2354_v49 = vsub.f32 %v10441_v18, %v2328_v21 }
 0xb60   :  { %v2415_v32 = vpop.xlane.xlu0 %2414 }
 0xb61   :  { %8819 = vpow2.f32 %v2403_v58  ;;  %v2405_v4 = vmul.f32 1.442695, %v2354_v49 }
 0xb62   :  { %8821 = vrcp.f32 %v2415_v32  ;;  %v2418_v53 = vpop.xlane.xlu1 %2417 }
 0xb63   :  { %v8816_v59 = vpop.eup %8815  ;;  %8823 = vpow2.f32 %v2405_v4 }
 0xb64   :  { %8825 = vrcp.f32 %v2418_v53  ;;  %v2486_v39 = vmul.f32 %v8816_v59, %v10431_v50 }
 0xb65   :  { %v8818_v16 = vpop.eup %8817 }
 0xb66   :  { %v2488_v6 = vmul.f32 %v8818_v16, %v10438_v55 }
 0xb68   :  { %v2537_v34 = vpack.c.bf16 %v2488_v6, %v2486_v39  ;;  %v2421_v38 = vpop.xlane.xlu0 %2420 }
 0xb69   :  { %8827 = vrcp.f32 %v2421_v38 }
 0xb6a   :  { %8082 = vmatmul.mubr.msk.bf16.vlgmr.msra.gmra.mrb[68].mxu0 %vm2250_vm6, %v2537_v34  ;;  %v2424_v8 = vpop.xlane.xlu1 %2423 }
 0xb6b   :  { %v10561_v18 = vpop.eup %8819  ;;  %8829 = vrcp.f32 %v2424_v8  ;;  %8085 = vmatprep.mubr.msk.bf16.mxu0 %vm9392_vm1, %v9391_v42 }
 0xb6c   :  { %v8822_v10 = vpop.eup %8821  ;;  %v2479_v11 = vsel %vm2250_vm6, %v10561_v18, 0.0 }
 0xb6d   :  { %v10567_v41 = vpop.eup %8823  ;;  %2480 = vadd.xlane.f32.xlu0 %v2479_v11  ;;  %v2490_v7 = vmul.f32 %v8822_v10, %v10450_v40 }
 0xb6e   :  { %v8826_v50 = vpop.eup %8825  ;;  %v2482_v55 = vsel %vm2250_vm6, %v10567_v41, 0.0 }
 0xb6f   :  { %2483 = vadd.xlane.f32.xlu1 %v2482_v55  ;;  %v2492_v2 = vmul.f32 %v8826_v50, %v10454_v28 }
 0xb70   :  { %v2427_v13 = vpop.xlane.xlu0 %2426 }
 0xb71   :  { %8831 = vrcp.f32 %v2427_v13  ;;  %v2538_v1 = vpack.c.bf16 %v2492_v2, %v2490_v7 }
 0xb72   :  { %v2430_v29 = vpop.xlane.xlu1 %2429 }
 0xb73   :  { %v8828_v48 = vpop.eup %8827  ;;  %8086 = vmatmul.mubr.msk.bf16.gmra.mrb[72].mxu0 %vm2250_vm6, %v2538_v1  ;;  %8833 = vrcp.f32 %v2430_v29 }
 0xb74   :  { %8089 = vmatprep.mubr.msk.bf16.mxu0 %vm9392_vm1, %v9391_v42  ;;  %v2494_v0 = vmul.f32 %v8828_v48, %v10460_v15 }
 0xb75   :  { %v8830_v27 = vpop.eup %8829 }
 0xb76   :  { %v2496_v52 = vmul.f32 %v8830_v27, %v10464_v36 }
 0xb78   :  { %v2433_v43 = vpop.xlane.xlu0 %2432  ;;  %v2539_v40 = vpack.c.bf16 %v2496_v52, %v2494_v0 }
 0xb79   :  { %8835 = vrcp.f32 %v2433_v43 }
 0xb7a   :  { %v2436_v28 = vpop.xlane.xlu1 %2435 }
 0xb7b   :  { %v8832_v47 = vpop.eup %8831  ;;  %8090 = vmatmul.mubr.msk.bf16.gmra.mrb[76].mxu0 %vm2250_vm6, %v2539_v40  ;;  %8837 = vrcp.f32 %v2436_v28 }
 0xb7c   :  { %8093 = vmatprep.mubr.msk.bf16.mxu0 %vm9392_vm1, %v9391_v42  ;;  %v2498_v24 = vmul.f32 %v8832_v47, %v10470_v62 }
 0xb7d   :  { %v8834_v35 = vpop.eup %8833 }
 0xb7e   :  { %v2500_v44 = vmul.f32 %v8834_v35, %v10474_v56 }
 0xb80   :  { %v2439_v12 = vpop.xlane.xlu0 %2438  ;;  %v2540_v15 = vpack.c.bf16 %v2500_v44, %v2498_v24 }
 0xb81   :  { %8839 = vrcp.f32 %v2439_v12 }
 0xb82   :  { %v2442_v36 = vpop.xlane.xlu1 %2441 }
 0xb83   :  { %v8836_v20 = vpop.eup %8835  ;;  %8094 = vmatmul.mubr.msk.bf16.gmra.mrb[80].mxu0 %vm2250_vm6, %v2540_v15  ;;  %8841 = vrcp.f32 %v2442_v36 }
 0xb84   :  { %8097 = vmatprep.mubr.msk.bf16.mxu0 %vm9392_vm1, %v9391_v42  ;;  %v2502_v58 = vmul.f32 %v8836_v20, %v10480_v17 }
 0xb85   :  { %v8838_v21 = vpop.eup %8837 }
 0xb86   :  { %v2504_v49 = vmul.f32 %v8838_v21, %v10484_v37 }
 0xb88   :  { %v2445_v32 = vpop.xlane.xlu0 %2444  ;;  %v2541_v62 = vpack.c.bf16 %v2504_v49, %v2502_v58 }
 0xb89   :  { %8843 = vrcp.f32 %v2445_v32 }
 0xb8a   :  { %v2448_v56 = vpop.xlane.xlu1 %2447 }
 0xb8b   :  { %v8840_v4 = vpop.eup %8839  ;;  %8098 = vmatmul.mubr.msk.bf16.gmra.mrb[84].mxu0 %vm2250_vm6, %v2541_v62  ;;  %8845 = vrcp.f32 %v2448_v56  ;;  %v8584_v62 = vld [vmem:[%s10629_s28 + $0x8] sm:$0xff]  }
 0xb8c   :  { %8101 = vmatprep.mubr.msk.bf16.mxu0 %vm9392_vm1, %v9391_v42  ;;  %v2506_v59 = vmul.f32 %v8840_v4, %v10490_v46 }
 0xb8d   :  { %v8842_v53 = vpop.eup %8841 }
 0xb8e   :  { %v2508_v16 = vmul.f32 %v8842_v53, %v10494_v33 }
 0xb90   :  { %v2451_v39 = vpop.xlane.xlu0 %2450  ;;  %v2542_v17 = vpack.c.bf16 %v2508_v16, %v2506_v59 }
 0xb91   :  { %8847 = vrcp.f32 %v2451_v39 }
 0xb92   :  { %v2454_v37 = vpop.xlane.xlu1 %2453 }
 0xb93   :  { %v8844_v6 = vpop.eup %8843  ;;  %8102 = vmatmul.mubr.msk.bf16.gmra.mrb[88].mxu0 %vm2250_vm6, %v2542_v17  ;;  %8849 = vrcp.f32 %v2454_v37 }
 0xb94   :  { %8105 = vmatprep.mubr.msk.bf16.mxu0 %vm9392_vm1, %v9391_v42  ;;  %v2510_v38 = vmul.f32 %v8844_v6, %v10500_v60 }
 0xb95   :  { %v8846_v34 = vpop.eup %8845 }
 0xb96   :  { %v2512_v8 = vmul.f32 %v8846_v34, %v10504_v30 }
 0xb98   :  { %v2457_v10 = vpop.xlane.xlu0 %2456  ;;  %v2543_v46 = vpack.c.bf16 %v2512_v8, %v2510_v38  ;;  %v9215_v8 = vld [vmem:[%s10140_s8 + $0x30] sm:$0xff] }
 0xb99   :  { %8851 = vrcp.f32 %v2457_v10 }
 0xb9a   :  { %v2460_v33 = vpop.xlane.xlu1 %2459 }
 0xb9b   :  { %v8848_v11 = vpop.eup %8847  ;;  %8106 = vmatmul.mubr.msk.bf16.gmra.mrb[92].mxu0 %vm2250_vm6, %v2543_v46  ;;  %8853 = vrcp.f32 %v2460_v33 }
 0xb9c   :  { %8109 = vmatprep.mubr.msk.bf16.mxu0 %vm9392_vm1, %v9391_v42  ;;  %v2514_v55 = vmul.f32 %v8848_v11, %v10510_v63  ;;  %v9216_v11 = vld [vmem:[%s10140_s8 + $0x38] sm:$0xff] }
 0xb9d   :  { %v8850_v50 = vpop.eup %8849 }
 0xb9e   :  { %v2516_v7 = vmul.f32 %v8850_v50, %v10514_v5 }
 0xba0   :  { %v2463_v2 = vpop.xlane.xlu0 %2462  ;;  %v2544_v60 = vpack.c.bf16 %v2516_v7, %v2514_v55 }
 0xba1   :  { %8855 = vrcp.f32 %v2463_v2 }
 0xba2   :  { %v2466_v30 = vpop.xlane.xlu1 %2465 }
 0xba3   :  { %v8852_v13 = vpop.eup %8851  ;;  %8110 = vmatmul.mubr.msk.bf16.gmra.mrb[96].mxu0 %vm2250_vm6, %v2544_v60  ;;  %8857 = vrcp.f32 %v2466_v30  ;;  %v9217_v60 = vld [vmem:[%s10140_s8] sm:$0xff] }
 0xba4   :  { %8113 = vmatprep.mubr.msk.bf16.mxu0 %vm9392_vm1, %v9391_v42  ;;  %v2518_v29 = vmul.f32 %v8852_v13, %v10520_v31 }
 0xba5   :  { %v8854_v1 = vpop.eup %8853 }
 0xba6   :  { %v2520_v48 = vmul.f32 %v8854_v1, %v10524_v54 }
 0xba8   :  { %v2469_v27 = vpop.xlane.xlu0 %2468  ;;  %v2545_v63 = vpack.c.bf16 %v2520_v48, %v2518_v29  ;;  %v9218_v48 = vld [vmem:[%s10140_s8 + $0x40] sm:$0xff] }
 0xba9   :  { %8859 = vrcp.f32 %v2469_v27 }
 0xbaa   :  { %v2472_v5 = vpop.xlane.xlu1 %2471 }
 0xbab   :  { %v8856_v0 = vpop.eup %8855  ;;  %8114 = vmatmul.mubr.msk.bf16.gmra.mrb[100].mxu0 %vm2250_vm6, %v2545_v63  ;;  %8861 = vrcp.f32 %v2472_v5 }
 0xbac   :  { %8117 = vmatprep.mubr.msk.bf16.mxu0 %vm9392_vm1, %v9391_v42  ;;  %v2522_v43 = vmul.f32 %v8856_v0, %v10530_v45 }
 0xbad   :  { %v8858_v52 = vpop.eup %8857 }
 0xbae   :  { %v2524_v40 = vmul.f32 %v8858_v52, %v10534_v14  ;;  %v9219_v52 = vld [vmem:[%s10140_s8 + $0x48] sm:$0xff] }
 0xbb0   :  { %v2475_v28 = vpop.xlane.xlu0 %2474  ;;  %v2546_v31 = vpack.c.bf16 %v2524_v40, %v2522_v43 }
 0xbb1   :  { %8863 = vrcp.f32 %v2475_v28  ;;  %v9220_v28 = vld [vmem:[%s10140_s8 + $0x8] sm:$0xff] }
 0xbb2   :  { %v2478_v54 = vpop.xlane.xlu1 %2477 }
 0xbb3   :  { %v8860_v47 = vpop.eup %8859  ;;  %8118 = vmatmul.mubr.msk.bf16.gmra.mrb[104].mxu0 %vm2250_vm6, %v2546_v31  ;;  %8865 = vrcp.f32 %v2478_v54 }
 0xbb4   :  { %8121 = vmatprep.mubr.msk.bf16.mxu0 %vm9392_vm1, %v9391_v42  ;;  %v2526_v24 = vmul.f32 %v8860_v47, %v10540_v9 }
 0xbb5   :  { %v8862_v35 = vpop.eup %8861 }
 0xbb6   :  { %v2528_v44 = vmul.f32 %v8862_v35, %v10544_v23  ;;  %v9221_v35 = vld [vmem:[%s10140_s8 + $0x10] sm:$0xff] }
 0xbb8   :  { %v2547_v12 = vpack.c.bf16 %v2528_v44, %v2526_v24 }
 0xbbb   :  { %v8864_v45 = vpop.eup %8863  ;;  %8122 = vmatmul.mubr.msk.bf16.gmra.mrb[108].mxu0 %vm2250_vm6, %v2547_v12 }
 0xbbc   :  { %8125 = vmatprep.mubr.msk.bf16.mxu0 %vm9392_vm1, %v9391_v42  ;;  %v2530_v15 = vmul.f32 %v8864_v45, %v10548_v25  ;;  %v8583_v25 = vld [vmem:[%s10629_s28] sm:$0xff]  }
 0xbbd   :  { %v8866_v14 = vpop.eup %8865  ;;  %8133 = vmatprep.subr.bf16.mxu0 %v8583_v25 }
 0xbbe   :  { %v2532_v36 = vmul.f32 %v8866_v14, %v10552_v57  ;;  %8134 = vmatpush3.bf16.msra.mxu0 %v8583_v25  ;;  %v9223_v25 = vld [vmem:[%s10140_s8 + $0x58] sm:$0xff] }
 0xbbf   :  { %8135 = vmatprep.subr.bf16.mxu0 %v8584_v62 }
 0xbc0   :  { %v2548_v20 = vpack.c.bf16 %v2532_v36, %v2530_v15  ;;  %v9222_v15 = vld [vmem:[%s10140_s8 + $0x50] sm:$0xff] }
 0xbc2   :  { %8136 = vmatpush3.bf16.msra.mxu0 %v8584_v62 }
 0xbc3   :  { %8126 = vmatmul.mubr.msk.bf16.gmra.mrb[112].mxu0 %vm2250_vm6, %v2548_v20 }
 0xbc4   :  { %8129 = vmatprep.mubr.msk.bf16.mxu0 %vm9392_vm1, %v9391_v42 }
 0xbfa   :  { %v2481_v9 = vpop.xlane.xlu0 %2480 }
 0xbfb   :  { %8867 = vrcp.f32 %v2481_v9 }
 0xbfc   :  { %v2484_v23 = vpop.xlane.xlu1 %2483 }
 0xbfd   :  { %8869 = vrcp.f32 %v2484_v23 }
 0xc05   :  { %v8868_v57 = vpop.eup %8867 }
 0xc06   :  { %v2534_v58 = vmul.f32 %v8868_v57, %v10561_v18 }
 0xc07   :  { %v8870_v21 = vpop.eup %8869 }
 0xc08   :  { %v2536_v49 = vmul.f32 %v8870_v21, %v10567_v41 }
 0xc0a   :  { %v2549_v32 = vpack.c.bf16 %v2536_v49, %v2534_v58  ;;  %v9224_v58 = vld [vmem:[%s10140_s8 + $0x18] sm:$0xff] }
 0xc0c   :  { %8130 = vmatmul.mubr.msk.bf16.gmra.mrb[116].mxu0 %vm2250_vm6, %v2549_v32 }
 0xc3d   :  { %v2626_v56 = vpop.f32.mrb[68].mxu0 }
 0xc3e   :  { %v8083_v4 = vpop.f32.mrb[69].mxu0  ;;  %v2729_v30 = vmul.f32 %v9217_v60, %v2626_v56  ;;  %v9225_v56 = vld [vmem:[%s10140_s8 + $0x20] sm:$0xff] }
 0xc3f   :  { %v2629_v53 = vpop.f32.mrb[70].mxu0 }
 0xc40   :  { %v8084_v59 = vpop.f32.mrb[71].mxu0  ;;  %v2730_v31 = vmul.f32 %v9220_v28, %v2629_v53 }
 0xc46   :  { %v2634_v16 = vpop.f32.mrb[72].mxu0 }
 0xc47   :  { %v8087_v39 = vpop.f32.mrb[73].mxu0  ;;  %v2731_v24 = vmul.f32 %v9221_v35, %v2634_v16 }
 0xc48   :  { %v2637_v17 = vpop.f32.mrb[74].mxu0 }
 0xc49   :  { %v8088_v37 = vpop.f32.mrb[75].mxu0  ;;  %v2732_v49 = vmul.f32 %v9224_v58, %v2637_v17 }
 0xc4a   :  { %v9226_v37 = vld [vmem:[%s10140_s8 + $0x60] sm:$0xff] }
 0xc4e   :  { %v2642_v18 = vpop.f32.mrb[76].mxu0 }
 0xc4f   :  { %v8091_v6 = vpop.f32.mrb[77].mxu0  ;;  %v2733_v4 = vmul.f32 %v9225_v56, %v2642_v18  ;;  %v9236_v56 = vld [vmem:[%s10140_s8 + $0xa8] sm:$0xff] }
 0xc50   :  { %v2645_v41 = vpop.f32.mrb[78].mxu0 }
 0xc51   :  { %v8092_v34 = vpop.f32.mrb[79].mxu0 }
 0xc56   :  { %v2650_v38 = vpop.f32.mrb[80].mxu0 }
 0xc57   :  { %v2735_v10 = vmul.f32 %v9215_v8, %v2650_v38  ;;  %v8095_v46 = vpop.f32.mrb[81].mxu0 }
 0xc58   :  { %v2653_v33 = vpop.f32.mrb[82].mxu0  ;;  %v9227_v46 = vld [vmem:[%s10140_s8 + $0x68] sm:$0xff] }
 0xc59   :  { %v2736_v50 = vmul.f32 %v9216_v11, %v2653_v33  ;;  %v8096_v55 = vpop.f32.mrb[83].mxu0  ;;  %v2769_v7 = vrot.slane %v2735_v10, 4  ;;  %v9228_v11 = vld [vmem:[%s10140_s8 + $0x28] sm:$0xff] }
 0xc5b   :  { %v2770_v2 = vrot.slane %v2736_v50, 4  ;;  %v2734_v50 = vmul.f32 %v9228_v11, %v2645_v41  ;;  %v9231_v41 = vld [vmem:[%s10140_s8 + $0x80] sm:$0xff] }
 0xc5d   :  { %v2771_v13 = vsel %vm1534_vm4, %v2769_v7, %v2770_v2 }
 0xc5e   :  { %v2658_v1 = vpop.f32.mrb[84].mxu0  ;;  %v2789_v29 = vadd.f32 %v2771_v13, %v2729_v30  ;;  %v9229_v30 = vld [vmem:[%s10140_s8 + $0x70] sm:$0xff] }
 0xc5f   :  { %v2737_v27 = vmul.f32 %v9218_v48, %v2658_v1  ;;  %v8099_v63 = vpop.f32.mrb[85].mxu0 }
 0xc60   :  { %v2661_v5 = vpop.f32.mrb[86].mxu0  ;;  %v9230_v63 = vld [vmem:[%s10140_s8 + $0x78] sm:$0xff] }
 0xc61   :  { %v2772_v0 = vrot.slane %v2737_v27, 4  ;;  %v2738_v43 = vmul.f32 %v9219_v52, %v2661_v5  ;;  %v8100_v40 = vpop.f32.mrb[87].mxu0 }
 0xc63   :  { %v2774_v54 = vrot.slane %v2738_v43, 4  ;;  %v2773_v47 = vsel %vm1534_vm4, %v2770_v2, %v2772_v0 }
 0xc64   :  { %v2790_v44 = vadd.f32 %v2773_v47, %v2730_v31  ;;  %v9232_v31 = vld [vmem:[%s10140_s8 + $0x88] sm:$0xff] }
 0xc65   :  { %v2775_v12 = vsel %vm1534_vm4, %v2772_v0, %v2774_v54 }
 0xc66   :  { %v2666_v45 = vpop.f32.mrb[88].mxu0  ;;  %v2791_v14 = vadd.f32 %v2775_v12, %v2731_v24  ;;  %v9233_v12 = vld [vmem:[%s10140_s8 + $0x90] sm:$0xff] }
 0xc67   :  { %v2739_v36 = vmul.f32 %v9222_v15, %v2666_v45  ;;  %v8103_v20 = vpop.f32.mrb[89].mxu0 }
 0xc68   :  { %v2669_v9 = vpop.f32.mrb[90].mxu0 }
 0xc69   :  { %v2776_v23 = vrot.slane %v2739_v36, 4  ;;  %v2740_v57 = vmul.f32 %v9223_v25, %v2669_v9  ;;  %v8104_v21 = vpop.f32.mrb[91].mxu0 }
 0xc6b   :  { %v2778_v32 = vrot.slane %v2740_v57, 4  ;;  %v2777_v62 = vsel %vm1534_vm4, %v2774_v54, %v2776_v23  ;;  %v9235_v57 = vld [vmem:[%s10140_s8 + $0xa0] sm:$0xff] }
 0xc6c   :  { %v2792_v53 = vadd.f32 %v2777_v62, %v2732_v49 }
 0xc6d   :  { %v2779_v59 = vsel %vm1534_vm4, %v2776_v23, %v2778_v32 }
 0xc6e   :  { %v2674_v16 = vpop.f32.mrb[92].mxu0  ;;  %v2793_v39 = vadd.f32 %v2779_v59, %v2733_v4 }
 0xc6f   :  { %v2741_v6 = vmul.f32 %v9226_v37, %v2674_v16  ;;  %v8107_v34 = vpop.f32.mrb[93].mxu0 }
 0xc70   :  { %v2677_v38 = vpop.f32.mrb[94].mxu0 }
 0xc71   :  { %v2780_v8 = vrot.slane %v2741_v6, 4  ;;  %v2742_v17 = vmul.f32 %v9227_v46, %v2677_v38  ;;  %v8108_v33 = vpop.f32.mrb[95].mxu0  ;;  %v9237_v38 = vld [vmem:[%s10140_s8 + $0xb0] sm:$0xff] }
 0xc73   :  { %v2795_v55 = vadd.f32 %v2780_v8, %v2735_v10  ;;  %v2796_v18 = vadd.f32 %v2789_v29, %v2742_v17  ;;  %v2781_v7 = vsel %vm1534_vm4, %v2778_v32, %v2780_v8 }
 0xc74   :  { %v2794_v2 = vadd.f32 %v2781_v7, %v2734_v50  ;;  %v9238_v50 = vld [vmem:[%s10140_s8 + $0xb8] sm:$0xff] }
 0xc76   :  { %v2682_v60 = vpop.f32.mrb[96].mxu0 }
 0xc77   :  { %v2743_v13 = vmul.f32 %v9229_v30, %v2682_v60  ;;  %v8111_v1 = vpop.f32.mrb[97].mxu0 }
 0xc78   :  { %v2685_v48 = vpop.f32.mrb[98].mxu0 }
 0xc79   :  { %v2797_v27 = vadd.f32 %v2790_v44, %v2743_v13  ;;  %v2744_v5 = vmul.f32 %v9230_v63, %v2685_v48  ;;  %v8112_v0 = vpop.f32.mrb[99].mxu0 }
 0xc7b   :  { %v2798_v52 = vadd.f32 %v2791_v14, %v2744_v5  ;;  %v9234_v14 = vld [vmem:[%s10140_s8 + $0x98] sm:$0xff] }
 0xc7e   :  { %v2690_v43 = vpop.f32.mrb[100].mxu0 }
 0xc7f   :  { %v2745_v10 = vmul.f32 %v9231_v41, %v2690_v43  ;;  %v8115_v29 = vpop.f32.mrb[101].mxu0  ;;  %v9240_v41 = vld [vmem:[%s10140_s8 + $0xc8] sm:$0xff] }
 0xc80   :  { %v2693_v40 = vpop.f32.mrb[102].mxu0 }
 0xc81   :  { %v2799_v28 = vadd.f32 %v2792_v53, %v2745_v10  ;;  %v2746_v54 = vmul.f32 %v9232_v31, %v2693_v40  ;;  %v8116_v47 = vpop.f32.mrb[103].mxu0 }
 0xc83   :  { %v2800_v35 = vadd.f32 %v2793_v39, %v2746_v54 }
 0xc86   :  { %v2698_v24 = vpop.f32.mrb[104].mxu0 }
 0xc87   :  { %v2747_v44 = vmul.f32 %v9233_v12, %v2698_v24  ;;  %v8119_v45 = vpop.f32.mrb[105].mxu0 }
 0xc88   :  { %v2701_v15 = vpop.f32.mrb[106].mxu0 }
 0xc89   :  { %v2801_v36 = vadd.f32 %v2794_v2, %v2747_v44  ;;  %v2748_v20 = vmul.f32 %v9234_v14, %v2701_v15  ;;  %v8120_v9 = vpop.f32.mrb[107].mxu0  ;;  %v7315_v44 = vld [vmem:[%s10681_s7] ss:$0 sm:$0xff] }
 0xc8b   :  { %v2802_v23 = vadd.f32 %v2795_v55, %v2748_v20  ;;  %v2810_v32 = vrot.slane %v2748_v20, 4 }
 0xc8e   :  { %v2706_v25 = vpop.f32.mrb[108].mxu0 }
 0xc8f   :  { %v2749_v21 = vmul.f32 %v9235_v57, %v2706_v25  ;;  %v8123_v58 = vpop.f32.mrb[109].mxu0 }
 0xc90   :  { %v2709_v49 = vpop.f32.mrb[110].mxu0 }
 0xc91   :  { %v2811_v62 = vrot.slane %v2749_v21, 4  ;;  %v2750_v4 = vmul.f32 %v9236_v56, %v2709_v49  ;;  %v8124_v53 = vpop.f32.mrb[111].mxu0 }
 0xc93   :  { %v2812_v59 = vsel %vm1534_vm4, %v2810_v32, %v2811_v62  ;;  %v2813_v16 = vrot.slane %v2750_v4, 4 }
 0xc94   :  { %v2830_v39 = vadd.f32 %v2812_v59, %v2796_v18 }
 0xc95   :  { %v2814_v37 = vsel %vm1534_vm4, %v2811_v62, %v2813_v16 }
 0xc96   :  { %v2831_v6 = vadd.f32 %v2814_v37, %v2797_v27  ;;  %v2714_v34 = vpop.f32.mrb[112].mxu0  ;;  %v9239_v27 = vld [vmem:[%s10140_s8 + $0xc0] sm:$0xff] }
 0xc97   :  { %v2751_v8 = vmul.f32 %v9237_v38, %v2714_v34  ;;  %v8127_v46 = vpop.f32.mrb[113].mxu0  ;;  %v9241_v37 = vld [vmem:[%s9993_s24] sm:$0x3]  ;;  %s9411_s24 = smov 24  }
 0xc98   :  { %v2717_v17 = vpop.f32.mrb[114].mxu0  ;;  %v2837_v33 = vpack.c.bf16 %v2831_v6, %v2830_v39  ;;  %s10735_s16 = sld [smem:[%s12364_s0 + %s9411_s24]]  }
 0xc99   :  { %v2815_v11 = vrot.slane %v2751_v8, 4  ;;  %v2752_v55 = vmul.f32 %v9238_v50, %v2717_v17  ;;  %v8128_v7 = vpop.f32.mrb[115].mxu0 }
 0xc9a   :  { %8137 = vmatprep.mubr.msk.bf16.mxu0 %vm261_vm0, %v2837_v33 }
 0xc9b   :  { %v2816_v2 = vsel %vm1534_vm4, %v2813_v16, %v2815_v11  ;;  %v2817_v18 = vrot.slane %v2752_v55, 4 }
 0xc9c   :  { %v2832_v60 = vadd.f32 %v2816_v2, %v2798_v52 }
 0xc9d   :  { %v2818_v30 = vsel %vm1534_vm4, %v2815_v11, %v2817_v18 }
 0xc9e   :  { %v2833_v13 = vadd.f32 %v2818_v30, %v2799_v28 }
 0xca0   :  { %v2838_v1 = vpack.c.bf16 %v2833_v13, %v2832_v60 }
 0xca2   :  { %8138 = vmatmul.mubr.msk.bf16.vlgmr.msra.gmra.mrb[120].mxu0 %vm261_vm0, %v2838_v1 }
 0xcdf   :  { %v2722_v48 = vpop.f32.mrb[116].mxu0 }
 0xce0   :  { %v2753_v63 = vmul.f32 %v9239_v27, %v2722_v48  ;;  %v8131_v5 = vpop.f32.mrb[117].mxu0 }
 0xce1   :  { %v2725_v0 = vpop.f32.mrb[118].mxu0 }
 0xce2   :  { %v2819_v43 = vrot.slane %v2753_v63, 4  ;;  %v2754_v10 = vmul.f32 %v9240_v41, %v2725_v0  ;;  %v8132_v29 = vpop.f32.mrb[119].mxu0 }
 0xce4   :  { %v2820_v40 = vsel %vm1534_vm4, %v2817_v18, %v2819_v43  ;;  %v2821_v31 = vrot.slane %v2754_v10, 4 }
 0xce5   :  { %v2834_v54 = vadd.f32 %v2820_v40, %v2800_v35 }
 0xce6   :  { %v2822_v52 = vsel %vm1534_vm4, %v2819_v43, %v2821_v31  ;;  %v2836_v47 = vadd.f32 %v2821_v31, %v2802_v23 }
 0xce7   :  { %v2835_v28 = vadd.f32 %v2822_v52, %v2801_v36 }
 0xce8   :  { %v2840_v12 = vpack.c.bf16 %v2836_v47, %v2836_v47  ;;  %v8585_v47 = vld [vmem:[%s10735_s16] sm:$0xff]  }
 0xce9   :  { %v2839_v24 = vpack.c.bf16 %v2835_v28, %v2834_v54  ;;  %8145 = vmatprep.subr.bf16.mxu1 %v8585_v47 }
 0xcea   :  { %8146 = vmatpush3.bf16.msra.mxu1 %v8585_v47 }
 0xceb   :  { %8141 = vmatprep.mubr.msk.bf16.mxu0 %vm261_vm0, %v2839_v24 }
 0xcec   :  { %8142 = vmatmul.mubr.msk.bf16.gmra.mrb[124].mxu0 %vm261_vm0, %v2840_v12 }
 0xd75   :  { %v8139_v45 = vpop.f32.mrb[120].mxu0 }
 0xd76   :  { %v2914_v35 = vadd.f32 %v8139_v45, %v7315_v44  ;;  %v2905_v15 = vpop.f32.mrb[121].mxu0 }
 0xd77   :  { %v2906_v14 = vadd.f32 %v7315_v44, %v2905_v15  ;;  %v8140_v20 = vpop.f32.mrb[122].mxu0 }
 0xd78   :  { %v2917_v36 = vadd.f32 %v8140_v20, %v7315_v44  ;;  %v2908_v9 = vpop.f32.mrb[123].mxu0  ;;  %v2951_v57 = vrot.slane %v2914_v35, 4 }
 0xd79   :  { %v2937_v23 = vrot.slane %v2906_v14, 2  ;;  %v2909_v25 = vadd.f32 %v7315_v44, %v2908_v9  ;;  %v2948_v49 = vrot.slane %v2906_v14, 4 }
 0xd7a   :  { %v2953_v21 = vrot.slane %v2917_v36, 4 }
 0xd7b   :  { %v2939_v58 = vadd.f32 %v2937_v23, %v2906_v14  ;;  %v2949_v32 = vrot.slane %v2909_v25, 4 }
 0xd7c   :  { %v2954_v62 = vsel %vm1534_vm4, %v2951_v57, %v2953_v21 }
 0xd7d   :  { %v2940_v56 = vmul.f32 0.5, %v2939_v58  ;;  %v2969_v4 = vadd.f32 %v2954_v62, %v10016_v22  ;;  %v2950_v53 = vsel %vm1534_vm4, %v2948_v49, %v2949_v32  ;;  %v2952_v59 = vsel %vm1534_vm4, %v2949_v32, %v2951_v57  ;;  %v8586_v58 = vld [vmem:[%s10735_s16 + $0x8] sm:$0xff]  }
 0xd7e   :  { %v2967_v16 = vadd.f32 %v2950_v53, %v10003_v19  ;;  %v2968_v39 = vadd.f32 %v2952_v59, %v10008_v3  ;;  %8147 = vmatprep.subr.bf16.mxu1 %v8586_v58 }
 0xd7f   :  { %v2941_v6 = vadd.f32 %v9241_v37, %v2940_v56  ;;  %v2982_v34 = vrot.slane %v2969_v4, 6  ;;  %8148 = vmatpush3.bf16.msra.mxu1 %v8586_v58 }
 0xd80   :  { %v2979_v38 = vrot.slane %v2967_v16, 6  ;;  %v2980_v8 = vrot.slane %v2968_v39, 6  ;;  %8181 = vmatprep.subr.bf16.mxu1 %v9391_v42 }
 0xd82   :  { %v10692_v46 = vsel %vm1526_vm3, %v2979_v38, %v2980_v8  ;;  %v10695_v17 = vsel %vm1526_vm3, %v2941_v6, %v2979_v38  ;;  %v10702_v19 = vsel %vm1526_vm3, %v2980_v8, %v2982_v34 }
 0xd83   :  { %v3003_v22 = vsel %vm261_vm0, %v10692_v46, 0.0  ;;  %v3000_v33 = vsel %vm261_vm0, %v10695_v17, 0.0  ;;  %v3006_v3 = vsel %vm261_vm0, %v10702_v19, 0.0 }
 0xd84   :  { %3004 = vadd.xlane.f32.xlu1 %v3003_v22  ;;  %3001 = vadd.xlane.f32.xlu0 %v3000_v33 }
 0xd88   :  { %3007 = vadd.xlane.f32.xlu0 %v3006_v3 }
 0xdbf   :  { %v8143_v11 = vpop.f32.mrb[124].mxu0 }
 0xdc0   :  { %v2921_v50 = vpop.f32.mrb[125].mxu0  ;;  %v2930_v55 = vadd.f32 %v8143_v11, %v7315_v44 }
 0xdc1   :  { %v2922_v7 = vadd.f32 %v7315_v44, %v2921_v50  ;;  %v8144_v2 = vpop.f32.mrb[126].mxu0 }
 0xdc2   :  { %v2924_v18 = vpop.f32.mrb[127].mxu0  ;;  %v2959_v13 = vrot.slane %v2930_v55, 4 }
 0xdc3   :  { %v2955_v60 = vrot.slane %v2922_v7, 4  ;;  %v2925_v30 = vadd.f32 %v7315_v44, %v2924_v18 }
 0xdc5   :  { %v2956_v1 = vsel %vm1534_vm4, %v2953_v21, %v2955_v60  ;;  %v2957_v48 = vrot.slane %v2925_v30, 4 }
 0xdc6   :  { %v2970_v27 = vadd.f32 %v2956_v1, %v10020_v61 }
 0xdc7   :  { %v2958_v63 = vsel %vm1534_vm4, %v2955_v60, %v2957_v48  ;;  %v2960_v5 = vsel %vm1534_vm4, %v2957_v48, %v2959_v13  ;;  %v7322_v48 = vld [vmem:[%s10777_s6] ss:$0 sm:$0xff] }
 0xdc8   :  { %v2984_v0 = vrot.slane %v2970_v27, 6  ;;  %v2971_v43 = vadd.f32 %v2958_v63, %v10028_v26  ;;  %v2972_v41 = vadd.f32 %v2960_v5, %v10032_v51  ;;  %v7323_v5 = vld [vmem:[%s10782_s12] ss:$0 sm:$0xff] }
 0xdca   :  { %v2986_v10 = vrot.slane %v2971_v43, 6  ;;  %v10712_v29 = vrot.slane %v2972_v41, 6  ;;  %v10715_v40 = vsel %vm1526_vm3, %v2982_v34, %v2984_v0 }
 0xdcb   :  { %v3009_v31 = vsel %vm261_vm0, %v10715_v40, 0.0 }
 0xdcc   :  { %3010 = vadd.xlane.f32.xlu1 %v3009_v31  ;;  %v10720_v61 = vsel %vm1526_vm3, %v2984_v0, %v2986_v10  ;;  %v10724_v54 = vsel %vm1526_vm3, %v2986_v10, %v10712_v29  ;;  %v3019_v52 = vsel %vm3018_vm7, %v10712_v29, 0.0 }
 0xdcd   :  { %v3012_v26 = vsel %vm261_vm0, %v10720_v61, 0.0  ;;  %v3015_v51 = vsel %vm261_vm0, %v10724_v54, 0.0 }
 0xdce   :  { %3013 = vadd.xlane.f32.xlu0 %v3012_v26 }
 0xdd0   :  { %3016 = vadd.xlane.f32.xlu1 %v3015_v51 }
 0xdd2   :  { %3020 = vadd.xlane.f32.xlu0 %v3019_v52 }
 0xe11   :  { %v3005_v28 = vpop.xlane.xlu1 %3004  ;;  %v3002_v24 = vpop.xlane.xlu0 %3001 }
 0xe12   :  { %v3023_v12 = vmul.f32 0.03125, %v3005_v28  ;;  %v3022_v44 = vmul.f32 0.03125, %v3002_v24 }
 0xe14   :  { %v3030_v45 = vsub.f32 %v10692_v46, %v3023_v12  ;;  %v3029_v35 = vsub.f32 %v10695_v17, %v3022_v44 }
 0xe15   :  { %v3008_v15 = vpop.xlane.xlu0 %3007 }
 0xe16   :  { %v3024_v14 = vmul.f32 0.03125, %v3008_v15  ;;  %v3037_v20 = vmul.f32 %v3030_v45, %v3030_v45  ;;  %v3036_v36 = vmul.f32 %v3029_v35, %v3029_v35 }
 0xe18   :  { %v10741_v9 = vsub.f32 %v10702_v19, %v3024_v14  ;;  %v3046_v23 = vsel %vm261_vm0, %v3037_v20, 0.0  ;;  %v3043_v25 = vsel %vm261_vm0, %v3036_v36, 0.0 }
 0xe19   :  { %3047 = vadd.xlane.f32.xlu0 %v3046_v23  ;;  %3044 = vadd.xlane.f32.xlu1 %v3043_v25 }
 0xe1a   :  { %v3038_v57 = vmul.f32 %v10741_v9, %v10741_v9 }
 0xe1c   :  { %v3049_v21 = vsel %vm261_vm0, %v3038_v57, 0.0 }
 0xe1d   :  { %3050 = vadd.xlane.f32.xlu1 %v3049_v21 }
 0xe59   :  { %v3011_v49 = vpop.xlane.xlu1 %3010 }
 0xe5a   :  { %v3025_v32 = vmul.f32 0.03125, %v3011_v49 }
 0xe5b   :  { %v3014_v62 = vpop.xlane.xlu0 %3013 }
 0xe5c   :  { %v10751_v56 = vsub.f32 %v10715_v40, %v3025_v32  ;;  %v3026_v4 = vmul.f32 0.03125, %v3014_v62 }
 0xe5d   :  { %v3017_v53 = vpop.xlane.xlu1 %3016 }
 0xe5e   :  { %v10754_v59 = vsub.f32 %v10720_v61, %v3026_v4  ;;  %v3027_v16 = vmul.f32 0.03125, %v3017_v53  ;;  %v3039_v39 = vmul.f32 %v10751_v56, %v10751_v56 }
 0xe5f   :  { %v3021_v37 = vpop.xlane.xlu0 %3020 }
 0xe60   :  { %v10759_v6 = vsub.f32 %v10724_v54, %v3027_v16  ;;  %v3028_v34 = vmul.f32 0.03125, %v3021_v37  ;;  %v3052_v38 = vsel %vm261_vm0, %v3039_v39, 0.0  ;;  %v3040_v8 = vmul.f32 %v10754_v59, %v10754_v59 }
 0xe61   :  { %3053 = vadd.xlane.f32.xlu0 %v3052_v38 }
 0xe62   :  { %v10765_v22 = vsub.f32 %v10712_v29, %v3028_v34  ;;  %v3055_v33 = vsel %vm261_vm0, %v3040_v8, 0.0  ;;  %v3041_v3 = vmul.f32 %v10759_v6, %v10759_v6 }
 0xe63   :  { %3056 = vadd.xlane.f32.xlu1 %v3055_v33 }
 0xe64   :  { %v3058_v11 = vsel %vm261_vm0, %v3041_v3, 0.0  ;;  %v3042_v50 = vmul.f32 %v10765_v22, %v10765_v22 }
 0xe65   :  { %3059 = vadd.xlane.f32.xlu0 %v3058_v11 }
 0xe66   :  { %v3061_v55 = vsel %vm3018_vm7, %v3042_v50, 0.0 }
 0xe67   :  { %3062 = vadd.xlane.f32.xlu1 %v3061_v55 }
 0xea6   :  { %v3045_v7 = vpop.xlane.xlu1 %3044  ;;  %v3048_v2 = vpop.xlane.xlu0 %3047 }
 0xea7   :  { %v3064_v18 = vmul.f32 0.03125, %v3045_v7  ;;  %v3065_v60 = vmul.f32 0.03125, %v3048_v2  ;;  %v8589_v2 = vld [vmem:[%s10800_s27 + $0x10] sm:$0xff]  }
 0xea9   :  { %v3071_v30 = vadd.f32 1e-05, %v3064_v18  ;;  %v3072_v13 = vadd.f32 1e-05, %v3065_v60  ;;  %v8590_v18 = vld [vmem:[%s10800_s27 + $0x18] sm:$0xff]   ;;  %v8591_v60 = vld [vmem:[%s10800_s27 + $0x20] sm:$0xff]  }
 0xeaa   :  { %v3051_v51 = vpop.xlane.xlu1 %3050 }
 0xeab   :  { %8871 = vrsqrt.f32 %v3071_v30  ;;  %v3066_v52 = vmul.f32 0.03125, %v3051_v51  ;;  %v8592_v30 = vld [vmem:[%s10800_s27 + $0x28] sm:$0xff]  }
 0xeac   :  { %8873 = vrsqrt.f32 %v3072_v13  ;;  %v8593_v13 = vld [vmem:[%s10800_s27 + $0x30] sm:$0xff]  }
 0xead   :  { %v3073_v47 = vadd.f32 1e-05, %v3066_v52 }
 0xeaf   :  { %8875 = vrsqrt.f32 %v3073_v47 }
 0xeb5   :  { %v8872_v1 = vpop.eup %8871 }
 0xeb6   :  { %v8874_v27 = vpop.eup %8873  ;;  %v3085_v63 = vmul.f32 %v8872_v1, %v3029_v35  ;;  %v8594_v1 = vld [vmem:[%s10800_s27 + $0x38] sm:$0xff]  }
 0xeb7   :  { %v3086_v0 = vmul.f32 %v8874_v27, %v3030_v45 }
 0xeb8   :  { %v3098_v43 = vmul.f32 %v7322_v48, %v3085_v63 }
 0xeb9   :  { %v3099_v41 = vmul.f32 %v7322_v48, %v3086_v0  ;;  %v8876_v25 = vpop.eup %8875 }
 0xeba   :  { %v3111_v10 = vadd.f32 %v7323_v5, %v3098_v43  ;;  %v3087_v21 = vmul.f32 %v8876_v25, %v10741_v9 }
 0xebb   :  { %v3112_v31 = vadd.f32 %v7323_v5, %v3099_v41 }
 0xebc   :  { %v3100_v49 = vmul.f32 %v7322_v48, %v3087_v21 }
 0xebd   :  { %v3118_v26 = vpack.c.bf16 %v3112_v31, %v3111_v10 }
 0xebe   :  { %v3113_v39 = vadd.f32 %v7323_v5, %v3100_v49 }
 0xebf   :  { %8149 = vmatprep.mubr.msk.bf16.mxu1 %vm261_vm0, %v3118_v26 }
 0xeee   :  { %v3054_v28 = vpop.xlane.xlu0 %3053 }
 0xeef   :  { %v3067_v24 = vmul.f32 0.03125, %v3054_v28 }
 0xef0   :  { %v3057_v12 = vpop.xlane.xlu1 %3056 }
 0xef1   :  { %v3074_v44 = vadd.f32 1e-05, %v3067_v24  ;;  %v3068_v15 = vmul.f32 0.03125, %v3057_v12 }
 0xef2   :  { %v3060_v14 = vpop.xlane.xlu0 %3059 }
 0xef3   :  { %8877 = vrsqrt.f32 %v3074_v44  ;;  %v3075_v35 = vadd.f32 1e-05, %v3068_v15  ;;  %v3069_v45 = vmul.f32 0.03125, %v3060_v14 }
 0xef4   :  { %v3063_v20 = vpop.xlane.xlu1 %3062 }
 0xef5   :  { %8879 = vrsqrt.f32 %v3075_v35  ;;  %v3076_v36 = vadd.f32 1e-05, %v3069_v45  ;;  %v3070_v23 = vmul.f32 0.03125, %v3063_v20 }
 0xef7   :  { %8881 = vrsqrt.f32 %v3076_v36  ;;  %v3077_v57 = vadd.f32 1e-05, %v3070_v23 }
 0xef9   :  { %8883 = vrsqrt.f32 %v3077_v57 }
 0xefd   :  { %v8878_v58 = vpop.eup %8877 }
 0xefe   :  { %v3088_v32 = vmul.f32 %v8878_v58, %v10751_v56 }
 0xeff   :  { %v8880_v62 = vpop.eup %8879 }
 0xf00   :  { %v3101_v4 = vmul.f32 %v7322_v48, %v3088_v32  ;;  %v3089_v53 = vmul.f32 %v8880_v62, %v10754_v59 }
 0xf01   :  { %v8882_v16 = vpop.eup %8881 }
 0xf02   :  { %v3114_v37 = vadd.f32 %v7323_v5, %v3101_v4  ;;  %v3090_v34 = vmul.f32 %v8882_v16, %v10759_v6  ;;  %v3102_v38 = vmul.f32 %v7322_v48, %v3089_v53  ;;  %v8587_v6 = vld [vmem:[%s10800_s27] sm:$0xff]  }
 0xf03   :  { %v8884_v8 = vpop.eup %8883  ;;  %8157 = vmatprep.subr.bf16.mxu0 %v8587_v6 }
 0xf04   :  { %v3119_v33 = vpack.c.bf16 %v3114_v37, %v3113_v39  ;;  %v3103_v3 = vmul.f32 %v7322_v48, %v3090_v34  ;;  %v3091_v11 = vmul.f32 %v8884_v8, %v10765_v22  ;;  %v3115_v9 = vadd.f32 %v7323_v5, %v3102_v38  ;;  %8158 = vmatpush3.bf16.msra.mxu0 %v8587_v6  ;;  %v8588_v22 = vld [vmem:[%s10800_s27 + $0x8] sm:$0xff]  }
 0xf05   :  { %8159 = vmatprep.subr.bf16.mxu0 %v8588_v22 }
 0xf06   :  { %8150 = vmatmul.mubr.msk.bf16.vlgmr.msra.gmra.mrb[116].mxu1 %vm261_vm0, %v3119_v33  ;;  %v3116_v50 = vadd.f32 %v7323_v5, %v3103_v3  ;;  %v3104_v56 = vmul.f32 %v7322_v48, %v3091_v11  ;;  %v7324_v48 = vld [vmem:[%s10814_s13] ss:$0 sm:$0xff] }
 0xf08   :  { %v3120_v55 = vpack.c.bf16 %v3116_v50, %v3115_v9  ;;  %v3117_v7 = vadd.f32 %v7323_v5, %v3104_v56  ;;  %8160 = vmatpush3.bf16.msra.mxu0 %v8588_v22 }
 0xf09   :  { %8161 = vmatprep.subr.bf16.mxu0 %v8589_v2 }
 0xf0a   :  { %8153 = vmatprep.mubr.msk.bf16.mxu1 %vm261_vm0, %v3120_v55  ;;  %v3121_v59 = vpack.c.bf16 %v3117_v7, %v3117_v7 }
 0xf0c   :  { %8162 = vmatpush3.bf16.msra.mxu0 %v8589_v2 }
 0xf0d   :  { %8163 = vmatprep.subr.bf16.mxu0 %v8590_v18 }
 0xf0e   :  { %8154 = vmatmul.mubr.msk.bf16.gmra.mrb[120].mxu1 %vm261_vm0, %v3121_v59 }
 0xf0f   :  { %8185 = vmatprep.mubr.msk.bf16.mxu1 %vm9392_vm1, %v9391_v42 }
 0xf10   :  { %8164 = vmatpush3.bf16.msra.mxu0 %v8590_v18 }
 0xf11   :  { %8165 = vmatprep.subr.bf16.mxu0 %v8591_v60 }
 0xf14   :  { %8166 = vmatpush3.bf16.msra.mxu0 %v8591_v60 }
 0xf15   :  { %8167 = vmatprep.subr.bf16.mxu0 %v8592_v30 }
 0xf18   :  { %8168 = vmatpush3.bf16.msra.mxu0 %v8592_v30 }
 0xf19   :  { %8169 = vmatprep.subr.bf16.mxu0 %v8593_v13 }
 0xf1c   :  { %8170 = vmatpush3.bf16.msra.mxu0 %v8593_v13 }
 0xf1d   :  { %8171 = vmatprep.subr.bf16.mxu0 %v8594_v1 }
 0xf20   :  { %8172 = vmatpush3.bf16.msra.mxu0 %v8594_v1 }
 0xf21   :  { %8197 = vmatprep.subr.bf16.mxu0 %v9391_v42 }
 0xfd9   :  { %v8151_v27 = vpop.f32.mrb[116].mxu1 }
 0xfda   :  { %v10817_v63 = vadd.f32 %v8151_v27, %v7324_v48  ;;  %v3191_v5 = vpop.f32.mrb[117].mxu1 }
 0xfdb   :  { %v10819_v0 = vadd.f32 %v7324_v48, %v3191_v5  ;;  %v8152_v43 = vpop.f32.mrb[118].mxu1 }
 0xfdc   :  { %v10822_v41 = vmul.f32 0.70710677, %v10817_v63  ;;  %v10824_v10 = vadd.f32 %v8152_v43, %v7324_v48  ;;  %v3194_v31 = vpop.f32.mrb[119].mxu1 }
 0xfdd   :  { %v10827_v26 = vmul.f32 0.70710677, %v10819_v0  ;;  %v10833_v47 = vadd.f32 %v7324_v48, %v3194_v31 }
 0xfde   :  { %v3251_v51 = vand.u32 2147483647, %v10822_v41  ;;  %v10831_v52 = vmul.f32 0.70710677, %v10824_v10  ;;  %vm3237_vm8 = vcmp.ge.f32.partialorder %v10822_v41, 0.0 }
 0xfdf   :  { %v3249_v28 = vand.u32 2147483647, %v10827_v26  ;;  %v10838_v14 = vmul.f32 0.70710677, %v10833_v47  ;;  %vm3235_vm9 = vcmp.ge.f32.partialorder %v10827_v26, 0.0 }
 0xfe0   :  { %v3258_v24 = vmul.f32 0.3275911, %v3251_v51  ;;  %v3252_v44 = vand.u32 2147483647, %v10831_v52  ;;  %v3349_v53 = vsub.f32 0.0, %v3251_v51  ;;  %vm3238_vm10 = vcmp.ge.f32.partialorder %v10831_v52, 0.0 }
 0xfe1   :  { %v3256_v12 = vmul.f32 0.3275911, %v3249_v28  ;;  %v8155_v35 = vpop.f32.mrb[120].mxu1  ;;  %v3250_v23 = vand.u32 2147483647, %v10838_v14  ;;  %v3347_v37 = vsub.f32 0.0, %v3249_v28 }
 0xfe2   :  { %v3265_v15 = vadd.f32 1.0, %v3258_v24  ;;  %v3259_v20 = vmul.f32 0.3275911, %v3252_v44  ;;  %v3207_v36 = vpop.f32.mrb[121].mxu1  ;;  %v10841_v49 = vadd.f32 %v8155_v35, %v7324_v48  ;;  %v3356_v33 = vmul.f32 %v3349_v53, %v3251_v51 }
 0xfe3   :  { %v3263_v45 = vadd.f32 1.0, %v3256_v12  ;;  %v8156_v25 = vpop.f32.mrb[122].mxu1  ;;  %v3257_v58 = vmul.f32 0.3275911, %v3250_v23  ;;  %v10843_v32 = vadd.f32 %v7324_v48, %v3207_v36  ;;  %v3350_v9 = vsub.f32 0.0, %v3252_v44 }
 0xfe4   :  { %8885 = vrcp.f32 %v3265_v15  ;;  %v3266_v57 = vadd.f32 1.0, %v3259_v20  ;;  %v3210_v21 = vpop.f32.mrb[123].mxu1  ;;  %v10848_v16 = vmul.f32 0.70710677, %v10841_v49  ;;  %v3354_v59 = vmul.f32 %v3347_v37, %v3249_v28 }
 0xfe5   :  { %8887 = vrcp.f32 %v3263_v45  ;;  %v3264_v62 = vadd.f32 1.0, %v3257_v58  ;;  %v10845_v4 = vadd.f32 %v7324_v48, %v3210_v21  ;;  %v10851_v39 = vmul.f32 0.70710677, %v10843_v32 }
 0xfe6   :  { %8889 = vrcp.f32 %v3266_v57  ;;  %v3255_v34 = vand.u32 2147483647, %v10848_v16  ;;  %v3348_v2 = vsub.f32 0.0, %v3250_v23  ;;  %v3365_v13 = vmul.f32 1.442695, %v3356_v33 }
 0xfe7   :  { %8891 = vrcp.f32 %v3264_v62  ;;  %v10855_v38 = vmul.f32 0.70710677, %v10845_v4  ;;  %v3253_v8 = vand.u32 2147483647, %v10851_v39  ;;  %v3357_v27 = vmul.f32 %v3350_v9, %v3252_v44 }
 0xfe8   :  { %v3262_v3 = vmul.f32 0.3275911, %v3255_v34  ;;  %v3361_v31 = vmul.f32 1.442695, %v3354_v59  ;;  %v3355_v12 = vmul.f32 %v3348_v2, %v3250_v23  ;;  %v3353_v15 = vsub.f32 0.0, %v3255_v34 }
 0xfe9   :  { %v3260_v50 = vmul.f32 0.3275911, %v3253_v8  ;;  %v10861_v56 = vand.u32 2147483647, %v10855_v38  ;;  %v3367_v36 = vmul.f32 1.442695, %v3357_v27 }
 0xfea   :  { %v3269_v6 = vadd.f32 1.0, %v3262_v3  ;;  %v3351_v25 = vsub.f32 0.0, %v3253_v8  ;;  %v3363_v62 = vmul.f32 1.442695, %v3355_v12  ;;  %v3360_v53 = vmul.f32 %v3353_v15, %v3255_v34 }
 0xfeb   :  { %v3267_v18 = vadd.f32 1.0, %v3260_v50  ;;  %v3261_v60 = vmul.f32 0.3275911, %v10861_v56  ;;  %v9416_v37 = vmov -1.0   ;;  %vm3236_vm11 = vcmp.ge.f32.partialorder %v10838_v14, 0.0 }
 0xfec   :  { %8893 = vrcp.f32 %v3269_v6  ;;  %v3244_v33 = vsel %vm3237_vm8, 1.0, %v9416_v37  ;;  %v3358_v59 = vmul.f32 %v3351_v25, %v3253_v8  ;;  %v3352_v6 = vsub.f32 0.0, %v10861_v56 }
 0xfed   :  { %8895 = vrcp.f32 %v3267_v18  ;;  %v3268_v5 = vadd.f32 1.0, %v3261_v60  ;;  %v3242_v34 = vsel %vm3235_vm9, 1.0, %v9416_v37  ;;  %vm3241_vm12 = vcmp.ge.f32.partialorder %v10848_v16, 0.0 }
 0xfee   :  { %v10858_v11 = vpop.eup %8885  ;;  %vm3239_vm13 = vcmp.ge.f32.partialorder %v10851_v39, 0.0  ;;  %vm3240_vm14 = vcmp.ge.f32.partialorder %v10855_v38, 0.0  ;;  %vm3708_vm8 = vcmask 1046528   ;;  %vm7178_vm9 = vcmask 123904  }
 0xfef   :  { %v10863_v55 = vpop.eup %8887  ;;  %v3286_v7 = vmul.f32 1.0614054, %v10858_v11  ;;  %8897 = vrcp.f32 %v3268_v5 }
 0xff0   :  { %v3284_v22 = vmul.f32 1.0614054, %v10863_v55  ;;  %v10868_v1 = vpop.eup %8889  ;;  %8899 = vpow2.f32 %v3365_v13  ;;  %v3373_v13 = vmul.f32 1.442695, %v3360_v53 }
 0xff1   :  { %v3293_v30 = vadd.f32 -1.4531521, %v3286_v7  ;;  %v3287_v51 = vmul.f32 1.0614054, %v10868_v1  ;;  %v10872_v28 = vpop.eup %8891  ;;  %8901 = vpow2.f32 %v3361_v31 }
 0xff2   :  { %v3291_v48 = vadd.f32 -1.4531521, %v3284_v22  ;;  %v3285_v20 = vmul.f32 1.0614054, %v10872_v28  ;;  %8903 = vpow2.f32 %v3367_v36 }
 0xff3   :  { %v3300_v43 = vmul.f32 %v10858_v11, %v3293_v30  ;;  %v3294_v45 = vadd.f32 -1.4531521, %v3287_v51  ;;  %8905 = vpow2.f32 %v3363_v62  ;;  %v3369_v51 = vmul.f32 1.442695, %v3358_v59 }
 0xff4   :  { %v3298_v24 = vmul.f32 %v10863_v55, %v3291_v48  ;;  %v3292_v58 = vadd.f32 -1.4531521, %v3285_v20  ;;  %8907 = vpow2.f32 %v3373_v13 }
 0xff5   :  { %v3307_v35 = vadd.f32 1.4214138, %v3300_v43  ;;  %v3301_v21 = vmul.f32 %v10868_v1, %v3294_v45  ;;  %8909 = vpow2.f32 %v3369_v51  ;;  %v3223_v51 = vmul.f32 0.5, %v10817_v63 }
 0xff6   :  { %v3305_v44 = vadd.f32 1.4214138, %v3298_v24  ;;  %v3299_v50 = vmul.f32 %v10872_v28, %v3292_v58  ;;  %v10886_v22 = vpop.eup %8893  ;;  %v3359_v24 = vmul.f32 %v3352_v6, %v10861_v56  ;;  %v3243_v63 = vsel %vm3236_vm11, 1.0, %v9416_v37 }
 0xff7   :  { %v3314_v57 = vmul.f32 %v10858_v11, %v3307_v35  ;;  %v3308_v9 = vadd.f32 1.4214138, %v3301_v21  ;;  %v10891_v41 = vpop.eup %8895  ;;  %v3290_v30 = vmul.f32 1.0614054, %v10886_v22 }
 0xff8   :  { %v3312_v23 = vmul.f32 %v10863_v55, %v3305_v44  ;;  %v3306_v18 = vadd.f32 1.4214138, %v3299_v50  ;;  %v3288_v5 = vmul.f32 1.0614054, %v10891_v41 }
 0xff9   :  { %v3321_v3 = vadd.f32 -0.28449672, %v3314_v57  ;;  %v3315_v2 = vmul.f32 %v10868_v1, %v3308_v9  ;;  %v3297_v31 = vadd.f32 -1.4531521, %v3290_v30  ;;  %v10899_v12 = vpop.eup %8897  ;;  %v3371_v9 = vmul.f32 1.442695, %v3359_v24 }
 0xffa   :  { %v3319_v7 = vadd.f32 -0.28449672, %v3312_v23  ;;  %v3313_v27 = vmul.f32 %v10872_v28, %v3306_v18  ;;  %v3295_v20 = vadd.f32 -1.4531521, %v3288_v5  ;;  %v8900_v44 = vpop.eup %8899  ;;  %v3289_v57 = vmul.f32 1.0614054, %v10899_v12 }
 0xffb   :  { %v3328_v26 = vmul.f32 %v10858_v11, %v3321_v3  ;;  %v3322_v48 = vadd.f32 -0.28449672, %v3315_v2  ;;  %v3304_v25 = vmul.f32 %v10886_v22, %v3297_v31  ;;  %v8902_v21 = vpop.eup %8901  ;;  %8911 = vpow2.f32 %v3371_v9 }
 0xffc   :  { %v3326_v60 = vmul.f32 %v10863_v55, %v3319_v7  ;;  %v3320_v45 = vadd.f32 -0.28449672, %v3313_v27  ;;  %v3302_v62 = vmul.f32 %v10891_v41, %v3295_v20  ;;  %v3296_v3 = vadd.f32 -1.4531521, %v3289_v57  ;;  %v8904_v6 = vpop.eup %8903 }
 0xffd   :  { %v3335_v8 = vadd.f32 0.2548296, %v3328_v26  ;;  %v3329_v35 = vmul.f32 %v10868_v1, %v3322_v48  ;;  %v3311_v53 = vadd.f32 1.4214138, %v3304_v25  ;;  %v8906_v48 = vpop.eup %8905 }
 0xffe   :  { %v3333_v43 = vadd.f32 0.2548296, %v3326_v60  ;;  %v3327_v56 = vmul.f32 %v10872_v28, %v3320_v45  ;;  %v3309_v59 = vadd.f32 1.4214138, %v3302_v62  ;;  %v3303_v18 = vmul.f32 %v10899_v12, %v3296_v3 }
 0xfff   :  { %v3342_v15 = vmul.f32 %v10858_v11, %v3335_v8  ;;  %v3336_v23 = vadd.f32 0.2548296, %v3329_v35  ;;  %v3318_v2 = vmul.f32 %v10886_v22, %v3311_v53  ;;  %v3222_v62 = vmul.f32 0.5, %v10833_v47 }
0x1000   :  { %v3340_v36 = vmul.f32 %v10863_v55, %v3333_v43  ;;  %v3334_v55 = vadd.f32 0.2548296, %v3327_v56  ;;  %v3316_v8 = vmul.f32 %v10891_v41, %v3309_v59  ;;  %v3221_v56 = vmul.f32 0.5, %v10819_v0 }
0x1001   :  { %v3377_v58 = vmul.f32 %v8900_v44, %v3342_v15  ;;  %v3343_v7 = vmul.f32 %v10868_v1, %v3336_v23  ;;  %v3325_v27 = vadd.f32 -0.28449672, %v3318_v2  ;;  %v3310_v1 = vadd.f32 1.4214138, %v3303_v18 }
0x1002   :  { %v3375_v11 = vmul.f32 %v8902_v21, %v3340_v36  ;;  %v3341_v13 = vmul.f32 %v10872_v28, %v3334_v55  ;;  %v3323_v24 = vadd.f32 -0.28449672, %v3316_v8  ;;  %v8908_v36 = vpop.eup %8907  ;;  %v3248_v18 = vsel %vm3241_vm12, 1.0, %v9416_v37 }
0x1003   :  { %v3384_v50 = vsub.f32 1.0, %v3377_v58  ;;  %v3378_v30 = vmul.f32 %v8904_v6, %v3343_v7  ;;  %v3332_v28 = vmul.f32 %v10886_v22, %v3325_v27  ;;  %v3317_v15 = vmul.f32 %v10899_v12, %v3310_v1 }
0x1004   :  { %v3382_v26 = vsub.f32 1.0, %v3375_v11  ;;  %v3376_v31 = vmul.f32 %v8906_v48, %v3341_v13  ;;  %v3330_v44 = vmul.f32 %v10891_v41, %v3323_v24  ;;  %v3246_v13 = vsel %vm3239_vm13, 1.0, %v9416_v37 }
0x1005   :  { %v3391_v60 = vmul.f32 %v3384_v50, %v3244_v33  ;;  %v3385_v43 = vsub.f32 1.0, %v3378_v30  ;;  %v3245_v33 = vsel %vm3238_vm10, 1.0, %v9416_v37  ;;  %v3339_v25 = vadd.f32 0.2548296, %v3332_v28  ;;  %v8910_v50 = vpop.eup %8909 }
0x1006   :  { %v3389_v5 = vmul.f32 %v3382_v26, %v3242_v34  ;;  %v3383_v20 = vsub.f32 1.0, %v3376_v31  ;;  %v3224_v34 = vmul.f32 0.5, %v10824_v10  ;;  %v3324_v57 = vadd.f32 -0.28449672, %v3317_v15  ;;  %v8912_v26 = vpop.eup %8911 }
0x1007   :  { %v3398_v35 = vadd.f32 1.0, %v3391_v60  ;;  %v3392_v45 = vmul.f32 %v3385_v43, %v3245_v33  ;;  %v3337_v23 = vadd.f32 0.2548296, %v3330_v44  ;;  %v3346_v11 = vmul.f32 %v10886_v22, %v3339_v25 }
0x1008   :  { %v3396_v52 = vadd.f32 1.0, %v3389_v5  ;;  %v3390_v58 = vmul.f32 %v3383_v20, %v3243_v63  ;;  %v3331_v53 = vmul.f32 %v10899_v12, %v3324_v57  ;;  %v3247_v48 = vsel %vm3240_vm14, 1.0, %v9416_v37 }
0x1009   :  { %v3399_v21 = vadd.f32 1.0, %v3392_v45  ;;  %v3405_v3 = vmul.f32 %v3398_v35, %v3223_v51  ;;  %v3344_v14 = vmul.f32 %v10891_v41, %v3337_v23  ;;  %v3381_v7 = vmul.f32 %v8908_v36, %v3346_v11 }
0x100a   :  { %v3397_v9 = vadd.f32 1.0, %v3390_v58  ;;  %v3338_v55 = vadd.f32 0.2548296, %v3331_v53  ;;  %v3403_v59 = vmul.f32 %v3396_v52, %v3221_v56  ;;  %v3225_v43 = vmul.f32 0.5, %v10843_v32 }
0x100b   :  { %v3406_v10 = vmul.f32 %v3399_v21, %v3224_v34  ;;  %v3379_v47 = vmul.f32 %v8910_v50, %v3344_v14  ;;  %v3388_v22 = vsub.f32 1.0, %v3381_v7  ;;  %v3226_v31 = vmul.f32 0.5, %v10845_v4 }
0x100c   :  { %v3404_v6 = vmul.f32 %v3397_v9, %v3222_v62  ;;  %v3345_v2 = vmul.f32 %v10899_v12, %v3338_v55  ;;  %v3227_v12 = vmul.f32 0.5, %v10841_v49  ;;  %v7331_v49 = vld [vmem:[%s10945_s5] ss:$0 sm:$0xff] }
0x100d   :  { %v3411_v0 = vpack.c.bf16 %v3406_v10, %v3405_v3  ;;  %v3386_v60 = vsub.f32 1.0, %v3379_v47  ;;  %v3395_v41 = vmul.f32 %v3388_v22, %v3248_v18 }
0x100e   :  { %v3410_v30 = vpack.c.bf16 %v3404_v6, %v3403_v59  ;;  %v3380_v16 = vmul.f32 %v8912_v26, %v3345_v2 }
0x100f   :  { %v3393_v39 = vmul.f32 %v3386_v60, %v3246_v13  ;;  %v3402_v27 = vadd.f32 1.0, %v3395_v41 }
0x1010   :  { %8173 = vmatprep.mubr.bf16.mxu0 %v3410_v30  ;;  %v3387_v8 = vsub.f32 1.0, %v3380_v16 }
0x1011   :  { %8174 = vmatmul.mubr.bf16.vlgmr.msra.gmra.mrb[128].mxu0 %v3411_v0  ;;  %v3400_v1 = vadd.f32 1.0, %v3393_v39  ;;  %v3409_v51 = vmul.f32 %v3402_v27, %v3227_v12 }
0x1012   :  { %v3394_v5 = vmul.f32 %v3387_v8, %v3247_v48 }
0x1013   :  { %v3407_v33 = vmul.f32 %v3400_v1, %v3225_v43  ;;  %v3413_v15 = vpack.c.bf16 %v3409_v51, %v3409_v51 }
0x1014   :  { %v3401_v24 = vadd.f32 1.0, %v3394_v5 }
0x1016   :  { %v3408_v38 = vmul.f32 %v3401_v24, %v3226_v31 }
0x1018   :  { %v3412_v28 = vpack.c.bf16 %v3408_v38, %v3407_v33 }
0x101a   :  { %8177 = vmatprep.mubr.bf16.mxu0 %v3412_v28 }
0x101b   :  { %8178 = vmatmul.mubr.bf16.gmra.mrb[132].mxu0 %v3413_v15 }
0x101c   :  { %8201 = vmatprep.mubr.msk.bf16.mxu0 %vm9392_vm1, %v9391_v42 }
0x10e4   :  { %v8175_v32 = vpop.f32.mrb[128].mxu0 }
0x10e5   :  { %v3519_v4 = vpop.f32.mrb[129].mxu0  ;;  %v3528_v35 = vadd.f32 %v8175_v32, %v7331_v49 }
0x10e6   :  { %v3520_v45 = vadd.f32 %v7331_v49, %v3519_v4  ;;  %v8176_v20 = vpop.f32.mrb[130].mxu0 }
0x10e7   :  { %v3522_v44 = vpop.f32.mrb[131].mxu0  ;;  %v3531_v34 = vadd.f32 %v8176_v20, %v7331_v49  ;;  %v10952_v25 = vadd.f32 %v3528_v35, %v10702_v19  ;;  %v8595_v35 = vld [vmem:[%s9484_s14 + $0x10] sm:$0xff]   ;;  %v8597_v20 = vld [vmem:[%s9484_s14 + $0x18] sm:$0xff]  }
0x10e8   :  { %v10949_v36 = vadd.f32 %v3520_v45, %v10695_v17  ;;  %v3523_v63 = vadd.f32 %v7331_v49, %v3522_v44  ;;  %v8596_v45 = vld [vmem:[%s9479_s10 + $0x10] sm:$0xff]   ;;  %8198 = vmatpush3.bf16.msra.mxu0 %v8595_v35  ;;  %v8598_v44 = vld [vmem:[%s9479_s10 + $0x18] sm:$0xff]   ;;  %s9418_s10 = smov 28  }
0x10e9   :  { %v10960_v21 = vadd.f32 %v3531_v34, %v10715_v40  ;;  %v3589_v17 = vsel %vm261_vm0, %v10952_v25, 0.0  ;;  %8182 = vmatpush3.bf16.msra.mxu1 %v8596_v45  ;;  %8199 = vmatprep.subr.bf16.mxu0 %v9391_v42 }
0x10ea   :  { %v10955_v57 = vadd.f32 %v3523_v63, %v10692_v46  ;;  %v3583_v52 = vsel %vm3582_vm15, %v10949_v36, 0.0  ;;  %8183 = vmatprep.subr.bf16.mxu1 %v9391_v42 }
0x10eb   :  { %3584 = vadd.xlane.f32.xlu0 %v3583_v52  ;;  %v3592_v46 = vsel %vm261_vm0, %v10960_v21, 0.0 }
0x10ec   :  { %v3586_v58 = vsel %vm261_vm0, %v10955_v57, 0.0  ;;  %8200 = vmatpush3.bf16.msra.mxu0 %v8597_v20 }
0x10ed   :  { %3587 = vadd.xlane.f32.xlu1 %v3586_v58  ;;  %8184 = vmatpush3.bf16.msra.mxu1 %v8598_v44  ;;  %v8599_v44 = vld [vmem:[%s9502_s18 + $0x10] sm:$0xff]  }
0x10ee   :  { %v8179_v23 = vpop.f32.mrb[132].mxu0  ;;  %8213 = vmatprep.subr.bf16.mxu1 %v9391_v42 }
0x10ef   :  { %3590 = vadd.xlane.f32.xlu0 %v3589_v17  ;;  %v3535_v19 = vpop.f32.mrb[133].mxu0  ;;  %v3544_v56 = vadd.f32 %v8179_v23, %v7331_v49 }
0x10f0   :  { %v3536_v62 = vadd.f32 %v7331_v49, %v3535_v19  ;;  %v8180_v11 = vpop.f32.mrb[134].mxu0 }
0x10f1   :  { %3593 = vadd.xlane.f32.xlu1 %v3592_v46  ;;  %v3538_v53 = vpop.f32.mrb[135].mxu0  ;;  %v10972_v10 = vadd.f32 %v3544_v56, %v10712_v29 }
0x10f2   :  { %v10969_v40 = vadd.f32 %v3536_v62, %v10720_v61  ;;  %v3539_v3 = vadd.f32 %v7331_v49, %v3538_v53 }
0x10f3   :  { %v3601_v7 = vsel %vm3018_vm7, %v10972_v10, 0.0 }
0x10f4   :  { %v10975_v9 = vadd.f32 %v3539_v3, %v10724_v54  ;;  %v3595_v14 = vsel %vm261_vm0, %v10969_v40, 0.0 }
0x10f5   :  { %3596 = vadd.xlane.f32.xlu0 %v3595_v14 }
0x10f6   :  { %v3598_v50 = vsel %vm261_vm0, %v10975_v9, 0.0 }
0x10f7   :  { %3599 = vadd.xlane.f32.xlu1 %v3598_v50 }
0x10f9   :  { %3602 = vadd.xlane.f32.xlu0 %v3601_v7 }
0x1178   :  { %v3585_v61 = vpop.xlane.xlu0 %3584 }
0x1179   :  { %v3604_v55 = vmul.f32 0.03125, %v3585_v61 }
0x117a   :  { %v3588_v59 = vpop.xlane.xlu1 %3587 }
0x117b   :  { %v10984_v29 = vsub.f32 %v10949_v36, %v3604_v55  ;;  %v3605_v54 = vmul.f32 0.03125, %v3588_v59 }
0x117c   :  { %v3591_v0 = vpop.xlane.xlu0 %3590 }
0x117d   :  { %v10987_v6 = vsub.f32 %v10955_v57, %v3605_v54  ;;  %v3606_v47 = vmul.f32 0.03125, %v3591_v0  ;;  %v3618_v26 = vmul.f32 %v10984_v29, %v10984_v29 }
0x117e   :  { %v3594_v22 = vpop.xlane.xlu1 %3593 }
0x117f   :  { %v10992_v2 = vsub.f32 %v10952_v25, %v3606_v47  ;;  %v3607_v18 = vmul.f32 0.03125, %v3594_v22  ;;  %v3625_v60 = vsel %vm3582_vm15, %v3618_v26, 0.0  ;;  %v3619_v30 = vmul.f32 %v10987_v6, %v10987_v6  ;;  %v7359_v22 = vld [vmem:[%s9507_s22 + $0x1] ss:$0 sm:$0xff]  ;;  %s7211_s22 = sld [smem:[%s12364_s0 + %s9418_s10]]  }
0x1180   :  { %3626 = vadd.xlane.f32.xlu1 %v3625_v60 }
0x1181   :  { %v10998_v41 = vsub.f32 %v10960_v21, %v3607_v18  ;;  %v3628_v13 = vsel %vm261_vm0, %v3619_v30, 0.0  ;;  %v3620_v16 = vmul.f32 %v10992_v2, %v10992_v2 }
0x1182   :  { %3629 = vadd.xlane.f32.xlu0 %v3628_v13  ;;  %v3597_v39 = vpop.xlane.xlu0 %3596 }
0x1183   :  { %v3631_v8 = vsel %vm261_vm0, %v3620_v16, 0.0  ;;  %v3621_v48 = vmul.f32 %v10998_v41, %v10998_v41  ;;  %v3608_v27 = vmul.f32 0.03125, %v3597_v39 }
0x1184   :  { %3632 = vadd.xlane.f32.xlu1 %v3631_v8  ;;  %v3600_v1 = vpop.xlane.xlu1 %3599 }
0x1185   :  { %v3634_v5 = vsel %vm261_vm0, %v3621_v48, 0.0  ;;  %v11008_v12 = vsub.f32 %v10969_v40, %v3608_v27  ;;  %v3609_v43 = vmul.f32 0.03125, %v3600_v1  ;;  %v7360_v48 = vld [vmem:[%s9512_s26 + $0x1] ss:$0 sm:$0xff]  ;;  %s9420_s26 = smov 30  }
0x1186   :  { %3635 = vadd.xlane.f32.xlu0 %v3634_v5  ;;  %v3603_v31 = vpop.xlane.xlu0 %3602 }
0x1187   :  { %v11011_v24 = vsub.f32 %v10975_v9, %v3609_v43  ;;  %v3610_v51 = vmul.f32 0.03125, %v3603_v31  ;;  %v3622_v33 = vmul.f32 %v11008_v12, %v11008_v12 }
0x1189   :  { %v11016_v38 = vsub.f32 %v10972_v10, %v3610_v51  ;;  %v3637_v28 = vsel %vm261_vm0, %v3622_v33, 0.0  ;;  %v3623_v15 = vmul.f32 %v11011_v24, %v11011_v24 }
0x118a   :  { %3638 = vadd.xlane.f32.xlu1 %v3637_v28 }
0x118b   :  { %v3640_v49 = vsel %vm261_vm0, %v3623_v15, 0.0  ;;  %v3624_v32 = vmul.f32 %v11016_v38, %v11016_v38 }
0x118c   :  { %3641 = vadd.xlane.f32.xlu0 %v3640_v49 }
0x118d   :  { %v3643_v4 = vsel %vm3018_vm7, %v3624_v32, 0.0 }
0x118e   :  { %3644 = vadd.xlane.f32.xlu1 %v3643_v4 }
0x120d   :  { %v3627_v34 = vpop.xlane.xlu1 %3626 }
0x120e   :  { %v3646_v63 = vmul.f32 0.03125, %v3627_v34 }
0x120f   :  { %v3630_v52 = vpop.xlane.xlu0 %3629 }
0x1210   :  { %v3653_v58 = vadd.f32 1e-05, %v3646_v63  ;;  %v3647_v17 = vmul.f32 0.03125, %v3630_v52 }
0x1211   :  { %v3633_v23 = vpop.xlane.xlu1 %3632 }
0x1212   :  { %8913 = vrsqrt.f32 %v3653_v58  ;;  %v3654_v19 = vadd.f32 1e-05, %v3647_v17  ;;  %v3648_v46 = vmul.f32 0.03125, %v3633_v23  ;;  %v8600_v58 = vld [vmem:[%s9502_s18 + $0x18] sm:$0xff]  }
0x1213   :  { %v3636_v56 = vpop.xlane.xlu0 %3635 }
0x1214   :  { %8915 = vrsqrt.f32 %v3654_v19  ;;  %v3655_v62 = vadd.f32 1e-05, %v3648_v46  ;;  %v3649_v11 = vmul.f32 0.03125, %v3636_v56 }
0x1216   :  { %8917 = vrsqrt.f32 %v3655_v62  ;;  %v3656_v53 = vadd.f32 1e-05, %v3649_v11 }
0x1217   :  { %v3639_v3 = vpop.xlane.xlu1 %3638 }
0x1218   :  { %8919 = vrsqrt.f32 %v3656_v53  ;;  %v3650_v14 = vmul.f32 0.03125, %v3639_v3 }
0x1219   :  { %v3642_v50 = vpop.xlane.xlu0 %3641 }
0x121a   :  { %v3657_v7 = vadd.f32 1e-05, %v3650_v14  ;;  %v3651_v61 = vmul.f32 0.03125, %v3642_v50  ;;  %v9242_v14 = vld [vmem:[%s9551_s30] sm:$0xff] }
0x121b   :  { %v3645_v59 = vpop.xlane.xlu1 %3644 }
0x121c   :  { %v8914_v55 = vpop.eup %8913  ;;  %8921 = vrsqrt.f32 %v3657_v7  ;;  %v3658_v0 = vadd.f32 1e-05, %v3651_v61  ;;  %v3652_v47 = vmul.f32 0.03125, %v3645_v59  ;;  %v9243_v7 = vld [vmem:[%s9551_s30 + $0x30] sm:$0xff] }
0x121d   :  { %v3667_v54 = vmul.f32 %v8914_v55, %v10984_v29  ;;  %v9244_v55 = vld [vmem:[%s9551_s30 + $0x60] sm:$0xff] }
0x121e   :  { %v8916_v26 = vpop.eup %8915  ;;  %8923 = vrsqrt.f32 %v3658_v0  ;;  %v3659_v60 = vadd.f32 1e-05, %v3652_v47 }
0x121f   :  { %v3668_v18 = vmul.f32 %v8916_v26, %v10987_v6  ;;  %v3680_v13 = vmul.f32 %v7359_v22, %v3667_v54  ;;  %v9245_v54 = vld [vmem:[%s9551_s30 + $0x90] sm:$0xff] }
0x1220   :  { %v8918_v30 = vpop.eup %8917  ;;  %8925 = vrsqrt.f32 %v3659_v60  ;;  %v9247_v60 = vld [vmem:[%s9551_s30 + $0x38] sm:$0xff] }
0x1221   :  { %v3681_v16 = vmul.f32 %v7359_v22, %v3668_v18  ;;  %v3669_v39 = vmul.f32 %v8918_v30, %v10992_v2  ;;  %v3693_v43 = vadd.f32 %v7360_v48, %v3680_v13  ;;  %v9248_v13 = vld [vmem:[%s9551_s30 + $0x68] sm:$0xff] }
0x1222   :  { %v8920_v8 = vpop.eup %8919 }
0x1223   :  { %v3682_v27 = vmul.f32 %v7359_v22, %v3669_v39  ;;  %v3670_v29 = vmul.f32 %v8920_v8, %v10998_v41  ;;  %v3694_v1 = vadd.f32 %v7360_v48, %v3681_v16  ;;  %v9249_v39 = vld [vmem:[%s9551_s30 + $0x98] sm:$0xff] }
0x1225   :  { %v3683_v5 = vmul.f32 %v7359_v22, %v3670_v29  ;;  %v3695_v51 = vadd.f32 %v7360_v48, %v3682_v27  ;;  %v3700_v33 = vpack.c.bf16 %v3694_v1, %v3693_v43 }
0x1226   :  { %v8922_v31 = vpop.eup %8921 }
0x1227   :  { %v3696_v6 = vadd.f32 %v7360_v48, %v3683_v5  ;;  %v3671_v28 = vmul.f32 %v8922_v31, %v11008_v12  ;;  %v3709_v35 = vrot.slane %v3700_v33, 1 }
0x1228   :  { %v8924_v15 = vpop.eup %8923 }
0x1229   :  { %v3701_v49 = vpack.c.bf16 %v3696_v6, %v3695_v51  ;;  %v3672_v2 = vmul.f32 %v8924_v15, %v11011_v24  ;;  %v3684_v32 = vmul.f32 %v7359_v22, %v3671_v28 }
0x122a   :  { %v8926_v4 = vpop.eup %8925 }
0x122b   :  { %v3710_v41 = vrot.slane %v3701_v49, 1  ;;  %v3685_v45 = vmul.f32 %v7359_v22, %v3672_v2  ;;  %v3673_v20 = vmul.f32 %v8926_v4, %v11016_v38  ;;  %v3697_v12 = vadd.f32 %v7360_v48, %v3684_v32  ;;  %v9250_v49 = vld [vmem:[%s9551_s30 + $0x10] sm:$0xff]  ;;  %v9251_v32 = vld [vmem:[%s9551_s30 + $0x40] sm:$0xff] }
0x122d   :  { %v3711_v34 = vsel %vm3708_vm8, %v3709_v35, %v3710_v41  ;;  %v3698_v63 = vadd.f32 %v7360_v48, %v3685_v45  ;;  %v3686_v52 = vmul.f32 %v7359_v22, %v3673_v20  ;;  %v9246_v22 = vld [vmem:[%s9551_s30 + $0x8] sm:$0xff]  ;;  %v9252_v35 = vld [vmem:[%s9551_s30 + $0x70] sm:$0xff]  ;;  %v9253_v45 = vld [vmem:[%s9551_s30 + $0xa0] sm:$0xff] }
0x122e   :  { %8186 = vmatmul.mubr.msk.bf16.vlgmr.msra.gmra.mrb[124].mxu1 %vm261_vm0, %v3711_v34  ;;  %8202 = vmatmul.mubr.msk.bf16.vlgmr.msra.gmra.mrb[136].mxu0 %vm261_vm0, %v3711_v34 }
0x122f   :  { %8189 = vmatprep.mubr.msk.bf16.mxu1 %vm9392_vm1, %v9391_v42  ;;  %8205 = vmatprep.mubr.msk.bf16.mxu0 %vm9392_vm1, %v9391_v42  ;;  %v3702_v24 = vpack.c.bf16 %v3698_v63, %v3697_v12  ;;  %v3699_v38 = vadd.f32 %v7360_v48, %v3686_v52  ;;  %v9254_v12 = vld [vmem:[%s9551_s30 + $0x18] sm:$0xff]  ;;  %v9255_v52 = vld [vmem:[%s9551_s30 + $0x48] sm:$0xff] }
0x1230   :  { %8214 = vmatpush3.bf16.msra.mxu1 %v8599_v44 }
0x1231   :  { %8215 = vmatprep.subr.bf16.mxu1 %v9391_v42  ;;  %v3712_v17 = vrot.slane %v3702_v24, 1  ;;  %v3703_v19 = vpack.c.bf16 %v3699_v38, %v3699_v38 }
0x1233   :  { %v3713_v23 = vsel %vm3708_vm8, %v3710_v41, %v3712_v17  ;;  %v3714_v46 = vrot.slane %v3703_v19, 1 }
0x1234   :  { %8216 = vmatpush3.bf16.msra.mxu1 %v8600_v58  ;;  %v9256_v58 = vld [vmem:[%s9551_s30 + $0x78] sm:$0xff] }
0x1235   :  { %v3715_v56 = vsel %vm3708_vm8, %v3712_v17, %v3714_v46  ;;  %v9257_v17 = vld [vmem:[%s9551_s30 + $0xa8] sm:$0xff] }
0x1236   :  { %8190 = vmatmul.mubr.msk.bf16.gmra.mrb[128].mxu1 %vm261_vm0, %v3713_v23  ;;  %8206 = vmatmul.mubr.msk.bf16.gmra.mrb[140].mxu0 %vm261_vm0, %v3713_v23 }
0x1237   :  { %8193 = vmatprep.mubr.msk.bf16.mxu1 %vm9392_vm1, %v9391_v42  ;;  %8209 = vmatprep.mubr.msk.bf16.mxu0 %vm9392_vm1, %v9391_v42 }
0x123e   :  { %8194 = vmatmul.mubr.msk.bf16.gmra.mrb[132].mxu1 %vm261_vm0, %v3715_v56  ;;  %8210 = vmatmul.mubr.msk.bf16.gmra.mrb[144].mxu0 %vm261_vm0, %v3715_v56 }
0x123f   :  { %8217 = vmatprep.mubr.msk.bf16.mxu1 %vm9392_vm1, %v9391_v42 }
0x1246   :  { %8218 = vmatmul.mubr.msk.bf16.vlgmr.msra.gmra.mrb[136].mxu1 %vm261_vm0, %v3711_v34 }
0x1247   :  { %8221 = vmatprep.mubr.msk.bf16.mxu1 %vm9392_vm1, %v9391_v42 }
0x124e   :  { %8222 = vmatmul.mubr.msk.bf16.gmra.mrb[140].mxu1 %vm261_vm0, %v3713_v23 }
0x124f   :  { %8225 = vmatprep.mubr.msk.bf16.mxu1 %vm9392_vm1, %v9391_v42 }
0x1256   :  { %8226 = vmatmul.mubr.msk.bf16.gmra.mrb[144].mxu1 %vm261_vm0, %v3715_v56 }
0x1301   :  { %v3771_v62 = vpop.f32.mrb[124].mxu1  ;;  %v3840_v11 = vpop.f32.mrb[136].mxu0 }
0x1302   :  { %v8187_v53 = vpop.f32.mrb[125].mxu1  ;;  %v8203_v3 = vpop.f32.mrb[137].mxu0  ;;  %v3938_v50 = vmul.f32 %v9242_v14, %v3771_v62  ;;  %v11072_v61 = vmul.f32 %v9243_v7, %v3771_v62  ;;  %v11075_v59 = vmul.f32 %v9244_v55, %v3771_v62  ;;  %v11078_v0 = vmul.f32 %v9245_v54, %v3771_v62 }
0x1303   :  { %v3774_v47 = vpop.f32.mrb[126].mxu1  ;;  %v3843_v26 = vpop.f32.mrb[138].mxu0 }
0x1304   :  { %v3939_v18 = vmul.f32 %v9246_v22, %v3774_v47  ;;  %v11082_v30 = vmul.f32 %v9247_v60, %v3774_v47  ;;  %v11085_v16 = vmul.f32 %v9248_v13, %v3774_v47  ;;  %v11088_v8 = vmul.f32 %v9249_v39, %v3774_v47  ;;  %v8188_v48 = vpop.f32.mrb[127].mxu1  ;;  %v8204_v27 = vpop.f32.mrb[139].mxu0  ;;  %v11131_v47 = vld [vmem:[%s9551_s30 + $0x20] sm:$0xff]  ;;  %v11135_v22 = vld [vmem:[%s9551_s30 + $0x50] sm:$0xff] }
0x1305   :  { %v3863_v29 = vpack.c.bf16 %v3843_v26, %v3840_v11  ;;  %v9260_v60 = vld [vmem:[%s9551_s30 + $0x80] sm:$0xff]  ;;  %v9261_v39 = vld [vmem:[%s9551_s30 + $0xb0] sm:$0xff] }
0x1306   :  { %v3962_v1 = vpack.c.bf16 %v3939_v18, %v3938_v50  ;;  %v3965_v5 = vpack.c.bf16 %v11082_v30, %v11072_v61  ;;  %v3968_v43 = vpack.c.bf16 %v11085_v16, %v11075_v59  ;;  %v3971_v31 = vpack.c.bf16 %v11088_v8, %v11078_v0  ;;  %v9266_v8 = vld [vmem:[%s9650_s4] sm:$0xff] }
0x1307   :  { %v4011_v51 = vsel %vm261_vm0, %v3863_v29, 0  ;;  %8528 = vmatprep.subr.msk.bf16.mxu0 %vm261_vm0, %v3863_v29 }
0x1308   :  { %8230 = vmatpush3.bf16.xpose.msra.mxu0 %v4011_v51  ;;  %8235 = vmatprep.mubr.msk.bf16.mxu0 %vm261_vm0, %v3962_v1  ;;  %v11141_v1 = vld [vmem:[%s9551_s30 + $0x28] sm:$0xff] }
0x1309   :  { %v3779_v6 = vpop.f32.mrb[128].mxu1  ;;  %v3848_v33 = vpop.f32.mrb[140].mxu0 }
0x130a   :  { %v8191_v28 = vpop.f32.mrb[129].mxu1  ;;  %v8207_v15 = vpop.f32.mrb[141].mxu0  ;;  %v11100_v2 = vmul.f32 %v9250_v49, %v3779_v6  ;;  %v11103_v4 = vmul.f32 %v9251_v32, %v3779_v6  ;;  %v11106_v41 = vmul.f32 %v9252_v35, %v3779_v6  ;;  %v11109_v20 = vmul.f32 %v9253_v45, %v3779_v6  ;;  %v11145_v6 = vld [vmem:[%s9551_s30 + $0x58] sm:$0xff] }
0x130b   :  { %v3782_v44 = vpop.f32.mrb[130].mxu1  ;;  %v3851_v34 = vpop.f32.mrb[142].mxu0  ;;  %v9264_v28 = vld [vmem:[%s9551_s30 + $0x88] sm:$0xff]  ;;  %v9265_v49 = vld [vmem:[%s9551_s30 + $0xb8] sm:$0xff] }
0x130c   :  { %v3941_v63 = vmul.f32 %v9254_v12, %v3782_v44  ;;  %v11113_v24 = vmul.f32 %v9255_v52, %v3782_v44  ;;  %v11116_v38 = vmul.f32 %v9256_v58, %v3782_v44  ;;  %v11119_v23 = vmul.f32 %v9257_v17, %v3782_v44  ;;  %v8192_v19 = vpop.f32.mrb[131].mxu1  ;;  %v8208_v46 = vpop.f32.mrb[143].mxu0 }
0x130d   :  { %v3864_v56 = vpack.c.bf16 %v3851_v34, %v3848_v33 }
0x130e   :  { %v3963_v62 = vpack.c.bf16 %v3941_v63, %v11100_v2  ;;  %v3966_v11 = vpack.c.bf16 %v11113_v24, %v11103_v4  ;;  %v3969_v53 = vpack.c.bf16 %v11116_v38, %v11106_v41  ;;  %v3972_v3 = vpack.c.bf16 %v11119_v23, %v11109_v20  ;;  %v9267_v20 = vld [vmem:[%s9650_s4 + $0x10] sm:$0xff]  ;;  %v9268_v23 = vld [vmem:[%s9650_s4 + $0x8] sm:$0xff] }
0x130f   :  { %v4014_v14 = vsel %vm261_vm0, %v3864_v56, 0  ;;  %8529 = vmatprep.subr.msk.bf16.mxu0 %vm261_vm0, %v3864_v56 }
0x1310   :  { %8232 = vmatpush3.bf16.xpose.msra.mxu0 %v4014_v14 }
0x1311   :  { %v3787_v50 = vpop.f32.mrb[132].mxu1  ;;  %v3856_v7 = vpop.f32.mrb[144].mxu0 }
0x1312   :  { %v8195_v55 = vpop.f32.mrb[133].mxu1  ;;  %v8211_v54 = vpop.f32.mrb[145].mxu0  ;;  %v3942_v26 = vmul.f32 %v11131_v47, %v3787_v50  ;;  %v3948_v18 = vmul.f32 %v11135_v22, %v3787_v50  ;;  %v3954_v13 = vmul.f32 %v9260_v60, %v3787_v50  ;;  %v3960_v48 = vmul.f32 %v9261_v39, %v3787_v50 }
0x1313   :  { %v3790_v27 = vpop.f32.mrb[134].mxu1  ;;  %v3859_v29 = vpop.f32.mrb[146].mxu0 }
0x1314   :  { %v3943_v51 = vmul.f32 %v11141_v1, %v3790_v27  ;;  %v3949_v33 = vmul.f32 %v11145_v6, %v3790_v27  ;;  %v3955_v15 = vmul.f32 %v9264_v28, %v3790_v27  ;;  %v3961_v2 = vmul.f32 %v9265_v49, %v3790_v27  ;;  %v8196_v32 = vpop.f32.mrb[135].mxu1  ;;  %v8212_v4 = vpop.f32.mrb[147].mxu0 }
0x1315   :  { %v3865_v35 = vpack.c.bf16 %v3859_v29, %v3856_v7 }
0x1316   :  { %v3964_v45 = vpack.c.bf16 %v3943_v51, %v3942_v26  ;;  %v3967_v44 = vpack.c.bf16 %v3949_v33, %v3948_v18  ;;  %v3970_v34 = vpack.c.bf16 %v3955_v15, %v3954_v13  ;;  %v3973_v12 = vpack.c.bf16 %v3961_v2, %v3960_v48  ;;  %v9270_v15 = vld [vmem:[%s9650_s4 + $0x20] sm:$0xff] }
0x1317   :  { %v4017_v63 = vsel %vm261_vm0, %v3865_v35, 0  ;;  %8530 = vmatprep.subr.msk.bf16.mxu0 %vm261_vm0, %v3865_v35  ;;  %v9271_v35 = vld [vmem:[%s9650_s4 + $0x30] sm:$0xff] }
0x1318   :  { %8234 = vmatpush3.bf16.xpose.msra.mxu0 %v4017_v63  ;;  %v9273_v63 = vld [vmem:[%s9650_s4 + $0x38] sm:$0xff] }
0x1319   :  { %v3912_v52 = vpop.f32.mrb[136].mxu1  ;;  %8289 = vmatprep.subr.bf16.mxu0 %v9391_v42 }
0x131a   :  { %v8219_v24 = vpop.f32.mrb[137].mxu1 }
0x131b   :  { %v3915_v58 = vpop.f32.mrb[138].mxu1 }
0x131c   :  { %v3935_v17 = vpack.c.bf16 %v3915_v58, %v3912_v52  ;;  %v8220_v19 = vpop.f32.mrb[139].mxu1 }
0x131e   :  { %8259 = vmatprep.subr.bf16.mxu1 %v3935_v17 }
0x131f   :  { %8236 = vmatmul.mubr.msk.bf16.vlgmr.msra.gmra.mrb[148].mxu0 %vm261_vm0, %v3963_v62  ;;  %8260 = vmatpush3.bf16.msra.mxu1 %v3935_v17 }
0x1320   :  { %8239 = vmatprep.mubr.msk.bf16.mxu0 %vm261_vm0, %v3964_v45 }
0x1321   :  { %v3920_v46 = vpop.f32.mrb[140].mxu1 }
0x1322   :  { %v8223_v56 = vpop.f32.mrb[141].mxu1 }
0x1323   :  { %v3923_v14 = vpop.f32.mrb[142].mxu1 }
0x1324   :  { %v3936_v50 = vpack.c.bf16 %v3923_v14, %v3920_v46  ;;  %v8224_v7 = vpop.f32.mrb[143].mxu1 }
0x1325   :  { %v9274_v7 = vld [vmem:[%s9650_s4 + $0x40] sm:$0xff] }
0x1326   :  { %8261 = vmatprep.subr.bf16.mxu1 %v3936_v50 }
0x1327   :  { %8240 = vmatmul.mubr.msk.bf16.gmra.mrb[152].mxu0 %vm261_vm0, %v3965_v5  ;;  %8262 = vmatpush3.bf16.msra.mxu1 %v3936_v50 }
0x1328   :  { %8243 = vmatprep.mubr.msk.bf16.mxu0 %vm261_vm0, %v3966_v11 }
0x1329   :  { %v3928_v55 = vpop.f32.mrb[144].mxu1 }
0x132a   :  { %v8227_v54 = vpop.f32.mrb[145].mxu1 }
0x132b   :  { %v3931_v62 = vpop.f32.mrb[146].mxu1 }
0x132c   :  { %v3937_v26 = vpack.c.bf16 %v3931_v62, %v3928_v55  ;;  %v8228_v18 = vpop.f32.mrb[147].mxu1 }
0x132d   :  { %v9275_v18 = vld [vmem:[%s9650_s4 + $0x50] sm:$0xff] }
0x132e   :  { %8263 = vmatprep.subr.bf16.mxu1 %v3937_v26 }
0x132f   :  { %8244 = vmatmul.mubr.msk.bf16.gmra.mrb[156].mxu0 %vm261_vm0, %v3967_v44  ;;  %8264 = vmatpush3.bf16.msra.mxu1 %v3937_v26  ;;  %v9272_v44 = vld [vmem:[%s9650_s4 + $0x28] sm:$0xff] }
0x1330   :  { %8247 = vmatprep.mubr.msk.bf16.mxu0 %vm261_vm0, %v3968_v43  ;;  %8305 = vmatprep.subr.bf16.mxu1 %v9391_v42 }
0x1337   :  { %8248 = vmatmul.mubr.msk.bf16.gmra.mrb[160].mxu0 %vm261_vm0, %v3969_v53 }
0x1338   :  { %8251 = vmatprep.mubr.msk.bf16.mxu0 %vm261_vm0, %v3970_v34 }
0x133f   :  { %8252 = vmatmul.mubr.msk.bf16.gmra.mrb[164].mxu0 %vm261_vm0, %v3971_v31 }
0x1340   :  { %8255 = vmatprep.mubr.msk.bf16.mxu0 %vm261_vm0, %v3972_v3  ;;  %v9269_v3 = vld [vmem:[%s9650_s4 + $0x18] sm:$0xff] }
0x1347   :  { %8256 = vmatmul.mubr.msk.bf16.gmra.mrb[168].mxu0 %vm261_vm0, %v3973_v12 }
0x1348   :  { %8293 = vmatprep.mubr.msk.bf16.mxu0 %vm9392_vm1, %v9391_v42 }
0x13f2   :  { %v8237_v61 = vpop.f32.mrb[148].mxu0 }
0x13f3   :  { %v4053_v59 = vpop.f32.mrb[149].mxu0  ;;  %v4150_v30 = vmul.f32 0.35355338, %v8237_v61 }
0x13f4   :  { %v4148_v16 = vmul.f32 0.35355338, %v4053_v59  ;;  %v8238_v5 = vpop.f32.mrb[150].mxu0  ;;  %v9276_v59 = vld [vmem:[%s9650_s4 + $0x48] sm:$0xff] }
0x13f5   :  { %v4056_v0 = vpop.f32.mrb[151].mxu0  ;;  %v4151_v31 = vmul.f32 0.35355338, %v8238_v5  ;;  %v11186_v38 = vadd.f32 %v9267_v20, %v4150_v30  ;;  %v9277_v5 = vld [vmem:[%s9650_s4 + $0x58] sm:$0xff] }
0x13f6   :  { %v11183_v43 = vadd.f32 %v9266_v8, %v4148_v16  ;;  %v4149_v41 = vmul.f32 0.35355338, %v4056_v0 }
0x13f7   :  { %v11194_v60 = vadd.f32 %v9269_v3, %v4151_v31  ;;  %v4202_v33 = vsel %vm848_vm2, %v11186_v38, -inf }
0x13f8   :  { %v11189_v11 = vadd.f32 %v9268_v23, %v4149_v41  ;;  %v4196_v53 = vsel %vm848_vm2, %v11183_v43, -inf }
0x13f9   :  { %4197 = vmax.xlane.f32.xlu0 %v4196_v53  ;;  %v4205_v4 = vsel %vm848_vm2, %v11194_v60, -inf }
0x13fa   :  { %v8241_v13 = vpop.f32.mrb[152].mxu0  ;;  %v4199_v39 = vsel %vm848_vm2, %v11189_v11, -inf }
0x13fb   :  { %4200 = vmax.xlane.f32.xlu1 %v4199_v39  ;;  %v4069_v48 = vpop.f32.mrb[153].mxu0  ;;  %v4154_v27 = vmul.f32 0.35355338, %v8241_v13  ;;  %v9278_v39 = vld [vmem:[%s9650_s4 + $0x60] sm:$0xff] }
0x13fc   :  { %v4152_v29 = vmul.f32 0.35355338, %v4069_v48  ;;  %v8242_v51 = vpop.f32.mrb[154].mxu0 }
0x13fd   :  { %4203 = vmax.xlane.f32.xlu0 %v4202_v33  ;;  %v4072_v28 = vpop.f32.mrb[155].mxu0  ;;  %v4155_v2 = vmul.f32 0.35355338, %v8242_v51  ;;  %v11206_v45 = vadd.f32 %v9271_v35, %v4154_v27  ;;  %v9279_v33 = vld [vmem:[%s9650_s4 + $0x70] sm:$0xff] }
0x13fe   :  { %v11201_v49 = vadd.f32 %v9270_v15, %v4152_v29  ;;  %v4153_v32 = vmul.f32 0.35355338, %v4072_v28  ;;  %v9280_v15 = vld [vmem:[%s9650_s4 + $0x68] sm:$0xff] }
0x13ff   :  { %4206 = vmax.xlane.f32.xlu1 %v4205_v4  ;;  %v11214_v52 = vadd.f32 %v9273_v63, %v4155_v2  ;;  %v4214_v14 = vsel %vm848_vm2, %v11206_v45, -inf  ;;  %v9281_v4 = vld [vmem:[%s9650_s4 + $0x78] sm:$0xff] }
0x1400   :  { %v11209_v34 = vadd.f32 %v9272_v44, %v4153_v32  ;;  %v4208_v12 = vsel %vm848_vm2, %v11201_v49, -inf }
0x1401   :  { %4209 = vmax.xlane.f32.xlu0 %v4208_v12  ;;  %v4217_v26 = vsel %vm848_vm2, %v11214_v52, -inf }
0x1402   :  { %v8245_v24 = vpop.f32.mrb[156].mxu0  ;;  %v4211_v58 = vsel %vm848_vm2, %v11209_v34, -inf }
0x1403   :  { %4212 = vmax.xlane.f32.xlu1 %v4211_v58  ;;  %v4085_v17 = vpop.f32.mrb[157].mxu0  ;;  %v4158_v19 = vmul.f32 0.35355338, %v8245_v24 }
0x1404   :  { %v4156_v46 = vmul.f32 0.35355338, %v4085_v17  ;;  %v8246_v56 = vpop.f32.mrb[158].mxu0 }
0x1405   :  { %4215 = vmax.xlane.f32.xlu0 %v4214_v14  ;;  %v4088_v50 = vpop.f32.mrb[159].mxu0  ;;  %v4159_v54 = vmul.f32 0.35355338, %v8246_v56  ;;  %v11226_v61 = vadd.f32 %v9275_v18, %v4158_v19  ;;  %v9282_v56 = vld [vmem:[%s9650_s4 + $0x80] sm:$0xff]  ;;  %v9284_v18 = vld [vmem:[%s9650_s4 + $0x88] sm:$0xff] }
0x1406   :  { %v11221_v55 = vadd.f32 %v9274_v7, %v4156_v46  ;;  %v4157_v62 = vmul.f32 0.35355338, %v4088_v50 }
0x1407   :  { %4218 = vmax.xlane.f32.xlu1 %v4217_v26  ;;  %v11234_v0 = vadd.f32 %v9277_v5, %v4159_v54  ;;  %v4226_v3 = vsel %vm848_vm2, %v11226_v61, -inf  ;;  %v9285_v5 = vld [vmem:[%s9650_s4 + $0x98] sm:$0xff] }
0x1408   :  { %v11229_v30 = vadd.f32 %v9276_v59, %v4157_v62  ;;  %v4220_v16 = vsel %vm848_vm2, %v11221_v55, -inf  ;;  %v9283_v62 = vld [vmem:[%s9650_s4 + $0x90] sm:$0xff] }
0x1409   :  { %4221 = vmax.xlane.f32.xlu0 %v4220_v16  ;;  %v4229_v51 = vsel %vm848_vm2, %v11234_v0, -inf }
0x140a   :  { %v8249_v8 = vpop.f32.mrb[160].mxu0  ;;  %v4223_v31 = vsel %vm848_vm2, %v11229_v30, -inf }
0x140b   :  { %4224 = vmax.xlane.f32.xlu1 %v4223_v31  ;;  %v4101_v41 = vpop.f32.mrb[161].mxu0  ;;  %v4162_v20 = vmul.f32 0.35355338, %v8249_v8 }
0x140c   :  { %v4160_v23 = vmul.f32 0.35355338, %v4101_v41  ;;  %v8250_v53 = vpop.f32.mrb[162].mxu0 }
0x140d   :  { %4227 = vmax.xlane.f32.xlu0 %v4226_v3  ;;  %v4104_v13 = vpop.f32.mrb[163].mxu0  ;;  %v4163_v27 = vmul.f32 0.35355338, %v8250_v53  ;;  %v11246_v28 = vadd.f32 %v9279_v33, %v4162_v20 }
0x140e   :  { %v11241_v48 = vadd.f32 %v9278_v39, %v4160_v23  ;;  %v4161_v29 = vmul.f32 0.35355338, %v4104_v13 }
0x140f   :  { %4230 = vmax.xlane.f32.xlu1 %v4229_v51  ;;  %v11254_v35 = vadd.f32 %v9281_v4, %v4163_v27  ;;  %v4238_v19 = vsel %vm848_vm2, %v11246_v28, -inf  ;;  %v9286_v27 = vld [vmem:[%s9650_s4 + $0xa0] sm:$0xff] }
0x1410   :  { %v11249_v2 = vadd.f32 %v9280_v15, %v4161_v29  ;;  %v4232_v32 = vsel %vm848_vm2, %v11241_v48, -inf }
0x1411   :  { %4233 = vmax.xlane.f32.xlu0 %v4232_v32  ;;  %v4241_v54 = vsel %vm848_vm2, %v11254_v35, -inf  ;;  %v9287_v32 = vld [vmem:[%s9650_s4 + $0xb0] sm:$0xff] }
0x1412   :  { %v8253_v44 = vpop.f32.mrb[164].mxu0  ;;  %v4235_v12 = vsel %vm848_vm2, %v11249_v2, -inf }
0x1413   :  { %4236 = vmax.xlane.f32.xlu1 %v4235_v12  ;;  %v4117_v63 = vpop.f32.mrb[165].mxu0  ;;  %v4166_v24 = vmul.f32 0.35355338, %v8253_v44  ;;  %v9288_v44 = vld [vmem:[%s9650_s4 + $0xa8] sm:$0xff] }
0x1414   :  { %v4164_v58 = vmul.f32 0.35355338, %v4117_v63  ;;  %v8254_v17 = vpop.f32.mrb[166].mxu0 }
0x1415   :  { %4239 = vmax.xlane.f32.xlu0 %v4238_v19  ;;  %v4120_v46 = vpop.f32.mrb[167].mxu0  ;;  %v4167_v50 = vmul.f32 0.35355338, %v8254_v17  ;;  %v11266_v26 = vadd.f32 %v9283_v62, %v4166_v24  ;;  %v9289_v24 = vld [vmem:[%s9650_s4 + $0xb8] sm:$0xff] }
0x1416   :  { %v11261_v14 = vadd.f32 %v9282_v56, %v4164_v58  ;;  %v4165_v7 = vmul.f32 0.35355338, %v4120_v46 }
0x1417   :  { %4242 = vmax.xlane.f32.xlu1 %v4241_v54  ;;  %v11274_v8 = vadd.f32 %v9285_v5, %v4167_v50  ;;  %v4250_v13 = vsel %vm848_vm2, %v11266_v26, -inf }
0x1418   :  { %v11269_v59 = vadd.f32 %v9284_v18, %v4165_v7  ;;  %v4244_v16 = vsel %vm848_vm2, %v11261_v14, -inf }
0x1419   :  { %4245 = vmax.xlane.f32.xlu0 %v4244_v16  ;;  %v4253_v15 = vsel %vm848_vm2, %v11274_v8, -inf }
0x141a   :  { %v8257_v31 = vpop.f32.mrb[168].mxu0  ;;  %v4247_v41 = vsel %vm848_vm2, %v11269_v59, -inf }
0x141b   :  { %4248 = vmax.xlane.f32.xlu1 %v4247_v41  ;;  %v4133_v20 = vpop.f32.mrb[169].mxu0  ;;  %v4170_v23 = vmul.f32 0.35355338, %v8257_v31 }
0x141c   :  { %v4168_v53 = vmul.f32 0.35355338, %v4133_v20  ;;  %v8258_v3 = vpop.f32.mrb[170].mxu0 }
0x141d   :  { %4251 = vmax.xlane.f32.xlu0 %v4250_v13  ;;  %v4136_v39 = vpop.f32.mrb[171].mxu0  ;;  %v4171_v51 = vmul.f32 0.35355338, %v8258_v3  ;;  %v11286_v4 = vadd.f32 %v9287_v32, %v4170_v23 }
0x141e   :  { %v11281_v29 = vadd.f32 %v9286_v27, %v4168_v53  ;;  %v4169_v33 = vmul.f32 0.35355338, %v4136_v39 }
0x141f   :  { %4254 = vmax.xlane.f32.xlu1 %v4253_v15  ;;  %v11294_v58 = vadd.f32 %v9289_v24, %v4171_v51  ;;  %v4262_v19 = vsel %vm848_vm2, %v11286_v4, -inf }
0x1420   :  { %v11289_v12 = vadd.f32 %v9288_v44, %v4169_v33  ;;  %v4256_v63 = vsel %vm848_vm2, %v11281_v29, -inf }
0x1421   :  { %4257 = vmax.xlane.f32.xlu0 %v4256_v63  ;;  %v4265_v46 = vsel %vm848_vm2, %v11294_v58, -inf }
0x1422   :  { %v4259_v17 = vsel %vm848_vm2, %v11289_v12, -inf }
0x1423   :  { %4260 = vmax.xlane.f32.xlu1 %v4259_v17 }
0x1425   :  { %4263 = vmax.xlane.f32.xlu0 %v4262_v19 }
0x1427   :  { %4266 = vmax.xlane.f32.xlu1 %v4265_v46 }
0x1486   :  { %v4198_v56 = vpop.xlane.xlu0 %4197 }
0x1487   :  { %v4268_v50 = vsub.f32 %v11183_v43, %v4198_v56 }
0x1488   :  { %v4201_v7 = vpop.xlane.xlu1 %4200 }
0x1489   :  { %v4292_v54 = vmul.f32 1.442695, %v4268_v50  ;;  %v4269_v62 = vsub.f32 %v11189_v11, %v4201_v7 }
0x148a   :  { %v4204_v18 = vpop.xlane.xlu0 %4203 }
0x148b   :  { %8927 = vpow2.f32 %v4292_v54  ;;  %v4294_v16 = vmul.f32 1.442695, %v4269_v62  ;;  %v4270_v5 = vsub.f32 %v11186_v38, %v4204_v18 }
0x148c   :  { %v4207_v31 = vpop.xlane.xlu1 %4206 }
0x148d   :  { %8929 = vpow2.f32 %v4294_v16  ;;  %v4296_v41 = vmul.f32 1.442695, %v4270_v5  ;;  %v4271_v20 = vsub.f32 %v11194_v60, %v4207_v31 }
0x148e   :  { %v4210_v23 = vpop.xlane.xlu0 %4209 }
0x148f   :  { %8931 = vpow2.f32 %v4296_v41  ;;  %v4298_v53 = vmul.f32 1.442695, %v4271_v20  ;;  %v4272_v3 = vsub.f32 %v11201_v49, %v4210_v23 }
0x1490   :  { %v4213_v43 = vpop.xlane.xlu1 %4212 }
0x1491   :  { %8933 = vpow2.f32 %v4298_v53  ;;  %v4300_v13 = vmul.f32 1.442695, %v4272_v3  ;;  %v4273_v11 = vsub.f32 %v11209_v34, %v4213_v43 }
0x1492   :  { %v4216_v39 = vpop.xlane.xlu0 %4215 }
0x1493   :  { %8935 = vpow2.f32 %v4300_v13  ;;  %v4302_v27 = vmul.f32 1.442695, %v4273_v11  ;;  %v4274_v38 = vsub.f32 %v11206_v45, %v4216_v39 }
0x1494   :  { %v4219_v51 = vpop.xlane.xlu1 %4218 }
0x1495   :  { %v11309_v33 = vpop.eup %8927  ;;  %8937 = vpow2.f32 %v4302_v27  ;;  %v4304_v60 = vmul.f32 1.442695, %v4274_v38  ;;  %v4275_v15 = vsub.f32 %v11214_v52, %v4219_v51 }
0x1496   :  { %v4222_v32 = vpop.xlane.xlu0 %4221  ;;  %v4340_v49 = vsel %vm848_vm2, %v11309_v33, 0.0 }
0x1497   :  { %v11314_v44 = vpop.eup %8929  ;;  %8939 = vpow2.f32 %v4304_v60  ;;  %v4306_v34 = vmul.f32 1.442695, %v4275_v15  ;;  %v4276_v63 = vsub.f32 %v11221_v55, %v4222_v32  ;;  %4341 = vadd.xlane.f32.xlu0 %v4340_v49 }
0x1498   :  { %v4225_v24 = vpop.xlane.xlu1 %4224  ;;  %v4343_v45 = vsel %vm848_vm2, %v11314_v44, 0.0 }
0x1499   :  { %v11319_v17 = vpop.eup %8931  ;;  %8941 = vpow2.f32 %v4306_v34  ;;  %v4308_v19 = vmul.f32 1.442695, %v4276_v63  ;;  %v4277_v52 = vsub.f32 %v11229_v30, %v4225_v24  ;;  %4344 = vadd.xlane.f32.xlu1 %v4343_v45 }
0x149a   :  { %v4228_v46 = vpop.xlane.xlu0 %4227  ;;  %v4346_v56 = vsel %vm848_vm2, %v11319_v17, 0.0 }
0x149b   :  { %v11324_v50 = vpop.eup %8933  ;;  %8943 = vpow2.f32 %v4308_v19  ;;  %v4310_v55 = vmul.f32 1.442695, %v4277_v52  ;;  %v4278_v7 = vsub.f32 %v11226_v61, %v4228_v46  ;;  %4347 = vadd.xlane.f32.xlu0 %v4346_v56 }
0x149c   :  { %v4231_v54 = vpop.xlane.xlu1 %4230  ;;  %v4349_v62 = vsel %vm848_vm2, %v11324_v50, 0.0 }
0x149d   :  { %v11329_v18 = vpop.eup %8935  ;;  %8945 = vpow2.f32 %v4310_v55  ;;  %v4312_v30 = vmul.f32 1.442695, %v4278_v7  ;;  %v4279_v16 = vsub.f32 %v11234_v0, %v4231_v54  ;;  %4350 = vadd.xlane.f32.xlu1 %v4349_v62 }
0x149e   :  { %v4234_v5 = vpop.xlane.xlu0 %4233  ;;  %v4352_v31 = vsel %vm848_vm2, %v11329_v18, 0.0 }
0x149f   :  { %v11334_v41 = vpop.eup %8937  ;;  %8947 = vpow2.f32 %v4312_v30  ;;  %v4314_v61 = vmul.f32 1.442695, %v4279_v16  ;;  %v4280_v20 = vsub.f32 %v11241_v48, %v4234_v5  ;;  %4353 = vadd.xlane.f32.xlu0 %v4352_v31 }
0x14a0   :  { %v4237_v23 = vpop.xlane.xlu1 %4236  ;;  %v4355_v53 = vsel %vm848_vm2, %v11334_v41, 0.0 }
0x14a1   :  { %v11339_v3 = vpop.eup %8939  ;;  %8949 = vpow2.f32 %v4314_v61  ;;  %v4316_v0 = vmul.f32 1.442695, %v4280_v20  ;;  %v4281_v43 = vsub.f32 %v11249_v2, %v4237_v23  ;;  %4356 = vadd.xlane.f32.xlu1 %v4355_v53 }
0x14a2   :  { %v4240_v13 = vpop.xlane.xlu0 %4239  ;;  %v4358_v11 = vsel %vm848_vm2, %v11339_v3, 0.0 }
0x14a3   :  { %v11344_v39 = vpop.eup %8941  ;;  %8951 = vpow2.f32 %v4316_v0  ;;  %v4318_v48 = vmul.f32 1.442695, %v4281_v43  ;;  %v4282_v27 = vsub.f32 %v11246_v28, %v4240_v13  ;;  %4359 = vadd.xlane.f32.xlu0 %v4358_v11 }
0x14a4   :  { %v4243_v38 = vpop.xlane.xlu1 %4242  ;;  %v4361_v51 = vsel %vm848_vm2, %v11344_v39, 0.0 }
0x14a5   :  { %v11349_v60 = vpop.eup %8943  ;;  %8953 = vpow2.f32 %v4318_v48  ;;  %v4320_v2 = vmul.f32 1.442695, %v4282_v27  ;;  %v4283_v15 = vsub.f32 %v11254_v35, %v4243_v38  ;;  %4362 = vadd.xlane.f32.xlu1 %v4361_v51 }
0x14a6   :  { %v4246_v32 = vpop.xlane.xlu0 %4245  ;;  %v4364_v49 = vsel %vm848_vm2, %v11349_v60, 0.0 }
0x14a7   :  { %v11354_v34 = vpop.eup %8945  ;;  %8955 = vpow2.f32 %v4320_v2  ;;  %v4322_v28 = vmul.f32 1.442695, %v4283_v15  ;;  %v4284_v63 = vsub.f32 %v11261_v14, %v4246_v32  ;;  %4365 = vadd.xlane.f32.xlu0 %v4364_v49 }
0x14a8   :  { %v4249_v24 = vpop.xlane.xlu1 %4248  ;;  %v4367_v45 = vsel %vm848_vm2, %v11354_v34, 0.0 }
0x14a9   :  { %v11359_v19 = vpop.eup %8947  ;;  %8957 = vpow2.f32 %v4322_v28  ;;  %v4324_v35 = vmul.f32 1.442695, %v4284_v63  ;;  %v4285_v52 = vsub.f32 %v11269_v59, %v4249_v24  ;;  %4368 = vadd.xlane.f32.xlu1 %v4367_v45 }
0x14aa   :  { %v4252_v46 = vpop.xlane.xlu0 %4251  ;;  %v4370_v56 = vsel %vm848_vm2, %v11359_v19, 0.0 }
0x14ab   :  { %v11364_v55 = vpop.eup %8949  ;;  %8959 = vpow2.f32 %v4324_v35  ;;  %v4326_v14 = vmul.f32 1.442695, %v4285_v52  ;;  %v4286_v7 = vsub.f32 %v11266_v26, %v4252_v46  ;;  %4371 = vadd.xlane.f32.xlu0 %v4370_v56 }
0x14ac   :  { %v4255_v54 = vpop.xlane.xlu1 %4254  ;;  %v4373_v62 = vsel %vm848_vm2, %v11364_v55, 0.0 }
0x14ad   :  { %v11369_v30 = vpop.eup %8951  ;;  %8961 = vpow2.f32 %v4326_v14  ;;  %v4328_v59 = vmul.f32 1.442695, %v4286_v7  ;;  %v4287_v16 = vsub.f32 %v11274_v8, %v4255_v54  ;;  %4374 = vadd.xlane.f32.xlu1 %v4373_v62 }
0x14ae   :  { %v4258_v5 = vpop.xlane.xlu0 %4257  ;;  %v4376_v31 = vsel %vm848_vm2, %v11369_v30, 0.0 }
0x14af   :  { %v11374_v61 = vpop.eup %8953  ;;  %8963 = vpow2.f32 %v4328_v59  ;;  %v4330_v26 = vmul.f32 1.442695, %v4287_v16  ;;  %v4288_v20 = vsub.f32 %v11281_v29, %v4258_v5  ;;  %4377 = vadd.xlane.f32.xlu0 %v4376_v31  ;;  %v8601_v59 = vld [vmem:[%s9895_s9 + $0x10] sm:$0xff]  }
0x14b0   :  { %v4261_v23 = vpop.xlane.xlu1 %4260  ;;  %v4379_v53 = vsel %vm848_vm2, %v11374_v61, 0.0  ;;  %8290 = vmatpush3.bf16.msra.mxu0 %v8601_v59 }
0x14b1   :  { %v11379_v0 = vpop.eup %8955  ;;  %8965 = vpow2.f32 %v4330_v26  ;;  %v4332_v8 = vmul.f32 1.442695, %v4288_v20  ;;  %v4289_v43 = vsub.f32 %v11289_v12, %v4261_v23  ;;  %4380 = vadd.xlane.f32.xlu1 %v4379_v53  ;;  %8291 = vmatprep.subr.bf16.mxu0 %v9391_v42 }
0x14b2   :  { %v4264_v13 = vpop.xlane.xlu0 %4263  ;;  %v4382_v11 = vsel %vm848_vm2, %v11379_v0, 0.0 }
0x14b3   :  { %v11384_v48 = vpop.eup %8957  ;;  %8967 = vpow2.f32 %v4332_v8  ;;  %v4334_v29 = vmul.f32 1.442695, %v4289_v43  ;;  %v4290_v27 = vsub.f32 %v11286_v4, %v4264_v13  ;;  %4383 = vadd.xlane.f32.xlu0 %v4382_v11 }
0x14b4   :  { %v4267_v38 = vpop.xlane.xlu1 %4266  ;;  %v4385_v51 = vsel %vm848_vm2, %v11384_v48, 0.0 }
0x14b5   :  { %v11389_v2 = vpop.eup %8959  ;;  %8969 = vpow2.f32 %v4334_v29  ;;  %v4336_v12 = vmul.f32 1.442695, %v4290_v27  ;;  %v4291_v15 = vsub.f32 %v11294_v58, %v4267_v38  ;;  %4386 = vadd.xlane.f32.xlu1 %v4385_v51 }
0x14b6   :  { %v4388_v32 = vsel %vm848_vm2, %v11389_v2, 0.0 }
0x14b7   :  { %v11394_v49 = vpop.eup %8961  ;;  %8971 = vpow2.f32 %v4336_v12  ;;  %v4338_v28 = vmul.f32 1.442695, %v4291_v15  ;;  %4389 = vadd.xlane.f32.xlu0 %v4388_v32 }
0x14b8   :  { %v4391_v4 = vsel %vm848_vm2, %v11394_v49, 0.0 }
0x14b9   :  { %v11398_v63 = vpop.eup %8963  ;;  %8973 = vpow2.f32 %v4338_v28  ;;  %4392 = vadd.xlane.f32.xlu1 %v4391_v4 }
0x14ba   :  { %v4394_v24 = vsel %vm848_vm2, %v11398_v63, 0.0 }
0x14bb   :  { %v11402_v58 = vpop.eup %8965  ;;  %4395 = vadd.xlane.f32.xlu0 %v4394_v24 }
0x14bc   :  { %v4397_v45 = vsel %vm848_vm2, %v11402_v58, 0.0 }
0x14bd   :  { %v11406_v35 = vpop.eup %8967  ;;  %4398 = vadd.xlane.f32.xlu1 %v4397_v45 }
0x14be   :  { %v4400_v52 = vsel %vm848_vm2, %v11406_v35, 0.0 }
0x14bf   :  { %v11410_v46 = vpop.eup %8969  ;;  %4401 = vadd.xlane.f32.xlu0 %v4400_v52 }
0x14c0   :  { %v4403_v56 = vsel %vm848_vm2, %v11410_v46, 0.0 }
0x14c1   :  { %v11414_v14 = vpop.eup %8971  ;;  %4404 = vadd.xlane.f32.xlu1 %v4403_v56 }
0x14c2   :  { %v4406_v7 = vsel %vm848_vm2, %v11414_v14, 0.0 }
0x14c3   :  { %v11418_v54 = vpop.eup %8973  ;;  %4407 = vadd.xlane.f32.xlu0 %v4406_v7 }
0x14c4   :  { %v4409_v62 = vsel %vm848_vm2, %v11418_v54, 0.0 }
0x14c5   :  { %4410 = vadd.xlane.f32.xlu1 %v4409_v62 }
0x1524   :  { %v4342_v16 = vpop.xlane.xlu0 %4341 }
0x1525   :  { %8975 = vrcp.f32 %v4342_v16 }
0x1526   :  { %v4345_v5 = vpop.xlane.xlu1 %4344 }
0x1527   :  { %8977 = vrcp.f32 %v4345_v5 }
0x1528   :  { %v4348_v31 = vpop.xlane.xlu0 %4347 }
0x1529   :  { %8979 = vrcp.f32 %v4348_v31 }
0x152a   :  { %v4351_v26 = vpop.xlane.xlu1 %4350 }
0x152b   :  { %8981 = vrcp.f32 %v4351_v26 }
0x152c   :  { %v4354_v20 = vpop.xlane.xlu0 %4353 }
0x152d   :  { %8983 = vrcp.f32 %v4354_v20 }
0x152e   :  { %v4357_v23 = vpop.xlane.xlu1 %4356 }
0x152f   :  { %v8976_v53 = vpop.eup %8975  ;;  %8985 = vrcp.f32 %v4357_v23 }
0x1530   :  { %v4360_v8 = vpop.xlane.xlu0 %4359  ;;  %v4413_v11 = vmul.f32 %v8976_v53, %v11309_v33 }
0x1531   :  { %v8978_v43 = vpop.eup %8977  ;;  %8987 = vrcp.f32 %v4360_v8 }
0x1532   :  { %v4363_v13 = vpop.xlane.xlu1 %4362  ;;  %v4415_v29 = vmul.f32 %v8978_v43, %v11314_v44 }
0x1533   :  { %v8980_v27 = vpop.eup %8979  ;;  %8989 = vrcp.f32 %v4363_v13 }
0x1534   :  { %v4366_v38 = vpop.xlane.xlu0 %4365  ;;  %v4460_v51 = vpack.c.bf16 %v4415_v29, %v4413_v11  ;;  %v4417_v15 = vmul.f32 %v8980_v27, %v11319_v17 }
0x1535   :  { %v8982_v12 = vpop.eup %8981  ;;  %8991 = vrcp.f32 %v4366_v38 }
0x1536   :  { %v4419_v32 = vmul.f32 %v8982_v12, %v11324_v50  ;;  %8265 = vmatprep.mubr.msk.bf16.mxu1 %vm848_vm2, %v4460_v51  ;;  %v4369_v28 = vpop.xlane.xlu1 %4368 }
0x1537   :  { %v8984_v4 = vpop.eup %8983  ;;  %8993 = vrcp.f32 %v4369_v28 }
0x1538   :  { %v4461_v24 = vpack.c.bf16 %v4419_v32, %v4417_v15  ;;  %v4372_v45 = vpop.xlane.xlu0 %4371  ;;  %v4421_v52 = vmul.f32 %v8984_v4, %v11329_v18 }
0x1539   :  { %v8986_v33 = vpop.eup %8985  ;;  %8995 = vrcp.f32 %v4372_v45 }
0x153a   :  { %v4375_v44 = vpop.xlane.xlu1 %4374  ;;  %8266 = vmatmul.mubr.msk.bf16.vlgmr.msra.gmra.mrb[148].mxu1 %vm848_vm2, %v4461_v24  ;;  %v4423_v56 = vmul.f32 %v8986_v33, %v11334_v41 }
0x153b   :  { %v8988_v7 = vpop.eup %8987  ;;  %8997 = vrcp.f32 %v4375_v44 }
0x153c   :  { %v4378_v17 = vpop.xlane.xlu0 %4377  ;;  %v4462_v50 = vpack.c.bf16 %v4423_v56, %v4421_v52  ;;  %v4425_v16 = vmul.f32 %v8988_v7, %v11339_v3 }
0x153d   :  { %v8990_v62 = vpop.eup %8989  ;;  %8999 = vrcp.f32 %v4378_v17 }
0x153e   :  { %v4381_v59 = vpop.xlane.xlu1 %4380  ;;  %8269 = vmatprep.mubr.msk.bf16.mxu1 %vm848_vm2, %v4462_v50  ;;  %v4427_v5 = vmul.f32 %v8990_v62, %v11344_v39 }
0x153f   :  { %v8992_v31 = vpop.eup %8991  ;;  %9001 = vrcp.f32 %v4381_v59 }
0x1540   :  { %v4384_v26 = vpop.xlane.xlu0 %4383  ;;  %v4463_v20 = vpack.c.bf16 %v4427_v5, %v4425_v16  ;;  %v4429_v23 = vmul.f32 %v8992_v31, %v11349_v60 }
0x1541   :  { %v8994_v18 = vpop.eup %8993  ;;  %9003 = vrcp.f32 %v4384_v26 }
0x1542   :  { %v4387_v41 = vpop.xlane.xlu1 %4386  ;;  %8270 = vmatmul.mubr.msk.bf16.gmra.mrb[152].mxu1 %vm848_vm2, %v4463_v20  ;;  %v4431_v53 = vmul.f32 %v8994_v18, %v11354_v34 }
0x1543   :  { %v8996_v8 = vpop.eup %8995  ;;  %9005 = vrcp.f32 %v4387_v41  ;;  %v8604_v41 = vld [vmem:[%s9941_s15 + $0x18] sm:$0xff]  }
0x1544   :  { %v4390_v43 = vpop.xlane.xlu0 %4389  ;;  %v4464_v13 = vpack.c.bf16 %v4431_v53, %v4429_v23  ;;  %v4433_v11 = vmul.f32 %v8996_v8, %v11359_v19 }
0x1545   :  { %v8998_v3 = vpop.eup %8997  ;;  %9007 = vrcp.f32 %v4390_v43  ;;  %v9290_v43 = vld [vmem:[%s9551_s30] sm:$0xff] }
0x1546   :  { %v4393_v39 = vpop.xlane.xlu1 %4392  ;;  %8273 = vmatprep.mubr.msk.bf16.mxu1 %vm848_vm2, %v4464_v13  ;;  %v4435_v29 = vmul.f32 %v8998_v3, %v11364_v55  ;;  %v9291_v3 = vld [vmem:[%s9551_s30 + $0x30] sm:$0xff] }
0x1547   :  { %v9000_v27 = vpop.eup %8999  ;;  %9009 = vrcp.f32 %v4393_v39 }
0x1548   :  { %v4396_v38 = vpop.xlane.xlu0 %4395  ;;  %v4465_v51 = vpack.c.bf16 %v4435_v29, %v4433_v11  ;;  %v4437_v12 = vmul.f32 %v9000_v27, %v11369_v30  ;;  %v9292_v27 = vld [vmem:[%s9551_s30 + $0x8] sm:$0xff] }
0x1549   :  { %v9002_v60 = vpop.eup %9001  ;;  %9011 = vrcp.f32 %v4396_v38 }
0x154a   :  { %v4399_v34 = vpop.xlane.xlu1 %4398  ;;  %8274 = vmatmul.mubr.msk.bf16.gmra.mrb[156].mxu1 %vm848_vm2, %v4465_v51  ;;  %v4439_v15 = vmul.f32 %v9002_v60, %v11374_v61  ;;  %v9293_v60 = vld [vmem:[%s9551_s30 + $0x38] sm:$0xff] }
0x154b   :  { %v9004_v32 = vpop.eup %9003  ;;  %9013 = vrcp.f32 %v4399_v34 }
0x154c   :  { %v4402_v28 = vpop.xlane.xlu0 %4401  ;;  %v4466_v4 = vpack.c.bf16 %v4439_v15, %v4437_v12  ;;  %v4441_v24 = vmul.f32 %v9004_v32, %v11379_v0 }
0x154d   :  { %v9006_v19 = vpop.eup %9005  ;;  %9015 = vrcp.f32 %v4402_v28 }
0x154e   :  { %v4405_v55 = vpop.xlane.xlu1 %4404  ;;  %8277 = vmatprep.mubr.msk.bf16.mxu1 %vm848_vm2, %v4466_v4  ;;  %v4443_v45 = vmul.f32 %v9006_v19, %v11384_v48 }
0x154f   :  { %v9008_v33 = vpop.eup %9007  ;;  %9017 = vrcp.f32 %v4405_v55  ;;  %v9294_v55 = vld [vmem:[%s9551_s30 + $0x10] sm:$0xff] }
0x1550   :  { %v4408_v44 = vpop.xlane.xlu0 %4407  ;;  %v4467_v52 = vpack.c.bf16 %v4443_v45, %v4441_v24  ;;  %v4445_v56 = vmul.f32 %v9008_v33, %v11389_v2  ;;  %v9295_v45 = vld [vmem:[%s9551_s30 + $0x40] sm:$0xff] }
0x1551   :  { %v9010_v30 = vpop.eup %9009  ;;  %9019 = vrcp.f32 %v4408_v44 }
0x1552   :  { %v4411_v61 = vpop.xlane.xlu1 %4410  ;;  %8278 = vmatmul.mubr.msk.bf16.gmra.mrb[160].mxu1 %vm848_vm2, %v4467_v52  ;;  %v4447_v7 = vmul.f32 %v9010_v30, %v11394_v49 }
0x1553   :  { %v9012_v17 = vpop.eup %9011  ;;  %9021 = vrcp.f32 %v4411_v61 }
0x1554   :  { %v4468_v50 = vpack.c.bf16 %v4447_v7, %v4445_v56  ;;  %v4449_v0 = vmul.f32 %v9012_v17, %v11398_v63  ;;  %v9296_v7 = vld [vmem:[%s9551_s30 + $0x18] sm:$0xff] }
0x1555   :  { %v9014_v62 = vpop.eup %9013 }
0x1556   :  { %8281 = vmatprep.mubr.msk.bf16.mxu1 %vm848_vm2, %v4468_v50  ;;  %v4451_v48 = vmul.f32 %v9014_v62, %v11402_v58  ;;  %v9297_v50 = vld [vmem:[%s9551_s30 + $0x48] sm:$0xff] }
0x1557   :  { %v9016_v59 = vpop.eup %9015 }
0x1558   :  { %v4469_v16 = vpack.c.bf16 %v4451_v48, %v4449_v0  ;;  %v4453_v2 = vmul.f32 %v9016_v59, %v11406_v35  ;;  %v8602_v35 = vld [vmem:[%s9895_s9 + $0x18] sm:$0xff]   ;;  %v9298_v59 = vld [vmem:[%s9551_s30 + $0x70] sm:$0xff]  ;;  %s12307_s9 = sld [smem:[%s12364_s0 + %s9420_s26]]  }
0x1559   :  { %v9018_v5 = vpop.eup %9017  ;;  %8292 = vmatpush3.bf16.msra.mxu0 %v8602_v35 }
0x155a   :  { %8282 = vmatmul.mubr.msk.bf16.gmra.mrb[164].mxu1 %vm848_vm2, %v4469_v16  ;;  %v4455_v49 = vmul.f32 %v9018_v5, %v11410_v46  ;;  %v8603_v46 = vld [vmem:[%s9941_s15 + $0x10] sm:$0xff]   ;;  %s9421_s15 = smov 29  }
0x155b   :  { %v9020_v31 = vpop.eup %9019  ;;  %8306 = vmatpush3.bf16.msra.mxu1 %v8603_v46 }
0x155c   :  { %v4470_v26 = vpack.c.bf16 %v4455_v49, %v4453_v2  ;;  %v4457_v63 = vmul.f32 %v9020_v31, %v11414_v14  ;;  %8307 = vmatprep.subr.bf16.mxu1 %v9391_v42  ;;  %v9299_v2 = vld [vmem:[%s9551_s30 + $0x60] sm:$0xff]  ;;  %v9300_v31 = vld [vmem:[%s9551_s30 + $0x78] sm:$0xff] }
0x155d   :  { %v9022_v20 = vpop.eup %9021 }
0x155e   :  { %8285 = vmatprep.mubr.msk.bf16.mxu1 %vm848_vm2, %v4470_v26  ;;  %v4459_v58 = vmul.f32 %v9022_v20, %v11418_v54 }
0x155f   :  { %8308 = vmatpush3.bf16.msra.mxu1 %v8604_v41 }
0x1560   :  { %v4471_v18 = vpack.c.bf16 %v4459_v58, %v4457_v63  ;;  %v9301_v58 = vld [vmem:[%s9551_s30 + $0x68] sm:$0xff] }
0x1562   :  { %8286 = vmatmul.mubr.msk.bf16.gmra.mrb[168].mxu1 %vm848_vm2, %v4471_v18 }
0x1563   :  { %8309 = vmatprep.mubr.msk.bf16.mxu1 %vm9392_vm1, %v9391_v42 }
0x160d   :  { %v8267_v14 = vpop.f32.mrb[148].mxu1 }
0x160e   :  { %v4542_v54 = vpop.f32.mrb[149].mxu1  ;;  %v4639_v24 = vmul.f32 %v9294_v55, %v8267_v14  ;;  %v9302_v14 = vld [vmem:[%s9551_s30 + $0x90] sm:$0xff] }
0x160f   :  { %v8268_v23 = vpop.f32.mrb[150].mxu1  ;;  %v4637_v13 = vmul.f32 %v9290_v43, %v4542_v54 }
0x1610   :  { %v4545_v53 = vpop.f32.mrb[151].mxu1  ;;  %v4640_v17 = vmul.f32 %v9296_v7, %v8268_v23 }
0x1611   :  { %v4638_v38 = vmul.f32 %v9292_v27, %v4545_v53  ;;  %v9303_v53 = vld [vmem:[%s9551_s30 + $0x80] sm:$0xff]  ;;  %v9305_v27 = vld [vmem:[%s9551_s30 + $0x88] sm:$0xff] }
0x1615   :  { %v8271_v8 = vpop.f32.mrb[152].mxu1 }
0x1616   :  { %v4643_v39 = vmul.f32 %v9291_v3, %v8271_v8  ;;  %v4558_v11 = vpop.f32.mrb[153].mxu1  ;;  %v9304_v3 = vld [vmem:[%s9551_s30 + $0x98] sm:$0xff] }
0x1617   :  { %v8272_v29 = vpop.f32.mrb[154].mxu1  ;;  %v4641_v28 = vmul.f32 %v11131_v47, %v4558_v11 }
0x1618   :  { %v4667_v51 = vadd.f32 %v4643_v39, %v4637_v13  ;;  %v4644_v34 = vmul.f32 %v9293_v60, %v8272_v29  ;;  %v4561_v12 = vpop.f32.mrb[155].mxu1 }
0x1619   :  { %v4642_v52 = vmul.f32 %v11141_v1, %v4561_v12 }
0x161a   :  { %v4668_v15 = vadd.f32 %v4644_v34, %v4638_v38 }
0x161d   :  { %v8275_v32 = vpop.f32.mrb[156].mxu1 }
0x161e   :  { %v4647_v4 = vmul.f32 %v11135_v22, %v8275_v32  ;;  %v4574_v19 = vpop.f32.mrb[157].mxu1 }
0x161f   :  { %v4645_v33 = vmul.f32 %v9295_v45, %v4574_v19  ;;  %v8276_v44 = vpop.f32.mrb[158].mxu1  ;;  %v9308_v45 = vld [vmem:[%s9551_s30 + $0xb8] sm:$0xff] }
0x1620   :  { %v4671_v30 = vadd.f32 %v4647_v4, %v4641_v28  ;;  %v4648_v61 = vmul.f32 %v11145_v6, %v8276_v44  ;;  %v4577_v56 = vpop.f32.mrb[159].mxu1  ;;  %v9307_v4 = vld [vmem:[%s9551_s30 + $0xa0] sm:$0xff] }
0x1621   :  { %v4669_v47 = vadd.f32 %v4645_v33, %v4639_v24  ;;  %v4646_v22 = vmul.f32 %v9297_v50, %v4577_v56  ;;  %v7400_v50 = vld [vmem:[%s9980_s20 + $0x1] ss:$0 sm:$0xff] }
0x1622   :  { %v4672_v62 = vadd.f32 %v4648_v61, %v4642_v52 }
0x1623   :  { %v4670_v0 = vadd.f32 %v4646_v22, %v4640_v17 }
0x1625   :  { %v8279_v48 = vpop.f32.mrb[160].mxu1 }
0x1626   :  { %v4651_v16 = vmul.f32 %v9298_v59, %v8279_v48  ;;  %v4590_v5 = vpop.f32.mrb[161].mxu1 }
0x1627   :  { %v4649_v1 = vmul.f32 %v9299_v2, %v4590_v5  ;;  %v8280_v49 = vpop.f32.mrb[162].mxu1 }
0x1628   :  { %v4675_v6 = vadd.f32 %v4669_v47, %v4651_v16  ;;  %v4652_v26 = vmul.f32 %v9300_v31, %v8280_v49  ;;  %v4593_v20 = vpop.f32.mrb[163].mxu1 }
0x1629   :  { %v4673_v63 = vadd.f32 %v4667_v51, %v4649_v1  ;;  %v4650_v18 = vmul.f32 %v9301_v58, %v4593_v20 }
0x162a   :  { %v4676_v35 = vadd.f32 %v4670_v0, %v4652_v26 }
0x162b   :  { %v4674_v46 = vadd.f32 %v4668_v15, %v4650_v18  ;;  %v9306_v15 = vld [vmem:[%s9551_s30 + $0xb0] sm:$0xff] }
0x162d   :  { %v8283_v41 = vpop.f32.mrb[164].mxu1 }
0x162e   :  { %v4655_v54 = vmul.f32 %v9302_v14, %v8283_v41  ;;  %v4606_v23 = vpop.f32.mrb[165].mxu1 }
0x162f   :  { %v4653_v8 = vmul.f32 %v9303_v53, %v4606_v23  ;;  %v8284_v43 = vpop.f32.mrb[166].mxu1 }
0x1630   :  { %v4679_v13 = vadd.f32 %v4673_v63, %v4655_v54  ;;  %v4656_v39 = vmul.f32 %v9304_v3, %v8284_v43  ;;  %v4609_v11 = vpop.f32.mrb[167].mxu1  ;;  %v7411_v54 = vld [vmem:[%s9998_s29 + $0x1] ss:$0 sm:$0xff] }
0x1631   :  { %v4677_v29 = vadd.f32 %v4671_v30, %v4653_v8  ;;  %v4654_v38 = vmul.f32 %v9305_v27, %v4609_v11  ;;  %v9309_v30 = vld [vmem:[%s9551_s30 + $0xa8] sm:$0xff]  ;;  %v4898_v11 = vrot.slane %v10949_v36, 6 }
0x1632   :  { %v4680_v51 = vadd.f32 %v4674_v46, %v4656_v39 }
0x1633   :  { %v4678_v60 = vadd.f32 %v4672_v62, %v4654_v38 }
0x1634   :  { %v4685_v34 = vpack.c.bf16 %v4680_v51, %v4679_v13 }
0x1635   :  { %v8287_v12 = vpop.f32.mrb[168].mxu1 }
0x1636   :  { %v4659_v32 = vmul.f32 %v9306_v15, %v8287_v12  ;;  %v4622_v28 = vpop.f32.mrb[169].mxu1  ;;  %8294 = vmatmul.mubr.msk.bf16.vlgmr.msra.gmra.mrb[172].mxu0 %vm261_vm0, %v4685_v34  ;;  %v4900_v34 = vsel %vm1526_vm3, %v10949_v36, %v4898_v11 }
0x1637   :  { %v4657_v19 = vmul.f32 %v9307_v4, %v4622_v28  ;;  %v8288_v55 = vpop.f32.mrb[170].mxu1  ;;  %8297 = vmatprep.mubr.msk.bf16.mxu0 %vm9392_vm1, %v9391_v42 }
0x1638   :  { %v4683_v24 = vadd.f32 %v4677_v29, %v4659_v32  ;;  %v4660_v33 = vmul.f32 %v9308_v45, %v8288_v55  ;;  %v4625_v44 = vpop.f32.mrb[171].mxu1 }
0x1639   :  { %v4681_v52 = vadd.f32 %v4675_v6, %v4657_v19  ;;  %v4658_v61 = vmul.f32 %v9309_v30, %v4625_v44 }
0x163a   :  { %v4684_v56 = vadd.f32 %v4678_v60, %v4660_v33 }
0x163b   :  { %v4682_v7 = vadd.f32 %v4676_v35, %v4658_v61 }
0x163c   :  { %v4687_v17 = vpack.c.bf16 %v4684_v56, %v4683_v24 }
0x163d   :  { %v4686_v47 = vpack.c.bf16 %v4682_v7, %v4681_v52 }
0x163f   :  { %8298 = vmatmul.mubr.msk.bf16.gmra.mrb[176].mxu0 %vm261_vm0, %v4686_v47 }
0x1640   :  { %8301 = vmatprep.mubr.msk.bf16.mxu0 %vm9392_vm1, %v9391_v42 }
0x1647   :  { %8302 = vmatmul.mubr.msk.bf16.gmra.mrb[180].mxu0 %vm261_vm0, %v4687_v17 }
0x1709   :  { %v4749_v22 = vpop.f32.mrb[172].mxu0 }
0x170a   :  { %v8295_v62 = vpop.f32.mrb[173].mxu0  ;;  %v4750_v48 = vadd.f32 %v7400_v50, %v4749_v22 }
0x170b   :  { %v4752_v0 = vpop.f32.mrb[174].mxu0 }
0x170c   :  { %v4753_v59 = vadd.f32 %v7400_v50, %v4752_v0  ;;  %v8296_v16 = vpop.f32.mrb[175].mxu0 }
0x170e   :  { %v4772_v5 = vpack.c.bf16 %v4753_v59, %v4750_v48 }
0x1710   :  { %8310 = vmatmul.mubr.msk.bf16.vlgmr.msra.gmra.mrb[172].mxu1 %vm261_vm0, %v4772_v5 }
0x1711   :  { %8313 = vmatprep.mubr.msk.bf16.mxu1 %vm9392_vm1, %v9391_v42 }
0x1712   :  { %v4757_v2 = vpop.f32.mrb[176].mxu0 }
0x1713   :  { %v8299_v1 = vpop.f32.mrb[177].mxu0  ;;  %v4758_v6 = vadd.f32 %v7400_v50, %v4757_v2 }
0x1714   :  { %v4760_v49 = vpop.f32.mrb[178].mxu0 }
0x1715   :  { %v4761_v31 = vadd.f32 %v7400_v50, %v4760_v49  ;;  %v8300_v26 = vpop.f32.mrb[179].mxu0 }
0x1717   :  { %v4773_v20 = vpack.c.bf16 %v4761_v31, %v4758_v6 }
0x1719   :  { %8314 = vmatmul.mubr.msk.bf16.gmra.mrb[176].mxu1 %vm261_vm0, %v4773_v20 }
0x171a   :  { %v4765_v63 = vpop.f32.mrb[180].mxu0  ;;  %8317 = vmatprep.mubr.msk.bf16.mxu1 %vm9392_vm1, %v9391_v42 }
0x171b   :  { %v8303_v58 = vpop.f32.mrb[181].mxu0  ;;  %v4766_v35 = vadd.f32 %v7400_v50, %v4765_v63 }
0x171c   :  { %v4768_v18 = vpop.f32.mrb[182].mxu0 }
0x171d   :  { %v4769_v46 = vadd.f32 %v7400_v50, %v4768_v18  ;;  %v8304_v41 = vpop.f32.mrb[183].mxu0 }
0x171f   :  { %v4774_v14 = vpack.c.bf16 %v4769_v46, %v4766_v35 }
0x1721   :  { %8318 = vmatmul.mubr.msk.bf16.gmra.mrb[180].mxu1 %vm261_vm0, %v4774_v14 }
0x17e3   :  { %v4843_v23 = vpop.f32.mrb[172].mxu1 }
0x17e4   :  { %v4844_v53 = vadd.f32 %v7411_v54, %v4843_v23  ;;  %v8311_v8 = vpop.f32.mrb[173].mxu1 }
0x17e5   :  { %v4846_v43 = vpop.f32.mrb[174].mxu1 }
0x17e6   :  { %v4872_v13 = vrot.slane %v4844_v53, 6  ;;  %v4847_v3 = vadd.f32 %v7411_v54, %v4846_v43  ;;  %v8312_v39 = vpop.f32.mrb[175].mxu1 }
0x17e8   :  { %v11508_v29 = vadd.f32 %v4872_v13, %v10949_v36  ;;  %v4873_v27 = vrot.slane %v4847_v3, 6 }
0x17ea   :  { %v4908_v38 = vrot.slane %v11508_v29, 6  ;;  %v4874_v51 = vsel %vm1526_vm3, %v4872_v13, %v4873_v27 }
0x17eb   :  { %v11513_v60 = vadd.f32 %v4874_v51, %v10955_v57 }
0x17ec   :  { %v4851_v12 = vpop.f32.mrb[176].mxu1  ;;  %v4928_v15 = vsel %vm1534_vm4, %v4900_v34, %v4908_v38 }
0x17ed   :  { %v4852_v32 = vadd.f32 %v7411_v54, %v4851_v12  ;;  %v8315_v28 = vpop.f32.mrb[177].mxu1  ;;  %v4955_v4 = vsel %vm261_vm0, %v4928_v15, 0.0  ;;  %v4909_v19 = vrot.slane %v11513_v60, 6 }
0x17ee   :  { %4956 = vadd.xlane.f32.xlu0 %v4955_v4  ;;  %v4854_v55 = vpop.f32.mrb[178].mxu1 }
0x17ef   :  { %v4875_v24 = vrot.slane %v4852_v32, 6  ;;  %v4855_v45 = vadd.f32 %v7411_v54, %v4854_v55  ;;  %v8316_v33 = vpop.f32.mrb[179].mxu1  ;;  %v4910_v57 = vsel %vm1526_vm3, %v4908_v38, %v4909_v19 }
0x17f0   :  { %v4958_v44 = vsel %vm261_vm0, %v4910_v57, 0.0 }
0x17f1   :  { %v4876_v52 = vsel %vm1526_vm3, %v4873_v27, %v4875_v24  ;;  %v4877_v30 = vrot.slane %v4855_v45, 6  ;;  %4959 = vadd.xlane.f32.xlu1 %v4958_v44 }
0x17f2   :  { %v11524_v61 = vadd.f32 %v4876_v52, %v10952_v25 }
0x17f3   :  { %v4878_v56 = vsel %vm1526_vm3, %v4875_v24, %v4877_v30 }
0x17f4   :  { %v11528_v7 = vadd.f32 %v4878_v56, %v10960_v21  ;;  %v4859_v17 = vpop.f32.mrb[180].mxu1  ;;  %v4911_v47 = vrot.slane %v11524_v61, 6 }
0x17f5   :  { %v4860_v50 = vadd.f32 %v7411_v54, %v4859_v17  ;;  %v8319_v22 = vpop.f32.mrb[181].mxu1 }
0x17f6   :  { %v4862_v62 = vpop.f32.mrb[182].mxu1  ;;  %v4912_v0 = vsel %vm1526_vm3, %v4909_v19, %v4911_v47  ;;  %v4913_v48 = vrot.slane %v11528_v7, 6 }
0x17f7   :  { %v4879_v59 = vrot.slane %v4860_v50, 6  ;;  %v4863_v16 = vadd.f32 %v7411_v54, %v4862_v62  ;;  %v8320_v5 = vpop.f32.mrb[183].mxu1  ;;  %v4961_v25 = vsel %vm261_vm0, %v4912_v0, 0.0 }
0x17f8   :  { %4962 = vadd.xlane.f32.xlu0 %v4961_v25  ;;  %v4914_v2 = vsel %vm1526_vm3, %v4911_v47, %v4913_v48  ;;  %v8608_v5 = vld [vmem:[%s10078_s3 + $0x18] sm:$0xff]   ;;  %v8609_v25 = vld [vmem:[%s10083_s11 + $0x10] sm:$0xff]  }
0x17f9   :  { %v4880_v21 = vsel %vm1526_vm3, %v4877_v30, %v4879_v59  ;;  %v4881_v1 = vrot.slane %v4863_v16, 6  ;;  %v4964_v49 = vsel %vm261_vm0, %v4914_v2, 0.0  ;;  %v8606_v16 = vld [vmem:[%s10092_s17 + $0x18] sm:$0xff]  }
0x17fa   :  { %v11538_v6 = vadd.f32 %v4880_v21, %v10969_v40  ;;  %4965 = vadd.xlane.f32.xlu1 %v4964_v49 }
0x17fb   :  { %v4882_v31 = vsel %vm1526_vm3, %v4879_v59, %v4881_v1  ;;  %v11542_v26 = vadd.f32 %v4881_v1, %v10972_v10  ;;  %v8607_v59 = vld [vmem:[%s10078_s3 + $0x10] sm:$0xff]   ;;  %s7212_s3 = sld [smem:[%s12364_s0 + %s9421_s15]]  }
0x17fc   :  { %v11545_v20 = vadd.f32 %v4882_v31, %v10975_v9  ;;  %v4915_v63 = vrot.slane %v11538_v6, 6  ;;  %8321 = vmatprep.subr.bf16.mxu0 %v8607_v59 }
0x17fd   :  { %v4919_v58 = vrot.slane %v11542_v26, 6  ;;  %8322 = vmatpush3.bf16.msra.mxu0 %v8607_v59 }
0x17fe   :  { %v4916_v18 = vsel %vm1526_vm3, %v4913_v48, %v4915_v63  ;;  %v4917_v35 = vrot.slane %v11545_v20, 6  ;;  %v8605_v48 = vld [vmem:[%s10092_s17 + $0x10] sm:$0xff]   ;;  %8323 = vmatprep.subr.bf16.mxu0 %v8608_v5 }
0x17ff   :  { %v4967_v40 = vsel %vm261_vm0, %v4916_v18, 0.0  ;;  %8333 = vmatprep.subr.bf16.mxu1 %v8605_v48 }
0x1800   :  { %4968 = vadd.xlane.f32.xlu0 %v4967_v40  ;;  %v4918_v46 = vsel %vm1526_vm3, %v4915_v63, %v4917_v35  ;;  %v4920_v41 = vsel %vm1526_vm3, %v4917_v35, %v4919_v58  ;;  %8334 = vmatpush3.bf16.msra.mxu1 %v8605_v48 }
0x1801   :  { %v4970_v10 = vsel %vm261_vm0, %v4918_v46, 0.0  ;;  %v4973_v9 = vsel %vm1591_vm5, %v4920_v41, 0.0  ;;  %8335 = vmatprep.subr.bf16.mxu1 %v8606_v16  ;;  %8324 = vmatpush3.bf16.msra.mxu0 %v8608_v5 }
0x1802   :  { %4971 = vadd.xlane.f32.xlu1 %v4970_v10  ;;  %8345 = vmatprep.subr.bf16.mxu0 %v8609_v25  ;;  %v7436_v10 = vld [vmem:[%s10102_s25 + $0x1] ss:$0 sm:$0xff] }
0x1804   :  { %4974 = vadd.xlane.f32.xlu0 %v4973_v9  ;;  %8336 = vmatpush3.bf16.msra.mxu1 %v8606_v16 }
0x1805   :  { %8357 = vmatprep.subr.bf16.mxu1 %v9391_v42 }
0x187b   :  { %v4957_v14 = vpop.xlane.xlu0 %4956 }
0x187c   :  { %v4976_v54 = vmul.f32 0.03125, %v4957_v14 }
0x187e   :  { %v11556_v23 = vsub.f32 %v4928_v15, %v4976_v54  ;;  %v4960_v53 = vpop.xlane.xlu1 %4959 }
0x187f   :  { %v4977_v8 = vmul.f32 0.03125, %v4960_v53 }
0x1880   :  { %v4990_v43 = vmul.f32 %v11556_v23, %v11556_v23 }
0x1881   :  { %v11560_v13 = vsub.f32 %v4910_v57, %v4977_v8 }
0x1882   :  { %v4997_v3 = vsel %vm261_vm0, %v4990_v43, 0.0 }
0x1883   :  { %4998 = vadd.xlane.f32.xlu1 %v4997_v3  ;;  %v4991_v39 = vmul.f32 %v11560_v13, %v11560_v13  ;;  %v7437_v3 = vld [vmem:[%s10107_s1 + $0x1] ss:$0 sm:$0xff] }
0x1885   :  { %v4963_v11 = vpop.xlane.xlu0 %4962  ;;  %v5000_v27 = vsel %vm261_vm0, %v4991_v39, 0.0 }
0x1886   :  { %v4978_v38 = vmul.f32 0.03125, %v4963_v11  ;;  %5001 = vadd.xlane.f32.xlu0 %v5000_v27 }
0x1887   :  { %v4966_v51 = vpop.xlane.xlu1 %4965 }
0x1888   :  { %v11566_v34 = vsub.f32 %v4912_v0, %v4978_v38  ;;  %v4979_v12 = vmul.f32 0.03125, %v4966_v51 }
0x188a   :  { %v11568_v15 = vsub.f32 %v4914_v2, %v4979_v12  ;;  %v4992_v32 = vmul.f32 %v11566_v34, %v11566_v34 }
0x188c   :  { %v5003_v28 = vsel %vm261_vm0, %v4992_v32, 0.0  ;;  %v4993_v4 = vmul.f32 %v11568_v15, %v11568_v15 }
0x188d   :  { %v4969_v19 = vpop.xlane.xlu0 %4968  ;;  %5004 = vadd.xlane.f32.xlu1 %v5003_v28 }
0x188e   :  { %v4980_v55 = vmul.f32 0.03125, %v4969_v19  ;;  %v5006_v24 = vsel %vm261_vm0, %v4993_v4, 0.0 }
0x188f   :  { %5007 = vadd.xlane.f32.xlu0 %v5006_v24  ;;  %v4972_v45 = vpop.xlane.xlu1 %4971 }
0x1890   :  { %v11576_v33 = vsub.f32 %v4916_v18, %v4980_v55  ;;  %v4981_v57 = vmul.f32 0.03125, %v4972_v45 }
0x1891   :  { %v4975_v44 = vpop.xlane.xlu0 %4974 }
0x1892   :  { %v11578_v52 = vsub.f32 %v4918_v46, %v4981_v57  ;;  %v4982_v30 = vmul.f32 0.03125, %v4975_v44  ;;  %v4994_v56 = vmul.f32 %v11576_v33, %v11576_v33 }
0x1894   :  { %v11582_v17 = vsub.f32 %v4920_v41, %v4982_v30  ;;  %v5009_v47 = vsel %vm261_vm0, %v4994_v56, 0.0  ;;  %v4995_v50 = vmul.f32 %v11578_v52, %v11578_v52 }
0x1895   :  { %5010 = vadd.xlane.f32.xlu1 %v5009_v47 }
0x1896   :  { %v5012_v22 = vsel %vm261_vm0, %v4995_v50, 0.0  ;;  %v4996_v62 = vmul.f32 %v11582_v17, %v11582_v17 }
0x1897   :  { %5013 = vadd.xlane.f32.xlu0 %v5012_v22 }
0x1898   :  { %v5015_v0 = vsel %vm1591_vm5, %v4996_v62, 0.0 }
0x1899   :  { %5016 = vadd.xlane.f32.xlu1 %v5015_v0  ;;  %v8610_v0 = vld [vmem:[%s10083_s11 + $0x18] sm:$0xff]   ;;  %s9422_s11 = smov 31  }
0x189a   :  { %s7214_s1 = sld [smem:[%s12364_s0 + %s9422_s11]]  }
0x1910   :  { %v4999_v2 = vpop.xlane.xlu1 %4998 }
0x1911   :  { %v5018_v21 = vmul.f32 0.03125, %v4999_v2 }
0x1913   :  { %v5025_v1 = vadd.f32 1e-05, %v5018_v21  ;;  %v5002_v49 = vpop.xlane.xlu0 %5001 }
0x1914   :  { %v5019_v31 = vmul.f32 0.03125, %v5002_v49 }
0x1915   :  { %9023 = vrsqrt.f32 %v5025_v1 }
0x1916   :  { %v5026_v63 = vadd.f32 1e-05, %v5019_v31 }
0x1918   :  { %9025 = vrsqrt.f32 %v5026_v63 }
0x191a   :  { %v5005_v58 = vpop.xlane.xlu1 %5004 }
0x191b   :  { %v5020_v18 = vmul.f32 0.03125, %v5005_v58 }
0x191c   :  { %v5008_v35 = vpop.xlane.xlu0 %5007 }
0x191d   :  { %v5027_v40 = vadd.f32 1e-05, %v5020_v18  ;;  %v5021_v46 = vmul.f32 0.03125, %v5008_v35  ;;  %v9310_v18 = vld [vmem:[%s10140_s8 + $0x10] sm:$0xff] }
0x191f   :  { %v9024_v41 = vpop.eup %9023  ;;  %9027 = vrsqrt.f32 %v5027_v40  ;;  %v5028_v9 = vadd.f32 1e-05, %v5021_v46 }
0x1920   :  { %v5039_v14 = vmul.f32 %v9024_v41, %v11556_v23  ;;  %v9311_v41 = vld [vmem:[%s10140_s8] sm:$0xff] }
0x1921   :  { %9029 = vrsqrt.f32 %v5028_v9 }
0x1922   :  { %v9026_v54 = vpop.eup %9025  ;;  %v5011_v53 = vpop.xlane.xlu1 %5010  ;;  %v5052_v8 = vmul.f32 %v7436_v10, %v5039_v14  ;;  %v9312_v14 = vld [vmem:[%s10140_s8 + $0x18] sm:$0xff] }
0x1923   :  { %v5040_v43 = vmul.f32 %v9026_v54, %v11560_v13  ;;  %v5022_v39 = vmul.f32 0.03125, %v5011_v53 }
0x1924   :  { %v5014_v11 = vpop.xlane.xlu0 %5013  ;;  %v5065_v32 = vadd.f32 %v7437_v3, %v5052_v8 }
0x1925   :  { %v5029_v27 = vadd.f32 1e-05, %v5022_v39  ;;  %v5023_v38 = vmul.f32 0.03125, %v5014_v11  ;;  %v5053_v51 = vmul.f32 %v7436_v10, %v5040_v43  ;;  %v9313_v39 = vld [vmem:[%s10140_s8 + $0x8] sm:$0xff] }
0x1926   :  { %v5017_v12 = vpop.xlane.xlu1 %5016 }
0x1927   :  { %9031 = vrsqrt.f32 %v5029_v27  ;;  %v5030_v28 = vadd.f32 1e-05, %v5023_v38  ;;  %v5024_v4 = vmul.f32 0.03125, %v5017_v12  ;;  %v5066_v19 = vadd.f32 %v7437_v3, %v5053_v51  ;;  %v9314_v27 = vld [vmem:[%s10140_s8 + $0x70] sm:$0xff]  ;;  %v9315_v12 = vld [vmem:[%s10140_s8 + $0x78] sm:$0xff] }
0x1929   :  { %v9028_v55 = vpop.eup %9027  ;;  %9033 = vrsqrt.f32 %v5030_v28  ;;  %v5031_v23 = vadd.f32 1e-05, %v5024_v4  ;;  %v5072_v24 = vpack.c.bf16 %v5066_v19, %v5065_v32 }
0x192a   :  { %v5041_v45 = vmul.f32 %v9028_v55, %v11566_v34  ;;  %v9316_v55 = vld [vmem:[%s10140_s8 + $0x48] sm:$0xff] }
0x192b   :  { %v9030_v13 = vpop.eup %9029  ;;  %9035 = vrsqrt.f32 %v5031_v23  ;;  %8325 = vmatprep.mubr.msk.bf16.mxu0 %vm261_vm0, %v5072_v24  ;;  %8337 = vmatprep.mubr.msk.bf16.mxu1 %vm261_vm0, %v5072_v24 }
0x192c   :  { %v5054_v57 = vmul.f32 %v7436_v10, %v5041_v45  ;;  %v5042_v44 = vmul.f32 %v9030_v13, %v11568_v15  ;;  %v9317_v13 = vld [vmem:[%s10140_s8 + $0x40] sm:$0xff] }
0x192e   :  { %v5055_v30 = vmul.f32 %v7436_v10, %v5042_v44  ;;  %v5067_v56 = vadd.f32 %v7437_v3, %v5054_v57  ;;  %v9318_v44 = vld [vmem:[%s10140_s8 + $0xa8] sm:$0xff] }
0x1930   :  { %v5068_v47 = vadd.f32 %v7437_v3, %v5055_v30 }
0x1931   :  { %v9032_v50 = vpop.eup %9031 }
0x1932   :  { %v5043_v22 = vmul.f32 %v9032_v50, %v11576_v33  ;;  %v5073_v62 = vpack.c.bf16 %v5068_v47, %v5067_v56 }
0x1933   :  { %v9034_v48 = vpop.eup %9033 }
0x1934   :  { %v5044_v34 = vmul.f32 %v9034_v48, %v11578_v52  ;;  %8326 = vmatmul.mubr.msk.bf16.vlgmr.msra.gmra.mrb[184].mxu0 %vm261_vm0, %v5073_v62  ;;  %8338 = vmatmul.mubr.msk.bf16.vlgmr.msra.gmra.mrb[184].mxu1 %vm261_vm0, %v5073_v62  ;;  %v5056_v59 = vmul.f32 %v7436_v10, %v5043_v22  ;;  %v9319_v22 = vld [vmem:[%s10140_s8 + $0xa0] sm:$0xff]  ;;  %v9320_v48 = vld [vmem:[%s10140_s8 + $0x68] sm:$0xff] }
0x1935   :  { %v9036_v16 = vpop.eup %9035  ;;  %8346 = vmatpush3.bf16.msra.mxu0 %v8609_v25 }
0x1936   :  { %v5057_v5 = vmul.f32 %v7436_v10, %v5044_v34  ;;  %v5045_v15 = vmul.f32 %v9036_v16, %v11582_v17  ;;  %8347 = vmatprep.subr.bf16.mxu0 %v8610_v0  ;;  %v5069_v2 = vadd.f32 %v7437_v3, %v5056_v59 }
0x1938   :  { %v5070_v21 = vadd.f32 %v7437_v3, %v5057_v5  ;;  %v5058_v1 = vmul.f32 %v7436_v10, %v5045_v15  ;;  %v9321_v5 = vld [vmem:[%s10140_s8 + $0x80] sm:$0xff] }
0x1939   :  { %8348 = vmatpush3.bf16.msra.mxu0 %v8610_v0 }
0x193a   :  { %v5074_v33 = vpack.c.bf16 %v5070_v21, %v5069_v2  ;;  %v5071_v49 = vadd.f32 %v7437_v3, %v5058_v1  ;;  %8417 = vmatprep.subr.bf16.mxu0 %v9391_v42 }
0x193c   :  { %8329 = vmatprep.mubr.msk.bf16.mxu0 %vm261_vm0, %v5074_v33  ;;  %8341 = vmatprep.mubr.msk.bf16.mxu1 %vm261_vm0, %v5074_v33  ;;  %v5075_v52 = vpack.c.bf16 %v5071_v49, %v5071_v49 }
0x193e   :  { %8330 = vmatmul.mubr.msk.bf16.gmra.mrb[188].mxu0 %vm261_vm0, %v5075_v52  ;;  %8342 = vmatmul.mubr.msk.bf16.gmra.mrb[188].mxu1 %vm261_vm0, %v5075_v52 }
0x193f   :  { %8349 = vmatprep.mubr.msk.bf16.mxu0 %vm261_vm0, %v5072_v24  ;;  %8365 = vmatprep.mubr.msk.bf16.mxu1 %vm9392_vm1, %v9391_v42 }
0x1946   :  { %8350 = vmatmul.mubr.msk.bf16.vlgmr.msra.gmra.mrb[192].mxu0 %vm261_vm0, %v5073_v62 }
0x1947   :  { %8353 = vmatprep.mubr.msk.bf16.mxu0 %vm261_vm0, %v5074_v33 }
0x194e   :  { %8354 = vmatmul.mubr.msk.bf16.gmra.mrb[196].mxu0 %vm261_vm0, %v5075_v52  ;;  %v9322_v52 = vld [vmem:[%s10140_s8 + $0xb0] sm:$0xff] }
0x194f   :  { %8425 = vmatprep.mubr.msk.bf16.mxu0 %vm9392_vm1, %v9391_v42 }
0x1a07   :  { %v8327_v17 = vpop.f32.mrb[184].mxu0  ;;  %v8339_v25 = vpop.f32.mrb[184].mxu1 }
0x1a08   :  { %v5134_v31 = vpop.f32.mrb[185].mxu0  ;;  %v5210_v63 = vpop.f32.mrb[185].mxu1  ;;  %v5334_v58 = vrot.slane %v8327_v17, 4  ;;  %v11625_v35 = vmul.f32 %v9310_v18, %v8327_v17  ;;  %v11644_v32 = vmul.f32 %v9315_v12, %v8327_v17 }
0x1a09   :  { %v11627_v40 = vpop.f32.mrb[186].mxu0  ;;  %v8340_v46 = vpop.f32.mrb[186].mxu1  ;;  %v11630_v10 = vmul.f32 %v9311_v41, %v5134_v31  ;;  %v5331_v19 = vrot.slane %v5134_v31, 4  ;;  %v11674_v34 = vmul.f32 %v9320_v48, %v5134_v31 }
0x1a0a   :  { %v5336_v9 = vrot.slane %v11627_v40, 4  ;;  %v11635_v54 = vmul.f32 %v9312_v14, %v11627_v40  ;;  %v5241_v53 = vpack.c.bf16 %v8340_v46, %v8339_v25  ;;  %v5137_v8 = vpop.f32.mrb[187].mxu0  ;;  %v5213_v43 = vpop.f32.mrb[187].mxu1  ;;  %v11680_v15 = vmul.f32 %v9321_v5, %v11627_v40  ;;  %v9323_v25 = vld [vmem:[%s10140_s8 + $0x30] sm:$0xff] }
0x1a0b   :  { %v5332_v3 = vrot.slane %v5137_v8, 4  ;;  %v11638_v11 = vmul.f32 %v9313_v39, %v5137_v8  ;;  %v11641_v38 = vmul.f32 %v9314_v27, %v5137_v8  ;;  %v5240_v51 = vpack.c.bf16 %v5213_v43, %v5210_v63  ;;  %v9324_v63 = vld [vmem:[%s10140_s8 + $0x38] sm:$0xff]  ;;  %v9326_v43 = vld [vmem:[%s10140_s8 + $0x20] sm:$0xff]  ;;  %v9327_v39 = vld [vmem:[%s10140_s8 + $0x88] sm:$0xff] }
0x1a0c   :  { %v5337_v28 = vsel %vm1534_vm4, %v5334_v58, %v5336_v9  ;;  %v5379_v4 = vpack.c.bf16 %v11635_v54, %v11625_v35  ;;  %v5434_v2 = vsel %vm261_vm0, %v5241_v53, 0  ;;  %v9325_v53 = vld [vmem:[%s10140_s8 + $0x98] sm:$0xff] }
0x1a0d   :  { %v11652_v23 = vmul.f32 %v9316_v55, %v5337_v28  ;;  %v5335_v24 = vsel %vm1534_vm4, %v5332_v3, %v5334_v58  ;;  %v5378_v45 = vpack.c.bf16 %v11638_v11, %v11630_v10  ;;  %v5385_v56 = vpack.c.bf16 %v11644_v32, %v11641_v38  ;;  %v9336_v38 = vld [vmem:[%s10304_s19] sm:$0xff] }
0x1a0e   :  { %v11658_v57 = vmul.f32 %v9317_v13, %v5335_v24  ;;  %v11661_v30 = vmul.f32 %v9318_v44, %v5335_v24  ;;  %v5431_v47 = vsel %vm261_vm0, %v5240_v51, 0  ;;  %v5333_v50 = vsel %vm1534_vm4, %v5331_v19, %v5332_v3  ;;  %v9328_v24 = vld [vmem:[%s10140_s8 + $0x28] sm:$0xff]  ;;  %v9329_v44 = vld [vmem:[%s10140_s8 + $0x50] sm:$0xff] }
0x1a0f   :  { %8358 = vmatpush3.bf16.xpose.msra.mxu1 %v5431_v47  ;;  %v11668_v62 = vmul.f32 %v9319_v22, %v5333_v50  ;;  %v11687_v17 = vmul.f32 %v9322_v52, %v5337_v28  ;;  %v11693_v58 = vmul.f32 %v9324_v63, %v5333_v50  ;;  %v9330_v50 = vld [vmem:[%s10140_s8 + $0xb8] sm:$0xff]  ;;  %v9333_v63 = vld [vmem:[%s10140_s8 + $0x60] sm:$0xff] }
0x1a10   :  { %8359 = vmatprep.subr.bf16.mxu1 %v9391_v42  ;;  %v5382_v0 = vpack.c.bf16 %v11652_v23, %v11658_v57  ;;  %v9332_v52 = vld [vmem:[%s10140_s8 + $0x58] sm:$0xff] }
0x1a11   :  { %v8331_v59 = vpop.f32.mrb[188].mxu0  ;;  %v11676_v16 = vpop.f32.mrb[188].mxu1  ;;  %v5388_v49 = vpack.c.bf16 %v11661_v30, %v11668_v62 }
0x1a12   :  { %v5351_v21 = vsel %vm1534_vm4, %v8331_v59, %v5331_v19  ;;  %v5150_v1 = vpop.f32.mrb[189].mxu0  ;;  %v5226_v33 = vpop.f32.mrb[189].mxu1  ;;  %v5342_v14 = vrot.slane %v8331_v59, 4  ;;  %v9331_v59 = vld [vmem:[%s10140_s8 + $0x90] sm:$0xff] }
0x1a13   :  { %v11690_v31 = vmul.f32 %v9323_v25, %v5351_v21  ;;  %v5338_v18 = vrot.slane %v5150_v1, 4  ;;  %v8332_v46 = vpop.f32.mrb[190].mxu0  ;;  %v8344_v41 = vpop.f32.mrb[190].mxu1  ;;  %v11696_v8 = vmul.f32 %v9325_v53, %v5351_v21  ;;  %v11699_v3 = vmul.f32 %v9326_v43, %v5150_v1  ;;  %v9335_v43 = vld [vmem:[%s10140_s8 + $0xc8] sm:$0xff] }
0x1a14   :  { %v11702_v27 = vmul.f32 %v9327_v39, %v5150_v1  ;;  %v5153_v51 = vpop.f32.mrb[191].mxu0  ;;  %v5229_v12 = vpop.f32.mrb[191].mxu1  ;;  %v9334_v41 = vld [vmem:[%s10140_s8 + $0xc0] sm:$0xff] }
0x1a15   :  { %v5381_v28 = vpack.c.bf16 %v11693_v58, %v11690_v31  ;;  %v5339_v19 = vsel %vm1534_vm4, %v5336_v9, %v5338_v18  ;;  %v5340_v55 = vrot.slane %v5153_v51, 4  ;;  %v5357_v13 = vmul.f32 %v9328_v24, %v5153_v51 }
0x1a16   :  { %v5362_v47 = vmul.f32 %v9329_v44, %v5339_v19  ;;  %v11712_v22 = vmul.f32 %v9330_v50, %v5339_v19  ;;  %v5386_v48 = vpack.c.bf16 %v11702_v27, %v11680_v15  ;;  %v11717_v5 = vmul.f32 %v9331_v59, %v5153_v51 }
0x1a17   :  { %v5341_v40 = vsel %vm1534_vm4, %v5338_v18, %v5340_v55  ;;  %v5343_v9 = vsel %vm1534_vm4, %v5340_v55, %v5342_v14  ;;  %v5380_v21 = vpack.c.bf16 %v5357_v13, %v11699_v3  ;;  %v5242_v1 = vpack.c.bf16 %v5229_v12, %v5226_v33  ;;  %8360 = vmatpush3.bf16.xpose.msra.mxu1 %v5434_v2 }
0x1a18   :  { %v5363_v25 = vmul.f32 %v9332_v52, %v5341_v40  ;;  %v5364_v46 = vmul.f32 %v9333_v63, %v5343_v9  ;;  %v5376_v53 = vmul.f32 %v9334_v41, %v5341_v40  ;;  %v5377_v39 = vmul.f32 %v9335_v43, %v5343_v9  ;;  %8361 = vmatprep.subr.bf16.mxu1 %v9391_v42 }
0x1a19   :  { %v5387_v51 = vpack.c.bf16 %v11696_v8, %v11717_v5  ;;  %v8351_v18 = vpop.f32.mrb[192].mxu0  ;;  %v5389_v14 = vpack.c.bf16 %v11712_v22, %v11687_v17  ;;  %v5437_v44 = vsel %vm261_vm0, %v5242_v1, 0  ;;  %v5243_v17 = vpack.c.bf16 %v11676_v16, %v11676_v16 }
0x1a1a   :  { %v5290_v3 = vpop.f32.mrb[193].mxu0  ;;  %v5383_v33 = vpack.c.bf16 %v5363_v25, %v5362_v47  ;;  %v5384_v2 = vpack.c.bf16 %v11674_v34, %v5364_v46  ;;  %v5390_v12 = vpack.c.bf16 %v5377_v39, %v5376_v53  ;;  %v9340_v46 = vld [vmem:[%s10304_s19 + $0x20] sm:$0xff]  ;;  %v9341_v39 = vld [vmem:[%s10304_s19 + $0x28] sm:$0xff] }
0x1a1b   :  { %v8352_v19 = vpop.f32.mrb[194].mxu0  ;;  %v5440_v59 = vsel %vm261_vm0, %v5243_v17, 0 }
0x1a1c   :  { %v5321_v55 = vpack.c.bf16 %v8352_v19, %v8351_v18  ;;  %v5293_v24 = vpop.f32.mrb[195].mxu0  ;;  %v9342_v19 = vld [vmem:[%s10304_s19 + $0x30] sm:$0xff] }
0x1a1d   :  { %v5320_v13 = vpack.c.bf16 %v5293_v24, %v5290_v3 }
0x1a1f   :  { %8362 = vmatpush3.bf16.xpose.msra.mxu1 %v5437_v44  ;;  %8418 = vmatpush3.bf16.msra.mxu0 %v5320_v13  ;;  %v9343_v44 = vld [vmem:[%s10304_s19 + $0x38] sm:$0xff] }
0x1a20   :  { %8419 = vmatprep.subr.bf16.mxu0 %v9391_v42  ;;  %8363 = vmatprep.subr.bf16.mxu1 %v9391_v42 }
0x1a21   :  { %v8355_v8 = vpop.f32.mrb[196].mxu0 }
0x1a22   :  { %v5306_v47 = vpop.f32.mrb[197].mxu0  ;;  %v5323_v5 = vpack.c.bf16 %v8355_v8, %v8355_v8 }
0x1a23   :  { %v8356_v50 = vpop.f32.mrb[198].mxu0  ;;  %8420 = vmatpush3.bf16.msra.mxu0 %v5321_v55 }
0x1a24   :  { %v5309_v34 = vpop.f32.mrb[199].mxu0  ;;  %8421 = vmatprep.subr.bf16.mxu0 %v9391_v42  ;;  %v5970_v40 = vsel %vm1526_vm3, %v5323_v5, 0  ;;  %v9344_v5 = vld [vmem:[%s10304_s19 + $0x40] sm:$0xff] }
0x1a25   :  { %v5322_v22 = vpack.c.bf16 %v5309_v34, %v5306_v47 }
0x1a27   :  { %8364 = vmatpush3.bf16.xpose.msra.mxu1 %v5440_v59  ;;  %8422 = vmatpush3.bf16.msra.mxu0 %v5322_v22 }
0x1a28   :  { %8423 = vmatprep.subr.bf16.mxu0 %v9391_v42 }
0x1a2b   :  { %8424 = vmatpush3.bf16.msra.mxu0 %v5970_v40 }
0x1a2e   :  { %8366 = vmatmul.mubr.msk.bf16.vlgmr.msra.gmra.mrb[192].mxu1 %vm261_vm0, %v5378_v45  ;;  %v9337_v45 = vld [vmem:[%s10304_s19 + $0x8] sm:$0xff] }
0x1a2f   :  { %8369 = vmatprep.mubr.msk.bf16.mxu1 %vm9392_vm1, %v9391_v42 }
0x1a36   :  { %8370 = vmatmul.mubr.msk.bf16.gmra.mrb[196].mxu1 %vm261_vm0, %v5379_v4 }
0x1a37   :  { %8373 = vmatprep.mubr.msk.bf16.mxu1 %vm9392_vm1, %v9391_v42 }
0x1a3e   :  { %8374 = vmatmul.mubr.msk.bf16.gmra.mrb[200].mxu1 %vm261_vm0, %v5380_v21 }
0x1a3f   :  { %8377 = vmatprep.mubr.msk.bf16.mxu1 %vm9392_vm1, %v9391_v42 }
0x1a46   :  { %8378 = vmatmul.mubr.msk.bf16.gmra.mrb[204].mxu1 %vm261_vm0, %v5381_v28  ;;  %v9339_v28 = vld [vmem:[%s10304_s19 + $0x18] sm:$0xff] }
0x1a47   :  { %8381 = vmatprep.mubr.msk.bf16.mxu1 %vm9392_vm1, %v9391_v42 }
0x1a4e   :  { %8382 = vmatmul.mubr.msk.bf16.gmra.mrb[208].mxu1 %vm261_vm0, %v5382_v0 }
0x1a4f   :  { %8385 = vmatprep.mubr.msk.bf16.mxu1 %vm9392_vm1, %v9391_v42 }
0x1a56   :  { %8386 = vmatmul.mubr.msk.bf16.gmra.mrb[212].mxu1 %vm261_vm0, %v5383_v33 }
0x1a57   :  { %8389 = vmatprep.mubr.msk.bf16.mxu1 %vm9392_vm1, %v9391_v42 }
0x1a5e   :  { %8390 = vmatmul.mubr.msk.bf16.gmra.mrb[216].mxu1 %vm261_vm0, %v5384_v2 }
0x1a5f   :  { %8393 = vmatprep.mubr.msk.bf16.mxu1 %vm9392_vm1, %v9391_v42 }
0x1a66   :  { %8394 = vmatmul.mubr.msk.bf16.gmra.mrb[220].mxu1 %vm261_vm0, %v5385_v56 }
0x1a67   :  { %8397 = vmatprep.mubr.msk.bf16.mxu1 %vm9392_vm1, %v9391_v42 }
0x1a6e   :  { %8398 = vmatmul.mubr.msk.bf16.gmra.mrb[224].mxu1 %vm261_vm0, %v5386_v48 }
0x1a6f   :  { %8401 = vmatprep.mubr.msk.bf16.mxu1 %vm9392_vm1, %v9391_v42 }
0x1a76   :  { %8402 = vmatmul.mubr.msk.bf16.gmra.mrb[228].mxu1 %vm261_vm0, %v5387_v51 }
0x1a77   :  { %8405 = vmatprep.mubr.msk.bf16.mxu1 %vm9392_vm1, %v9391_v42 }
0x1a7e   :  { %8406 = vmatmul.mubr.msk.bf16.gmra.mrb[232].mxu1 %vm261_vm0, %v5388_v49  ;;  %v9338_v49 = vld [vmem:[%s10304_s19 + $0x10] sm:$0xff] }
0x1a7f   :  { %8409 = vmatprep.mubr.msk.bf16.mxu1 %vm9392_vm1, %v9391_v42 }
0x1a86   :  { %8410 = vmatmul.mubr.msk.bf16.gmra.mrb[236].mxu1 %vm261_vm0, %v5389_v14 }
0x1a87   :  { %8413 = vmatprep.mubr.msk.bf16.mxu1 %vm9392_vm1, %v9391_v42 }
0x1a8e   :  { %8414 = vmatmul.mubr.msk.bf16.gmra.mrb[240].mxu1 %vm261_vm0, %v5390_v12 }
0x1b01   :  { %v5476_v35 = vpop.f32.mrb[192].mxu1 }
0x1b02   :  { %v5579_v10 = vmul.f32 0.35355338, %v5476_v35  ;;  %v8367_v54 = vpop.f32.mrb[193].mxu1 }
0x1b03   :  { %v5479_v11 = vpop.f32.mrb[194].mxu1  ;;  %v9345_v54 = vld [vmem:[%s10304_s19 + $0x48] sm:$0xff] }
0x1b04   :  { %v11800_v32 = vadd.f32 %v9336_v38, %v5579_v10  ;;  %v5580_v4 = vmul.f32 0.35355338, %v5479_v11  ;;  %v8368_v23 = vpop.f32.mrb[195].mxu1 }
0x1b06   :  { %v11803_v57 = vadd.f32 %v9337_v45, %v5580_v4  ;;  %v5631_v30 = vsel %vm2250_vm6, %v11800_v32, -inf }
0x1b07   :  { %5632 = vmax.xlane.f32.xlu0 %v5631_v30 }
0x1b08   :  { %v5634_v56 = vsel %vm2250_vm6, %v11803_v57, -inf }
0x1b09   :  { %5635 = vmax.xlane.f32.xlu1 %v5634_v56  ;;  %v5484_v62 = vpop.f32.mrb[196].mxu1 }
0x1b0a   :  { %v5581_v0 = vmul.f32 0.35355338, %v5484_v62  ;;  %v8371_v16 = vpop.f32.mrb[197].mxu1  ;;  %v9346_v62 = vld [vmem:[%s10304_s19 + $0x50] sm:$0xff] }
0x1b0b   :  { %v5487_v15 = vpop.f32.mrb[198].mxu1 }
0x1b0c   :  { %v11810_v31 = vadd.f32 %v9338_v49, %v5581_v0  ;;  %v5582_v58 = vmul.f32 0.35355338, %v5487_v15  ;;  %v8372_v27 = vpop.f32.mrb[199].mxu1  ;;  %v9347_v49 = vld [vmem:[%s10304_s19 + $0x58] sm:$0xff] }
0x1b0e   :  { %v11813_v48 = vadd.f32 %v9339_v28, %v5582_v58  ;;  %v5637_v9 = vsel %vm2250_vm6, %v11810_v31, -inf }
0x1b0f   :  { %5638 = vmax.xlane.f32.xlu0 %v5637_v9 }
0x1b10   :  { %v5640_v21 = vsel %vm2250_vm6, %v11813_v48, -inf }
0x1b11   :  { %5641 = vmax.xlane.f32.xlu1 %v5640_v21  ;;  %v5492_v1 = vpop.f32.mrb[200].mxu1 }
0x1b12   :  { %v5583_v52 = vmul.f32 0.35355338, %v5492_v1  ;;  %v8375_v25 = vpop.f32.mrb[201].mxu1 }
0x1b13   :  { %v5495_v63 = vpop.f32.mrb[202].mxu1  ;;  %v9348_v25 = vld [vmem:[%s10304_s19 + $0x60] sm:$0xff] }
0x1b14   :  { %v11820_v41 = vadd.f32 %v9340_v46, %v5583_v52  ;;  %v5584_v53 = vmul.f32 0.35355338, %v5495_v63  ;;  %v8376_v43 = vpop.f32.mrb[203].mxu1 }
0x1b15   :  { %v9349_v43 = vld [vmem:[%s10304_s19 + $0x68] sm:$0xff] }
0x1b16   :  { %v11823_v51 = vadd.f32 %v9341_v39, %v5584_v53  ;;  %v5643_v18 = vsel %vm2250_vm6, %v11820_v41, -inf }
0x1b17   :  { %5644 = vmax.xlane.f32.xlu0 %v5643_v18 }
0x1b18   :  { %v5646_v14 = vsel %vm2250_vm6, %v11823_v51, -inf }
0x1b19   :  { %5647 = vmax.xlane.f32.xlu1 %v5646_v14  ;;  %v5500_v3 = vpop.f32.mrb[204].mxu1 }
0x1b1a   :  { %v5585_v33 = vmul.f32 0.35355338, %v5500_v3  ;;  %v8379_v2 = vpop.f32.mrb[205].mxu1 }
0x1b1b   :  { %v5503_v12 = vpop.f32.mrb[206].mxu1 }
0x1b1c   :  { %v11830_v55 = vadd.f32 %v9342_v19, %v5585_v33  ;;  %v5586_v24 = vmul.f32 0.35355338, %v5503_v12  ;;  %v8380_v13 = vpop.f32.mrb[207].mxu1  ;;  %v9350_v19 = vld [vmem:[%s10304_s19 + $0x70] sm:$0xff] }
0x1b1e   :  { %v11833_v8 = vadd.f32 %v9343_v44, %v5586_v24  ;;  %v5649_v17 = vsel %vm2250_vm6, %v11830_v55, -inf }
0x1b1f   :  { %5650 = vmax.xlane.f32.xlu0 %v5649_v17  ;;  %v9351_v17 = vld [vmem:[%s10304_s19 + $0x78] sm:$0xff] }
0x1b20   :  { %v5652_v47 = vsel %vm2250_vm6, %v11833_v8, -inf }
0x1b21   :  { %5653 = vmax.xlane.f32.xlu1 %v5652_v47  ;;  %v5508_v50 = vpop.f32.mrb[208].mxu1 }
0x1b22   :  { %v5587_v34 = vmul.f32 0.35355338, %v5508_v50  ;;  %v8383_v22 = vpop.f32.mrb[209].mxu1 }
0x1b23   :  { %v5511_v59 = vpop.f32.mrb[210].mxu1 }
0x1b24   :  { %v11840_v40 = vadd.f32 %v9344_v5, %v5587_v34  ;;  %v5588_v35 = vmul.f32 0.35355338, %v5511_v59  ;;  %v8384_v10 = vpop.f32.mrb[211].mxu1 }
0x1b25   :  { %v9352_v10 = vld [vmem:[%s10304_s19 + $0x80] sm:$0xff] }
0x1b26   :  { %v11843_v11 = vadd.f32 %v9345_v54, %v5588_v35  ;;  %v5655_v38 = vsel %vm2250_vm6, %v11840_v40, -inf }
0x1b27   :  { %5656 = vmax.xlane.f32.xlu0 %v5655_v38 }
0x1b28   :  { %v5658_v4 = vsel %vm2250_vm6, %v11843_v11, -inf }
0x1b29   :  { %5659 = vmax.xlane.f32.xlu1 %v5658_v4  ;;  %v5516_v23 = vpop.f32.mrb[212].mxu1 }
0x1b2a   :  { %v5589_v45 = vmul.f32 0.35355338, %v5516_v23  ;;  %v8387_v30 = vpop.f32.mrb[213].mxu1  ;;  %v9353_v23 = vld [vmem:[%s10304_s19 + $0x88] sm:$0xff] }
0x1b2b   :  { %v5519_v56 = vpop.f32.mrb[214].mxu1 }
0x1b2c   :  { %v11850_v0 = vadd.f32 %v9346_v62, %v5589_v45  ;;  %v5590_v16 = vmul.f32 0.35355338, %v5519_v56  ;;  %v8388_v15 = vpop.f32.mrb[215].mxu1 }
0x1b2e   :  { %v11853_v58 = vadd.f32 %v9347_v49, %v5590_v16  ;;  %v5661_v27 = vsel %vm2250_vm6, %v11850_v0, -inf }
0x1b2f   :  { %5662 = vmax.xlane.f32.xlu0 %v5661_v27  ;;  %v9354_v27 = vld [vmem:[%s10304_s19 + $0x90] sm:$0xff] }
0x1b30   :  { %v5664_v28 = vsel %vm2250_vm6, %v11853_v58, -inf }
0x1b31   :  { %5665 = vmax.xlane.f32.xlu1 %v5664_v28  ;;  %v5524_v9 = vpop.f32.mrb[216].mxu1 }
0x1b32   :  { %v5591_v21 = vmul.f32 0.35355338, %v5524_v9  ;;  %v8391_v1 = vpop.f32.mrb[217].mxu1 }
0x1b33   :  { %v5527_v52 = vpop.f32.mrb[218].mxu1  ;;  %v9355_v1 = vld [vmem:[%s10304_s19 + $0x98] sm:$0xff] }
0x1b34   :  { %v11860_v63 = vadd.f32 %v9348_v25, %v5591_v21  ;;  %v5592_v46 = vmul.f32 0.35355338, %v5527_v52  ;;  %v8392_v53 = vpop.f32.mrb[219].mxu1 }
0x1b36   :  { %v11863_v39 = vadd.f32 %v9349_v43, %v5592_v46  ;;  %v5667_v18 = vsel %vm2250_vm6, %v11860_v63, -inf }
0x1b37   :  { %5668 = vmax.xlane.f32.xlu0 %v5667_v18 }
0x1b38   :  { %v5670_v14 = vsel %vm2250_vm6, %v11863_v39, -inf }
0x1b39   :  { %5671 = vmax.xlane.f32.xlu1 %v5670_v14  ;;  %v5532_v3 = vpop.f32.mrb[220].mxu1 }
0x1b3a   :  { %v5593_v33 = vmul.f32 0.35355338, %v5532_v3  ;;  %v8395_v2 = vpop.f32.mrb[221].mxu1  ;;  %v9356_v3 = vld [vmem:[%s10304_s19 + $0xa0] sm:$0xff] }
0x1b3b   :  { %v5535_v12 = vpop.f32.mrb[222].mxu1 }
0x1b3c   :  { %v11870_v24 = vadd.f32 %v9350_v19, %v5593_v33  ;;  %v5594_v13 = vmul.f32 0.35355338, %v5535_v12  ;;  %v8396_v44 = vpop.f32.mrb[223].mxu1  ;;  %v9357_v19 = vld [vmem:[%s10304_s19 + $0xa8] sm:$0xff] }
0x1b3e   :  { %v11873_v47 = vadd.f32 %v9351_v17, %v5594_v13  ;;  %v5673_v50 = vsel %vm2250_vm6, %v11870_v24, -inf }
0x1b3f   :  { %5674 = vmax.xlane.f32.xlu0 %v5673_v50 }
0x1b40   :  { %v5676_v34 = vsel %vm2250_vm6, %v11873_v47, -inf }
0x1b41   :  { %5677 = vmax.xlane.f32.xlu1 %v5676_v34  ;;  %v5540_v22 = vpop.f32.mrb[224].mxu1 }
0x1b42   :  { %v5595_v59 = vmul.f32 0.35355338, %v5540_v22  ;;  %v8399_v5 = vpop.f32.mrb[225].mxu1 }
0x1b43   :  { %v5543_v35 = vpop.f32.mrb[226].mxu1  ;;  %v9358_v5 = vld [vmem:[%s10304_s19 + $0xb0] sm:$0xff] }
0x1b44   :  { %v11880_v54 = vadd.f32 %v9352_v10, %v5595_v59  ;;  %v5596_v38 = vmul.f32 0.35355338, %v5543_v35  ;;  %v8400_v4 = vpop.f32.mrb[227].mxu1 }
0x1b45   :  { %v9359_v4 = vld [vmem:[%s10304_s19 + $0xb8] sm:$0xff] }
0x1b46   :  { %v11883_v45 = vadd.f32 %v9353_v23, %v5596_v38  ;;  %v5679_v30 = vsel %vm2250_vm6, %v11880_v54, -inf }
0x1b47   :  { %5680 = vmax.xlane.f32.xlu0 %v5679_v30 }
0x1b48   :  { %v5682_v56 = vsel %vm2250_vm6, %v11883_v45, -inf }
0x1b49   :  { %5683 = vmax.xlane.f32.xlu1 %v5682_v56  ;;  %v5548_v62 = vpop.f32.mrb[228].mxu1 }
0x1b4a   :  { %v5597_v16 = vmul.f32 0.35355338, %v5548_v62  ;;  %v8403_v15 = vpop.f32.mrb[229].mxu1 }
0x1b4b   :  { %v5551_v49 = vpop.f32.mrb[230].mxu1 }
0x1b4c   :  { %v11890_v28 = vadd.f32 %v9354_v27, %v5597_v16  ;;  %v5598_v9 = vmul.f32 0.35355338, %v5551_v49  ;;  %v8404_v21 = vpop.f32.mrb[231].mxu1 }
0x1b4e   :  { %v11893_v52 = vadd.f32 %v9355_v1, %v5598_v9  ;;  %v5685_v25 = vsel %vm2250_vm6, %v11890_v28, -inf }
0x1b4f   :  { %5686 = vmax.xlane.f32.xlu0 %v5685_v25 }
0x1b50   :  { %v5688_v46 = vsel %vm2250_vm6, %v11893_v52, -inf }
0x1b51   :  { %5689 = vmax.xlane.f32.xlu1 %v5688_v46  ;;  %v5556_v53 = vpop.f32.mrb[232].mxu1 }
0x1b52   :  { %v5599_v43 = vmul.f32 0.35355338, %v5556_v53  ;;  %v8407_v18 = vpop.f32.mrb[233].mxu1 }
0x1b53   :  { %v5559_v14 = vpop.f32.mrb[234].mxu1 }
0x1b54   :  { %v11900_v33 = vadd.f32 %v9356_v3, %v5599_v43  ;;  %v5600_v2 = vmul.f32 0.35355338, %v5559_v14  ;;  %v8408_v12 = vpop.f32.mrb[235].mxu1 }
0x1b56   :  { %v11903_v13 = vadd.f32 %v9357_v19, %v5600_v2  ;;  %v5691_v44 = vsel %vm2250_vm6, %v11900_v33, -inf }
0x1b57   :  { %5692 = vmax.xlane.f32.xlu0 %v5691_v44  ;;  %v9360_v44 = vld [vmem:[%s10304_s19 + $0xc0] sm:$0xff] }
0x1b58   :  { %v5694_v17 = vsel %vm2250_vm6, %v11903_v13, -inf }
0x1b59   :  { %5695 = vmax.xlane.f32.xlu1 %v5694_v17  ;;  %v5564_v50 = vpop.f32.mrb[236].mxu1 }
0x1b5a   :  { %v5601_v34 = vmul.f32 0.35355338, %v5564_v50  ;;  %v8411_v22 = vpop.f32.mrb[237].mxu1 }
0x1b5b   :  { %v5567_v59 = vpop.f32.mrb[238].mxu1 }
0x1b5c   :  { %v11910_v35 = vadd.f32 %v9358_v5, %v5601_v34  ;;  %v5602_v10 = vmul.f32 0.35355338, %v5567_v59  ;;  %v8412_v38 = vpop.f32.mrb[239].mxu1 }
0x1b5e   :  { %v11913_v23 = vadd.f32 %v9359_v4, %v5602_v10  ;;  %v5697_v30 = vsel %vm2250_vm6, %v11910_v35, -inf }
0x1b5f   :  { %5698 = vmax.xlane.f32.xlu0 %v5697_v30 }
0x1b60   :  { %v5700_v56 = vsel %vm2250_vm6, %v11913_v23, -inf }
0x1b61   :  { %5701 = vmax.xlane.f32.xlu1 %v5700_v56  ;;  %v5572_v62 = vpop.f32.mrb[240].mxu1 }
0x1b62   :  { %v8415_v16 = vpop.f32.mrb[241].mxu1  ;;  %v5603_v2 = vmul.f32 0.35355338, %v5572_v62 }
0x1b63   :  { %v5575_v15 = vpop.f32.mrb[242].mxu1 }
0x1b64   :  { %v8416_v49 = vpop.f32.mrb[243].mxu1 }
0x1b94   :  { %v5633_v27 = vpop.xlane.xlu0 %5632 }
0x1b95   :  { %v5709_v9 = vsub.f32 %v11800_v32, %v5633_v27  ;;  %v5604_v32 = vmul.f32 0.35355338, %v5575_v15 }
0x1b96   :  { %v5636_v21 = vpop.xlane.xlu1 %5635 }
0x1b97   :  { %v5735_v1 = vmul.f32 1.442695, %v5709_v9  ;;  %v5710_v25 = vsub.f32 %v11803_v57, %v5636_v21  ;;  %v11926_v57 = vadd.f32 %v9360_v44, %v5603_v2 }
0x1b99   :  { %9037 = vpow2.f32 %v5735_v1  ;;  %v5737_v46 = vmul.f32 1.442695, %v5710_v25  ;;  %v5703_v4 = vsel %vm2250_vm6, %v11926_v57, -inf }
0x1b9b   :  { %9039 = vpow2.f32 %v5737_v46 }
0x1b9c   :  { %v5639_v53 = vpop.xlane.xlu0 %5638 }
0x1b9d   :  { %v5711_v43 = vsub.f32 %v11810_v31, %v5639_v53 }
0x1b9e   :  { %v5642_v18 = vpop.xlane.xlu1 %5641 }
0x1b9f   :  { %v5739_v14 = vmul.f32 1.442695, %v5711_v43  ;;  %v5712_v3 = vsub.f32 %v11813_v48, %v5642_v18  ;;  %v9361_v48 = vld [vmem:[%s10304_s19 + $0xc8] sm:$0xff] }
0x1ba0   :  { %v11934_v22 = vadd.f32 %v9361_v48, %v5604_v32 }
0x1ba1   :  { %9041 = vpow2.f32 %v5739_v14  ;;  %v5741_v12 = vmul.f32 1.442695, %v5712_v3 }
0x1ba3   :  { %v11923_v19 = vpop.eup %9037  ;;  %9043 = vpow2.f32 %v5741_v12 }
0x1ba4   :  { %v5645_v17 = vpop.xlane.xlu0 %5644  ;;  %v5787_v50 = vsel %vm2250_vm6, %v11923_v19, 0.0 }
0x1ba5   :  { %v11930_v31 = vpop.eup %9039  ;;  %v5713_v34 = vsub.f32 %v11820_v41, %v5645_v17  ;;  %5788 = vadd.xlane.f32.xlu0 %v5787_v50  ;;  %v5706_v41 = vsel %vm2250_vm6, %v11934_v22, -inf }
0x1ba6   :  { %v5648_v59 = vpop.xlane.xlu1 %5647  ;;  %v5790_v5 = vsel %vm2250_vm6, %v11930_v31, 0.0 }
0x1ba7   :  { %v5743_v10 = vmul.f32 1.442695, %v5713_v34  ;;  %v5714_v38 = vsub.f32 %v11823_v51, %v5648_v59  ;;  %5791 = vadd.xlane.f32.xlu1 %v5790_v5 }
0x1ba9   :  { %9045 = vpow2.f32 %v5743_v10  ;;  %v5745_v30 = vmul.f32 1.442695, %v5714_v38  ;;  %5704 = vmax.xlane.f32.xlu0 %v5703_v4 }
0x1bab   :  { %v11943_v56 = vpop.eup %9041  ;;  %9047 = vpow2.f32 %v5745_v30  ;;  %5707 = vmax.xlane.f32.xlu1 %v5706_v41 }
0x1bac   :  { %v5651_v62 = vpop.xlane.xlu0 %5650  ;;  %v5793_v16 = vsel %vm2250_vm6, %v11943_v56, 0.0 }
0x1bad   :  { %v11947_v15 = vpop.eup %9043  ;;  %v5715_v51 = vsub.f32 %v11830_v55, %v5651_v62  ;;  %5794 = vadd.xlane.f32.xlu0 %v5793_v16 }
0x1bae   :  { %v5654_v49 = vpop.xlane.xlu1 %5653  ;;  %v5796_v27 = vsel %vm2250_vm6, %v11947_v15, 0.0 }
0x1baf   :  { %v5747_v9 = vmul.f32 1.442695, %v5715_v51  ;;  %v5716_v21 = vsub.f32 %v11833_v8, %v5654_v49  ;;  %5797 = vadd.xlane.f32.xlu1 %v5796_v27 }
0x1bb1   :  { %9049 = vpow2.f32 %v5747_v9  ;;  %v5749_v1 = vmul.f32 1.442695, %v5716_v21 }
0x1bb3   :  { %v11953_v25 = vpop.eup %9045  ;;  %9051 = vpow2.f32 %v5749_v1 }
0x1bb4   :  { %v5657_v46 = vpop.xlane.xlu0 %5656  ;;  %v5799_v53 = vsel %vm2250_vm6, %v11953_v25, 0.0 }
0x1bb5   :  { %v11957_v43 = vpop.eup %9047  ;;  %v5717_v55 = vsub.f32 %v11840_v40, %v5657_v46  ;;  %5800 = vadd.xlane.f32.xlu0 %v5799_v53 }
0x1bb6   :  { %v5660_v18 = vpop.xlane.xlu1 %5659  ;;  %v5802_v14 = vsel %vm2250_vm6, %v11957_v43, 0.0 }
0x1bb7   :  { %v5751_v8 = vmul.f32 1.442695, %v5717_v55  ;;  %v5718_v3 = vsub.f32 %v11843_v11, %v5660_v18  ;;  %5803 = vadd.xlane.f32.xlu1 %v5802_v14 }
0x1bb9   :  { %9053 = vpow2.f32 %v5751_v8  ;;  %v5753_v2 = vmul.f32 1.442695, %v5718_v3 }
0x1bbb   :  { %v11963_v12 = vpop.eup %9049  ;;  %9055 = vpow2.f32 %v5753_v2 }
0x1bbc   :  { %v5663_v32 = vpop.xlane.xlu0 %5662  ;;  %v5805_v44 = vsel %vm2250_vm6, %v11963_v12, 0.0 }
0x1bbd   :  { %v11967_v17 = vpop.eup %9051  ;;  %v5719_v40 = vsub.f32 %v11850_v0, %v5663_v32  ;;  %5806 = vadd.xlane.f32.xlu0 %v5805_v44 }
0x1bbe   :  { %v5666_v50 = vpop.xlane.xlu1 %5665  ;;  %v5808_v34 = vsel %vm2250_vm6, %v11967_v17, 0.0 }
0x1bbf   :  { %v5755_v11 = vmul.f32 1.442695, %v5719_v40  ;;  %v5720_v48 = vsub.f32 %v11853_v58, %v5666_v50  ;;  %5809 = vadd.xlane.f32.xlu1 %v5808_v34 }
0x1bc1   :  { %9057 = vpow2.f32 %v5755_v11  ;;  %v5757_v59 = vmul.f32 1.442695, %v5720_v48 }
0x1bc3   :  { %v11973_v5 = vpop.eup %9053  ;;  %9059 = vpow2.f32 %v5757_v59 }
0x1bc4   :  { %v5669_v10 = vpop.xlane.xlu0 %5668  ;;  %v5811_v38 = vsel %vm2250_vm6, %v11973_v5, 0.0 }
0x1bc5   :  { %v11977_v4 = vpop.eup %9055  ;;  %v5721_v0 = vsub.f32 %v11860_v63, %v5669_v10  ;;  %5812 = vadd.xlane.f32.xlu0 %v5811_v38 }
0x1bc6   :  { %v5672_v30 = vpop.xlane.xlu1 %5671  ;;  %v5814_v41 = vsel %vm2250_vm6, %v11977_v4, 0.0 }
0x1bc7   :  { %v5759_v58 = vmul.f32 1.442695, %v5721_v0  ;;  %v5722_v62 = vsub.f32 %v11863_v39, %v5672_v30  ;;  %5815 = vadd.xlane.f32.xlu1 %v5814_v41 }
0x1bc9   :  { %9061 = vpow2.f32 %v5759_v58  ;;  %v5761_v16 = vmul.f32 1.442695, %v5722_v62 }
0x1bcb   :  { %v11983_v51 = vpop.eup %9057  ;;  %9063 = vpow2.f32 %v5761_v16 }
0x1bcc   :  { %v5675_v49 = vpop.xlane.xlu0 %5674  ;;  %v5817_v27 = vsel %vm2250_vm6, %v11983_v51, 0.0 }
0x1bcd   :  { %v11987_v9 = vpop.eup %9059  ;;  %v5723_v63 = vsub.f32 %v11870_v24, %v5675_v49  ;;  %5818 = vadd.xlane.f32.xlu0 %v5817_v27 }
0x1bce   :  { %v5678_v21 = vpop.xlane.xlu1 %5677  ;;  %v5820_v1 = vsel %vm2250_vm6, %v11987_v9, 0.0 }
0x1bcf   :  { %v5763_v39 = vmul.f32 1.442695, %v5723_v63  ;;  %v5724_v46 = vsub.f32 %v11873_v47, %v5678_v21  ;;  %5821 = vadd.xlane.f32.xlu1 %v5820_v1 }
0x1bd1   :  { %9065 = vpow2.f32 %v5763_v39  ;;  %v5765_v53 = vmul.f32 1.442695, %v5724_v46 }
0x1bd3   :  { %v11993_v55 = vpop.eup %9061  ;;  %9067 = vpow2.f32 %v5765_v53 }
0x1bd4   :  { %v5681_v18 = vpop.xlane.xlu0 %5680  ;;  %v5823_v14 = vsel %vm2250_vm6, %v11993_v55, 0.0 }
0x1bd5   :  { %v11997_v8 = vpop.eup %9063  ;;  %v5725_v24 = vsub.f32 %v11880_v54, %v5681_v18  ;;  %5824 = vadd.xlane.f32.xlu0 %v5823_v14 }
0x1bd6   :  { %v5684_v3 = vpop.xlane.xlu1 %5683  ;;  %v5826_v2 = vsel %vm2250_vm6, %v11997_v8, 0.0 }
0x1bd7   :  { %v5767_v47 = vmul.f32 1.442695, %v5725_v24  ;;  %v5726_v32 = vsub.f32 %v11883_v45, %v5684_v3  ;;  %5827 = vadd.xlane.f32.xlu1 %v5826_v2 }
0x1bd9   :  { %9069 = vpow2.f32 %v5767_v47  ;;  %v5769_v44 = vmul.f32 1.442695, %v5726_v32 }
0x1bdb   :  { %v12003_v40 = vpop.eup %9065  ;;  %9071 = vpow2.f32 %v5769_v44 }
0x1bdc   :  { %v5687_v50 = vpop.xlane.xlu0 %5686  ;;  %v5829_v34 = vsel %vm2250_vm6, %v12003_v40, 0.0 }
0x1bdd   :  { %v12007_v11 = vpop.eup %9067  ;;  %v5727_v54 = vsub.f32 %v11890_v28, %v5687_v50  ;;  %5830 = vadd.xlane.f32.xlu0 %v5829_v34 }
0x1bde   :  { %v5690_v48 = vpop.xlane.xlu1 %5689  ;;  %v5832_v59 = vsel %vm2250_vm6, %v12007_v11, 0.0 }
0x1bdf   :  { %v5771_v45 = vmul.f32 1.442695, %v5727_v54  ;;  %v5728_v10 = vsub.f32 %v11893_v52, %v5690_v48  ;;  %5833 = vadd.xlane.f32.xlu1 %v5832_v59 }
0x1be1   :  { %9073 = vpow2.f32 %v5771_v45  ;;  %v5773_v38 = vmul.f32 1.442695, %v5728_v10 }
0x1be3   :  { %v12013_v0 = vpop.eup %9069  ;;  %9075 = vpow2.f32 %v5773_v38 }
0x1be4   :  { %v5693_v30 = vpop.xlane.xlu0 %5692  ;;  %v5835_v41 = vsel %vm2250_vm6, %v12013_v0, 0.0 }
0x1be5   :  { %v12017_v58 = vpop.eup %9071  ;;  %v5729_v28 = vsub.f32 %v11900_v33, %v5693_v30  ;;  %5836 = vadd.xlane.f32.xlu0 %v5835_v41 }
0x1be6   :  { %v5696_v62 = vpop.xlane.xlu1 %5695  ;;  %v5838_v16 = vsel %vm2250_vm6, %v12017_v58, 0.0 }
0x1be7   :  { %v5775_v52 = vmul.f32 1.442695, %v5729_v28  ;;  %v5730_v49 = vsub.f32 %v11903_v13, %v5696_v62  ;;  %5839 = vadd.xlane.f32.xlu1 %v5838_v16 }
0x1be9   :  { %9077 = vpow2.f32 %v5775_v52  ;;  %v5777_v27 = vmul.f32 1.442695, %v5730_v49 }
0x1beb   :  { %v12023_v63 = vpop.eup %9073  ;;  %9079 = vpow2.f32 %v5777_v27 }
0x1bec   :  { %v5699_v21 = vpop.xlane.xlu0 %5698  ;;  %v5841_v1 = vsel %vm2250_vm6, %v12023_v63, 0.0 }
0x1bed   :  { %v12027_v39 = vpop.eup %9075  ;;  %v5731_v33 = vsub.f32 %v11910_v35, %v5699_v21  ;;  %5842 = vadd.xlane.f32.xlu0 %v5841_v1 }
0x1bee   :  { %v5702_v46 = vpop.xlane.xlu1 %5701  ;;  %v5844_v53 = vsel %vm2250_vm6, %v12027_v39, 0.0 }
0x1bef   :  { %v5779_v13 = vmul.f32 1.442695, %v5731_v33  ;;  %v5732_v18 = vsub.f32 %v11913_v23, %v5702_v46  ;;  %5845 = vadd.xlane.f32.xlu1 %v5844_v53 }
0x1bf1   :  { %9081 = vpow2.f32 %v5779_v13  ;;  %v5781_v14 = vmul.f32 1.442695, %v5732_v18 }
0x1bf3   :  { %v12033_v24 = vpop.eup %9077  ;;  %9083 = vpow2.f32 %v5781_v14 }
0x1bf4   :  { %v5847_v3 = vsel %vm2250_vm6, %v12033_v24, 0.0 }
0x1bf5   :  { %v12037_v2 = vpop.eup %9079  ;;  %5848 = vadd.xlane.f32.xlu0 %v5847_v3 }
0x1bf6   :  { %v5850_v35 = vsel %vm2250_vm6, %v12037_v2, 0.0 }
0x1bf7   :  { %5851 = vadd.xlane.f32.xlu1 %v5850_v35 }
0x1bfb   :  { %v12041_v47 = vpop.eup %9081 }
0x1bfc   :  { %v5853_v23 = vsel %vm2250_vm6, %v12041_v47, 0.0 }
0x1bfd   :  { %v12045_v32 = vpop.eup %9083  ;;  %5854 = vadd.xlane.f32.xlu0 %v5853_v23 }
0x1bfe   :  { %v5856_v44 = vsel %vm2250_vm6, %v12045_v32, 0.0 }
0x1bff   :  { %5857 = vadd.xlane.f32.xlu1 %v5856_v44 }
0x1c32   :  { %v5789_v50 = vpop.xlane.xlu0 %5788 }
0x1c33   :  { %9085 = vrcp.f32 %v5789_v50 }
0x1c34   :  { %v5792_v34 = vpop.xlane.xlu1 %5791 }
0x1c35   :  { %9087 = vrcp.f32 %v5792_v34 }
0x1c36   :  { %v5705_v54 = vpop.xlane.xlu0 %5704 }
0x1c37   :  { %v5733_v48 = vsub.f32 %v11926_v57, %v5705_v54 }
0x1c38   :  { %v5708_v59 = vpop.xlane.xlu1 %5707 }
0x1c39   :  { %v5783_v45 = vmul.f32 1.442695, %v5733_v48  ;;  %v5734_v10 = vsub.f32 %v11934_v22, %v5708_v59 }
0x1c3a   :  { %v5795_v38 = vpop.xlane.xlu0 %5794 }
0x1c3b   :  { %9089 = vpow2.f32 %v5783_v45  ;;  %v5785_v30 = vmul.f32 1.442695, %v5734_v10 }
0x1c3c   :  { %9091 = vrcp.f32 %v5795_v38  ;;  %v5798_v41 = vpop.xlane.xlu1 %5797 }
0x1c3d   :  { %v9086_v28 = vpop.eup %9085  ;;  %9093 = vpow2.f32 %v5785_v30 }
0x1c3e   :  { %9095 = vrcp.f32 %v5798_v41  ;;  %v5866_v16 = vmul.f32 %v9086_v28, %v11923_v19 }
0x1c3f   :  { %v9088_v62 = vpop.eup %9087 }
0x1c40   :  { %v5868_v52 = vmul.f32 %v9088_v62, %v11930_v31 }
0x1c42   :  { %v5917_v49 = vpack.c.bf16 %v5868_v52, %v5866_v16  ;;  %v5801_v27 = vpop.xlane.xlu0 %5800 }
0x1c43   :  { %9097 = vrcp.f32 %v5801_v27 }
0x1c44   :  { %v5804_v57 = vpop.xlane.xlu1 %5803  ;;  %8426 = vmatmul.mubr.msk.bf16.vlgmr.msra.gmra.mrb[200].mxu0 %vm2250_vm6, %v5917_v49 }
0x1c45   :  { %v12054_v22 = vpop.eup %9089  ;;  %9099 = vrcp.f32 %v5804_v57  ;;  %8429 = vmatprep.mubr.msk.bf16.mxu0 %vm9392_vm1, %v9391_v42 }
0x1c46   :  { %v9092_v21 = vpop.eup %9091  ;;  %v5859_v1 = vsel %vm2250_vm6, %v12054_v22, 0.0 }
0x1c47   :  { %v12060_v33 = vpop.eup %9093  ;;  %5860 = vadd.xlane.f32.xlu0 %v5859_v1  ;;  %v5870_v46 = vmul.f32 %v9092_v21, %v11943_v56 }
0x1c48   :  { %v9096_v19 = vpop.eup %9095  ;;  %v5862_v31 = vsel %vm2250_vm6, %v12060_v33, 0.0 }
0x1c49   :  { %5863 = vadd.xlane.f32.xlu1 %v5862_v31  ;;  %v5872_v53 = vmul.f32 %v9096_v19, %v11947_v15 }
0x1c4a   :  { %v5807_v13 = vpop.xlane.xlu0 %5806 }
0x1c4b   :  { %9101 = vrcp.f32 %v5807_v13  ;;  %v5918_v18 = vpack.c.bf16 %v5872_v53, %v5870_v46 }
0x1c4c   :  { %v5810_v14 = vpop.xlane.xlu1 %5809 }
0x1c4d   :  { %v9098_v3 = vpop.eup %9097  ;;  %9103 = vrcp.f32 %v5810_v14  ;;  %8430 = vmatmul.mubr.msk.bf16.gmra.mrb[204].mxu0 %vm2250_vm6, %v5918_v18 }
0x1c4e   :  { %8433 = vmatprep.mubr.msk.bf16.mxu0 %vm9392_vm1, %v9391_v42  ;;  %v5874_v23 = vmul.f32 %v9098_v3, %v11953_v25 }
0x1c4f   :  { %v9100_v35 = vpop.eup %9099 }
0x1c50   :  { %v5876_v44 = vmul.f32 %v9100_v35, %v11957_v43 }
0x1c52   :  { %v5813_v50 = vpop.xlane.xlu0 %5812  ;;  %v5919_v56 = vpack.c.bf16 %v5876_v44, %v5874_v23 }
0x1c53   :  { %9105 = vrcp.f32 %v5813_v50 }
0x1c54   :  { %v5816_v15 = vpop.xlane.xlu1 %5815 }
0x1c55   :  { %v9102_v34 = vpop.eup %9101  ;;  %9107 = vrcp.f32 %v5816_v15  ;;  %8434 = vmatmul.mubr.msk.bf16.gmra.mrb[208].mxu0 %vm2250_vm6, %v5919_v56 }
0x1c56   :  { %8437 = vmatprep.mubr.msk.bf16.mxu0 %vm9392_vm1, %v9391_v42  ;;  %v5878_v48 = vmul.f32 %v9102_v34, %v11963_v12 }
0x1c57   :  { %v9104_v54 = vpop.eup %9103 }
0x1c58   :  { %v5880_v59 = vmul.f32 %v9104_v54, %v11967_v17 }
0x1c5a   :  { %v5819_v45 = vpop.xlane.xlu0 %5818  ;;  %v5920_v25 = vpack.c.bf16 %v5880_v59, %v5878_v48 }
0x1c5b   :  { %9109 = vrcp.f32 %v5819_v45 }
0x1c5c   :  { %v5822_v43 = vpop.xlane.xlu1 %5821 }
0x1c5d   :  { %v9106_v10 = vpop.eup %9105  ;;  %9111 = vrcp.f32 %v5822_v43  ;;  %8438 = vmatmul.mubr.msk.bf16.gmra.mrb[212].mxu0 %vm2250_vm6, %v5920_v25 }
0x1c5e   :  { %8441 = vmatprep.mubr.msk.bf16.mxu0 %vm9392_vm1, %v9391_v42  ;;  %v5882_v30 = vmul.f32 %v9106_v10, %v11973_v5 }
0x1c5f   :  { %v9108_v38 = vpop.eup %9107 }
0x1c60   :  { %v5884_v41 = vmul.f32 %v9108_v38, %v11977_v4 }
0x1c62   :  { %v5825_v28 = vpop.xlane.xlu0 %5824  ;;  %v5921_v12 = vpack.c.bf16 %v5884_v41, %v5882_v30 }
0x1c63   :  { %9113 = vrcp.f32 %v5825_v28 }
0x1c64   :  { %v5828_v17 = vpop.xlane.xlu1 %5827 }
0x1c65   :  { %v9110_v62 = vpop.eup %9109  ;;  %9115 = vrcp.f32 %v5828_v17  ;;  %8442 = vmatmul.mubr.msk.bf16.gmra.mrb[216].mxu0 %vm2250_vm6, %v5921_v12 }
0x1c66   :  { %8445 = vmatprep.mubr.msk.bf16.mxu0 %vm9392_vm1, %v9391_v42  ;;  %v5886_v52 = vmul.f32 %v9110_v62, %v11983_v51 }
0x1c67   :  { %v9112_v16 = vpop.eup %9111 }
0x1c68   :  { %v5888_v49 = vmul.f32 %v9112_v16, %v11987_v9  ;;  %v8612_v16 = vld [vmem:[%s10629_s28 + $0x18] sm:$0xff]  }
0x1c6a   :  { %v5831_v27 = vpop.xlane.xlu0 %5830  ;;  %v5922_v5 = vpack.c.bf16 %v5888_v49, %v5886_v52 }
0x1c6b   :  { %9117 = vrcp.f32 %v5831_v27 }
0x1c6c   :  { %v5834_v4 = vpop.xlane.xlu1 %5833 }
0x1c6d   :  { %v9114_v57 = vpop.eup %9113  ;;  %9119 = vrcp.f32 %v5834_v4  ;;  %8446 = vmatmul.mubr.msk.bf16.gmra.mrb[220].mxu0 %vm2250_vm6, %v5922_v5 }
0x1c6e   :  { %8449 = vmatprep.mubr.msk.bf16.mxu0 %vm9392_vm1, %v9391_v42  ;;  %v5890_v1 = vmul.f32 %v9114_v57, %v11993_v55 }
0x1c6f   :  { %v9116_v21 = vpop.eup %9115 }
0x1c70   :  { %v5892_v19 = vmul.f32 %v9116_v21, %v11997_v8 }
0x1c72   :  { %v5837_v31 = vpop.xlane.xlu0 %5836  ;;  %v5923_v51 = vpack.c.bf16 %v5892_v19, %v5890_v1 }
0x1c73   :  { %9121 = vrcp.f32 %v5837_v31 }
0x1c74   :  { %v5840_v9 = vpop.xlane.xlu1 %5839 }
0x1c75   :  { %v9118_v46 = vpop.eup %9117  ;;  %9123 = vrcp.f32 %v5840_v9  ;;  %8450 = vmatmul.mubr.msk.bf16.gmra.mrb[224].mxu0 %vm2250_vm6, %v5923_v51  ;;  %v9362_v51 = vld [vmem:[%s10140_s8 + $0x30] sm:$0xff] }
0x1c76   :  { %8453 = vmatprep.mubr.msk.bf16.mxu0 %vm9392_vm1, %v9391_v42  ;;  %v5894_v13 = vmul.f32 %v9118_v46, %v12003_v40 }
0x1c77   :  { %v9120_v53 = vpop.eup %9119 }
0x1c78   :  { %v5896_v18 = vmul.f32 %v9120_v53, %v12007_v11 }
0x1c7a   :  { %v5843_v14 = vpop.xlane.xlu0 %5842  ;;  %v5924_v55 = vpack.c.bf16 %v5896_v18, %v5894_v13  ;;  %v9363_v13 = vld [vmem:[%s10140_s8 + $0x38] sm:$0xff] }
0x1c7b   :  { %9125 = vrcp.f32 %v5843_v14 }
0x1c7c   :  { %v5846_v8 = vpop.xlane.xlu1 %5845 }
0x1c7d   :  { %v9122_v3 = vpop.eup %9121  ;;  %9127 = vrcp.f32 %v5846_v8  ;;  %8454 = vmatmul.mubr.msk.bf16.gmra.mrb[228].mxu0 %vm2250_vm6, %v5924_v55 }
0x1c7e   :  { %8457 = vmatprep.mubr.msk.bf16.mxu0 %vm9392_vm1, %v9391_v42  ;;  %v5898_v23 = vmul.f32 %v9122_v3, %v12013_v0  ;;  %v9364_v3 = vld [vmem:[%s10140_s8] sm:$0xff] }
0x1c7f   :  { %v9124_v35 = vpop.eup %9123 }
0x1c80   :  { %v5900_v44 = vmul.f32 %v9124_v35, %v12017_v58 }
0x1c82   :  { %v5849_v50 = vpop.xlane.xlu0 %5848  ;;  %v5925_v40 = vpack.c.bf16 %v5900_v44, %v5898_v23 }
0x1c83   :  { %9129 = vrcp.f32 %v5849_v50 }
0x1c84   :  { %v5852_v11 = vpop.xlane.xlu1 %5851 }
0x1c85   :  { %v9126_v56 = vpop.eup %9125  ;;  %9131 = vrcp.f32 %v5852_v11  ;;  %8458 = vmatmul.mubr.msk.bf16.gmra.mrb[232].mxu0 %vm2250_vm6, %v5925_v40  ;;  %v9365_v40 = vld [vmem:[%s10140_s8 + $0x40] sm:$0xff] }
0x1c86   :  { %8461 = vmatprep.mubr.msk.bf16.mxu0 %vm9392_vm1, %v9391_v42  ;;  %v5902_v34 = vmul.f32 %v9126_v56, %v12023_v63 }
0x1c87   :  { %v9128_v15 = vpop.eup %9127 }
0x1c88   :  { %v5904_v54 = vmul.f32 %v9128_v15, %v12027_v39 }
0x1c8a   :  { %v5855_v48 = vpop.xlane.xlu0 %5854  ;;  %v5926_v0 = vpack.c.bf16 %v5904_v54, %v5902_v34  ;;  %v9366_v54 = vld [vmem:[%s10140_s8 + $0x48] sm:$0xff] }
0x1c8b   :  { %9133 = vrcp.f32 %v5855_v48 }
0x1c8c   :  { %v5858_v58 = vpop.xlane.xlu1 %5857 }
0x1c8d   :  { %v9130_v59 = vpop.eup %9129  ;;  %9135 = vrcp.f32 %v5858_v58  ;;  %8462 = vmatmul.mubr.msk.bf16.gmra.mrb[236].mxu0 %vm2250_vm6, %v5926_v0  ;;  %v9367_v58 = vld [vmem:[%s10140_s8 + $0x8] sm:$0xff] }
0x1c8e   :  { %8465 = vmatprep.mubr.msk.bf16.mxu0 %vm9392_vm1, %v9391_v42  ;;  %v5906_v25 = vmul.f32 %v9130_v59, %v12033_v24 }
0x1c8f   :  { %v9132_v45 = vpop.eup %9131 }
0x1c90   :  { %v5908_v43 = vmul.f32 %v9132_v45, %v12037_v2  ;;  %v8611_v2 = vld [vmem:[%s10629_s28 + $0x10] sm:$0xff]  }
0x1c91   :  { %8477 = vmatprep.subr.bf16.mxu0 %v8611_v2 }
0x1c92   :  { %v5927_v63 = vpack.c.bf16 %v5908_v43, %v5906_v25  ;;  %8478 = vmatpush3.bf16.msra.mxu0 %v8611_v2  ;;  %v9368_v43 = vld [vmem:[%s10140_s8 + $0x10] sm:$0xff] }
0x1c93   :  { %8479 = vmatprep.subr.bf16.mxu0 %v8612_v16 }
0x1c95   :  { %v9134_v10 = vpop.eup %9133  ;;  %8466 = vmatmul.mubr.msk.bf16.gmra.mrb[240].mxu0 %vm2250_vm6, %v5927_v63 }
0x1c96   :  { %8469 = vmatprep.mubr.msk.bf16.mxu0 %vm9392_vm1, %v9391_v42  ;;  %v5910_v38 = vmul.f32 %v9134_v10, %v12041_v47  ;;  %8480 = vmatpush3.bf16.msra.mxu0 %v8612_v16 }
0x1c97   :  { %v9136_v39 = vpop.eup %9135 }
0x1c98   :  { %v5912_v30 = vmul.f32 %v9136_v39, %v12045_v32 }
0x1c9a   :  { %v5928_v41 = vpack.c.bf16 %v5912_v30, %v5910_v38 }
0x1c9d   :  { %8470 = vmatmul.mubr.msk.bf16.gmra.mrb[244].mxu0 %vm2250_vm6, %v5928_v41  ;;  %v9369_v41 = vld [vmem:[%s10140_s8 + $0x50] sm:$0xff] }
0x1c9e   :  { %8473 = vmatprep.mubr.msk.bf16.mxu0 %vm9392_vm1, %v9391_v42  ;;  %vm6328_vm1 = vcmask 1045504  }
0x1cd4   :  { %v5861_v24 = vpop.xlane.xlu0 %5860 }
0x1cd5   :  { %9137 = vrcp.f32 %v5861_v24 }
0x1cd6   :  { %v5864_v28 = vpop.xlane.xlu1 %5863 }
0x1cd7   :  { %9139 = vrcp.f32 %v5864_v28 }
0x1cdf   :  { %v9138_v12 = vpop.eup %9137 }
0x1ce0   :  { %v5914_v47 = vmul.f32 %v9138_v12, %v12054_v22 }
0x1ce1   :  { %v9140_v17 = vpop.eup %9139 }
0x1ce2   :  { %v5916_v32 = vmul.f32 %v9140_v17, %v12060_v33  ;;  %v9370_v17 = vld [vmem:[%s10140_s8 + $0x58] sm:$0xff] }
0x1ce4   :  { %v5929_v62 = vpack.c.bf16 %v5916_v32, %v5914_v47 }
0x1ce6   :  { %8474 = vmatmul.mubr.msk.bf16.gmra.mrb[248].mxu0 %vm2250_vm6, %v5929_v62  ;;  %v9371_v62 = vld [vmem:[%s10140_s8 + $0x18] sm:$0xff] }
0x1d17   :  { %v6006_v42 = vpop.f32.mrb[200].mxu0 }
0x1d18   :  { %v8427_v52 = vpop.f32.mrb[201].mxu0  ;;  %v6109_v35 = vmul.f32 %v9364_v3, %v6006_v42 }
0x1d19   :  { %v6009_v49 = vpop.f32.mrb[202].mxu0 }
0x1d1a   :  { %v8428_v27 = vpop.f32.mrb[203].mxu0  ;;  %v6110_v59 = vmul.f32 %v9367_v58, %v6009_v49  ;;  %v9372_v49 = vld [vmem:[%s10140_s8 + $0x20] sm:$0xff] }
0x1d20   :  { %v6014_v5 = vpop.f32.mrb[204].mxu0 }
0x1d21   :  { %v8431_v4 = vpop.f32.mrb[205].mxu0  ;;  %v6111_v63 = vmul.f32 %v9368_v43, %v6014_v5 }
0x1d22   :  { %v6017_v57 = vpop.f32.mrb[206].mxu0 }
0x1d23   :  { %v8432_v21 = vpop.f32.mrb[207].mxu0  ;;  %v6112_v16 = vmul.f32 %v9371_v62, %v6017_v57  ;;  %v9382_v62 = vld [vmem:[%s10140_s8 + $0xa0] sm:$0xff] }
0x1d28   :  { %v6022_v22 = vpop.f32.mrb[208].mxu0 }
0x1d29   :  { %v8435_v1 = vpop.f32.mrb[209].mxu0  ;;  %v6113_v27 = vmul.f32 %v9372_v49, %v6022_v22 }
0x1d2a   :  { %v6025_v33 = vpop.f32.mrb[210].mxu0 }
0x1d2b   :  { %v8436_v19 = vpop.f32.mrb[211].mxu0 }
0x1d2c   :  { %v9373_v19 = vld [vmem:[%s10140_s8 + $0x60] sm:$0xff] }
0x1d30   :  { %v6030_v31 = vpop.f32.mrb[212].mxu0 }
0x1d31   :  { %v6115_v9 = vmul.f32 %v9362_v51, %v6030_v31  ;;  %v8439_v46 = vpop.f32.mrb[213].mxu0 }
0x1d32   :  { %v6033_v53 = vpop.f32.mrb[214].mxu0 }
0x1d33   :  { %v6116_v18 = vmul.f32 %v9363_v13, %v6033_v53  ;;  %v8440_v14 = vpop.f32.mrb[215].mxu0  ;;  %v6149_v55 = vrot.slane %v6115_v9, 4  ;;  %v9374_v13 = vld [vmem:[%s10140_s8 + $0x68] sm:$0xff] }
0x1d34   :  { %v9375_v14 = vld [vmem:[%s10140_s8 + $0x28] sm:$0xff] }
0x1d35   :  { %v6150_v8 = vrot.slane %v6116_v18, 4 }
0x1d37   :  { %v6151_v23 = vsel %vm1534_vm4, %v6149_v55, %v6150_v8  ;;  %v6114_v55 = vmul.f32 %v9375_v14, %v6025_v33  ;;  %v9378_v33 = vld [vmem:[%s10140_s8 + $0x80] sm:$0xff] }
0x1d38   :  { %v6038_v44 = vpop.f32.mrb[216].mxu0  ;;  %v6169_v50 = vadd.f32 %v6151_v23, %v6109_v35 }
0x1d39   :  { %v6117_v11 = vmul.f32 %v9365_v40, %v6038_v44  ;;  %v8443_v56 = vpop.f32.mrb[217].mxu0  ;;  %v9376_v44 = vld [vmem:[%s10140_s8 + $0x70] sm:$0xff] }
0x1d3a   :  { %v6041_v15 = vpop.f32.mrb[218].mxu0 }
0x1d3b   :  { %v6152_v34 = vrot.slane %v6117_v11, 4  ;;  %v6118_v48 = vmul.f32 %v9366_v54, %v6041_v15  ;;  %v8444_v0 = vpop.f32.mrb[219].mxu0 }
0x1d3d   :  { %v6154_v45 = vrot.slane %v6118_v48, 4  ;;  %v6153_v25 = vsel %vm1534_vm4, %v6150_v8, %v6152_v34 }
0x1d3e   :  { %v6170_v10 = vadd.f32 %v6153_v25, %v6110_v59  ;;  %v9379_v25 = vld [vmem:[%s10140_s8 + $0x88] sm:$0xff] }
0x1d3f   :  { %v6155_v39 = vsel %vm1534_vm4, %v6152_v34, %v6154_v45  ;;  %v9377_v34 = vld [vmem:[%s10140_s8 + $0x78] sm:$0xff] }
0x1d40   :  { %v6046_v38 = vpop.f32.mrb[220].mxu0  ;;  %v6171_v30 = vadd.f32 %v6155_v39, %v6111_v63 }
0x1d41   :  { %v6119_v24 = vmul.f32 %v9369_v41, %v6046_v38  ;;  %v8447_v2 = vpop.f32.mrb[221].mxu0  ;;  %v9380_v41 = vld [vmem:[%s10140_s8 + $0x90] sm:$0xff] }
0x1d42   :  { %v6049_v28 = vpop.f32.mrb[222].mxu0 }
0x1d43   :  { %v6156_v12 = vrot.slane %v6119_v24, 4  ;;  %v6120_v47 = vmul.f32 %v9370_v17, %v6049_v28  ;;  %v8448_v32 = vpop.f32.mrb[223].mxu0 }
0x1d45   :  { %v6158_v42 = vrot.slane %v6120_v47, 4  ;;  %v6157_v52 = vsel %vm1534_vm4, %v6154_v45, %v6156_v12 }
0x1d46   :  { %v6172_v5 = vadd.f32 %v6157_v52, %v6112_v16 }
0x1d47   :  { %v6159_v4 = vsel %vm1534_vm4, %v6156_v12, %v6158_v42 }
0x1d48   :  { %v6054_v21 = vpop.f32.mrb[224].mxu0  ;;  %v6173_v1 = vadd.f32 %v6159_v4, %v6113_v27 }
0x1d49   :  { %v6121_v31 = vmul.f32 %v9373_v19, %v6054_v21  ;;  %v8451_v51 = vpop.f32.mrb[225].mxu0 }
0x1d4a   :  { %v6057_v46 = vpop.f32.mrb[226].mxu0 }
0x1d4b   :  { %v6160_v53 = vrot.slane %v6121_v31, 4  ;;  %v6122_v57 = vmul.f32 %v9374_v13, %v6057_v46  ;;  %v8452_v18 = vpop.f32.mrb[227].mxu0  ;;  %v9384_v13 = vld [vmem:[%s10140_s8 + $0xb0] sm:$0xff] }
0x1d4d   :  { %v6175_v8 = vadd.f32 %v6160_v53, %v6115_v9  ;;  %v6176_v22 = vadd.f32 %v6169_v50, %v6122_v57  ;;  %v6161_v3 = vsel %vm1534_vm4, %v6158_v42, %v6160_v53 }
0x1d4e   :  { %v6174_v35 = vadd.f32 %v6161_v3, %v6114_v55  ;;  %v9385_v3 = vld [vmem:[%s10140_s8 + $0xb8] sm:$0xff] }
0x1d50   :  { %v6062_v23 = vpop.f32.mrb[228].mxu0 }
0x1d51   :  { %v6123_v40 = vmul.f32 %v9376_v44, %v6062_v23  ;;  %v8455_v11 = vpop.f32.mrb[229].mxu0 }
0x1d52   :  { %v6065_v56 = vpop.f32.mrb[230].mxu0 }
0x1d53   :  { %v6177_v15 = vadd.f32 %v6170_v10, %v6123_v40  ;;  %v6124_v54 = vmul.f32 %v9377_v34, %v6065_v56  ;;  %v8456_v48 = vpop.f32.mrb[231].mxu0 }
0x1d55   :  { %v6178_v0 = vadd.f32 %v6171_v30, %v6124_v54  ;;  %v9381_v30 = vld [vmem:[%s10140_s8 + $0x98] sm:$0xff]  ;;  %v9386_v54 = vld [vmem:[%s10140_s8 + $0xc0] sm:$0xff] }
0x1d58   :  { %v6070_v58 = vpop.f32.mrb[232].mxu0 }
0x1d59   :  { %v6125_v9 = vmul.f32 %v9378_v33, %v6070_v58  ;;  %v8459_v50 = vpop.f32.mrb[233].mxu0 }
0x1d5a   :  { %v6073_v59 = vpop.f32.mrb[234].mxu0  ;;  %v9387_v50 = vld [vmem:[%s10140_s8 + $0xc8] sm:$0xff] }
0x1d5b   :  { %v6179_v45 = vadd.f32 %v6172_v5, %v6125_v9  ;;  %v6126_v43 = vmul.f32 %v9379_v25, %v6073_v59  ;;  %v8460_v63 = vpop.f32.mrb[235].mxu0  ;;  %v9383_v5 = vld [vmem:[%s10140_s8 + $0xa8] sm:$0xff]  ;;  %s9423_s8 = smov 32  }
0x1d5d   :  { %v6180_v39 = vadd.f32 %v6173_v1, %v6126_v43 }
0x1d60   :  { %v6078_v38 = vpop.f32.mrb[236].mxu0 }
0x1d61   :  { %v6127_v10 = vmul.f32 %v9380_v41, %v6078_v38  ;;  %v8463_v24 = vpop.f32.mrb[237].mxu0 }
0x1d62   :  { %v6081_v2 = vpop.f32.mrb[238].mxu0 }
0x1d63   :  { %v6181_v28 = vadd.f32 %v6174_v35, %v6127_v10  ;;  %v6128_v12 = vmul.f32 %v9381_v30, %v6081_v2  ;;  %v8464_v17 = vpop.f32.mrb[239].mxu0  ;;  %v7482_v2 = vld [vmem:[%s10681_s7 + $0x1] ss:$0 sm:$0xff]  ;;  %s7215_s7 = sld [smem:[%s12364_s0 + %s9423_s8]]  }
0x1d65   :  { %v6182_v47 = vadd.f32 %v6175_v8, %v6128_v12  ;;  %v6190_v49 = vrot.slane %v6128_v12, 4 }
0x1d68   :  { %v6086_v32 = vpop.f32.mrb[240].mxu0 }
0x1d69   :  { %v6129_v16 = vmul.f32 %v9382_v62, %v6086_v32  ;;  %v8467_v42 = vpop.f32.mrb[241].mxu0 }
0x1d6a   :  { %v6089_v52 = vpop.f32.mrb[242].mxu0 }
0x1d6b   :  { %v6191_v27 = vrot.slane %v6129_v16, 4  ;;  %v6130_v4 = vmul.f32 %v9383_v5, %v6089_v52  ;;  %v8468_v21 = vpop.f32.mrb[243].mxu0 }
0x1d6d   :  { %v6192_v1 = vsel %vm1534_vm4, %v6190_v49, %v6191_v27  ;;  %v6193_v19 = vrot.slane %v6130_v4, 4 }
0x1d6e   :  { %v6210_v31 = vadd.f32 %v6192_v1, %v6176_v22 }
0x1d6f   :  { %v6194_v51 = vsel %vm1534_vm4, %v6191_v27, %v6193_v19 }
0x1d70   :  { %v6211_v46 = vadd.f32 %v6194_v51, %v6177_v15  ;;  %v6094_v53 = vpop.f32.mrb[244].mxu0 }
0x1d71   :  { %v6131_v57 = vmul.f32 %v9384_v13, %v6094_v53  ;;  %v8471_v18 = vpop.f32.mrb[245].mxu0 }
0x1d72   :  { %v6097_v14 = vpop.f32.mrb[246].mxu0  ;;  %v6217_v55 = vpack.c.bf16 %v6211_v46, %v6210_v31 }
0x1d73   :  { %v6195_v8 = vrot.slane %v6131_v57, 4  ;;  %v6132_v35 = vmul.f32 %v9385_v3, %v6097_v14  ;;  %v8472_v23 = vpop.f32.mrb[247].mxu0 }
0x1d74   :  { %8481 = vmatprep.mubr.msk.bf16.mxu0 %vm261_vm0, %v6217_v55 }
0x1d75   :  { %v6196_v44 = vsel %vm1534_vm4, %v6193_v19, %v6195_v8  ;;  %v6197_v22 = vrot.slane %v6132_v35, 4 }
0x1d76   :  { %v6212_v40 = vadd.f32 %v6196_v44, %v6178_v0 }
0x1d77   :  { %v6198_v11 = vsel %vm1534_vm4, %v6195_v8, %v6197_v22 }
0x1d78   :  { %v6213_v56 = vadd.f32 %v6198_v11, %v6179_v45 }
0x1d7a   :  { %v6218_v15 = vpack.c.bf16 %v6213_v56, %v6212_v40 }
0x1d7c   :  { %8482 = vmatmul.mubr.msk.bf16.vlgmr.msra.gmra.mrb[252].mxu0 %vm261_vm0, %v6218_v15  ;;  %v8613_v15 = vld [vmem:[%s10735_s16 + $0x10] sm:$0xff]  }
0x1d7d   :  { %8489 = vmatprep.subr.bf16.mxu1 %v8613_v15 }
0x1d7e   :  { %8490 = vmatpush3.bf16.msra.mxu1 %v8613_v15 }
0x1db9   :  { %v6102_v34 = vpop.f32.mrb[248].mxu0 }
0x1dba   :  { %v6133_v48 = vmul.f32 %v9386_v54, %v6102_v34  ;;  %v8475_v58 = vpop.f32.mrb[249].mxu0 }
0x1dbb   :  { %v6105_v33 = vpop.f32.mrb[250].mxu0 }
0x1dbc   :  { %v6199_v9 = vrot.slane %v6133_v48, 4  ;;  %v6134_v59 = vmul.f32 %v9387_v50, %v6105_v33  ;;  %v8476_v25 = vpop.f32.mrb[251].mxu0 }
0x1dbe   :  { %v6200_v43 = vsel %vm1534_vm4, %v6197_v22, %v6199_v9  ;;  %v6201_v63 = vrot.slane %v6134_v59, 4 }
0x1dbf   :  { %v6214_v0 = vadd.f32 %v6200_v43, %v6180_v39 }
0x1dc0   :  { %v6202_v38 = vsel %vm1534_vm4, %v6199_v9, %v6201_v63  ;;  %v6216_v45 = vadd.f32 %v6201_v63, %v6182_v47 }
0x1dc1   :  { %v6215_v41 = vadd.f32 %v6202_v38, %v6181_v28 }
0x1dc2   :  { %v6220_v24 = vpack.c.bf16 %v6216_v45, %v6216_v45 }
0x1dc3   :  { %v6219_v10 = vpack.c.bf16 %v6215_v41, %v6214_v0 }
0x1dc5   :  { %8485 = vmatprep.mubr.msk.bf16.mxu0 %vm261_vm0, %v6219_v10 }
0x1dc6   :  { %8486 = vmatmul.mubr.msk.bf16.gmra.mrb[0].mxu0 %vm261_vm0, %v6220_v24 }
0x1e4f   :  { %v8483_v30 = vpop.f32.mrb[252].mxu0 }
0x1e50   :  { %v6285_v12 = vpop.f32.mrb[253].mxu0  ;;  %v6294_v17 = vadd.f32 %v8483_v30, %v7482_v2  ;;  %v8614_v30 = vld [vmem:[%s10735_s16 + $0x18] sm:$0xff]  }
0x1e51   :  { %v6286_v32 = vadd.f32 %v7482_v2, %v6285_v12  ;;  %v8484_v62 = vpop.f32.mrb[254].mxu0  ;;  %8491 = vmatprep.subr.bf16.mxu1 %v8614_v30 }
0x1e52   :  { %v6297_v16 = vadd.f32 %v8484_v62, %v7482_v2  ;;  %v6288_v42 = vpop.f32.mrb[255].mxu0  ;;  %v6331_v49 = vrot.slane %v6294_v17, 2  ;;  %8492 = vmatpush3.bf16.msra.mxu1 %v8614_v30 }
0x1e53   :  { %v6317_v52 = vrot.slane %v6286_v32, 2  ;;  %v6289_v39 = vadd.f32 %v7482_v2, %v6288_v42 }
0x1e54   :  { %v6333_v28 = vrot.slane %v6297_v16, 2 }
0x1e55   :  { %v6319_v47 = vadd.f32 %v6317_v52, %v6286_v32  ;;  %v6329_v27 = vrot.slane %v6289_v39, 2 }
0x1e56   :  { %v6334_v51 = vsel %vm6328_vm1, %v6331_v49, %v6333_v28 }
0x1e57   :  { %v6320_v5 = vmul.f32 0.5, %v6319_v47  ;;  %v6330_v4 = vsel %vm6328_vm1, %v6317_v52, %v6329_v27  ;;  %v6332_v21 = vsel %vm6328_vm1, %v6329_v27, %v6331_v49  ;;  %v6350_v57 = vadd.f32 %v6334_v51, %v11524_v61 }
0x1e58   :  { %v6348_v1 = vadd.f32 %v6330_v4, %v11508_v29  ;;  %v6349_v19 = vadd.f32 %v6332_v21, %v11513_v60 }
0x1e59   :  { %v6321_v31 = vadd.f32 %v6320_v5, %v10949_v36  ;;  %v6366_v29 = vsel %vm261_vm0, %v6350_v57, 0.0 }
0x1e5a   :  { %v6363_v46 = vsel %vm261_vm0, %v6349_v19, 0.0 }
0x1e5b   :  { %6364 = vadd.xlane.f32.xlu1 %v6363_v46  ;;  %v12175_v53 = vsel %vm1526_vm3, %v6321_v31, %v6348_v1 }
0x1e5c   :  { %v6360_v13 = vsel %vm261_vm0, %v12175_v53, 0.0 }
0x1e5d   :  { %6361 = vadd.xlane.f32.xlu0 %v6360_v13 }
0x1e61   :  { %6367 = vadd.xlane.f32.xlu0 %v6366_v29 }
0x1e99   :  { %v8487_v60 = vpop.f32.mrb[0].mxu0 }
0x1e9a   :  { %v6301_v36 = vpop.f32.mrb[1].mxu0  ;;  %v6310_v18 = vadd.f32 %v8487_v60, %v7482_v2 }
0x1e9b   :  { %v6302_v14 = vadd.f32 %v7482_v2, %v6301_v36  ;;  %v8488_v55 = vpop.f32.mrb[2].mxu0 }
0x1e9c   :  { %v6304_v8 = vpop.f32.mrb[3].mxu0  ;;  %v6339_v23 = vrot.slane %v6310_v18, 2  ;;  %v12218_v18 = vld [vmem:[%s10782_s12 + $0x1] ss:$0 sm:$0xff] }
0x1e9d   :  { %v6335_v3 = vrot.slane %v6302_v14, 2  ;;  %v6305_v35 = vadd.f32 %v7482_v2, %v6304_v8 }
0x1e9e   :  { %v6354_v10 = vadd.f32 %v6339_v23, %v11542_v26 }
0x1e9f   :  { %v6337_v44 = vrot.slane %v6305_v35, 2  ;;  %v6336_v22 = vsel %vm6328_vm1, %v6333_v28, %v6335_v3 }
0x1ea0   :  { %v6351_v40 = vadd.f32 %v6336_v22, %v11528_v7  ;;  %v6378_v2 = vsel %vm3018_vm7, %v6354_v10, 0.0 }
0x1ea1   :  { %v6338_v61 = vsel %vm6328_vm1, %v6335_v3, %v6337_v44  ;;  %v6340_v11 = vsel %vm6328_vm1, %v6337_v44, %v6339_v23 }
0x1ea2   :  { %v6369_v56 = vsel %vm261_vm0, %v6351_v40, 0.0  ;;  %v6352_v41 = vadd.f32 %v6338_v61, %v11538_v6  ;;  %v12202_v6 = vadd.f32 %v6340_v11, %v11545_v20 }
0x1ea3   :  { %6370 = vadd.xlane.f32.xlu1 %v6369_v56 }
0x1ea4   :  { %v6372_v24 = vsel %vm261_vm0, %v6352_v41, 0.0  ;;  %v6375_v26 = vsel %vm261_vm0, %v12202_v6, 0.0 }
0x1ee8   :  { %v6365_v34 = vpop.xlane.xlu1 %6364 }
0x1ee9   :  { %v6382_v54 = vmul.f32 0.03125, %v6365_v34 }
0x1eea   :  { %v6362_v48 = vpop.xlane.xlu0 %6361 }
0x1eeb   :  { %v6389_v58 = vsub.f32 %v6349_v19, %v6382_v54  ;;  %v6381_v33 = vmul.f32 0.03125, %v6362_v48  ;;  %v12209_v19 = vld [vmem:[%s10777_s6 + $0x1] ss:$0 sm:$0xff] }
0x1eed   :  { %v6388_v9 = vsub.f32 %v12175_v53, %v6381_v33  ;;  %v6396_v50 = vmul.f32 %v6389_v58, %v6389_v58 }
0x1eee   :  { %v6368_v59 = vpop.xlane.xlu0 %6367 }
0x1eef   :  { %v6383_v7 = vmul.f32 0.03125, %v6368_v59  ;;  %v6405_v25 = vsel %vm261_vm0, %v6396_v50, 0.0  ;;  %v6395_v43 = vmul.f32 %v6388_v9, %v6388_v9  ;;  %v8615_v59 = vld [vmem:[%s10800_s27 + $0x40] sm:$0xff]  }
0x1ef0   :  { %6406 = vadd.xlane.f32.xlu1 %v6405_v25  ;;  %8501 = vmatprep.subr.bf16.mxu0 %v8615_v59  ;;  %v8617_v25 = vld [vmem:[%s10800_s27 + $0x50] sm:$0xff]  }
0x1ef1   :  { %v12189_v63 = vsub.f32 %v6350_v57, %v6383_v7  ;;  %v6402_v0 = vsel %vm261_vm0, %v6395_v43, 0.0  ;;  %8502 = vmatpush3.bf16.msra.mxu0 %v8615_v59  ;;  %v8616_v7 = vld [vmem:[%s10800_s27 + $0x48] sm:$0xff]   ;;  %v8618_v43 = vld [vmem:[%s10800_s27 + $0x58] sm:$0xff]  }
0x1ef2   :  { %6403 = vadd.xlane.f32.xlu0 %v6402_v0  ;;  %8503 = vmatprep.subr.bf16.mxu0 %v8616_v7  ;;  %v8620_v0 = vld [vmem:[%s10800_s27 + $0x68] sm:$0xff]  }
0x1ef3   :  { %v6397_v38 = vmul.f32 %v12189_v63, %v12189_v63 }
0x1ef5   :  { %v6408_v45 = vsel %vm261_vm0, %v6397_v38, 0.0  ;;  %8504 = vmatpush3.bf16.msra.mxu0 %v8616_v7  ;;  %v8621_v38 = vld [vmem:[%s10800_s27 + $0x70] sm:$0xff]  }
0x1ef6   :  { %6409 = vadd.xlane.f32.xlu0 %v6408_v45  ;;  %8505 = vmatprep.subr.bf16.mxu0 %v8617_v25  ;;  %v8622_v45 = vld [vmem:[%s10800_s27 + $0x78] sm:$0xff]  }
0x1ef9   :  { %8506 = vmatpush3.bf16.msra.mxu0 %v8617_v25 }
0x1efa   :  { %6373 = vadd.xlane.f32.xlu0 %v6372_v24  ;;  %8507 = vmatprep.subr.bf16.mxu0 %v8618_v43 }
0x1efd   :  { %8508 = vmatpush3.bf16.msra.mxu0 %v8618_v43 }
0x1efe   :  { %6379 = vadd.xlane.f32.xlu0 %v6378_v2 }
0x1f30   :  { %v6371_v12 = vpop.xlane.xlu1 %6370 }
0x1f31   :  { %v6384_v17 = vmul.f32 0.03125, %v6371_v12 }
0x1f33   :  { %v6391_v32 = vsub.f32 %v6351_v40, %v6384_v17 }
0x1f35   :  { %v6398_v62 = vmul.f32 %v6391_v32, %v6391_v32 }
0x1f37   :  { %v6411_v16 = vsel %vm261_vm0, %v6398_v62, 0.0 }
0x1f38   :  { %6412 = vadd.xlane.f32.xlu1 %v6411_v16 }
0x1f3c   :  { %6376 = vadd.xlane.f32.xlu1 %v6375_v26 }
0x1f7d   :  { %v6407_v42 = vpop.xlane.xlu1 %6406 }
0x1f7e   :  { %v6424_v52 = vmul.f32 0.03125, %v6407_v42 }
0x1f7f   :  { %v6404_v39 = vpop.xlane.xlu0 %6403 }
0x1f80   :  { %v6431_v49 = vadd.f32 1e-05, %v6424_v52  ;;  %v6423_v47 = vmul.f32 0.03125, %v6404_v39 }
0x1f82   :  { %9141 = vrsqrt.f32 %v6431_v49  ;;  %v6430_v28 = vadd.f32 1e-05, %v6423_v47 }
0x1f83   :  { %v6410_v27 = vpop.xlane.xlu0 %6409 }
0x1f84   :  { %9143 = vrsqrt.f32 %v6430_v28  ;;  %v6425_v44 = vmul.f32 0.03125, %v6410_v27 }
0x1f86   :  { %v6432_v22 = vadd.f32 1e-05, %v6425_v44 }
0x1f87   :  { %v6374_v5 = vpop.xlane.xlu0 %6373 }
0x1f88   :  { %v6385_v4 = vmul.f32 0.03125, %v6374_v5  ;;  %9145 = vrsqrt.f32 %v6432_v22 }
0x1f8a   :  { %v12206_v20 = vsub.f32 %v6352_v41, %v6385_v4  ;;  %v12242_v41 = vld [vmem:[%s10814_s13 + $0x1] ss:$0 sm:$0xff] }
0x1f8b   :  { %v6380_v21 = vpop.xlane.xlu0 %6379 }
0x1f8c   :  { %v9142_v1 = vpop.eup %9141  ;;  %v6387_v31 = vmul.f32 0.03125, %v6380_v21  ;;  %v6399_v51 = vmul.f32 %v12206_v20, %v12206_v20 }
0x1f8d   :  { %v6445_v46 = vmul.f32 %v9142_v1, %v6389_v58 }
0x1f8e   :  { %v9144_v13 = vpop.eup %9143  ;;  %v12213_v57 = vsub.f32 %v6354_v10, %v6387_v31  ;;  %v6414_v29 = vsel %vm261_vm0, %v6399_v51, 0.0 }
0x1f8f   :  { %v6444_v60 = vmul.f32 %v9144_v13, %v6388_v9  ;;  %6415 = vadd.xlane.f32.xlu0 %v6414_v29  ;;  %v6458_v36 = vmul.f32 %v12209_v19, %v6445_v46 }
0x1f90   :  { %v6401_v14 = vmul.f32 %v12213_v57, %v12213_v57 }
0x1f91   :  { %v6457_v55 = vmul.f32 %v12209_v19, %v6444_v60  ;;  %v6471_v35 = vadd.f32 %v12218_v18, %v6458_v36 }
0x1f92   :  { %v6420_v8 = vsel %vm3018_vm7, %v6401_v14, 0.0  ;;  %v9146_v56 = vpop.eup %9145 }
0x1f93   :  { %6421 = vadd.xlane.f32.xlu0 %v6420_v8  ;;  %v6470_v3 = vadd.f32 %v12218_v18, %v6457_v55  ;;  %v6446_v15 = vmul.f32 %v9146_v56, %v12189_v63  ;;  %v8619_v63 = vld [vmem:[%s10800_s27 + $0x60] sm:$0xff]  }
0x1f94   :  { %8509 = vmatprep.subr.bf16.mxu0 %v8619_v63 }
0x1f95   :  { %v6477_v23 = vpack.c.bf16 %v6471_v35, %v6470_v3  ;;  %v6459_v54 = vmul.f32 %v12209_v19, %v6446_v15  ;;  %8510 = vmatpush3.bf16.msra.mxu0 %v8619_v63 }
0x1f96   :  { %8511 = vmatprep.subr.bf16.mxu0 %v8620_v0 }
0x1f97   :  { %8493 = vmatprep.mubr.msk.bf16.mxu1 %vm261_vm0, %v6477_v23  ;;  %v6472_v33 = vadd.f32 %v12218_v18, %v6459_v54 }
0x1f99   :  { %8512 = vmatpush3.bf16.msra.mxu0 %v8620_v0 }
0x1f9a   :  { %8513 = vmatprep.subr.bf16.mxu0 %v8621_v38 }
0x1f9d   :  { %8514 = vmatpush3.bf16.msra.mxu0 %v8621_v38 }
0x1f9e   :  { %8515 = vmatprep.subr.bf16.mxu0 %v8622_v45 }
0x1fa1   :  { %8516 = vmatpush3.bf16.msra.mxu0 %v8622_v45 }
0x1fc5   :  { %v6413_v40 = vpop.xlane.xlu1 %6412 }
0x1fc6   :  { %v6426_v61 = vmul.f32 0.03125, %v6413_v40 }
0x1fc8   :  { %v6433_v11 = vadd.f32 1e-05, %v6426_v61 }
0x1fca   :  { %9147 = vrsqrt.f32 %v6433_v11 }
0x1fd4   :  { %v9148_v34 = vpop.eup %9147 }
0x1fd5   :  { %v6447_v48 = vmul.f32 %v9148_v34, %v6391_v32 }
0x1fd7   :  { %v6460_v58 = vmul.f32 %v12209_v19, %v6447_v48 }
0x1fd9   :  { %v6473_v9 = vadd.f32 %v12218_v18, %v6460_v58 }
0x1fdb   :  { %v6478_v50 = vpack.c.bf16 %v6473_v9, %v6472_v33 }
0x1fdd   :  { %8494 = vmatmul.mubr.msk.bf16.vlgmr.msra.gmra.mrb[244].mxu1 %vm261_vm0, %v6478_v50 }
0x20b0   :  { %v8495_v10 = vpop.f32.mrb[244].mxu1 }
0x20b1   :  { %v12245_v24 = vadd.f32 %v8495_v10, %v12242_v41  ;;  %v6552_v2 = vpop.f32.mrb[245].mxu1 }
0x20b2   :  { %v12248_v30 = vadd.f32 %v12242_v41, %v6552_v2  ;;  %v8496_v12 = vpop.f32.mrb[246].mxu1 }
0x20b3   :  { %v12251_v17 = vmul.f32 0.70710677, %v12245_v24  ;;  %v12254_v32 = vadd.f32 %v8496_v12, %v12242_v41  ;;  %v6555_v62 = vpop.f32.mrb[247].mxu1 }
0x20b4   :  { %v12257_v16 = vmul.f32 0.70710677, %v12248_v30  ;;  %v12264_v52 = vadd.f32 %v12242_v41, %v6555_v62 }
0x20b5   :  { %v6612_v26 = vand.u32 2147483647, %v12251_v17  ;;  %v12261_v42 = vmul.f32 0.70710677, %v12254_v32  ;;  %vm6598_vm2 = vcmp.ge.f32.partialorder %v12251_v17, 0.0 }
0x20b6   :  { %v6610_v39 = vand.u32 2147483647, %v12257_v16  ;;  %v12269_v5 = vmul.f32 0.70710677, %v12264_v52  ;;  %vm6596_vm3 = vcmp.ge.f32.partialorder %v12257_v16, 0.0 }
0x20b7   :  { %v6619_v49 = vmul.f32 0.3275911, %v6612_v26  ;;  %v6613_v28 = vand.u32 2147483647, %v12261_v42  ;;  %v6710_v13 = vsub.f32 0.0, %v6612_v26  ;;  %vm6599_vm4 = vcmp.ge.f32.partialorder %v12261_v42, 0.0 }
0x20b8   :  { %v6617_v47 = vmul.f32 0.3275911, %v6610_v39  ;;  %v6611_v1 = vand.u32 2147483647, %v12269_v5  ;;  %v6708_v29 = vsub.f32 0.0, %v6610_v39  ;;  %v6603_v17 = vsel %vm6596_vm3, 1.0, %v9416_v37 }
0x20b9   :  { %v6626_v27 = vadd.f32 1.0, %v6619_v49  ;;  %v6620_v21 = vmul.f32 0.3275911, %v6613_v28  ;;  %v6717_v36 = vmul.f32 %v6710_v13, %v6612_v26  ;;  %v6711_v14 = vsub.f32 0.0, %v6613_v28 }
0x20ba   :  { %v6624_v4 = vadd.f32 1.0, %v6617_v47  ;;  %v6618_v51 = vmul.f32 0.3275911, %v6611_v1  ;;  %v6715_v3 = vmul.f32 %v6708_v29, %v6610_v39  ;;  %v6709_v23 = vsub.f32 0.0, %v6611_v1 }
0x20bb   :  { %9149 = vrcp.f32 %v6626_v27  ;;  %v6627_v31 = vadd.f32 1.0, %v6620_v21  ;;  %v6726_v40 = vmul.f32 1.442695, %v6717_v36  ;;  %v6718_v11 = vmul.f32 %v6711_v14, %v6613_v28 }
0x20bc   :  { %9151 = vrcp.f32 %v6624_v4  ;;  %v6625_v46 = vadd.f32 1.0, %v6618_v51  ;;  %v6722_v15 = vmul.f32 1.442695, %v6715_v3  ;;  %v6716_v58 = vmul.f32 %v6709_v23, %v6611_v1 }
0x20bd   :  { %9153 = vrcp.f32 %v6627_v31  ;;  %v6728_v7 = vmul.f32 1.442695, %v6718_v11  ;;  %vm6597_vm5 = vcmp.ge.f32.partialorder %v12269_v5, 0.0  ;;  %v6606_v16 = vsel %vm6599_vm4, 1.0, %v9416_v37 }
0x20be   :  { %9155 = vrcp.f32 %v6625_v46  ;;  %v6724_v38 = vmul.f32 1.442695, %v6716_v58 }
0x20bf   :  { %9157 = vpow2.f32 %v6726_v40  ;;  %v6605_v40 = vsel %vm6598_vm2, 1.0, %v9416_v37 }
0x20c0   :  { %9159 = vpow2.f32 %v6722_v15 }
0x20c1   :  { %9161 = vpow2.f32 %v6728_v7 }
0x20c2   :  { %9163 = vpow2.f32 %v6724_v38 }
0x20c5   :  { %v9150_v60 = vpop.eup %9149 }
0x20c6   :  { %v9152_v55 = vpop.eup %9151  ;;  %v6647_v8 = vmul.f32 1.0614054, %v9150_v60 }
0x20c7   :  { %v6645_v35 = vmul.f32 1.0614054, %v9152_v55  ;;  %v9154_v22 = vpop.eup %9153 }
0x20c8   :  { %v6654_v44 = vadd.f32 -1.4531521, %v6647_v8  ;;  %v6648_v34 = vmul.f32 1.0614054, %v9154_v22  ;;  %v9156_v54 = vpop.eup %9155 }
0x20c9   :  { %v6652_v61 = vadd.f32 -1.4531521, %v6645_v35  ;;  %v6646_v50 = vmul.f32 1.0614054, %v9156_v54  ;;  %v9158_v51 = vpop.eup %9157 }
0x20ca   :  { %v6661_v56 = vmul.f32 %v9150_v60, %v6654_v44  ;;  %v6655_v9 = vadd.f32 -1.4531521, %v6648_v34  ;;  %v9160_v13 = vpop.eup %9159 }
0x20cb   :  { %v6659_v48 = vmul.f32 %v9152_v55, %v6652_v61  ;;  %v6653_v63 = vadd.f32 -1.4531521, %v6646_v50  ;;  %v9162_v44 = vpop.eup %9161  ;;  %v6604_v50 = vsel %vm6597_vm5, 1.0, %v9416_v37 }
0x20cc   :  { %v6668_v33 = vadd.f32 1.4214138, %v6661_v56  ;;  %v6662_v43 = vmul.f32 %v9154_v22, %v6655_v9  ;;  %v9164_v56 = vpop.eup %9163  ;;  %v6584_v9 = vmul.f32 0.5, %v12245_v24  ;;  %v6377_v24 = vpop.xlane.xlu1 %6376 }
0x20cd   :  { %v6666_v59 = vadd.f32 1.4214138, %v6659_v48  ;;  %v6660_v2 = vmul.f32 %v9156_v54, %v6653_v63  ;;  %v6583_v63 = vmul.f32 0.5, %v12264_v52 }
0x20ce   :  { %v6675_v25 = vmul.f32 %v9150_v60, %v6668_v33  ;;  %v6669_v10 = vadd.f32 1.4214138, %v6662_v43 }
0x20cf   :  { %v6673_v0 = vmul.f32 %v9152_v55, %v6666_v59  ;;  %v6667_v39 = vadd.f32 1.4214138, %v6660_v2 }
0x20d0   :  { %v6682_v45 = vadd.f32 -0.28449672, %v6675_v25  ;;  %v6676_v26 = vmul.f32 %v9154_v22, %v6669_v10  ;;  %v6582_v25 = vmul.f32 0.5, %v12248_v30 }
0x20d1   :  { %v6680_v12 = vadd.f32 -0.28449672, %v6673_v0  ;;  %v6674_v27 = vmul.f32 %v9156_v54, %v6667_v39 }
0x20d2   :  { %v6689_v62 = vmul.f32 %v9150_v60, %v6682_v45  ;;  %v6683_v28 = vadd.f32 -0.28449672, %v6676_v26 }
0x20d3   :  { %v6687_v49 = vmul.f32 %v9152_v55, %v6680_v12  ;;  %v6681_v31 = vadd.f32 -0.28449672, %v6674_v27  ;;  %v6386_v12 = vmul.f32 0.03125, %v6377_v24  ;;  %v8639_v24 = vld [vmem:[%s12307_s9 + $0x68] sm:$0xff]  }
0x20d4   :  { %v6696_v47 = vadd.f32 0.2548296, %v6689_v62  ;;  %v6690_v1 = vmul.f32 %v9154_v22, %v6683_v28  ;;  %v7522_v62 = vld [vmem:[%s10945_s5 + $0x1] ss:$0 sm:$0xff] }
0x20d5   :  { %v6694_v4 = vadd.f32 0.2548296, %v6687_v49  ;;  %v6688_v14 = vmul.f32 %v9156_v54, %v6681_v31  ;;  %v6393_v39 = vsub.f32 %v12202_v6, %v6386_v12  ;;  %v8640_v12 = vld [vmem:[%s12307_s9 + $0x28] sm:$0xff]  }
0x20d6   :  { %v6703_v21 = vmul.f32 %v9150_v60, %v6696_v47  ;;  %v6697_v36 = vadd.f32 0.2548296, %v6690_v1 }
0x20d7   :  { %v6701_v46 = vmul.f32 %v9152_v55, %v6694_v4  ;;  %v6695_v23 = vadd.f32 0.2548296, %v6688_v14  ;;  %v6400_v27 = vmul.f32 %v6393_v39, %v6393_v39 }
0x20d8   :  { %v6738_v29 = vmul.f32 %v9158_v51, %v6703_v21  ;;  %v6704_v35 = vmul.f32 %v9154_v22, %v6697_v36  ;;  %v6416_v21 = vpop.xlane.xlu0 %6415 }
0x20d9   :  { %v6736_v8 = vmul.f32 %v9160_v13, %v6701_v46  ;;  %v6702_v11 = vmul.f32 %v9156_v54, %v6695_v23  ;;  %v6585_v54 = vmul.f32 0.5, %v12254_v32  ;;  %v6417_v4 = vsel %vm261_vm0, %v6400_v27, 0.0 }
0x20da   :  { %v6745_v3 = vsub.f32 1.0, %v6738_v29  ;;  %v6739_v55 = vmul.f32 %v9162_v44, %v6704_v35  ;;  %v6427_v51 = vmul.f32 0.03125, %v6416_v21 }
0x20db   :  { %v6743_v60 = vsub.f32 1.0, %v6736_v8  ;;  %v6737_v48 = vmul.f32 %v9164_v56, %v6702_v11 }
0x20dc   :  { %v6752_v61 = vmul.f32 %v6745_v3, %v6605_v40  ;;  %v6746_v34 = vsub.f32 1.0, %v6739_v55  ;;  %v6422_v1 = vpop.xlane.xlu0 %6421  ;;  %v6434_v13 = vadd.f32 1e-05, %v6427_v51 }
0x20dd   :  { %v6750_v15 = vmul.f32 %v6743_v60, %v6603_v17  ;;  %v6744_v33 = vsub.f32 1.0, %v6737_v48  ;;  %v6429_v31 = vmul.f32 0.03125, %v6422_v1 }
0x20de   :  { %v6759_v22 = vadd.f32 1.0, %v6752_v61  ;;  %v6753_v58 = vmul.f32 %v6746_v34, %v6606_v16 }
0x20df   :  { %v6757_v42 = vadd.f32 1.0, %v6750_v15  ;;  %v6751_v7 = vmul.f32 %v6744_v33, %v6604_v50  ;;  %v6436_v46 = vadd.f32 1e-05, %v6429_v31 }
0x20e0   :  { %v6760_v59 = vadd.f32 1.0, %v6753_v58  ;;  %v6766_v43 = vmul.f32 %v6759_v22, %v6584_v9  ;;  %v8623_v22 = vld [vmem:[%s7211_s22] ss:$8 sps:$4 sm:$0xff]   ;;  %v8626_v58 = vld [vmem:[%s7211_s22 + $0x10] ss:$8 sps:$4 sm:$0xff]  }
0x20e1   :  { %v6758_v0 = vadd.f32 1.0, %v6751_v7  ;;  %v6764_v38 = vmul.f32 %v6757_v42, %v6582_v25  ;;  %9165 = vrsqrt.f32 %v6436_v46  ;;  %v8629_v7 = vld [vmem:[%s12307_s9 + $0x40] sm:$0xff]  }
0x20e2   :  { %v6767_v5 = vmul.f32 %v6760_v59, %v6585_v54  ;;  %9167 = vrsqrt.f32 %v6434_v13  ;;  %v8630_v25 = vld [vmem:[%s12307_s9] sm:$0xff]  }
0x20e3   :  { %v6765_v10 = vmul.f32 %v6758_v0, %v6583_v63  ;;  %v8633_v63 = vld [vmem:[%s12307_s9 + $0x50] sm:$0xff]  }
0x20e4   :  { %v6772_v45 = vpack.c.bf16 %v6767_v5, %v6766_v43  ;;  %v8631_v43 = vld [vmem:[%s12307_s9 + $0x48] sm:$0xff]   ;;  %v8634_v0 = vld [vmem:[%s12307_s9 + $0x10] sm:$0xff]  }
0x20e5   :  { %v6771_v2 = vpack.c.bf16 %v6765_v10, %v6764_v38  ;;  %v8632_v5 = vld [vmem:[%s12307_s9 + $0x8] sm:$0xff]   ;;  %v8635_v38 = vld [vmem:[%s12307_s9 + $0x58] sm:$0xff]   ;;  %v8637_v10 = vld [vmem:[%s12307_s9 + $0x60] sm:$0xff]  }
0x20e7   :  { %8517 = vmatprep.mubr.bf16.mxu0 %v6771_v2  ;;  %v8638_v2 = vld [vmem:[%s12307_s9 + $0x20] sm:$0xff]  }
0x20e8   :  { %8518 = vmatmul.mubr.bf16.vlgmr.msra.gmra.mrb[4].mxu0 %v6772_v45  ;;  %v8636_v45 = vld [vmem:[%s12307_s9 + $0x18] sm:$0xff]  }
0x20eb   :  { %v9166_v23 = vpop.eup %9165 }
0x20ec   :  { %v9168_v44 = vpop.eup %9167  ;;  %v6450_v40 = vmul.f32 %v9166_v23, %v12213_v57  ;;  %v8625_v57 = vld [vmem:[%s7211_s22 + $0x4] ss:$8 sps:$4 sm:$0xff]  }
0x20ed   :  { %v6448_v60 = vmul.f32 %v9168_v44, %v12206_v20  ;;  %6960 = vmatprep.subr.bf16.mxu1 %v8625_v57 }
0x20ee   :  { %v6463_v55 = vmul.f32 %v12209_v19, %v6450_v40  ;;  %6961 = vmatpush1.bf16.msra.mxu1 %v8623_v22 }
0x20ef   :  { %v6461_v56 = vmul.f32 %v12209_v19, %v6448_v60 }
0x20f0   :  { %v6476_v15 = vadd.f32 %v12218_v18, %v6463_v55 }
0x20f1   :  { %v6474_v34 = vadd.f32 %v12218_v18, %v6461_v56 }
0x20f2   :  { %v6480_v20 = vpack.c.bf16 %v6476_v15, %v6476_v15 }
0x21bb   :  { %v8519_v32 = vpop.f32.mrb[4].mxu0 }
0x21bc   :  { %v6882_v26 = vpop.f32.mrb[5].mxu0 }
0x21bd   :  { %v6883_v49 = vadd.f32 %v7522_v62, %v6882_v26  ;;  %v8520_v30 = vpop.f32.mrb[6].mxu0  ;;  %v8641_v62 = vld [vmem:[%s12307_s9 + $0x70] sm:$0xff]  }
0x21be   :  { %v6885_v47 = vpop.f32.mrb[7].mxu0 }
0x21bf   :  { %v6906_v28 = vadd.f32 %v6883_v49, %v12175_v53 }
0x21c1   :  { %v6907_v52 = vsel %vm3018_vm7, %v6906_v28, 0.0 }
0x21c2   :  { %6908 = vadd.xlane.f32.xlu1 %v6907_v52 }
0x21c6   :  { %6418 = vadd.xlane.f32.xlu1 %v6417_v4 }
0x224f   :  { %v6909_v29 = vpop.xlane.xlu1 %6908 }
0x2250   :  { %v6910_v6 = vmul.f32 0.03125, %v6909_v29 }
0x2252   :  { %v6911_v36 = vsub.f32 %v6906_v28, %v6910_v6 }
0x2253   :  { %v6419_v14 = vpop.xlane.xlu1 %6418 }
0x2254   :  { %v6428_v53 = vmul.f32 0.03125, %v6419_v14  ;;  %v6912_v8 = vmul.f32 %v6911_v36, %v6911_v36  ;;  %v8643_v14 = vld [vmem:[%s12307_s9 + $0x78] sm:$0xff]  }
0x2256   :  { %v6435_v3 = vadd.f32 1e-05, %v6428_v53  ;;  %v6913_v35 = vsel %vm3018_vm7, %v6912_v8, 0.0  ;;  %v8644_v53 = vld [vmem:[%s12307_s9 + $0x38] sm:$0xff]  }
0x2257   :  { %6914 = vadd.xlane.f32.xlu1 %v6913_v35 }
0x2258   :  { %9169 = vrsqrt.f32 %v6435_v3 }
0x2262   :  { %v9170_v61 = vpop.eup %9169 }
0x2263   :  { %v6449_v11 = vmul.f32 %v9170_v61, %v6393_v39 }
0x2265   :  { %v6462_v17 = vmul.f32 %v12209_v19, %v6449_v11  ;;  %v8628_v19 = vld [vmem:[%s7211_s22 + $0x14] ss:$8 sps:$4 sm:$0xff]  }
0x2266   :  { %6962 = vmatprep.subr.bf16.mxu1 %v8628_v19 }
0x2267   :  { %v6475_v48 = vadd.f32 %v12218_v18, %v6462_v17  ;;  %6963 = vmatpush1.bf16.msra.mxu1 %v8626_v58  ;;  %v9419_v18 = vmov 0  }
0x2268   :  { %7815 = vmatprep.subr.bf16.mxu1 %v8629_v7 }
0x2269   :  { %v6479_v16 = vpack.c.bf16 %v6475_v48, %v6474_v34 }
0x226b   :  { %8497 = vmatprep.mubr.msk.bf16.mxu1 %vm261_vm0, %v6479_v16 }
0x226c   :  { %8498 = vmatmul.mubr.msk.bf16.gmra.mrb[248].mxu1 %vm261_vm0, %v6480_v20 }
0x226d   :  { %6992 = vmatprep.mubr.bf16.mxu1 %v9419_v18 }
0x22e4   :  { %v6915_v33 = vpop.xlane.xlu1 %6914 }
0x22e5   :  { %v6916_v9 = vmul.f32 0.03125, %v6915_v33 }
0x22e7   :  { %v6917_v50 = vadd.f32 1e-05, %v6916_v9 }
0x22e9   :  { %9171 = vrsqrt.f32 %v6917_v50 }
0x22f3   :  { %v9172_v42 = vpop.eup %9171 }
0x22f4   :  { %v6919_v54 = vmul.f32 %v9172_v42, %v6911_v36  ;;  %v8642_v36 = vld [vmem:[%s12307_s9 + $0x30] sm:$0xff]  }
0x22f6   :  { %v6920_v59 = vpack.c.bf16 %v6919_v54, %v6919_v54 }
0x22f8   :  { %7535 = vmatmul.mubr.msk.bf16.vlgmr.msra.gmra.mrb[252].mxu1 %vm261_vm0, %v6920_v59 }
0x22f9   :  { %7816 = vmatpush3.bf16.msra.mxu1 %v8630_v25 }
0x22fa   :  { %7817 = vmatprep.subr.bf16.mxu1 %v8631_v43 }
0x22fd   :  { %7818 = vmatpush3.bf16.msra.mxu1 %v8632_v5 }
0x22fe   :  { %7819 = vmatprep.subr.bf16.mxu1 %v8633_v63 }
0x2301   :  { %7820 = vmatpush3.bf16.msra.mxu1 %v8634_v0 }
0x2302   :  { %7821 = vmatprep.subr.bf16.mxu1 %v8635_v38 }
0x2305   :  { %7822 = vmatpush3.bf16.msra.mxu1 %v8636_v45 }
0x2306   :  { %7823 = vmatprep.subr.bf16.mxu1 %v8637_v10 }
0x2309   :  { %7824 = vmatpush3.bf16.msra.mxu1 %v8638_v2 }
0x230a   :  { %7825 = vmatprep.subr.bf16.mxu1 %v8639_v24 }
0x230d   :  { %7826 = vmatpush3.bf16.msra.mxu1 %v8640_v12 }
0x230e   :  { %7827 = vmatprep.subr.bf16.mxu1 %v8641_v62 }
0x2311   :  { %7828 = vmatpush3.bf16.msra.mxu1 %v8642_v36 }
0x2312   :  { %7829 = vmatprep.subr.bf16.mxu1 %v8643_v14 }
0x2315   :  { %7830 = vmatpush3.bf16.msra.mxu1 %v8644_v53 }
0x233f   :  { %v8499_v32 = vpop.f32.mrb[248].mxu1 }
0x2340   :  { %v12323_v26 = vadd.f32 %v8499_v32, %v12242_v41  ;;  %v6568_v39 = vpop.f32.mrb[249].mxu1 }
0x2341   :  { %v12326_v49 = vadd.f32 %v12242_v41, %v6568_v39  ;;  %v8500_v30 = vpop.f32.mrb[250].mxu1 }
0x2342   :  { %v12329_v47 = vmul.f32 0.70710677, %v12323_v26  ;;  %v6571_v28 = vpop.f32.mrb[251].mxu1 }
0x2343   :  { %v12332_v52 = vmul.f32 0.70710677, %v12326_v49  ;;  %v12335_v27 = vadd.f32 %v12242_v41, %v6571_v28  ;;  %v6586_v14 = vmul.f32 0.5, %v12326_v49 }
0x2344   :  { %v6616_v4 = vand.u32 2147483647, %v12329_v47  ;;  %vm6602_vm0 = vcmp.ge.f32.partialorder %v12329_v47, 0.0 }
0x2345   :  { %v6614_v21 = vand.u32 2147483647, %v12332_v52  ;;  %v12340_v31 = vmul.f32 0.70710677, %v12335_v27  ;;  %vm6600_vm6 = vcmp.ge.f32.partialorder %v12332_v52, 0.0  ;;  %v6587_v53 = vmul.f32 0.5, %v12335_v27 }
0x2346   :  { %v6623_v1 = vmul.f32 0.3275911, %v6616_v4  ;;  %v6714_v8 = vsub.f32 0.0, %v6616_v4 }
0x2347   :  { %v6621_v51 = vmul.f32 0.3275911, %v6614_v21  ;;  %v6615_v13 = vand.u32 2147483647, %v12340_v31  ;;  %v6712_v3 = vsub.f32 0.0, %v6614_v21  ;;  %vm6601_vm7 = vcmp.ge.f32.partialorder %v12340_v31, 0.0 }
0x2348   :  { %v6630_v46 = vadd.f32 1.0, %v6623_v1  ;;  %v6721_v23 = vmul.f32 %v6714_v8, %v6616_v4  ;;  %v6609_v4 = vsel %vm6602_vm0, 1.0, %v9416_v37 }
0x2349   :  { %v6628_v29 = vadd.f32 1.0, %v6621_v51  ;;  %v6622_v6 = vmul.f32 0.3275911, %v6615_v13  ;;  %v6713_v44 = vsub.f32 0.0, %v6615_v13  ;;  %v6719_v61 = vmul.f32 %v6712_v3, %v6614_v21 }
0x234a   :  { %9173 = vrcp.f32 %v6630_v46  ;;  %v6734_v17 = vmul.f32 1.442695, %v6721_v23  ;;  %v6607_v51 = vsel %vm6600_vm6, 1.0, %v9416_v37 }
0x234b   :  { %9175 = vrcp.f32 %v6628_v29  ;;  %v6629_v41 = vadd.f32 1.0, %v6622_v6  ;;  %v6720_v34 = vmul.f32 %v6713_v44, %v6615_v13  ;;  %v6730_v16 = vmul.f32 1.442695, %v6719_v61 }
0x234c   :  { %v6608_v6 = vsel %vm6601_vm7, 1.0, %v9416_v37 }
0x234d   :  { %9177 = vrcp.f32 %v6629_v41  ;;  %v6732_v18 = vmul.f32 1.442695, %v6720_v34  ;;  %v6588_v41 = vmul.f32 0.5, %v12323_v26 }
0x234e   :  { %9179 = vpow2.f32 %v6734_v17 }
0x234f   :  { %9181 = vpow2.f32 %v6730_v16 }
0x2350   :  { %9183 = vpow2.f32 %v6732_v18  ;;  %v7536_v18 = vld [vmem:[%s7214_s1] ss:$0 sm:$0xff] }
0x2354   :  { %v9174_v35 = vpop.eup %9173 }
0x2355   :  { %v9176_v40 = vpop.eup %9175  ;;  %v6651_v60 = vmul.f32 1.0614054, %v9174_v35 }
0x2356   :  { %v6649_v55 = vmul.f32 1.0614054, %v9176_v40 }
0x2357   :  { %v6658_v11 = vadd.f32 -1.4531521, %v6651_v60  ;;  %v9178_v56 = vpop.eup %9177  ;;  %v6925_v60 = vld [vmem:[%s7212_s3] sm:$0x3] }
0x2358   :  { %v6656_v15 = vadd.f32 -1.4531521, %v6649_v55  ;;  %v6650_v20 = vmul.f32 1.0614054, %v9178_v56  ;;  %v9180_v10 = vpop.eup %9179 }
0x2359   :  { %v6665_v48 = vmul.f32 %v9174_v35, %v6658_v11  ;;  %v9182_v24 = vpop.eup %9181 }
0x235a   :  { %v6663_v57 = vmul.f32 %v9176_v40, %v6656_v15  ;;  %v6657_v19 = vadd.f32 -1.4531521, %v6650_v20  ;;  %v9184_v28 = vpop.eup %9183 }
0x235b   :  { %v6672_v22 = vadd.f32 1.4214138, %v6665_v48 }
0x235c   :  { %v6670_v58 = vadd.f32 1.4214138, %v6663_v57  ;;  %v6664_v9 = vmul.f32 %v9178_v56, %v6657_v19 }
0x235d   :  { %v6679_v33 = vmul.f32 %v9174_v35, %v6672_v22 }
0x235e   :  { %v6677_v50 = vmul.f32 %v9176_v40, %v6670_v58  ;;  %v6671_v54 = vadd.f32 1.4214138, %v6664_v9 }
0x235f   :  { %v6686_v42 = vadd.f32 -0.28449672, %v6679_v33 }
0x2360   :  { %v6684_v59 = vadd.f32 -0.28449672, %v6677_v50  ;;  %v6678_v25 = vmul.f32 %v9178_v56, %v6671_v54 }
0x2361   :  { %v6693_v7 = vmul.f32 %v9174_v35, %v6686_v42 }
0x2362   :  { %v6691_v43 = vmul.f32 %v9176_v40, %v6684_v59  ;;  %v6685_v63 = vadd.f32 -0.28449672, %v6678_v25 }
0x2363   :  { %v6700_v5 = vadd.f32 0.2548296, %v6693_v7 }
0x2364   :  { %v6698_v0 = vadd.f32 0.2548296, %v6691_v43  ;;  %v6692_v45 = vmul.f32 %v9178_v56, %v6685_v63 }
0x2365   :  { %v6707_v38 = vmul.f32 %v9174_v35, %v6700_v5 }
0x2366   :  { %v6705_v2 = vmul.f32 %v9176_v40, %v6698_v0  ;;  %v6699_v62 = vadd.f32 0.2548296, %v6692_v45  ;;  %v6927_v40 = vlaneseq }
0x2367   :  { %v6742_v12 = vmul.f32 %v9180_v10, %v6707_v38 }
0x2368   :  { %v6740_v32 = vmul.f32 %v9182_v24, %v6705_v2  ;;  %v6706_v30 = vmul.f32 %v9178_v56, %v6699_v62  ;;  %v6928_v37 = vshrl.u32 %v6927_v40, 7 }
0x2369   :  { %v6749_v39 = vsub.f32 1.0, %v6742_v12 }
0x236a   :  { %v6747_v21 = vsub.f32 1.0, %v6740_v32  ;;  %v6741_v46 = vmul.f32 %v9184_v28, %v6706_v30  ;;  %v6929_v26 = vsub.s32 0, %v6928_v37  ;;  %v6933_v49 = vsub.s32 1, %v6928_v37 }
0x236b   :  { %v6756_v1 = vmul.f32 %v6749_v39, %v6609_v4 }
0x236c   :  { %v6754_v13 = vmul.f32 %v6747_v21, %v6607_v51  ;;  %v6748_v29 = vsub.f32 1.0, %v6741_v46  ;;  %v6930_v61 = vrot.slane %v6925_v60, %v6929_v26  ;;  %v6934_v27 = vrot.slane %v6925_v60, %v6933_v49 }
0x236d   :  { %v6763_v47 = vadd.f32 1.0, %v6756_v1 }
0x236e   :  { %v6761_v36 = vadd.f32 1.0, %v6754_v13  ;;  %v6755_v52 = vmul.f32 %v6748_v29, %v6608_v6 }
0x236f   :  { %v6770_v3 = vmul.f32 %v6763_v47, %v6588_v41 }
0x2370   :  { %v6762_v8 = vadd.f32 1.0, %v6755_v52  ;;  %v6768_v35 = vmul.f32 %v6761_v36, %v6586_v14 }
0x2371   :  { %v6774_v31 = vpack.c.bf16 %v6770_v3, %v6770_v3 }
0x2372   :  { %v6769_v23 = vmul.f32 %v6762_v8, %v6587_v53 }
0x2374   :  { %v6773_v44 = vpack.c.bf16 %v6769_v23, %v6768_v35 }
0x2376   :  { %8521 = vmatprep.mubr.bf16.mxu0 %v6773_v44 }
0x2377   :  { %8522 = vmatmul.mubr.bf16.gmra.mrb[8].mxu0 %v6774_v31 }
0x23cb   :  { %v6994_v55 = vpop.f32.mrb[252].mxu1 }
0x23cc   :  { %v6995_v11 = vadd.f32 %v6994_v55, %v6930_v61  ;;  %v6996_v56 = vpop.f32.mrb[253].mxu1 }
0x23cd   :  { %v6997_v17 = vadd.f32 %v6996_v56, %v6934_v27  ;;  %v6998_v15 = vpop.f32.mrb[254].mxu1 }
0x23ce   :  { %v6999_v34 = vpop.f32.mrb[255].mxu1  ;;  %v7001_v16 = vpack.c.bf16 %v6995_v11, %v6995_v11 }
0x23cf   :  { %v7002_v48 = vpack.c.bf16 %v6997_v17, %v6997_v17 }
0x23d1   :  { %7170 = vmatprep.mubr.bf16.mxu1 %v7002_v48 }
0x23d2   :  { %7171 = vmatmul.mubr.bf16.vlgmr.msra.gmra.mrb[0].mxu1 %v7001_v16 }
0x244a   :  { %v8523_v20 = vpop.f32.mrb[8].mxu0 }
0x244b   :  { %v6895_v57 = vpop.f32.mrb[9].mxu0 }
0x244c   :  { %v8524_v22 = vpop.f32.mrb[10].mxu0 }
0x244d   :  { %v6897_v19 = vpop.f32.mrb[11].mxu0 }
0x24a5   :  { %v7831_v58 = vpop.f32.mrb[0].mxu1 }
0x24a6   :  { %v7832_v33 = vpop.f32.mrb[1].mxu1 }
0x24a7   :  { %v7833_v9 = vadd.f32 %v7832_v33, %v7831_v58  ;;  %v7834_v50 = vpop.f32.mrb[2].mxu1 }
0x24a8   :  { %v7835_v42 = vpop.f32.mrb[3].mxu1 }
0x24a9   :  { %v7173_v54 = vadd.f32 %v7833_v9, %v7536_v18 }
0x24ab   :  { %7179 = vst.msk [vmem:[%s7215_s7] sm:$0x3] %vm7178_vm9, %v7173_v54 }

</bundles_post_ra>
